<compile_context>
chip_gen: v6e
topology: v6e:2x2x1
jax: 0.10.0
libtpu: 0.0.40
codegen_flags: <defaults>
</compile_context>

<pallas_src>
import numpy as np
import jax
import jax.numpy as jnp
from jax.experimental import pallas as pl
from jax.experimental.pallas import tpu as pltpu


# ----------------------------------------------------------------------------
# Bilinear (align_corners=False) 1-D interpolation matrix, PyTorch convention
# ----------------------------------------------------------------------------
def _interp_matrix(out_size, in_size):
    A = np.zeros((out_size, in_size), dtype=np.float32)
    scale = in_size / out_size
    for i in range(out_size):
        src = (i + 0.5) * scale - 0.5
        src = max(src, 0.0)
        i0 = min(int(np.floor(src)), in_size - 1)
        i1 = min(i0 + 1, in_size - 1)
        frac = src - i0
        A[i, i0] += 1.0 - frac
        A[i, i1] += frac
    return A


# ----------------------------------------------------------------------------
# Fused RLFB forward
# ----------------------------------------------------------------------------
def rlfb_forward(params, x):
    """x: (N, C, H, W) float32 NCHW -> (N, C, H, W)."""
    N, C, H, W = x.shape
    n_rrrb = len(params["rrrbs"])
    assert n_rrrb >= 1
    M1 = params["rrrbs"][0]["k0"].shape[0]          # RRRB mid channels (trunk)
    F = params["esa_conv1_w"].shape[0]              # ESA mid channels
    M2 = params["esa_rrrb"]["k0"].shape[0]          # ESA-RRRB mid channels

    Wp = W + 2                                       # padded row width (full res)
    L = H * Wp                                       # flat padW length (full res)
    Hs1 = H - 2                                      # ESA conv2 stride-1 valid rows
    H2, W2 = (H - 3) // 2 + 1, (W - 3) // 2 + 1      # ESA conv2 (stride 2) output
    assert H2 >= 7 and W2 >= 7, "spatial size too small for the ESA 7x7/3 pool"
    Hp, Wq = (H2 - 7) // 3 + 1, (W2 - 7) // 3 + 1    # max-pool output
    Wqp = Wq + 2
    Ls = Hp * Wqp                                    # flat padW length (pooled res)

    PB_ROWS = max(M1, F)
    LP_BIG = (H + 2) * Wp + 2                        # padded-map scratch (full res)
    LP_SMALL = (Hp + 2) * Wqp + 2                    # padded-map scratch (pooled res)

    # ---------------- trace-time constants ----------------
    A_h = _interp_matrix(H, Hp)
    A_w = _interp_matrix(W, Wq)
    Bup_np = np.zeros((Ls, H, Wp), np.float32)       # padW(pooled) -> padW(full)
    for q in range(Hp):
        for p in range(Wq):
            Bup_np[q * Wqp + p + 1, :, 1:W + 1] = np.outer(A_h[:, q], A_w[:, p])
    Bup = jnp.asarray(Bup_np.reshape(Ls, L))

    mb = np.zeros((H, Wp), np.float32); mb[:, 1:W + 1] = 1.0
    mask_big = jnp.asarray(mb.reshape(1, L))
    ms = np.zeros((Hp, Wqp), np.float32); ms[:, 1:Wq + 1] = 1.0
    mask_small = jnp.asarray(ms.reshape(1, Ls))

    # ---------------- glue: pad width by 1 (zeros) and flatten spatial --------
    xp = jnp.pad(x.astype(jnp.float32), ((0, 0), (0, 0), (0, 0), (1, 1)))
    xp = xp.reshape(N, C, L)

    # ---------------- flat parameter list (order mirrored in the kernel) ------
    flat = []
    for p in params["rrrbs"]:
        flat += [p["k0"], p["b0"], p["k1"], p["b1"], p["k2"], p["b2"]]
    flat += [params["conv_w"], params["conv_b"],
             params["esa_conv1_w"], params["esa_conv1_b"],
             params["esa_conv2_w"], params["esa_conv2_b"]]
    e = params["esa_rrrb"]
    flat += [e["k0"], e["b0"], e["k1"], e["b1"], e["k2"], e["b2"]]
    flat += [params["esa_conv4_w"], params["esa_conv4_b"]]
    const_inputs = flat + [Bup, mask_big, mask_small]

    # ---------------- kernel ----------------
    def rrrb_block(x_flat, k0, b0, k1, b1, k2, b2, pbuf, mask, h, w, act):
        """One RRRB on the flat width-padded layout.

        x_flat: (Cin, h*(w+2)) value with zero pad columns.
        Returns RRRB output in the same layout (pad columns forced back to 0).
        """
        wp = w + 2
        la = h * wp
        m = k0.shape[0]
        b0v = b0[...]
        # 1x1 expand; zero pad cols of x become exactly b0 (reference border).
        t = jnp.dot(k0[...], x_flat, preferred_element_type=jnp.float32) + b0v
        # Build the (h+2)x(w+2) padded map in scratch, stored at lane offset 1.
        b0row = jnp.broadcast_to(b0v, (m, wp))
        pbuf[:, pl.ds(1, wp)] = b0row                            # top border row
        pbuf[:, pl.ds(1 + wp, la)] = t                           # interior rows
        pbuf[:, pl.ds(1 + (h + 1) * wp, wp)] = b0row             # bottom border row
        # 3x3 valid conv as 9 lane-dense dots over shifted views of the scratch.
        acc = jnp.broadcast_to(b1[...], (m, la))                 # bias, hoisted
        for dy in range(3):
            for dx in range(3):
                acc = acc + jnp.dot(
                    k1[3 * dy + dx],
                    pbuf[:, pl.ds(dy * wp + dx, la)],
                    preferred_element_type=jnp.float32)
        z = acc + t                                              # + out_identity
        out = (jnp.dot(k2[...], z, preferred_element_type=jnp.float32)
               + b2[...] + x_flat)                               # reduce + residual
        out = jnp.where(mask > 0.5, out, 0.0)                    # zero pad columns
        if act:
            out = jnp.where(out >= 0.0, out, 0.05 * out)         # LeakyReLU(0.05)
        return out

    def kernel(*refs):
        x_ref = refs[0]
        idx = 1
        rrrb_w = []
        for _ in range(n_rrrb):
            rrrb_w.append(refs[idx:idx + 6]); idx += 6
        wc, bc = refs[idx:idx + 2]; idx += 2
        w1, b1c = refs[idx:idx + 2]; idx += 2
        w2, b2c = refs[idx:idx + 2]; idx += 2
        e_w = refs[idx:idx + 6]; idx += 6
        w4, b4 = refs[idx:idx + 2]; idx += 2
        bup_ref, mbig_ref, msmall_ref = refs[idx:idx + 3]; idx += 3
        out_ref = refs[idx]; idx += 1
        pbig, psmall, ybuf = refs[idx:idx + 3]

        mbig = mbig_ref[...]
        msmall = msmall_ref[...]
        pb_main = pbig if PB_ROWS == M1 else pbig.at[0:M1]
        pb_c1 = pbig if PB_ROWS == F else pbig.at[0:F]

        # ---- trunk: x -> act(RRRB) x n -> + shortcut -> 1x1 conv -------------
        xin = x_ref[0]                                           # (C, L)
        hcur = xin
        for wset in rrrb_w:
            hcur = rrrb_block(hcur, *wset, pb_main, mbig, H, W, True)
        s0 = hcur + xin
        yv = jnp.dot(wc[...], s0, preferred_element_type=jnp.float32) + bc[...]
        ybuf[...] = yv                                           # kept for the gate

        # ---- ESA.conv1 (1x1) -------------------------------------------------
        c1v = jnp.dot(w1[...], yv, preferred_element_type=jnp.float32) + b1c[...]
        pb_c1[:, pl.ds(0, L)] = c1v                              # stash c1_ (reused)
        pb_c1[:, pl.ds(L, 2 * Wp)] = jnp.zeros((F, 2 * Wp), jnp.float32)

        # ---- ESA.conv2 (3x3 valid) on the flat padded layout -----------------
        acc2 = jnp.broadcast_to(b2c[...], (F, Hs1 * Wp))
        for dy in range(3):
            for dx in range(3):
                acc2 = acc2 + jnp.dot(
                    w2[3 * dy + dx],
                    pb_c1[:, pl.ds(dy * Wp + dx + 1, Hs1 * Wp)],
                    preferred_element_type=jnp.float32)

        # ---- stride-2 subsample + 7x7/3 max-pool (tiny Hp x Wq result) -------
        zero1 = jnp.zeros((F, 1), jnp.float32)
        pieces = []
        for py in range(Hp):
            rm = None
            for i in range(7):                                   # window rows
                r = 6 * py + 2 * i                               # stride-2 row index
                row = acc2[:, r * Wp:(r + 1) * Wp]
                rm = row if rm is None else jnp.maximum(rm, row)
            pieces.append(zero1)
            for px in range(Wq):
                cm = None
                for j in range(7):                               # window cols
                    cidx = 6 * px + 2 * j                        # stride-2 col index
                    col = rm[:, cidx:cidx + 1]
                    cm = col if cm is None else jnp.maximum(cm, col)
                pieces.append(cm)
            pieces.append(zero1)
        pooled = jnp.concatenate(pieces, axis=1)                 # (F, Ls), zero pads

        # ---- ESA.conv3 (RRRB, no act) at pooled resolution -------------------
        r_flat = rrrb_block(pooled, *e_w, psmall, msmall, Hp, Wq, False)

        # ---- bilinear upsample (align_corners=False) as one matmul -----------
        up = jnp.dot(r_flat, bup_ref[...],
                     preferred_element_type=jnp.float32)         # (F, L)

        # ---- tail: conv4(up + c1_), sigmoid, gate -----------------------------
        s4 = up + pb_c1[:, pl.ds(0, L)]
        z4 = jnp.dot(w4[...], s4, preferred_element_type=jnp.float32) + b4[...]
        gate = 1.0 / (1.0 + jnp.exp(-z4))
        out_ref[0] = ybuf[...] * gate

    def _const_spec(a):
        nd = a.ndim
        return pl.BlockSpec(a.shape, lambda n: (0,) * nd)

    grid_spec = pltpu.PrefetchScalarGridSpec(
        num_scalar_prefetch=0,
        grid=(N,),
        in_specs=[pl.BlockSpec((1, C, L), lambda n: (n, 0, 0))]
                 + [_const_spec(a) for a in const_inputs],
        out_specs=pl.BlockSpec((1, C, L), lambda n: (n, 0, 0)),
        scratch_shapes=[pltpu.VMEM((PB_ROWS, LP_BIG), jnp.float32),   # padded map / c1_ stash
                        pltpu.VMEM((M2, LP_SMALL), jnp.float32),       # padded map (pooled)
                        pltpu.VMEM((C, L), jnp.float32)],              # y stash
    )

    out_flat = pl.pallas_call(
        kernel,
        out_shape=jax.ShapeDtypeStruct((N, C, L), jnp.float32),
        grid_spec=grid_spec,
        compiler_params=pltpu.CompilerParams(dimension_semantics=("parallel",)),
    )(xp, *const_inputs)

    return out_flat.reshape(N, C, H, Wp)[:, :, :, 1:W + 1]


# ----------------------------------------------------------------------------
# Deterministic parameter init (shapes from the PyTorch __init__)
# ----------------------------------------------------------------------------
def _init_conv(key, c_out, c_in, k):
    kw, kb = jax.random.split(key)
    fan_in = c_in * k * k
    w = jax.random.normal(kw, (c_out, c_in, k, k), jnp.float32) / np.sqrt(fan_in)
    b = jax.random.normal(kb, (c_out,), jnp.float32) * 0.05
    return w, b


def _init_rrrb(key, c, ratio=2):
    m = c * ratio
    k0, k1, k2 = jax.random.split(key, 3)
    w0, b0 = _init_conv(k0, m, c, 1)
    w1, b1 = _init_conv(k1, m, m, 3)
    w2, b2 = _init_conv(k2, c, m, 1)
    return dict(
        k0=w0.reshape(m, c), b0=b0.reshape(m, 1),
        k1=jnp.transpose(w1, (2, 3, 0, 1)).reshape(9, m, m), b1=b1.reshape(m, 1),
        k2=w2.reshape(c, m), b2=b2.reshape(c, 1),
    )


def init_rlfb(key, n_feats, n_rrrb, esa_c=16, ratio=2):
    keys = jax.random.split(key, n_rrrb + 5)
    rrrbs = [_init_rrrb(keys[i], n_feats, ratio) for i in range(n_rrrb)]
    wc, bc = _init_conv(keys[n_rrrb + 0], n_feats, n_feats, 1)
    w1, b1 = _init_conv(keys[n_rrrb + 1], esa_c, n_feats, 1)
    w2, b2 = _init_conv(keys[n_rrrb + 2], esa_c, esa_c, 3)
    rrrb3 = _init_rrrb(keys[n_rrrb + 3], esa_c, 2)
    w4, b4 = _init_conv(keys[n_rrrb + 4], n_feats, esa_c, 1)
    return dict(
        rrrbs=rrrbs,
        conv_w=wc.reshape(n_feats, n_feats), conv_b=bc.reshape(n_feats, 1),
        esa_conv1_w=w1.reshape(esa_c, n_feats), esa_conv1_b=b1.reshape(esa_c, 1),
        esa_conv2_w=jnp.transpose(w2, (2, 3, 0, 1)).reshape(9, esa_c, esa_c),
        esa_conv2_b=b2.reshape(esa_c, 1),
        esa_rrrb=rrrb3,
        esa_conv4_w=w4.reshape(n_feats, esa_c), esa_conv4_b=b4.reshape(n_feats, 1),
    )


if __name__ == "__main__":
    key = jax.random.PRNGKey(0)
    pkey, xkey = jax.random.split(key)

    n_feats, n_rrrb, esa_c = 8, 2, 16
    N, H, W = 2, 24, 24            # 24 -> conv2(stride2) 11 -> pool(7/3) 2

    params = init_rlfb(pkey, n_feats, n_rrrb, esa_c)
    x = jax.random.normal(xkey, (N, n_feats, H, W), jnp.float32)

    fwd = jax.jit(rlfb_forward)
    out = fwd(params, x)
    out = jax.block_until_ready(out)

    assert out.shape == (N, n_feats, H, W), out.shape
    assert bool(jnp.all(jnp.isfinite(out)))
    print("KERNEL_OK")
</pallas_src>

<mosaic_0001>
module attributes {stable_mosaic.version = 11 : i64} {
  func.func @kernel(%arg0: i32, %arg1: memref<1x8x624xf32, #tpu.memory_space<vmem>>, %arg2: memref<16x8xf32, #tpu.memory_space<vmem>>, %arg3: memref<16x1xf32, #tpu.memory_space<vmem>>, %arg4: memref<9x16x16xf32, #tpu.memory_space<vmem>>, %arg5: memref<16x1xf32, #tpu.memory_space<vmem>>, %arg6: memref<8x16xf32, #tpu.memory_space<vmem>>, %arg7: memref<8x1xf32, #tpu.memory_space<vmem>>, %arg8: memref<16x8xf32, #tpu.memory_space<vmem>>, %arg9: memref<16x1xf32, #tpu.memory_space<vmem>>, %arg10: memref<9x16x16xf32, #tpu.memory_space<vmem>>, %arg11: memref<16x1xf32, #tpu.memory_space<vmem>>, %arg12: memref<8x16xf32, #tpu.memory_space<vmem>>, %arg13: memref<8x1xf32, #tpu.memory_space<vmem>>, %arg14: memref<8x8xf32, #tpu.memory_space<vmem>>, %arg15: memref<8x1xf32, #tpu.memory_space<vmem>>, %arg16: memref<16x8xf32, #tpu.memory_space<vmem>>, %arg17: memref<16x1xf32, #tpu.memory_space<vmem>>, %arg18: memref<9x16x16xf32, #tpu.memory_space<vmem>>, %arg19: memref<16x1xf32, #tpu.memory_space<vmem>>, %arg20: memref<32x16xf32, #tpu.memory_space<vmem>>, %arg21: memref<32x1xf32, #tpu.memory_space<vmem>>, %arg22: memref<9x32x32xf32, #tpu.memory_space<vmem>>, %arg23: memref<32x1xf32, #tpu.memory_space<vmem>>, %arg24: memref<16x32xf32, #tpu.memory_space<vmem>>, %arg25: memref<16x1xf32, #tpu.memory_space<vmem>>, %arg26: memref<8x16xf32, #tpu.memory_space<vmem>>, %arg27: memref<8x1xf32, #tpu.memory_space<vmem>>, %arg28: memref<8x624xf32, #tpu.memory_space<vmem>>, %arg29: memref<1x624xf32, #tpu.memory_space<vmem>>, %arg30: memref<1x8xf32, #tpu.memory_space<vmem>>, %arg31: memref<1x8x624xf32, #tpu.memory_space<vmem>>, %arg32: memref<16x678xf32, #tpu.memory_space<vmem>>, %arg33: memref<32x18xf32, #tpu.memory_space<vmem>>, %arg34: memref<8x624xf32, #tpu.memory_space<vmem>>) attributes {dimension_semantics = [#tpu.dimension_semantics<parallel>], iteration_bounds = array<i64: 2>, scalar_prefetch = 0 : i64, scratch_operands = 3 : i64, tpu.core_type = #tpu.core_type<tc>, window_params = [{transform_indices = @transform_0, window_bounds = array<i64: 1, 8, 624>}, {pipeline_mode = #tpu.pipeline_mode<synchronous>, transform_indices = @transform_1, window_bounds = array<i64: 16, 8>}, {pipeline_mode = #tpu.pipeline_mode<synchronous>, transform_indices = @transform_2, window_bounds = array<i64: 16, 1>}, {pipeline_mode = #tpu.pipeline_mode<synchronous>, transform_indices = @transform_3, window_bounds = array<i64: 9, 16, 16>}, {pipeline_mode = #tpu.pipeline_mode<synchronous>, transform_indices = @transform_4, window_bounds = array<i64: 16, 1>}, {pipeline_mode = #tpu.pipeline_mode<synchronous>, transform_indices = @transform_5, window_bounds = array<i64: 8, 16>}, {pipeline_mode = #tpu.pipeline_mode<synchronous>, transform_indices = @transform_6, window_bounds = array<i64: 8, 1>}, {pipeline_mode = #tpu.pipeline_mode<synchronous>, transform_indices = @transform_7, window_bounds = array<i64: 16, 8>}, {pipeline_mode = #tpu.pipeline_mode<synchronous>, transform_indices = @transform_8, window_bounds = array<i64: 16, 1>}, {pipeline_mode = #tpu.pipeline_mode<synchronous>, transform_indices = @transform_9, window_bounds = array<i64: 9, 16, 16>}, {pipeline_mode = #tpu.pipeline_mode<synchronous>, transform_indices = @transform_10, window_bounds = array<i64: 16, 1>}, {pipeline_mode = #tpu.pipeline_mode<synchronous>, transform_indices = @transform_11, window_bounds = array<i64: 8, 16>}, {pipeline_mode = #tpu.pipeline_mode<synchronous>, transform_indices = @transform_12, window_bounds = array<i64: 8, 1>}, {pipeline_mode = #tpu.pipeline_mode<synchronous>, transform_indices = @transform_13, window_bounds = array<i64: 8, 8>}, {pipeline_mode = #tpu.pipeline_mode<synchronous>, transform_indices = @transform_14, window_bounds = array<i64: 8, 1>}, {pipeline_mode = #tpu.pipeline_mode<synchronous>, transform_indices = @transform_15, window_bounds = array<i64: 16, 8>}, {pipeline_mode = #tpu.pipeline_mode<synchronous>, transform_indices = @transform_16, window_bounds = array<i64: 16, 1>}, {pipeline_mode = #tpu.pipeline_mode<synchronous>, transform_indices = @transform_17, window_bounds = array<i64: 9, 16, 16>}, {pipeline_mode = #tpu.pipeline_mode<synchronous>, transform_indices = @transform_18, window_bounds = array<i64: 16, 1>}, {pipeline_mode = #tpu.pipeline_mode<synchronous>, transform_indices = @transform_19, window_bounds = array<i64: 32, 16>}, {pipeline_mode = #tpu.pipeline_mode<synchronous>, transform_indices = @transform_20, window_bounds = array<i64: 32, 1>}, {pipeline_mode = #tpu.pipeline_mode<synchronous>, transform_indices = @transform_21, window_bounds = array<i64: 9, 32, 32>}, {pipeline_mode = #tpu.pipeline_mode<synchronous>, transform_indices = @transform_22, window_bounds = array<i64: 32, 1>}, {pipeline_mode = #tpu.pipeline_mode<synchronous>, transform_indices = @transform_23, window_bounds = array<i64: 16, 32>}, {pipeline_mode = #tpu.pipeline_mode<synchronous>, transform_indices = @transform_24, window_bounds = array<i64: 16, 1>}, {pipeline_mode = #tpu.pipeline_mode<synchronous>, transform_indices = @transform_25, window_bounds = array<i64: 8, 16>}, {pipeline_mode = #tpu.pipeline_mode<synchronous>, transform_indices = @transform_26, window_bounds = array<i64: 8, 1>}, {pipeline_mode = #tpu.pipeline_mode<synchronous>, transform_indices = @transform_27, window_bounds = array<i64: 8, 624>}, {pipeline_mode = #tpu.pipeline_mode<synchronous>, transform_indices = @transform_28, window_bounds = array<i64: 1, 624>}, {pipeline_mode = #tpu.pipeline_mode<synchronous>, transform_indices = @transform_29, window_bounds = array<i64: 1, 8>}, {transform_indices = @transform_30, window_bounds = array<i64: 1, 8, 624>}]} {
    %c0 = arith.constant 0 : index
    %c0_0 = arith.constant 0 : index
    %0 = vector.load %arg29[%c0, %c0_0] : memref<1x624xf32, #tpu.memory_space<vmem>>, vector<1x624xf32>
    %c0_1 = arith.constant 0 : index
    %c0_2 = arith.constant 0 : index
    %1 = vector.load %arg30[%c0_1, %c0_2] : memref<1x8xf32, #tpu.memory_space<vmem>>, vector<1x8xf32>
    %c0_3 = arith.constant 0 : index
    %c0_4 = arith.constant 0 : index
    %c0_5 = arith.constant 0 : index
    %2 = vector.load %arg1[%c0_3, %c0_4, %c0_5] : memref<1x8x624xf32, #tpu.memory_space<vmem>>, vector<1x8x624xf32>
    %3 = vector.shape_cast %2 : vector<1x8x624xf32> to vector<8x624xf32>
    %c0_6 = arith.constant 0 : index
    %c0_7 = arith.constant 0 : index
    %4 = vector.load %arg3[%c0_6, %c0_7] : memref<16x1xf32, #tpu.memory_space<vmem>>, vector<16x1xf32>
    %c0_8 = arith.constant 0 : index
    %c0_9 = arith.constant 0 : index
    %5 = vector.load %arg2[%c0_8, %c0_9] : memref<16x8xf32, #tpu.memory_space<vmem>>, vector<16x8xf32>
    %cst = arith.constant dense<0.000000e+00> : vector<16x624xf32>
    %6 = tpu.matmul %5, %3, %cst {dimension_numbers = #tpu.dot_dimension_numbers<[1], [0], [0], [1], [0, 0, 1, 1], [], []>} : vector<16x8xf32>, vector<8x624xf32>, vector<16x624xf32> -> vector<16x624xf32>
    %7 = vector.broadcast %4 : vector<16x1xf32> to vector<16x624xf32>
    %8 = arith.addf %6, %7 : vector<16x624xf32>
    %9 = vector.shape_cast %4 : vector<16x1xf32> to vector<16x1xf32>
    %10 = vector.broadcast %9 : vector<16x1xf32> to vector<16x26xf32>
    %c0_10 = arith.constant 0 : index
    %c1 = arith.constant 1 : index
    %11 = vector.load %arg32[%c0_10, %c1] : memref<16x678xf32, #tpu.memory_space<vmem>>, vector<16x26xf32>
    tpu.vector_store %arg32[%c0_10, %c1], %10 {strides = array<i32>} : memref<16x678xf32, #tpu.memory_space<vmem>>, vector<16x26xf32>,
    %c0_11 = arith.constant 0 : index
    %c27 = arith.constant 27 : index
    %12 = vector.load %arg32[%c0_11, %c27] : memref<16x678xf32, #tpu.memory_space<vmem>>, vector<16x624xf32>
    tpu.vector_store %arg32[%c0_11, %c27], %8 {strides = array<i32>} : memref<16x678xf32, #tpu.memory_space<vmem>>, vector<16x624xf32>,
    %c0_12 = arith.constant 0 : index
    %c651 = arith.constant 651 : index
    %13 = vector.load %arg32[%c0_12, %c651] : memref<16x678xf32, #tpu.memory_space<vmem>>, vector<16x26xf32>
    tpu.vector_store %arg32[%c0_12, %c651], %10 {strides = array<i32>} : memref<16x678xf32, #tpu.memory_space<vmem>>, vector<16x26xf32>,
    %c0_13 = arith.constant 0 : index
    %c0_14 = arith.constant 0 : index
    %14 = vector.load %arg5[%c0_13, %c0_14] : memref<16x1xf32, #tpu.memory_space<vmem>>, vector<16x1xf32>
    %15 = vector.shape_cast %14 : vector<16x1xf32> to vector<16x1xf32>
    %16 = vector.broadcast %15 : vector<16x1xf32> to vector<16x624xf32>
    %c0_15 = arith.constant 0 : index
    %c0_16 = arith.constant 0 : index
    %c0_17 = arith.constant 0 : index
    %17 = vector.load %arg4[%c0_15, %c0_16, %c0_17] : memref<9x16x16xf32, #tpu.memory_space<vmem>>, vector<1x16x16xf32>
    %18 = vector.shape_cast %17 : vector<1x16x16xf32> to vector<16x16xf32>
    %c0_18 = arith.constant 0 : index
    %c0_19 = arith.constant 0 : index
    %19 = vector.load %arg32[%c0_18, %c0_19] : memref<16x678xf32, #tpu.memory_space<vmem>>, vector<16x624xf32>
    %cst_20 = arith.constant dense<0.000000e+00> : vector<16x624xf32>
    %20 = tpu.matmul %18, %19, %cst_20 {dimension_numbers = #tpu.dot_dimension_numbers<[1], [0], [0], [1], [0, 0, 1, 1], [], []>} : vector<16x16xf32>, vector<16x624xf32>, vector<16x624xf32> -> vector<16x624xf32>
    %21 = arith.addf %16, %20 : vector<16x624xf32>
    %c1_21 = arith.constant 1 : index
    %c0_22 = arith.constant 0 : index
    %c0_23 = arith.constant 0 : index
    %22 = vector.load %arg4[%c1_21, %c0_22, %c0_23] : memref<9x16x16xf32, #tpu.memory_space<vmem>>, vector<1x16x16xf32>
    %23 = vector.shape_cast %22 : vector<1x16x16xf32> to vector<16x16xf32>
    %c0_24 = arith.constant 0 : index
    %c1_25 = arith.constant 1 : index
    %24 = vector.load %arg32[%c0_24, %c1_25] : memref<16x678xf32, #tpu.memory_space<vmem>>, vector<16x624xf32>
    %cst_26 = arith.constant dense<0.000000e+00> : vector<16x624xf32>
    %25 = tpu.matmul %23, %24, %cst_26 {dimension_numbers = #tpu.dot_dimension_numbers<[1], [0], [0], [1], [0, 0, 1, 1], [], []>} : vector<16x16xf32>, vector<16x624xf32>, vector<16x624xf32> -> vector<16x624xf32>
    %26 = arith.addf %21, %25 : vector<16x624xf32>
    %c2 = arith.constant 2 : index
    %c0_27 = arith.constant 0 : index
    %c0_28 = arith.constant 0 : index
    %27 = vector.load %arg4[%c2, %c0_27, %c0_28] : memref<9x16x16xf32, #tpu.memory_space<vmem>>, vector<1x16x16xf32>
    %28 = vector.shape_cast %27 : vector<1x16x16xf32> to vector<16x16xf32>
    %c0_29 = arith.constant 0 : index
    %c2_30 = arith.constant 2 : index
    %29 = vector.load %arg32[%c0_29, %c2_30] : memref<16x678xf32, #tpu.memory_space<vmem>>, vector<16x624xf32>
    %cst_31 = arith.constant dense<0.000000e+00> : vector<16x624xf32>
    %30 = tpu.matmul %28, %29, %cst_31 {dimension_numbers = #tpu.dot_dimension_numbers<[1], [0], [0], [1], [0, 0, 1, 1], [], []>} : vector<16x16xf32>, vector<16x624xf32>, vector<16x624xf32> -> vector<16x624xf32>
    %31 = arith.addf %26, %30 : vector<16x624xf32>
    %c3 = arith.constant 3 : index
    %c0_32 = arith.constant 0 : index
    %c0_33 = arith.constant 0 : index
    %32 = vector.load %arg4[%c3, %c0_32, %c0_33] : memref<9x16x16xf32, #tpu.memory_space<vmem>>, vector<1x16x16xf32>
    %33 = vector.shape_cast %32 : vector<1x16x16xf32> to vector<16x16xf32>
    %c0_34 = arith.constant 0 : index
    %c26 = arith.constant 26 : index
    %34 = vector.load %arg32[%c0_34, %c26] : memref<16x678xf32, #tpu.memory_space<vmem>>, vector<16x624xf32>
    %cst_35 = arith.constant dense<0.000000e+00> : vector<16x624xf32>
    %35 = tpu.matmul %33, %34, %cst_35 {dimension_numbers = #tpu.dot_dimension_numbers<[1], [0], [0], [1], [0, 0, 1, 1], [], []>} : vector<16x16xf32>, vector<16x624xf32>, vector<16x624xf32> -> vector<16x624xf32>
    %36 = arith.addf %31, %35 : vector<16x624xf32>
    %c4 = arith.constant 4 : index
    %c0_36 = arith.constant 0 : index
    %c0_37 = arith.constant 0 : index
    %37 = vector.load %arg4[%c4, %c0_36, %c0_37] : memref<9x16x16xf32, #tpu.memory_space<vmem>>, vector<1x16x16xf32>
    %38 = vector.shape_cast %37 : vector<1x16x16xf32> to vector<16x16xf32>
    %c0_38 = arith.constant 0 : index
    %c27_39 = arith.constant 27 : index
    %39 = vector.load %arg32[%c0_38, %c27_39] : memref<16x678xf32, #tpu.memory_space<vmem>>, vector<16x624xf32>
    %cst_40 = arith.constant dense<0.000000e+00> : vector<16x624xf32>
    %40 = tpu.matmul %38, %39, %cst_40 {dimension_numbers = #tpu.dot_dimension_numbers<[1], [0], [0], [1], [0, 0, 1, 1], [], []>} : vector<16x16xf32>, vector<16x624xf32>, vector<16x624xf32> -> vector<16x624xf32>
    %41 = arith.addf %36, %40 : vector<16x624xf32>
    %c5 = arith.constant 5 : index
    %c0_41 = arith.constant 0 : index
    %c0_42 = arith.constant 0 : index
    %42 = vector.load %arg4[%c5, %c0_41, %c0_42] : memref<9x16x16xf32, #tpu.memory_space<vmem>>, vector<1x16x16xf32>
    %43 = vector.shape_cast %42 : vector<1x16x16xf32> to vector<16x16xf32>
    %c0_43 = arith.constant 0 : index
    %c28 = arith.constant 28 : index
    %44 = vector.load %arg32[%c0_43, %c28] : memref<16x678xf32, #tpu.memory_space<vmem>>, vector<16x624xf32>
    %cst_44 = arith.constant dense<0.000000e+00> : vector<16x624xf32>
    %45 = tpu.matmul %43, %44, %cst_44 {dimension_numbers = #tpu.dot_dimension_numbers<[1], [0], [0], [1], [0, 0, 1, 1], [], []>} : vector<16x16xf32>, vector<16x624xf32>, vector<16x624xf32> -> vector<16x624xf32>
    %46 = arith.addf %41, %45 : vector<16x624xf32>
    %c6 = arith.constant 6 : index
    %c0_45 = arith.constant 0 : index
    %c0_46 = arith.constant 0 : index
    %47 = vector.load %arg4[%c6, %c0_45, %c0_46] : memref<9x16x16xf32, #tpu.memory_space<vmem>>, vector<1x16x16xf32>
    %48 = vector.shape_cast %47 : vector<1x16x16xf32> to vector<16x16xf32>
    %c0_47 = arith.constant 0 : index
    %c52 = arith.constant 52 : index
    %49 = vector.load %arg32[%c0_47, %c52] : memref<16x678xf32, #tpu.memory_space<vmem>>, vector<16x624xf32>
    %cst_48 = arith.constant dense<0.000000e+00> : vector<16x624xf32>
    %50 = tpu.matmul %48, %49, %cst_48 {dimension_numbers = #tpu.dot_dimension_numbers<[1], [0], [0], [1], [0, 0, 1, 1], [], []>} : vector<16x16xf32>, vector<16x624xf32>, vector<16x624xf32> -> vector<16x624xf32>
    %51 = arith.addf %46, %50 : vector<16x624xf32>
    %c7 = arith.constant 7 : index
    %c0_49 = arith.constant 0 : index
    %c0_50 = arith.constant 0 : index
    %52 = vector.load %arg4[%c7, %c0_49, %c0_50] : memref<9x16x16xf32, #tpu.memory_space<vmem>>, vector<1x16x16xf32>
    %53 = vector.shape_cast %52 : vector<1x16x16xf32> to vector<16x16xf32>
    %c0_51 = arith.constant 0 : index
    %c53 = arith.constant 53 : index
    %54 = vector.load %arg32[%c0_51, %c53] : memref<16x678xf32, #tpu.memory_space<vmem>>, vector<16x624xf32>
    %cst_52 = arith.constant dense<0.000000e+00> : vector<16x624xf32>
    %55 = tpu.matmul %53, %54, %cst_52 {dimension_numbers = #tpu.dot_dimension_numbers<[1], [0], [0], [1], [0, 0, 1, 1], [], []>} : vector<16x16xf32>, vector<16x624xf32>, vector<16x624xf32> -> vector<16x624xf32>
    %56 = arith.addf %51, %55 : vector<16x624xf32>
    %c8 = arith.constant 8 : index
    %c0_53 = arith.constant 0 : index
    %c0_54 = arith.constant 0 : index
    %57 = vector.load %arg4[%c8, %c0_53, %c0_54] : memref<9x16x16xf32, #tpu.memory_space<vmem>>, vector<1x16x16xf32>
    %58 = vector.shape_cast %57 : vector<1x16x16xf32> to vector<16x16xf32>
    %c0_55 = arith.constant 0 : index
    %c54 = arith.constant 54 : index
    %59 = vector.load %arg32[%c0_55, %c54] : memref<16x678xf32, #tpu.memory_space<vmem>>, vector<16x624xf32>
    %cst_56 = arith.constant dense<0.000000e+00> : vector<16x624xf32>
    %60 = tpu.matmul %58, %59, %cst_56 {dimension_numbers = #tpu.dot_dimension_numbers<[1], [0], [0], [1], [0, 0, 1, 1], [], []>} : vector<16x16xf32>, vector<16x624xf32>, vector<16x624xf32> -> vector<16x624xf32>
    %61 = arith.addf %56, %60 : vector<16x624xf32>
    %62 = arith.addf %61, %8 : vector<16x624xf32>
    %c0_57 = arith.constant 0 : index
    %c0_58 = arith.constant 0 : index
    %63 = vector.load %arg6[%c0_57, %c0_58] : memref<8x16xf32, #tpu.memory_space<vmem>>, vector<8x16xf32>
    %cst_59 = arith.constant dense<0.000000e+00> : vector<8x624xf32>
    %64 = tpu.matmul %63, %62, %cst_59 {dimension_numbers = #tpu.dot_dimension_numbers<[1], [0], [0], [1], [0, 0, 1, 1], [], []>} : vector<8x16xf32>, vector<16x624xf32>, vector<8x624xf32> -> vector<8x624xf32>
    %c0_60 = arith.constant 0 : index
    %c0_61 = arith.constant 0 : index
    %65 = vector.load %arg7[%c0_60, %c0_61] : memref<8x1xf32, #tpu.memory_space<vmem>>, vector<8x1xf32>
    %66 = vector.broadcast %65 : vector<8x1xf32> to vector<8x624xf32>
    %67 = arith.addf %64, %66 : vector<8x624xf32>
    %68 = arith.addf %67, %3 : vector<8x624xf32>
    %cst_62 = arith.constant 5.000000e-01 : f32
    %69 = vector.broadcast %cst_62 : f32 to vector<1x624xf32>
    %70 = arith.cmpf ogt, %0, %69 : vector<1x624xf32>
    %cst_63 = arith.constant 0.000000e+00 : f32
    %71 = vector.shape_cast %70 : vector<1x624xi1> to vector<1x624xi1>
    %72 = vector.broadcast %71 : vector<1x624xi1> to vector<8x624xi1>
    %73 = vector.broadcast %cst_63 : f32 to vector<8x624xf32>
    %74 = arith.select %72, %68, %73 : vector<8x624xi1>, vector<8x624xf32>
    %cst_64 = arith.constant 0.000000e+00 : f32
    %75 = vector.broadcast %cst_64 : f32 to vector<8x624xf32>
    %76 = arith.cmpf oge, %74, %75 : vector<8x624xf32>
    %cst_65 = arith.constant 5.000000e-02 : f32
    %77 = vector.broadcast %cst_65 : f32 to vector<8x624xf32>
    %78 = arith.mulf %77, %74 : vector<8x624xf32>
    %79 = arith.select %76, %74, %78 : vector<8x624xi1>, vector<8x624xf32>
    %c0_66 = arith.constant 0 : index
    %c0_67 = arith.constant 0 : index
    %80 = vector.load %arg9[%c0_66, %c0_67] : memref<16x1xf32, #tpu.memory_space<vmem>>, vector<16x1xf32>
    %c0_68 = arith.constant 0 : index
    %c0_69 = arith.constant 0 : index
    %81 = vector.load %arg8[%c0_68, %c0_69] : memref<16x8xf32, #tpu.memory_space<vmem>>, vector<16x8xf32>
    %cst_70 = arith.constant dense<0.000000e+00> : vector<16x624xf32>
    %82 = tpu.matmul %81, %79, %cst_70 {dimension_numbers = #tpu.dot_dimension_numbers<[1], [0], [0], [1], [0, 0, 1, 1], [], []>} : vector<16x8xf32>, vector<8x624xf32>, vector<16x624xf32> -> vector<16x624xf32>
    %83 = vector.broadcast %80 : vector<16x1xf32> to vector<16x624xf32>
    %84 = arith.addf %82, %83 : vector<16x624xf32>
    %85 = vector.shape_cast %80 : vector<16x1xf32> to vector<16x1xf32>
    %86 = vector.broadcast %85 : vector<16x1xf32> to vector<16x26xf32>
    %c0_71 = arith.constant 0 : index
    %c1_72 = arith.constant 1 : index
    %87 = vector.load %arg32[%c0_71, %c1_72] : memref<16x678xf32, #tpu.memory_space<vmem>>, vector<16x26xf32>
    tpu.vector_store %arg32[%c0_71, %c1_72], %86 {strides = array<i32>} : memref<16x678xf32, #tpu.memory_space<vmem>>, vector<16x26xf32>,
    %c0_73 = arith.constant 0 : index
    %c27_74 = arith.constant 27 : index
    %88 = vector.load %arg32[%c0_73, %c27_74] : memref<16x678xf32, #tpu.memory_space<vmem>>, vector<16x624xf32>
    tpu.vector_store %arg32[%c0_73, %c27_74], %84 {strides = array<i32>} : memref<16x678xf32, #tpu.memory_space<vmem>>, vector<16x624xf32>,
    %c0_75 = arith.constant 0 : index
    %c651_76 = arith.constant 651 : index
    %89 = vector.load %arg32[%c0_75, %c651_76] : memref<16x678xf32, #tpu.memory_space<vmem>>, vector<16x26xf32>
    tpu.vector_store %arg32[%c0_75, %c651_76], %86 {strides = array<i32>} : memref<16x678xf32, #tpu.memory_space<vmem>>, vector<16x26xf32>,
    %c0_77 = arith.constant 0 : index
    %c0_78 = arith.constant 0 : index
    %90 = vector.load %arg11[%c0_77, %c0_78] : memref<16x1xf32, #tpu.memory_space<vmem>>, vector<16x1xf32>
    %91 = vector.shape_cast %90 : vector<16x1xf32> to vector<16x1xf32>
    %92 = vector.broadcast %91 : vector<16x1xf32> to vector<16x624xf32>
    %c0_79 = arith.constant 0 : index
    %c0_80 = arith.constant 0 : index
    %c0_81 = arith.constant 0 : index
    %93 = vector.load %arg10[%c0_79, %c0_80, %c0_81] : memref<9x16x16xf32, #tpu.memory_space<vmem>>, vector<1x16x16xf32>
    %94 = vector.shape_cast %93 : vector<1x16x16xf32> to vector<16x16xf32>
    %c0_82 = arith.constant 0 : index
    %c0_83 = arith.constant 0 : index
    %95 = vector.load %arg32[%c0_82, %c0_83] : memref<16x678xf32, #tpu.memory_space<vmem>>, vector<16x624xf32>
    %cst_84 = arith.constant dense<0.000000e+00> : vector<16x624xf32>
    %96 = tpu.matmul %94, %95, %cst_84 {dimension_numbers = #tpu.dot_dimension_numbers<[1], [0], [0], [1], [0, 0, 1, 1], [], []>} : vector<16x16xf32>, vector<16x624xf32>, vector<16x624xf32> -> vector<16x624xf32>
    %97 = arith.addf %92, %96 : vector<16x624xf32>
    %c1_85 = arith.constant 1 : index
    %c0_86 = arith.constant 0 : index
    %c0_87 = arith.constant 0 : index
    %98 = vector.load %arg10[%c1_85, %c0_86, %c0_87] : memref<9x16x16xf32, #tpu.memory_space<vmem>>, vector<1x16x16xf32>
    %99 = vector.shape_cast %98 : vector<1x16x16xf32> to vector<16x16xf32>
    %c0_88 = arith.constant 0 : index
    %c1_89 = arith.constant 1 : index
    %100 = vector.load %arg32[%c0_88, %c1_89] : memref<16x678xf32, #tpu.memory_space<vmem>>, vector<16x624xf32>
    %cst_90 = arith.constant dense<0.000000e+00> : vector<16x624xf32>
    %101 = tpu.matmul %99, %100, %cst_90 {dimension_numbers = #tpu.dot_dimension_numbers<[1], [0], [0], [1], [0, 0, 1, 1], [], []>} : vector<16x16xf32>, vector<16x624xf32>, vector<16x624xf32> -> vector<16x624xf32>
    %102 = arith.addf %97, %101 : vector<16x624xf32>
    %c2_91 = arith.constant 2 : index
    %c0_92 = arith.constant 0 : index
    %c0_93 = arith.constant 0 : index
    %103 = vector.load %arg10[%c2_91, %c0_92, %c0_93] : memref<9x16x16xf32, #tpu.memory_space<vmem>>, vector<1x16x16xf32>
    %104 = vector.shape_cast %103 : vector<1x16x16xf32> to vector<16x16xf32>
    %c0_94 = arith.constant 0 : index
    %c2_95 = arith.constant 2 : index
    %105 = vector.load %arg32[%c0_94, %c2_95] : memref<16x678xf32, #tpu.memory_space<vmem>>, vector<16x624xf32>
    %cst_96 = arith.constant dense<0.000000e+00> : vector<16x624xf32>
    %106 = tpu.matmul %104, %105, %cst_96 {dimension_numbers = #tpu.dot_dimension_numbers<[1], [0], [0], [1], [0, 0, 1, 1], [], []>} : vector<16x16xf32>, vector<16x624xf32>, vector<16x624xf32> -> vector<16x624xf32>
    %107 = arith.addf %102, %106 : vector<16x624xf32>
    %c3_97 = arith.constant 3 : index
    %c0_98 = arith.constant 0 : index
    %c0_99 = arith.constant 0 : index
    %108 = vector.load %arg10[%c3_97, %c0_98, %c0_99] : memref<9x16x16xf32, #tpu.memory_space<vmem>>, vector<1x16x16xf32>
    %109 = vector.shape_cast %108 : vector<1x16x16xf32> to vector<16x16xf32>
    %c0_100 = arith.constant 0 : index
    %c26_101 = arith.constant 26 : index
    %110 = vector.load %arg32[%c0_100, %c26_101] : memref<16x678xf32, #tpu.memory_space<vmem>>, vector<16x624xf32>
    %cst_102 = arith.constant dense<0.000000e+00> : vector<16x624xf32>
    %111 = tpu.matmul %109, %110, %cst_102 {dimension_numbers = #tpu.dot_dimension_numbers<[1], [0], [0], [1], [0, 0, 1, 1], [], []>} : vector<16x16xf32>, vector<16x624xf32>, vector<16x624xf32> -> vector<16x624xf32>
    %112 = arith.addf %107, %111 : vector<16x624xf32>
    %c4_103 = arith.constant 4 : index
    %c0_104 = arith.constant 0 : index
    %c0_105 = arith.constant 0 : index
    %113 = vector.load %arg10[%c4_103, %c0_104, %c0_105] : memref<9x16x16xf32, #tpu.memory_space<vmem>>, vector<1x16x16xf32>
    %114 = vector.shape_cast %113 : vector<1x16x16xf32> to vector<16x16xf32>
    %c0_106 = arith.constant 0 : index
    %c27_107 = arith.constant 27 : index
    %115 = vector.load %arg32[%c0_106, %c27_107] : memref<16x678xf32, #tpu.memory_space<vmem>>, vector<16x624xf32>
    %cst_108 = arith.constant dense<0.000000e+00> : vector<16x624xf32>
    %116 = tpu.matmul %114, %115, %cst_108 {dimension_numbers = #tpu.dot_dimension_numbers<[1], [0], [0], [1], [0, 0, 1, 1], [], []>} : vector<16x16xf32>, vector<16x624xf32>, vector<16x624xf32> -> vector<16x624xf32>
    %117 = arith.addf %112, %116 : vector<16x624xf32>
    %c5_109 = arith.constant 5 : index
    %c0_110 = arith.constant 0 : index
    %c0_111 = arith.constant 0 : index
    %118 = vector.load %arg10[%c5_109, %c0_110, %c0_111] : memref<9x16x16xf32, #tpu.memory_space<vmem>>, vector<1x16x16xf32>
    %119 = vector.shape_cast %118 : vector<1x16x16xf32> to vector<16x16xf32>
    %c0_112 = arith.constant 0 : index
    %c28_113 = arith.constant 28 : index
    %120 = vector.load %arg32[%c0_112, %c28_113] : memref<16x678xf32, #tpu.memory_space<vmem>>, vector<16x624xf32>
    %cst_114 = arith.constant dense<0.000000e+00> : vector<16x624xf32>
    %121 = tpu.matmul %119, %120, %cst_114 {dimension_numbers = #tpu.dot_dimension_numbers<[1], [0], [0], [1], [0, 0, 1, 1], [], []>} : vector<16x16xf32>, vector<16x624xf32>, vector<16x624xf32> -> vector<16x624xf32>
    %122 = arith.addf %117, %121 : vector<16x624xf32>
    %c6_115 = arith.constant 6 : index
    %c0_116 = arith.constant 0 : index
    %c0_117 = arith.constant 0 : index
    %123 = vector.load %arg10[%c6_115, %c0_116, %c0_117] : memref<9x16x16xf32, #tpu.memory_space<vmem>>, vector<1x16x16xf32>
    %124 = vector.shape_cast %123 : vector<1x16x16xf32> to vector<16x16xf32>
    %c0_118 = arith.constant 0 : index
    %c52_119 = arith.constant 52 : index
    %125 = vector.load %arg32[%c0_118, %c52_119] : memref<16x678xf32, #tpu.memory_space<vmem>>, vector<16x624xf32>
    %cst_120 = arith.constant dense<0.000000e+00> : vector<16x624xf32>
    %126 = tpu.matmul %124, %125, %cst_120 {dimension_numbers = #tpu.dot_dimension_numbers<[1], [0], [0], [1], [0, 0, 1, 1], [], []>} : vector<16x16xf32>, vector<16x624xf32>, vector<16x624xf32> -> vector<16x624xf32>
    %127 = arith.addf %122, %126 : vector<16x624xf32>
    %c7_121 = arith.constant 7 : index
    %c0_122 = arith.constant 0 : index
    %c0_123 = arith.constant 0 : index
    %128 = vector.load %arg10[%c7_121, %c0_122, %c0_123] : memref<9x16x16xf32, #tpu.memory_space<vmem>>, vector<1x16x16xf32>
    %129 = vector.shape_cast %128 : vector<1x16x16xf32> to vector<16x16xf32>
    %c0_124 = arith.constant 0 : index
    %c53_125 = arith.constant 53 : index
    %130 = vector.load %arg32[%c0_124, %c53_125] : memref<16x678xf32, #tpu.memory_space<vmem>>, vector<16x624xf32>
    %cst_126 = arith.constant dense<0.000000e+00> : vector<16x624xf32>
    %131 = tpu.matmul %129, %130, %cst_126 {dimension_numbers = #tpu.dot_dimension_numbers<[1], [0], [0], [1], [0, 0, 1, 1], [], []>} : vector<16x16xf32>, vector<16x624xf32>, vector<16x624xf32> -> vector<16x624xf32>
    %132 = arith.addf %127, %131 : vector<16x624xf32>
    %c8_127 = arith.constant 8 : index
    %c0_128 = arith.constant 0 : index
    %c0_129 = arith.constant 0 : index
    %133 = vector.load %arg10[%c8_127, %c0_128, %c0_129] : memref<9x16x16xf32, #tpu.memory_space<vmem>>, vector<1x16x16xf32>
    %134 = vector.shape_cast %133 : vector<1x16x16xf32> to vector<16x16xf32>
    %c0_130 = arith.constant 0 : index
    %c54_131 = arith.constant 54 : index
    %135 = vector.load %arg32[%c0_130, %c54_131] : memref<16x678xf32, #tpu.memory_space<vmem>>, vector<16x624xf32>
    %cst_132 = arith.constant dense<0.000000e+00> : vector<16x624xf32>
    %136 = tpu.matmul %134, %135, %cst_132 {dimension_numbers = #tpu.dot_dimension_numbers<[1], [0], [0], [1], [0, 0, 1, 1], [], []>} : vector<16x16xf32>, vector<16x624xf32>, vector<16x624xf32> -> vector<16x624xf32>
    %137 = arith.addf %132, %136 : vector<16x624xf32>
    %138 = arith.addf %137, %84 : vector<16x624xf32>
    %c0_133 = arith.constant 0 : index
    %c0_134 = arith.constant 0 : index
    %139 = vector.load %arg12[%c0_133, %c0_134] : memref<8x16xf32, #tpu.memory_space<vmem>>, vector<8x16xf32>
    %cst_135 = arith.constant dense<0.000000e+00> : vector<8x624xf32>
    %140 = tpu.matmul %139, %138, %cst_135 {dimension_numbers = #tpu.dot_dimension_numbers<[1], [0], [0], [1], [0, 0, 1, 1], [], []>} : vector<8x16xf32>, vector<16x624xf32>, vector<8x624xf32> -> vector<8x624xf32>
    %c0_136 = arith.constant 0 : index
    %c0_137 = arith.constant 0 : index
    %141 = vector.load %arg13[%c0_136, %c0_137] : memref<8x1xf32, #tpu.memory_space<vmem>>, vector<8x1xf32>
    %142 = vector.broadcast %141 : vector<8x1xf32> to vector<8x624xf32>
    %143 = arith.addf %140, %142 : vector<8x624xf32>
    %144 = arith.addf %143, %79 : vector<8x624xf32>
    %cst_138 = arith.constant 5.000000e-01 : f32
    %145 = vector.broadcast %cst_138 : f32 to vector<1x624xf32>
    %146 = arith.cmpf ogt, %0, %145 : vector<1x624xf32>
    %cst_139 = arith.constant 0.000000e+00 : f32
    %147 = vector.shape_cast %146 : vector<1x624xi1> to vector<1x624xi1>
    %148 = vector.broadcast %147 : vector<1x624xi1> to vector<8x624xi1>
    %149 = vector.broadcast %cst_139 : f32 to vector<8x624xf32>
    %150 = arith.select %148, %144, %149 : vector<8x624xi1>, vector<8x624xf32>
    %cst_140 = arith.constant 0.000000e+00 : f32
    %151 = vector.broadcast %cst_140 : f32 to vector<8x624xf32>
    %152 = arith.cmpf oge, %150, %151 : vector<8x624xf32>
    %cst_141 = arith.constant 5.000000e-02 : f32
    %153 = vector.broadcast %cst_141 : f32 to vector<8x624xf32>
    %154 = arith.mulf %153, %150 : vector<8x624xf32>
    %155 = arith.select %152, %150, %154 : vector<8x624xi1>, vector<8x624xf32>
    %156 = arith.addf %155, %3 : vector<8x624xf32>
    %c0_142 = arith.constant 0 : index
    %c0_143 = arith.constant 0 : index
    %157 = vector.load %arg14[%c0_142, %c0_143] : memref<8x8xf32, #tpu.memory_space<vmem>>, vector<8x8xf32>
    %cst_144 = arith.constant dense<0.000000e+00> : vector<8x624xf32>
    %158 = tpu.matmul %157, %156, %cst_144 {dimension_numbers = #tpu.dot_dimension_numbers<[1], [0], [0], [1], [0, 0, 1, 1], [], []>} : vector<8x8xf32>, vector<8x624xf32>, vector<8x624xf32> -> vector<8x624xf32>
    %c0_145 = arith.constant 0 : index
    %c0_146 = arith.constant 0 : index
    %159 = vector.load %arg15[%c0_145, %c0_146] : memref<8x1xf32, #tpu.memory_space<vmem>>, vector<8x1xf32>
    %160 = vector.broadcast %159 : vector<8x1xf32> to vector<8x624xf32>
    %161 = arith.addf %158, %160 : vector<8x624xf32>
    %c0_147 = arith.constant 0 : index
    %c0_148 = arith.constant 0 : index
    %162 = vector.load %arg34[%c0_147, %c0_148] : memref<8x624xf32, #tpu.memory_space<vmem>>, vector<8x624xf32>
    tpu.vector_store %arg34[%c0_147, %c0_148], %161 {strides = array<i32>} : memref<8x624xf32, #tpu.memory_space<vmem>>, vector<8x624xf32>,
    %c0_149 = arith.constant 0 : index
    %c0_150 = arith.constant 0 : index
    %163 = vector.load %arg16[%c0_149, %c0_150] : memref<16x8xf32, #tpu.memory_space<vmem>>, vector<16x8xf32>
    %cst_151 = arith.constant dense<0.000000e+00> : vector<16x624xf32>
    %164 = tpu.matmul %163, %161, %cst_151 {dimension_numbers = #tpu.dot_dimension_numbers<[1], [0], [0], [1], [0, 0, 1, 1], [], []>} : vector<16x8xf32>, vector<8x624xf32>, vector<16x624xf32> -> vector<16x624xf32>
    %c0_152 = arith.constant 0 : index
    %c0_153 = arith.constant 0 : index
    %165 = vector.load %arg17[%c0_152, %c0_153] : memref<16x1xf32, #tpu.memory_space<vmem>>, vector<16x1xf32>
    %166 = vector.broadcast %165 : vector<16x1xf32> to vector<16x624xf32>
    %167 = arith.addf %164, %166 : vector<16x624xf32>
    %c0_154 = arith.constant 0 : index
    %c0_155 = arith.constant 0 : index
    %168 = vector.load %arg32[%c0_154, %c0_155] : memref<16x678xf32, #tpu.memory_space<vmem>>, vector<16x624xf32>
    tpu.vector_store %arg32[%c0_154, %c0_155], %167 {strides = array<i32>} : memref<16x678xf32, #tpu.memory_space<vmem>>, vector<16x624xf32>,
    %cst_156 = arith.constant 0.000000e+00 : f32
    %169 = vector.broadcast %cst_156 : f32 to vector<16x52xf32>
    %c0_157 = arith.constant 0 : index
    %c624 = arith.constant 624 : index
    %170 = vector.load %arg32[%c0_157, %c624] : memref<16x678xf32, #tpu.memory_space<vmem>>, vector<16x52xf32>
    tpu.vector_store %arg32[%c0_157, %c624], %169 {strides = array<i32>} : memref<16x678xf32, #tpu.memory_space<vmem>>, vector<16x52xf32>,
    %c0_158 = arith.constant 0 : index
    %c0_159 = arith.constant 0 : index
    %171 = vector.load %arg19[%c0_158, %c0_159] : memref<16x1xf32, #tpu.memory_space<vmem>>, vector<16x1xf32>
    %172 = vector.shape_cast %171 : vector<16x1xf32> to vector<16x1xf32>
    %173 = vector.broadcast %172 : vector<16x1xf32> to vector<16x572xf32>
    %c0_160 = arith.constant 0 : index
    %c0_161 = arith.constant 0 : index
    %c0_162 = arith.constant 0 : index
    %174 = vector.load %arg18[%c0_160, %c0_161, %c0_162] : memref<9x16x16xf32, #tpu.memory_space<vmem>>, vector<1x16x16xf32>
    %175 = vector.shape_cast %174 : vector<1x16x16xf32> to vector<16x16xf32>
    %c0_163 = arith.constant 0 : index
    %c1_164 = arith.constant 1 : index
    %176 = vector.load %arg32[%c0_163, %c1_164] : memref<16x678xf32, #tpu.memory_space<vmem>>, vector<16x572xf32>
    %cst_165 = arith.constant dense<0.000000e+00> : vector<16x572xf32>
    %177 = tpu.matmul %175, %176, %cst_165 {dimension_numbers = #tpu.dot_dimension_numbers<[1], [0], [0], [1], [0, 0, 1, 1], [], []>} : vector<16x16xf32>, vector<16x572xf32>, vector<16x572xf32> -> vector<16x572xf32>
    %178 = arith.addf %173, %177 : vector<16x572xf32>
    %c1_166 = arith.constant 1 : index
    %c0_167 = arith.constant 0 : index
    %c0_168 = arith.constant 0 : index
    %179 = vector.load %arg18[%c1_166, %c0_167, %c0_168] : memref<9x16x16xf32, #tpu.memory_space<vmem>>, vector<1x16x16xf32>
    %180 = vector.shape_cast %179 : vector<1x16x16xf32> to vector<16x16xf32>
    %c0_169 = arith.constant 0 : index
    %c2_170 = arith.constant 2 : index
    %181 = vector.load %arg32[%c0_169, %c2_170] : memref<16x678xf32, #tpu.memory_space<vmem>>, vector<16x572xf32>
    %cst_171 = arith.constant dense<0.000000e+00> : vector<16x572xf32>
    %182 = tpu.matmul %180, %181, %cst_171 {dimension_numbers = #tpu.dot_dimension_numbers<[1], [0], [0], [1], [0, 0, 1, 1], [], []>} : vector<16x16xf32>, vector<16x572xf32>, vector<16x572xf32> -> vector<16x572xf32>
    %183 = arith.addf %178, %182 : vector<16x572xf32>
    %c2_172 = arith.constant 2 : index
    %c0_173 = arith.constant 0 : index
    %c0_174 = arith.constant 0 : index
    %184 = vector.load %arg18[%c2_172, %c0_173, %c0_174] : memref<9x16x16xf32, #tpu.memory_space<vmem>>, vector<1x16x16xf32>
    %185 = vector.shape_cast %184 : vector<1x16x16xf32> to vector<16x16xf32>
    %c0_175 = arith.constant 0 : index
    %c3_176 = arith.constant 3 : index
    %186 = vector.load %arg32[%c0_175, %c3_176] : memref<16x678xf32, #tpu.memory_space<vmem>>, vector<16x572xf32>
    %cst_177 = arith.constant dense<0.000000e+00> : vector<16x572xf32>
    %187 = tpu.matmul %185, %186, %cst_177 {dimension_numbers = #tpu.dot_dimension_numbers<[1], [0], [0], [1], [0, 0, 1, 1], [], []>} : vector<16x16xf32>, vector<16x572xf32>, vector<16x572xf32> -> vector<16x572xf32>
    %188 = arith.addf %183, %187 : vector<16x572xf32>
    %c3_178 = arith.constant 3 : index
    %c0_179 = arith.constant 0 : index
    %c0_180 = arith.constant 0 : index
    %189 = vector.load %arg18[%c3_178, %c0_179, %c0_180] : memref<9x16x16xf32, #tpu.memory_space<vmem>>, vector<1x16x16xf32>
    %190 = vector.shape_cast %189 : vector<1x16x16xf32> to vector<16x16xf32>
    %c0_181 = arith.constant 0 : index
    %c27_182 = arith.constant 27 : index
    %191 = vector.load %arg32[%c0_181, %c27_182] : memref<16x678xf32, #tpu.memory_space<vmem>>, vector<16x572xf32>
    %cst_183 = arith.constant dense<0.000000e+00> : vector<16x572xf32>
    %192 = tpu.matmul %190, %191, %cst_183 {dimension_numbers = #tpu.dot_dimension_numbers<[1], [0], [0], [1], [0, 0, 1, 1], [], []>} : vector<16x16xf32>, vector<16x572xf32>, vector<16x572xf32> -> vector<16x572xf32>
    %193 = arith.addf %188, %192 : vector<16x572xf32>
    %c4_184 = arith.constant 4 : index
    %c0_185 = arith.constant 0 : index
    %c0_186 = arith.constant 0 : index
    %194 = vector.load %arg18[%c4_184, %c0_185, %c0_186] : memref<9x16x16xf32, #tpu.memory_space<vmem>>, vector<1x16x16xf32>
    %195 = vector.shape_cast %194 : vector<1x16x16xf32> to vector<16x16xf32>
    %c0_187 = arith.constant 0 : index
    %c28_188 = arith.constant 28 : index
    %196 = vector.load %arg32[%c0_187, %c28_188] : memref<16x678xf32, #tpu.memory_space<vmem>>, vector<16x572xf32>
    %cst_189 = arith.constant dense<0.000000e+00> : vector<16x572xf32>
    %197 = tpu.matmul %195, %196, %cst_189 {dimension_numbers = #tpu.dot_dimension_numbers<[1], [0], [0], [1], [0, 0, 1, 1], [], []>} : vector<16x16xf32>, vector<16x572xf32>, vector<16x572xf32> -> vector<16x572xf32>
    %198 = arith.addf %193, %197 : vector<16x572xf32>
    %c5_190 = arith.constant 5 : index
    %c0_191 = arith.constant 0 : index
    %c0_192 = arith.constant 0 : index
    %199 = vector.load %arg18[%c5_190, %c0_191, %c0_192] : memref<9x16x16xf32, #tpu.memory_space<vmem>>, vector<1x16x16xf32>
    %200 = vector.shape_cast %199 : vector<1x16x16xf32> to vector<16x16xf32>
    %c0_193 = arith.constant 0 : index
    %c29 = arith.constant 29 : index
    %201 = vector.load %arg32[%c0_193, %c29] : memref<16x678xf32, #tpu.memory_space<vmem>>, vector<16x572xf32>
    %cst_194 = arith.constant dense<0.000000e+00> : vector<16x572xf32>
    %202 = tpu.matmul %200, %201, %cst_194 {dimension_numbers = #tpu.dot_dimension_numbers<[1], [0], [0], [1], [0, 0, 1, 1], [], []>} : vector<16x16xf32>, vector<16x572xf32>, vector<16x572xf32> -> vector<16x572xf32>
    %203 = arith.addf %198, %202 : vector<16x572xf32>
    %c6_195 = arith.constant 6 : index
    %c0_196 = arith.constant 0 : index
    %c0_197 = arith.constant 0 : index
    %204 = vector.load %arg18[%c6_195, %c0_196, %c0_197] : memref<9x16x16xf32, #tpu.memory_space<vmem>>, vector<1x16x16xf32>
    %205 = vector.shape_cast %204 : vector<1x16x16xf32> to vector<16x16xf32>
    %c0_198 = arith.constant 0 : index
    %c53_199 = arith.constant 53 : index
    %206 = vector.load %arg32[%c0_198, %c53_199] : memref<16x678xf32, #tpu.memory_space<vmem>>, vector<16x572xf32>
    %cst_200 = arith.constant dense<0.000000e+00> : vector<16x572xf32>
    %207 = tpu.matmul %205, %206, %cst_200 {dimension_numbers = #tpu.dot_dimension_numbers<[1], [0], [0], [1], [0, 0, 1, 1], [], []>} : vector<16x16xf32>, vector<16x572xf32>, vector<16x572xf32> -> vector<16x572xf32>
    %208 = arith.addf %203, %207 : vector<16x572xf32>
    %c7_201 = arith.constant 7 : index
    %c0_202 = arith.constant 0 : index
    %c0_203 = arith.constant 0 : index
    %209 = vector.load %arg18[%c7_201, %c0_202, %c0_203] : memref<9x16x16xf32, #tpu.memory_space<vmem>>, vector<1x16x16xf32>
    %210 = vector.shape_cast %209 : vector<1x16x16xf32> to vector<16x16xf32>
    %c0_204 = arith.constant 0 : index
    %c54_205 = arith.constant 54 : index
    %211 = vector.load %arg32[%c0_204, %c54_205] : memref<16x678xf32, #tpu.memory_space<vmem>>, vector<16x572xf32>
    %cst_206 = arith.constant dense<0.000000e+00> : vector<16x572xf32>
    %212 = tpu.matmul %210, %211, %cst_206 {dimension_numbers = #tpu.dot_dimension_numbers<[1], [0], [0], [1], [0, 0, 1, 1], [], []>} : vector<16x16xf32>, vector<16x572xf32>, vector<16x572xf32> -> vector<16x572xf32>
    %213 = arith.addf %208, %212 : vector<16x572xf32>
    %c8_207 = arith.constant 8 : index
    %c0_208 = arith.constant 0 : index
    %c0_209 = arith.constant 0 : index
    %214 = vector.load %arg18[%c8_207, %c0_208, %c0_209] : memref<9x16x16xf32, #tpu.memory_space<vmem>>, vector<1x16x16xf32>
    %215 = vector.shape_cast %214 : vector<1x16x16xf32> to vector<16x16xf32>
    %c0_210 = arith.constant 0 : index
    %c55 = arith.constant 55 : index
    %216 = vector.load %arg32[%c0_210, %c55] : memref<16x678xf32, #tpu.memory_space<vmem>>, vector<16x572xf32>
    %cst_211 = arith.constant dense<0.000000e+00> : vector<16x572xf32>
    %217 = tpu.matmul %215, %216, %cst_211 {dimension_numbers = #tpu.dot_dimension_numbers<[1], [0], [0], [1], [0, 0, 1, 1], [], []>} : vector<16x16xf32>, vector<16x572xf32>, vector<16x572xf32> -> vector<16x572xf32>
    %218 = arith.addf %213, %217 : vector<16x572xf32>
    %cst_212 = arith.constant 0.000000e+00 : f32
    %219 = vector.broadcast %cst_212 : f32 to vector<16x1xf32>
    %220 = vector.extract_strided_slice %218 {offsets = [0, 0], sizes = [16, 26], strides = [1, 1]} : vector<16x572xf32> to vector<16x26xf32>
    %221 = vector.extract_strided_slice %218 {offsets = [0, 52], sizes = [16, 26], strides = [1, 1]} : vector<16x572xf32> to vector<16x26xf32>
    %222 = arith.maximumf %220, %221 : vector<16x26xf32>
    %223 = vector.extract_strided_slice %218 {offsets = [0, 104], sizes = [16, 26], strides = [1, 1]} : vector<16x572xf32> to vector<16x26xf32>
    %224 = arith.maximumf %222, %223 : vector<16x26xf32>
    %225 = vector.extract_strided_slice %218 {offsets = [0, 156], sizes = [16, 26], strides = [1, 1]} : vector<16x572xf32> to vector<16x26xf32>
    %226 = arith.maximumf %224, %225 : vector<16x26xf32>
    %227 = vector.extract_strided_slice %218 {offsets = [0, 208], sizes = [16, 26], strides = [1, 1]} : vector<16x572xf32> to vector<16x26xf32>
    %228 = arith.maximumf %226, %227 : vector<16x26xf32>
    %229 = vector.extract_strided_slice %218 {offsets = [0, 260], sizes = [16, 26], strides = [1, 1]} : vector<16x572xf32> to vector<16x26xf32>
    %230 = arith.maximumf %228, %229 : vector<16x26xf32>
    %231 = vector.extract_strided_slice %218 {offsets = [0, 312], sizes = [16, 26], strides = [1, 1]} : vector<16x572xf32> to vector<16x26xf32>
    %232 = arith.maximumf %230, %231 : vector<16x26xf32>
    %233 = vector.extract_strided_slice %232 {offsets = [0, 0], sizes = [16, 1], strides = [1, 1]} : vector<16x26xf32> to vector<16x1xf32>
    %234 = vector.extract_strided_slice %232 {offsets = [0, 2], sizes = [16, 1], strides = [1, 1]} : vector<16x26xf32> to vector<16x1xf32>
    %235 = arith.maximumf %233, %234 : vector<16x1xf32>
    %236 = vector.extract_strided_slice %232 {offsets = [0, 4], sizes = [16, 1], strides = [1, 1]} : vector<16x26xf32> to vector<16x1xf32>
    %237 = arith.maximumf %235, %236 : vector<16x1xf32>
    %238 = vector.extract_strided_slice %232 {offsets = [0, 6], sizes = [16, 1], strides = [1, 1]} : vector<16x26xf32> to vector<16x1xf32>
    %239 = arith.maximumf %237, %238 : vector<16x1xf32>
    %240 = vector.extract_strided_slice %232 {offsets = [0, 8], sizes = [16, 1], strides = [1, 1]} : vector<16x26xf32> to vector<16x1xf32>
    %241 = arith.maximumf %239, %240 : vector<16x1xf32>
    %242 = vector.extract_strided_slice %232 {offsets = [0, 10], sizes = [16, 1], strides = [1, 1]} : vector<16x26xf32> to vector<16x1xf32>
    %243 = arith.maximumf %241, %242 : vector<16x1xf32>
    %244 = vector.extract_strided_slice %232 {offsets = [0, 12], sizes = [16, 1], strides = [1, 1]} : vector<16x26xf32> to vector<16x1xf32>
    %245 = arith.maximumf %243, %244 : vector<16x1xf32>
    %246 = vector.extract_strided_slice %232 {offsets = [0, 6], sizes = [16, 1], strides = [1, 1]} : vector<16x26xf32> to vector<16x1xf32>
    %247 = vector.extract_strided_slice %232 {offsets = [0, 8], sizes = [16, 1], strides = [1, 1]} : vector<16x26xf32> to vector<16x1xf32>
    %248 = arith.maximumf %246, %247 : vector<16x1xf32>
    %249 = vector.extract_strided_slice %232 {offsets = [0, 10], sizes = [16, 1], strides = [1, 1]} : vector<16x26xf32> to vector<16x1xf32>
    %250 = arith.maximumf %248, %249 : vector<16x1xf32>
    %251 = vector.extract_strided_slice %232 {offsets = [0, 12], sizes = [16, 1], strides = [1, 1]} : vector<16x26xf32> to vector<16x1xf32>
    %252 = arith.maximumf %250, %251 : vector<16x1xf32>
    %253 = vector.extract_strided_slice %232 {offsets = [0, 14], sizes = [16, 1], strides = [1, 1]} : vector<16x26xf32> to vector<16x1xf32>
    %254 = arith.maximumf %252, %253 : vector<16x1xf32>
    %255 = vector.extract_strided_slice %232 {offsets = [0, 16], sizes = [16, 1], strides = [1, 1]} : vector<16x26xf32> to vector<16x1xf32>
    %256 = arith.maximumf %254, %255 : vector<16x1xf32>
    %257 = vector.extract_strided_slice %232 {offsets = [0, 18], sizes = [16, 1], strides = [1, 1]} : vector<16x26xf32> to vector<16x1xf32>
    %258 = arith.maximumf %256, %257 : vector<16x1xf32>
    %259 = vector.extract_strided_slice %218 {offsets = [0, 156], sizes = [16, 26], strides = [1, 1]} : vector<16x572xf32> to vector<16x26xf32>
    %260 = vector.extract_strided_slice %218 {offsets = [0, 208], sizes = [16, 26], strides = [1, 1]} : vector<16x572xf32> to vector<16x26xf32>
    %261 = arith.maximumf %259, %260 : vector<16x26xf32>
    %262 = vector.extract_strided_slice %218 {offsets = [0, 260], sizes = [16, 26], strides = [1, 1]} : vector<16x572xf32> to vector<16x26xf32>
    %263 = arith.maximumf %261, %262 : vector<16x26xf32>
    %264 = vector.extract_strided_slice %218 {offsets = [0, 312], sizes = [16, 26], strides = [1, 1]} : vector<16x572xf32> to vector<16x26xf32>
    %265 = arith.maximumf %263, %264 : vector<16x26xf32>
    %266 = vector.extract_strided_slice %218 {offsets = [0, 364], sizes = [16, 26], strides = [1, 1]} : vector<16x572xf32> to vector<16x26xf32>
    %267 = arith.maximumf %265, %266 : vector<16x26xf32>
    %268 = vector.extract_strided_slice %218 {offsets = [0, 416], sizes = [16, 26], strides = [1, 1]} : vector<16x572xf32> to vector<16x26xf32>
    %269 = arith.maximumf %267, %268 : vector<16x26xf32>
    %270 = vector.extract_strided_slice %218 {offsets = [0, 468], sizes = [16, 26], strides = [1, 1]} : vector<16x572xf32> to vector<16x26xf32>
    %271 = arith.maximumf %269, %270 : vector<16x26xf32>
    %272 = vector.extract_strided_slice %271 {offsets = [0, 0], sizes = [16, 1], strides = [1, 1]} : vector<16x26xf32> to vector<16x1xf32>
    %273 = vector.extract_strided_slice %271 {offsets = [0, 2], sizes = [16, 1], strides = [1, 1]} : vector<16x26xf32> to vector<16x1xf32>
    %274 = arith.maximumf %272, %273 : vector<16x1xf32>
    %275 = vector.extract_strided_slice %271 {offsets = [0, 4], sizes = [16, 1], strides = [1, 1]} : vector<16x26xf32> to vector<16x1xf32>
    %276 = arith.maximumf %274, %275 : vector<16x1xf32>
    %277 = vector.extract_strided_slice %271 {offsets = [0, 6], sizes = [16, 1], strides = [1, 1]} : vector<16x26xf32> to vector<16x1xf32>
    %278 = arith.maximumf %276, %277 : vector<16x1xf32>
    %279 = vector.extract_strided_slice %271 {offsets = [0, 8], sizes = [16, 1], strides = [1, 1]} : vector<16x26xf32> to vector<16x1xf32>
    %280 = arith.maximumf %278, %279 : vector<16x1xf32>
    %281 = vector.extract_strided_slice %271 {offsets = [0, 10], sizes = [16, 1], strides = [1, 1]} : vector<16x26xf32> to vector<16x1xf32>
    %282 = arith.maximumf %280, %281 : vector<16x1xf32>
    %283 = vector.extract_strided_slice %271 {offsets = [0, 12], sizes = [16, 1], strides = [1, 1]} : vector<16x26xf32> to vector<16x1xf32>
    %284 = arith.maximumf %282, %283 : vector<16x1xf32>
    %285 = vector.extract_strided_slice %271 {offsets = [0, 6], sizes = [16, 1], strides = [1, 1]} : vector<16x26xf32> to vector<16x1xf32>
    %286 = vector.extract_strided_slice %271 {offsets = [0, 8], sizes = [16, 1], strides = [1, 1]} : vector<16x26xf32> to vector<16x1xf32>
    %287 = arith.maximumf %285, %286 : vector<16x1xf32>
    %288 = vector.extract_strided_slice %271 {offsets = [0, 10], sizes = [16, 1], strides = [1, 1]} : vector<16x26xf32> to vector<16x1xf32>
    %289 = arith.maximumf %287, %288 : vector<16x1xf32>
    %290 = vector.extract_strided_slice %271 {offsets = [0, 12], sizes = [16, 1], strides = [1, 1]} : vector<16x26xf32> to vector<16x1xf32>
    %291 = arith.maximumf %289, %290 : vector<16x1xf32>
    %292 = vector.extract_strided_slice %271 {offsets = [0, 14], sizes = [16, 1], strides = [1, 1]} : vector<16x26xf32> to vector<16x1xf32>
    %293 = arith.maximumf %291, %292 : vector<16x1xf32>
    %294 = vector.extract_strided_slice %271 {offsets = [0, 16], sizes = [16, 1], strides = [1, 1]} : vector<16x26xf32> to vector<16x1xf32>
    %295 = arith.maximumf %293, %294 : vector<16x1xf32>
    %296 = vector.extract_strided_slice %271 {offsets = [0, 18], sizes = [16, 1], strides = [1, 1]} : vector<16x26xf32> to vector<16x1xf32>
    %297 = arith.maximumf %295, %296 : vector<16x1xf32>
    %298 = tpu.concatenate %219, %245, %258, %219, %219, %284, %297, %219 in 1 : vector<16x1xf32>, vector<16x1xf32>, vector<16x1xf32>, vector<16x1xf32>, vector<16x1xf32>, vector<16x1xf32>, vector<16x1xf32>, vector<16x1xf32> -> vector<16x8xf32>
    %c0_213 = arith.constant 0 : index
    %c0_214 = arith.constant 0 : index
    %299 = vector.load %arg21[%c0_213, %c0_214] : memref<32x1xf32, #tpu.memory_space<vmem>>, vector<32x1xf32>
    %c0_215 = arith.constant 0 : index
    %c0_216 = arith.constant 0 : index
    %300 = vector.load %arg20[%c0_215, %c0_216] : memref<32x16xf32, #tpu.memory_space<vmem>>, vector<32x16xf32>
    %cst_217 = arith.constant dense<0.000000e+00> : vector<32x8xf32>
    %301 = tpu.matmul %300, %298, %cst_217 {dimension_numbers = #tpu.dot_dimension_numbers<[1], [0], [0], [1], [0, 0, 1, 1], [], []>} : vector<32x16xf32>, vector<16x8xf32>, vector<32x8xf32> -> vector<32x8xf32>
    %302 = vector.broadcast %299 : vector<32x1xf32> to vector<32x8xf32>
    %303 = arith.addf %301, %302 : vector<32x8xf32>
    %304 = vector.shape_cast %299 : vector<32x1xf32> to vector<32x1xf32>
    %305 = vector.broadcast %304 : vector<32x1xf32> to vector<32x4xf32>
    %c0_218 = arith.constant 0 : index
    %c1_219 = arith.constant 1 : index
    %306 = vector.load %arg33[%c0_218, %c1_219] : memref<32x18xf32, #tpu.memory_space<vmem>>, vector<32x4xf32>
    tpu.vector_store %arg33[%c0_218, %c1_219], %305 {strides = array<i32>} : memref<32x18xf32, #tpu.memory_space<vmem>>, vector<32x4xf32>,
    %c0_220 = arith.constant 0 : index
    %c5_221 = arith.constant 5 : index
    %307 = vector.load %arg33[%c0_220, %c5_221] : memref<32x18xf32, #tpu.memory_space<vmem>>, vector<32x8xf32>
    tpu.vector_store %arg33[%c0_220, %c5_221], %303 {strides = array<i32>} : memref<32x18xf32, #tpu.memory_space<vmem>>, vector<32x8xf32>,
    %c0_222 = arith.constant 0 : index
    %c13 = arith.constant 13 : index
    %308 = vector.load %arg33[%c0_222, %c13] : memref<32x18xf32, #tpu.memory_space<vmem>>, vector<32x4xf32>
    tpu.vector_store %arg33[%c0_222, %c13], %305 {strides = array<i32>} : memref<32x18xf32, #tpu.memory_space<vmem>>, vector<32x4xf32>,
    %c0_223 = arith.constant 0 : index
    %c0_224 = arith.constant 0 : index
    %309 = vector.load %arg23[%c0_223, %c0_224] : memref<32x1xf32, #tpu.memory_space<vmem>>, vector<32x1xf32>
    %310 = vector.shape_cast %309 : vector<32x1xf32> to vector<32x1xf32>
    %311 = vector.broadcast %310 : vector<32x1xf32> to vector<32x8xf32>
    %c0_225 = arith.constant 0 : index
    %c0_226 = arith.constant 0 : index
    %c0_227 = arith.constant 0 : index
    %312 = vector.load %arg22[%c0_225, %c0_226, %c0_227] : memref<9x32x32xf32, #tpu.memory_space<vmem>>, vector<1x32x32xf32>
    %313 = vector.shape_cast %312 : vector<1x32x32xf32> to vector<32x32xf32>
    %c0_228 = arith.constant 0 : index
    %c0_229 = arith.constant 0 : index
    %314 = vector.load %arg33[%c0_228, %c0_229] : memref<32x18xf32, #tpu.memory_space<vmem>>, vector<32x8xf32>
    %cst_230 = arith.constant dense<0.000000e+00> : vector<32x8xf32>
    %315 = tpu.matmul %313, %314, %cst_230 {dimension_numbers = #tpu.dot_dimension_numbers<[1], [0], [0], [1], [0, 0, 1, 1], [], []>} : vector<32x32xf32>, vector<32x8xf32>, vector<32x8xf32> -> vector<32x8xf32>
    %316 = arith.addf %311, %315 : vector<32x8xf32>
    %c1_231 = arith.constant 1 : index
    %c0_232 = arith.constant 0 : index
    %c0_233 = arith.constant 0 : index
    %317 = vector.load %arg22[%c1_231, %c0_232, %c0_233] : memref<9x32x32xf32, #tpu.memory_space<vmem>>, vector<1x32x32xf32>
    %318 = vector.shape_cast %317 : vector<1x32x32xf32> to vector<32x32xf32>
    %c0_234 = arith.constant 0 : index
    %c1_235 = arith.constant 1 : index
    %319 = vector.load %arg33[%c0_234, %c1_235] : memref<32x18xf32, #tpu.memory_space<vmem>>, vector<32x8xf32>
    %cst_236 = arith.constant dense<0.000000e+00> : vector<32x8xf32>
    %320 = tpu.matmul %318, %319, %cst_236 {dimension_numbers = #tpu.dot_dimension_numbers<[1], [0], [0], [1], [0, 0, 1, 1], [], []>} : vector<32x32xf32>, vector<32x8xf32>, vector<32x8xf32> -> vector<32x8xf32>
    %321 = arith.addf %316, %320 : vector<32x8xf32>
    %c2_237 = arith.constant 2 : index
    %c0_238 = arith.constant 0 : index
    %c0_239 = arith.constant 0 : index
    %322 = vector.load %arg22[%c2_237, %c0_238, %c0_239] : memref<9x32x32xf32, #tpu.memory_space<vmem>>, vector<1x32x32xf32>
    %323 = vector.shape_cast %322 : vector<1x32x32xf32> to vector<32x32xf32>
    %c0_240 = arith.constant 0 : index
    %c2_241 = arith.constant 2 : index
    %324 = vector.load %arg33[%c0_240, %c2_241] : memref<32x18xf32, #tpu.memory_space<vmem>>, vector<32x8xf32>
    %cst_242 = arith.constant dense<0.000000e+00> : vector<32x8xf32>
    %325 = tpu.matmul %323, %324, %cst_242 {dimension_numbers = #tpu.dot_dimension_numbers<[1], [0], [0], [1], [0, 0, 1, 1], [], []>} : vector<32x32xf32>, vector<32x8xf32>, vector<32x8xf32> -> vector<32x8xf32>
    %326 = arith.addf %321, %325 : vector<32x8xf32>
    %c3_243 = arith.constant 3 : index
    %c0_244 = arith.constant 0 : index
    %c0_245 = arith.constant 0 : index
    %327 = vector.load %arg22[%c3_243, %c0_244, %c0_245] : memref<9x32x32xf32, #tpu.memory_space<vmem>>, vector<1x32x32xf32>
    %328 = vector.shape_cast %327 : vector<1x32x32xf32> to vector<32x32xf32>
    %c0_246 = arith.constant 0 : index
    %c4_247 = arith.constant 4 : index
    %329 = vector.load %arg33[%c0_246, %c4_247] : memref<32x18xf32, #tpu.memory_space<vmem>>, vector<32x8xf32>
    %cst_248 = arith.constant dense<0.000000e+00> : vector<32x8xf32>
    %330 = tpu.matmul %328, %329, %cst_248 {dimension_numbers = #tpu.dot_dimension_numbers<[1], [0], [0], [1], [0, 0, 1, 1], [], []>} : vector<32x32xf32>, vector<32x8xf32>, vector<32x8xf32> -> vector<32x8xf32>
    %331 = arith.addf %326, %330 : vector<32x8xf32>
    %c4_249 = arith.constant 4 : index
    %c0_250 = arith.constant 0 : index
    %c0_251 = arith.constant 0 : index
    %332 = vector.load %arg22[%c4_249, %c0_250, %c0_251] : memref<9x32x32xf32, #tpu.memory_space<vmem>>, vector<1x32x32xf32>
    %333 = vector.shape_cast %332 : vector<1x32x32xf32> to vector<32x32xf32>
    %c0_252 = arith.constant 0 : index
    %c5_253 = arith.constant 5 : index
    %334 = vector.load %arg33[%c0_252, %c5_253] : memref<32x18xf32, #tpu.memory_space<vmem>>, vector<32x8xf32>
    %cst_254 = arith.constant dense<0.000000e+00> : vector<32x8xf32>
    %335 = tpu.matmul %333, %334, %cst_254 {dimension_numbers = #tpu.dot_dimension_numbers<[1], [0], [0], [1], [0, 0, 1, 1], [], []>} : vector<32x32xf32>, vector<32x8xf32>, vector<32x8xf32> -> vector<32x8xf32>
    %336 = arith.addf %331, %335 : vector<32x8xf32>
    %c5_255 = arith.constant 5 : index
    %c0_256 = arith.constant 0 : index
    %c0_257 = arith.constant 0 : index
    %337 = vector.load %arg22[%c5_255, %c0_256, %c0_257] : memref<9x32x32xf32, #tpu.memory_space<vmem>>, vector<1x32x32xf32>
    %338 = vector.shape_cast %337 : vector<1x32x32xf32> to vector<32x32xf32>
    %c0_258 = arith.constant 0 : index
    %c6_259 = arith.constant 6 : index
    %339 = vector.load %arg33[%c0_258, %c6_259] : memref<32x18xf32, #tpu.memory_space<vmem>>, vector<32x8xf32>
    %cst_260 = arith.constant dense<0.000000e+00> : vector<32x8xf32>
    %340 = tpu.matmul %338, %339, %cst_260 {dimension_numbers = #tpu.dot_dimension_numbers<[1], [0], [0], [1], [0, 0, 1, 1], [], []>} : vector<32x32xf32>, vector<32x8xf32>, vector<32x8xf32> -> vector<32x8xf32>
    %341 = arith.addf %336, %340 : vector<32x8xf32>
    %c6_261 = arith.constant 6 : index
    %c0_262 = arith.constant 0 : index
    %c0_263 = arith.constant 0 : index
    %342 = vector.load %arg22[%c6_261, %c0_262, %c0_263] : memref<9x32x32xf32, #tpu.memory_space<vmem>>, vector<1x32x32xf32>
    %343 = vector.shape_cast %342 : vector<1x32x32xf32> to vector<32x32xf32>
    %c0_264 = arith.constant 0 : index
    %c8_265 = arith.constant 8 : index
    %344 = vector.load %arg33[%c0_264, %c8_265] : memref<32x18xf32, #tpu.memory_space<vmem>>, vector<32x8xf32>
    %cst_266 = arith.constant dense<0.000000e+00> : vector<32x8xf32>
    %345 = tpu.matmul %343, %344, %cst_266 {dimension_numbers = #tpu.dot_dimension_numbers<[1], [0], [0], [1], [0, 0, 1, 1], [], []>} : vector<32x32xf32>, vector<32x8xf32>, vector<32x8xf32> -> vector<32x8xf32>
    %346 = arith.addf %341, %345 : vector<32x8xf32>
    %c7_267 = arith.constant 7 : index
    %c0_268 = arith.constant 0 : index
    %c0_269 = arith.constant 0 : index
    %347 = vector.load %arg22[%c7_267, %c0_268, %c0_269] : memref<9x32x32xf32, #tpu.memory_space<vmem>>, vector<1x32x32xf32>
    %348 = vector.shape_cast %347 : vector<1x32x32xf32> to vector<32x32xf32>
    %c0_270 = arith.constant 0 : index
    %c9 = arith.constant 9 : index
    %349 = vector.load %arg33[%c0_270, %c9] : memref<32x18xf32, #tpu.memory_space<vmem>>, vector<32x8xf32>
    %cst_271 = arith.constant dense<0.000000e+00> : vector<32x8xf32>
    %350 = tpu.matmul %348, %349, %cst_271 {dimension_numbers = #tpu.dot_dimension_numbers<[1], [0], [0], [1], [0, 0, 1, 1], [], []>} : vector<32x32xf32>, vector<32x8xf32>, vector<32x8xf32> -> vector<32x8xf32>
    %351 = arith.addf %346, %350 : vector<32x8xf32>
    %c8_272 = arith.constant 8 : index
    %c0_273 = arith.constant 0 : index
    %c0_274 = arith.constant 0 : index
    %352 = vector.load %arg22[%c8_272, %c0_273, %c0_274] : memref<9x32x32xf32, #tpu.memory_space<vmem>>, vector<1x32x32xf32>
    %353 = vector.shape_cast %352 : vector<1x32x32xf32> to vector<32x32xf32>
    %c0_275 = arith.constant 0 : index
    %c10 = arith.constant 10 : index
    %354 = vector.load %arg33[%c0_275, %c10] : memref<32x18xf32, #tpu.memory_space<vmem>>, vector<32x8xf32>
    %cst_276 = arith.constant dense<0.000000e+00> : vector<32x8xf32>
    %355 = tpu.matmul %353, %354, %cst_276 {dimension_numbers = #tpu.dot_dimension_numbers<[1], [0], [0], [1], [0, 0, 1, 1], [], []>} : vector<32x32xf32>, vector<32x8xf32>, vector<32x8xf32> -> vector<32x8xf32>
    %356 = arith.addf %351, %355 : vector<32x8xf32>
    %357 = arith.addf %356, %303 : vector<32x8xf32>
    %c0_277 = arith.constant 0 : index
    %c0_278 = arith.constant 0 : index
    %358 = vector.load %arg24[%c0_277, %c0_278] : memref<16x32xf32, #tpu.memory_space<vmem>>, vector<16x32xf32>
    %cst_279 = arith.constant dense<0.000000e+00> : vector<16x8xf32>
    %359 = tpu.matmul %358, %357, %cst_279 {dimension_numbers = #tpu.dot_dimension_numbers<[1], [0], [0], [1], [0, 0, 1, 1], [], []>} : vector<16x32xf32>, vector<32x8xf32>, vector<16x8xf32> -> vector<16x8xf32>
    %c0_280 = arith.constant 0 : index
    %c0_281 = arith.constant 0 : index
    %360 = vector.load %arg25[%c0_280, %c0_281] : memref<16x1xf32, #tpu.memory_space<vmem>>, vector<16x1xf32>
    %361 = vector.broadcast %360 : vector<16x1xf32> to vector<16x8xf32>
    %362 = arith.addf %359, %361 : vector<16x8xf32>
    %363 = arith.addf %362, %298 : vector<16x8xf32>
    %cst_282 = arith.constant 5.000000e-01 : f32
    %364 = vector.broadcast %cst_282 : f32 to vector<1x8xf32>
    %365 = arith.cmpf ogt, %1, %364 : vector<1x8xf32>
    %cst_283 = arith.constant 0.000000e+00 : f32
    %366 = vector.shape_cast %365 : vector<1x8xi1> to vector<1x8xi1>
    %367 = vector.broadcast %366 : vector<1x8xi1> to vector<16x8xi1>
    %368 = vector.broadcast %cst_283 : f32 to vector<16x8xf32>
    %369 = arith.select %367, %363, %368 : vector<16x8xi1>, vector<16x8xf32>
    %c0_284 = arith.constant 0 : index
    %c0_285 = arith.constant 0 : index
    %370 = vector.load %arg28[%c0_284, %c0_285] : memref<8x624xf32, #tpu.memory_space<vmem>>, vector<8x624xf32>
    %cst_286 = arith.constant dense<0.000000e+00> : vector<16x624xf32>
    %371 = tpu.matmul %369, %370, %cst_286 {dimension_numbers = #tpu.dot_dimension_numbers<[1], [0], [0], [1], [0, 0, 1, 1], [], []>} : vector<16x8xf32>, vector<8x624xf32>, vector<16x624xf32> -> vector<16x624xf32>
    %c0_287 = arith.constant 0 : index
    %c0_288 = arith.constant 0 : index
    %372 = vector.load %arg32[%c0_287, %c0_288] : memref<16x678xf32, #tpu.memory_space<vmem>>, vector<16x624xf32>
    %373 = arith.addf %371, %372 : vector<16x624xf32>
    %c0_289 = arith.constant 0 : index
    %c0_290 = arith.constant 0 : index
    %374 = vector.load %arg26[%c0_289, %c0_290] : memref<8x16xf32, #tpu.memory_space<vmem>>, vector<8x16xf32>
    %cst_291 = arith.constant dense<0.000000e+00> : vector<8x624xf32>
    %375 = tpu.matmul %374, %373, %cst_291 {dimension_numbers = #tpu.dot_dimension_numbers<[1], [0], [0], [1], [0, 0, 1, 1], [], []>} : vector<8x16xf32>, vector<16x624xf32>, vector<8x624xf32> -> vector<8x624xf32>
    %c0_292 = arith.constant 0 : index
    %c0_293 = arith.constant 0 : index
    %376 = vector.load %arg27[%c0_292, %c0_293] : memref<8x1xf32, #tpu.memory_space<vmem>>, vector<8x1xf32>
    %377 = vector.broadcast %376 : vector<8x1xf32> to vector<8x624xf32>
    %378 = arith.addf %375, %377 : vector<8x624xf32>
    %cst_294 = arith.constant 0.000000e+00 : f32
    %379 = vector.broadcast %cst_294 : f32 to vector<8x624xf32>
    %380 = arith.subf %379, %378 : vector<8x624xf32>
    %381 = math.exp %380 : vector<8x624xf32>
    %cst_295 = arith.constant 1.000000e+00 : f32
    %382 = vector.broadcast %cst_295 : f32 to vector<8x624xf32>
    %383 = arith.addf %382, %381 : vector<8x624xf32>
    %cst_296 = arith.constant 1.000000e+00 : f32
    %384 = vector.broadcast %cst_296 : f32 to vector<8x624xf32>
    %385 = arith.divf %384, %383 : vector<8x624xf32>
    %c0_297 = arith.constant 0 : index
    %c0_298 = arith.constant 0 : index
    %386 = vector.load %arg34[%c0_297, %c0_298] : memref<8x624xf32, #tpu.memory_space<vmem>>, vector<8x624xf32>
    %387 = arith.mulf %386, %385 : vector<8x624xf32>
    %c0_299 = arith.constant 0 : index
    %c0_300 = arith.constant 0 : index
    %c0_301 = arith.constant 0 : index
    %388 = vector.load %arg31[%c0_299, %c0_300, %c0_301] : memref<1x8x624xf32, #tpu.memory_space<vmem>>, vector<1x8x624xf32>
    %389 = vector.shape_cast %388 : vector<1x8x624xf32> to vector<8x624xf32>
    %390 = vector.shape_cast %387 : vector<8x624xf32> to vector<1x8x624xf32>
    tpu.vector_store %arg31[%c0_299, %c0_300, %c0_301], %390 {strides = array<i32>} : memref<1x8x624xf32, #tpu.memory_space<vmem>>, vector<1x8x624xf32>,
    return
  }
  func.func @transform_0(%arg0: i32) -> (i32, i32, i32) {
    %c0_i32 = arith.constant 0 : i32
    %c0_i32_0 = arith.constant 0 : i32
    %c0_i32_1 = arith.constant 0 : i32
    return %arg0, %c0_i32, %c0_i32_0 : i32, i32, i32
  }
  func.func @transform_1(%arg0: i32) -> (i32, i32) {
    %c0_i32 = arith.constant 0 : i32
    %c0_i32_0 = arith.constant 0 : i32
    %c0_i32_1 = arith.constant 0 : i32
    return %c0_i32, %c0_i32_0 : i32, i32
  }
  func.func @transform_2(%arg0: i32) -> (i32, i32) {
    %c0_i32 = arith.constant 0 : i32
    %c0_i32_0 = arith.constant 0 : i32
    %c0_i32_1 = arith.constant 0 : i32
    return %c0_i32, %c0_i32_0 : i32, i32
  }
  func.func @transform_3(%arg0: i32) -> (i32, i32, i32) {
    %c0_i32 = arith.constant 0 : i32
    %c0_i32_0 = arith.constant 0 : i32
    %c0_i32_1 = arith.constant 0 : i32
    %c0_i32_2 = arith.constant 0 : i32
    return %c0_i32, %c0_i32_0, %c0_i32_1 : i32, i32, i32
  }
  func.func @transform_4(%arg0: i32) -> (i32, i32) {
    %c0_i32 = arith.constant 0 : i32
    %c0_i32_0 = arith.constant 0 : i32
    %c0_i32_1 = arith.constant 0 : i32
    return %c0_i32, %c0_i32_0 : i32, i32
  }
  func.func @transform_5(%arg0: i32) -> (i32, i32) {
    %c0_i32 = arith.constant 0 : i32
    %c0_i32_0 = arith.constant 0 : i32
    %c0_i32_1 = arith.constant 0 : i32
    return %c0_i32, %c0_i32_0 : i32, i32
  }
  func.func @transform_6(%arg0: i32) -> (i32, i32) {
    %c0_i32 = arith.constant 0 : i32
    %c0_i32_0 = arith.constant 0 : i32
    %c0_i32_1 = arith.constant 0 : i32
    return %c0_i32, %c0_i32_0 : i32, i32
  }
  func.func @transform_7(%arg0: i32) -> (i32, i32) {
    %c0_i32 = arith.constant 0 : i32
    %c0_i32_0 = arith.constant 0 : i32
    %c0_i32_1 = arith.constant 0 : i32
    return %c0_i32, %c0_i32_0 : i32, i32
  }
  func.func @transform_8(%arg0: i32) -> (i32, i32) {
    %c0_i32 = arith.constant 0 : i32
    %c0_i32_0 = arith.constant 0 : i32
    %c0_i32_1 = arith.constant 0 : i32
    return %c0_i32, %c0_i32_0 : i32, i32
  }
  func.func @transform_9(%arg0: i32) -> (i32, i32, i32) {
    %c0_i32 = arith.constant 0 : i32
    %c0_i32_0 = arith.constant 0 : i32
    %c0_i32_1 = arith.constant 0 : i32
    %c0_i32_2 = arith.constant 0 : i32
    return %c0_i32, %c0_i32_0, %c0_i32_1 : i32, i32, i32
  }
  func.func @transform_10(%arg0: i32) -> (i32, i32) {
    %c0_i32 = arith.constant 0 : i32
    %c0_i32_0 = arith.constant 0 : i32
    %c0_i32_1 = arith.constant 0 : i32
    return %c0_i32, %c0_i32_0 : i32, i32
  }
  func.func @transform_11(%arg0: i32) -> (i32, i32) {
    %c0_i32 = arith.constant 0 : i32
    %c0_i32_0 = arith.constant 0 : i32
    %c0_i32_1 = arith.constant 0 : i32
    return %c0_i32, %c0_i32_0 : i32, i32
  }
  func.func @transform_12(%arg0: i32) -> (i32, i32) {
    %c0_i32 = arith.constant 0 : i32
    %c0_i32_0 = arith.constant 0 : i32
    %c0_i32_1 = arith.constant 0 : i32
    return %c0_i32, %c0_i32_0 : i32, i32
  }
  func.func @transform_13(%arg0: i32) -> (i32, i32) {
    %c0_i32 = arith.constant 0 : i32
    %c0_i32_0 = arith.constant 0 : i32
    %c0_i32_1 = arith.constant 0 : i32
    return %c0_i32, %c0_i32_0 : i32, i32
  }
  func.func @transform_14(%arg0: i32) -> (i32, i32) {
    %c0_i32 = arith.constant 0 : i32
    %c0_i32_0 = arith.constant 0 : i32
    %c0_i32_1 = arith.constant 0 : i32
    return %c0_i32, %c0_i32_0 : i32, i32
  }
  func.func @transform_15(%arg0: i32) -> (i32, i32) {
    %c0_i32 = arith.constant 0 : i32
    %c0_i32_0 = arith.constant 0 : i32
    %c0_i32_1 = arith.constant 0 : i32
    return %c0_i32, %c0_i32_0 : i32, i32
  }
  func.func @transform_16(%arg0: i32) -> (i32, i32) {
    %c0_i32 = arith.constant 0 : i32
    %c0_i32_0 = arith.constant 0 : i32
    %c0_i32_1 = arith.constant 0 : i32
    return %c0_i32, %c0_i32_0 : i32, i32
  }
  func.func @transform_17(%arg0: i32) -> (i32, i32, i32) {
    %c0_i32 = arith.constant 0 : i32
    %c0_i32_0 = arith.constant 0 : i32
    %c0_i32_1 = arith.constant 0 : i32
    %c0_i32_2 = arith.constant 0 : i32
    return %c0_i32, %c0_i32_0, %c0_i32_1 : i32, i32, i32
  }
  func.func @transform_18(%arg0: i32) -> (i32, i32) {
    %c0_i32 = arith.constant 0 : i32
    %c0_i32_0 = arith.constant 0 : i32
    %c0_i32_1 = arith.constant 0 : i32
    return %c0_i32, %c0_i32_0 : i32, i32
  }
  func.func @transform_19(%arg0: i32) -> (i32, i32) {
    %c0_i32 = arith.constant 0 : i32
    %c0_i32_0 = arith.constant 0 : i32
    %c0_i32_1 = arith.constant 0 : i32
    return %c0_i32, %c0_i32_0 : i32, i32
  }
  func.func @transform_20(%arg0: i32) -> (i32, i32) {
    %c0_i32 = arith.constant 0 : i32
    %c0_i32_0 = arith.constant 0 : i32
    %c0_i32_1 = arith.constant 0 : i32
    return %c0_i32, %c0_i32_0 : i32, i32
  }
  func.func @transform_21(%arg0: i32) -> (i32, i32, i32) {
    %c0_i32 = arith.constant 0 : i32
    %c0_i32_0 = arith.constant 0 : i32
    %c0_i32_1 = arith.constant 0 : i32
    %c0_i32_2 = arith.constant 0 : i32
    return %c0_i32, %c0_i32_0, %c0_i32_1 : i32, i32, i32
  }
  func.func @transform_22(%arg0: i32) -> (i32, i32) {
    %c0_i32 = arith.constant 0 : i32
    %c0_i32_0 = arith.constant 0 : i32
    %c0_i32_1 = arith.constant 0 : i32
    return %c0_i32, %c0_i32_0 : i32, i32
  }
  func.func @transform_23(%arg0: i32) -> (i32, i32) {
    %c0_i32 = arith.constant 0 : i32
    %c0_i32_0 = arith.constant 0 : i32
    %c0_i32_1 = arith.constant 0 : i32
    return %c0_i32, %c0_i32_0 : i32, i32
  }
  func.func @transform_24(%arg0: i32) -> (i32, i32) {
    %c0_i32 = arith.constant 0 : i32
    %c0_i32_0 = arith.constant 0 : i32
    %c0_i32_1 = arith.constant 0 : i32
    return %c0_i32, %c0_i32_0 : i32, i32
  }
  func.func @transform_25(%arg0: i32) -> (i32, i32) {
    %c0_i32 = arith.constant 0 : i32
    %c0_i32_0 = arith.constant 0 : i32
    %c0_i32_1 = arith.constant 0 : i32
    return %c0_i32, %c0_i32_0 : i32, i32
  }
  func.func @transform_26(%arg0: i32) -> (i32, i32) {
    %c0_i32 = arith.constant 0 : i32
    %c0_i32_0 = arith.constant 0 : i32
    %c0_i32_1 = arith.constant 0 : i32
    return %c0_i32, %c0_i32_0 : i32, i32
  }
  func.func @transform_27(%arg0: i32) -> (i32, i32) {
    %c0_i32 = arith.constant 0 : i32
    %c0_i32_0 = arith.constant 0 : i32
    %c0_i32_1 = arith.constant 0 : i32
    return %c0_i32, %c0_i32_0 : i32, i32
  }
  func.func @transform_28(%arg0: i32) -> (i32, i32) {
    %c0_i32 = arith.constant 0 : i32
    %c0_i32_0 = arith.constant 0 : i32
    %c0_i32_1 = arith.constant 0 : i32
    return %c0_i32, %c0_i32_0 : i32, i32
  }
  func.func @transform_29(%arg0: i32) -> (i32, i32) {
    %c0_i32 = arith.constant 0 : i32
    %c0_i32_0 = arith.constant 0 : i32
    %c0_i32_1 = arith.constant 0 : i32
    return %c0_i32, %c0_i32_0 : i32, i32
  }
  func.func @transform_30(%arg0: i32) -> (i32, i32, i32) {
    %c0_i32 = arith.constant 0 : i32
    %c0_i32_0 = arith.constant 0 : i32
    %c0_i32_1 = arith.constant 0 : i32
    return %arg0, %c0_i32, %c0_i32_0 : i32, i32, i32
  }
}

</mosaic_0001>

<bundles_post_ra>
// kernel: rlfb_forward.1
= control target key start
LH: loop header
LB: loop body
LE: loop exit
PB: predicated region body
PF: predicated region fallthrough
CT: control target
= control target key end

     0   :  { %s12908_s6 = smov 1   ;;  %s12909_s10 = smov 2   ;;  %s16214_s0 = inlined_call_operand.smem [shape: u32[31], index: -1, kind: input, shape index: {}] }
   0x1   :  { %s12974_s5 = sld [smem:[%s16214_s0]]   ;;  %s12910_s14 = smov 3  }
   0x2   :  { %s12979_s9 = sld [smem:[%s16214_s0 + %s12908_s6]]   ;;  %s12911_s18 = smov 4  }
   0x3   :  { %s12984_s13 = sld [smem:[%s16214_s0 + %s12909_s10]]   ;;  %s12912_s22 = smov 5  }
   0x4   :  { %s12989_s17 = sld [smem:[%s16214_s0 + %s12910_s14]]   ;;  %s12913_s26 = smov 6  }
   0x5   :  { %s12994_s21 = sld [smem:[%s16214_s0 + %s12911_s18]]   ;;  %s12914_s30 = smov 7  }
   0x6   :  { %s12999_s25 = sld [smem:[%s16214_s0 + %s12912_s22]]   ;;  %s12915_s4 = smov 8  }
   0x7   :  { %16287 = sst [smem:[#allocation5_spill]] %s12974_s5  ;;  %s12916_s10 = smov 9  }
   0x8   :  { %s13004_s29 = sld [smem:[%s16214_s0 + %s12913_s26]]   ;;  %s12917_s15 = smov 10  }
   0x9   :  { %s13009_s3 = sld [smem:[%s16214_s0 + %s12914_s30]]   ;;  %s12918_s20 = smov 11  }
   0xa   :  { %s13014_s8 = sld [smem:[%s16214_s0 + %s12915_s4]]   ;;  %s12919_s26 = smov 12  }
   0xb   :  { %s13019_s14 = sld [smem:[%s16214_s0 + %s12916_s10]]   ;;  %s12920_s1 = smov 13  }
   0xc   :  { %s13024_s19 = sld [smem:[%s16214_s0 + %s12917_s15]]   ;;  %s12921_s7 = smov 14  }
   0xd   :  { %s13029_s24 = sld [smem:[%s16214_s0 + %s12918_s20]]   ;;  %s12922_s15 = smov 15  }
   0xe   :  { %s13034_s30 = sld [smem:[%s16214_s0 + %s12919_s26]]   ;;  %s12923_s22 = smov 16  }
   0xf   :  { %16288 = sst [smem:[#allocation6_spill]] %s13009_s3  ;;  %s12924_s28 = smov 17  }
  0x10   :  { %s13039_s6 = sld [smem:[%s16214_s0 + %s12920_s1]]  }
  0x11   :  { %s13044_s12 = sld [smem:[%s16214_s0 + %s12921_s7]]   ;;  %s12925_s7 = smov 18  }
  0x12   :  { %s13049_s20 = sld [smem:[%s16214_s0 + %s12922_s15]]   ;;  %s12926_s15 = smov 19  }
  0x13   :  { %16289 = sst [smem:[#allocation7_spill]] %s13029_s24 }
  0x14   :  { %s13054_s27 = sld [smem:[%s16214_s0 + %s12923_s22]]   ;;  %s12927_s22 = smov 20  }
  0x15   :  { %s13059_s4 = sld [smem:[%s16214_s0 + %s12924_s28]]   ;;  %s12928_s28 = smov 21  }
  0x16   :  { %16290 = sst [smem:[#allocation8_spill]] %s13039_s6 }
  0x17   :  { %s13064_s6 = sld [smem:[%s16214_s0 + %s12925_s7]]   ;;  %s12929_s7 = smov 22  }
  0x18   :  { %16291 = sst [smem:[#allocation9_spill]] %s13049_s20 }
  0x19   :  { %s13069_s20 = sld [smem:[%s16214_s0 + %s12926_s15]]   ;;  %s12930_s15 = smov 23  }
  0x1a   :  { %s13074_s24 = sld [smem:[%s16214_s0 + %s12927_s22]]   ;;  %s12931_s22 = smov 24  }
  0x1b   :  { %16292 = sst [smem:[#allocation10_spill]] %s13059_s4 }
  0x1c   :  { %s13079_s4 = sld [smem:[%s16214_s0 + %s12928_s28]]   ;;  %s12932_s28 = smov 25  }
  0x1d   :  { %16293 = sst [smem:[#allocation11_spill]] %s13064_s6 }
  0x1e   :  { %s13084_s6 = sld [smem:[%s16214_s0 + %s12929_s7]]   ;;  %s12933_s7 = smov 26  }
  0x1f   :  { %16294 = sst [smem:[#allocation12_spill]] %s13069_s20 }
  0x20   :  { %16295 = sst [smem:[#allocation13_spill]] %s13074_s24 }
  0x21   :  { %s13089_s20 = sld [smem:[%s16214_s0 + %s12930_s15]]   ;;  %s12934_s15 = smov 27  }
  0x22   :  { %16296 = sst [smem:[#allocation14_spill]] %s13079_s4 }
  0x23   :  { %s13094_s24 = sld [smem:[%s16214_s0 + %s12931_s22]]   ;;  %s12935_s22 = smov 28  }
  0x24   :  { %16297 = sst [smem:[#allocation15_spill]] %s13084_s6 }
  0x25   :  { %s13099_s4 = sld [smem:[%s16214_s0 + %s12932_s28]]   ;;  %s12936_s28 = smov 29  }
  0x26   :  { %s13104_s6 = sld [smem:[%s16214_s0 + %s12933_s7]]   ;;  %s12937_s7 = smov 30  }
  0x27   :  { %16298 = sst [smem:[#allocation16_spill]] %s13089_s20 }
  0x28   :  { %s13109_s20 = sld [smem:[%s16214_s0 + %s12934_s15]]   ;;  %s13126_s15 = smov 0  }
  0x29   :  { %16299 = sst [smem:[#allocation17_spill]] %s13094_s24 }
  0x2a   :  { %s13114_s24 = sld [smem:[%s16214_s0 + %s12935_s22]]  }
  0x2b   :  { %16300 = sst [smem:[#allocation18_spill]] %s13099_s4 }
  0x2c   :  { %16301 = sst [smem:[#allocation19_spill]] %s13104_s6 }
  0x2d   :  { %s13119_s4 = sld [smem:[%s16214_s0 + %s12936_s28]]  }
  0x2e   :  { %s13124_s6 = sld [smem:[%s16214_s0 + %s12937_s7]]  }
  0x2f LB: > { %s16302_s3 = sld [smem:[#allocation6_spill]]  ;;  %s11990_s16 = sadd.s32 4294967295, %s12906_s15   ;;  %s12906_s15 = sphi %s13126_s15, %s71_s15  }
  0x30   : > { %p11994_p0 = scmp.ge.s32.totalorder %s12906_s15, 1  ;;  %p843_p1 = scmp.lt.s32.totalorder %s12906_s15, 3 }
  0x32   : > { %p844_p2 = pnand %p11994_p0, %p843_p1 }
  0x34   : > { %847 = sbr.rel (%p844_p2) target bundleno = 4822 (0x12d6), region = 140 }
  0x39   : > { %p921_p3 = scmp.lt.s32.totalorder %s11990_s16, 1  ;;  %s16303_s5 = sld [smem:[#allocation5_spill]]  ;;  %v16226_v0 = vmov 0.0   ;;  %v939_v1 = vld [vmem:[%s12984_s13 + $0x8] sm:$0xff]  ;;  %v16224_v2 = vmov 0   ;;  %v938_v3 = vld [vmem:[%s12984_s13] sm:$0xff] }
  0x3a   : > { %1023 = vmatprep.mubr.f32.mxu0 %v16226_v0  ;;  %1100 = vmatprep.mubr.f32.mxu1 %v16226_v0  ;;  %v940_v4 = vld [vmem:[%s12979_s9] sm:$0xff]  ;;  %vm952_vm0 = vcmask 64512   ;;  %v941_v10 = vld [vmem:[%s12979_s9 + $0x8] sm:$0xff]  ;;  %vm1188_vm1 = vcmask 220168   ;;  %s12940_s22 = smov 27   ;;  %vm1242_vm2 = vcmask 1047768  }
  0x3b   : > { %s16573_s16 = smov (!%p921_p3, %s11990_s16), 1  ;;  %12868 = vset.pattern.permute.xlu0 %v16224_v2  ;;  %12869 = vset.pattern.permute.xlu1 %v16224_v2  ;;  %vm1221_vm3 = vcmask 220160   ;;  %s12941_s23 = smov 127   ;;  %vm1248_vm4 = vcmask 89088   ;;  %vm1256_vm5 = vcmask 302168   ;;  %v1271_v50 = vld [vmem:[%s12989_s17] sm:$0xff] }
  0x3c   : > { %949 = vperm.xlu0 %12868, %v939_v1   ;;  %s16278_s0 = smul.u32 40, %s16573_s16  ;;  %s12942_s26 = smov 126   ;;  %vm1283_vm6 = vcmask 130048   ;;  %v1272_v54 = vld [vmem:[%s12989_s17 + $0x8] sm:$0xff]  ;;  %vm1562_vm7 = vcmask 1039360   ;;  %vm1849_vm8 = vcmask 1031168  }
  0x3d   : > { %s12943_s28 = smov 102   ;;  %s12944_s1 = smov 101   ;;  %vm16253_vm9 = vcmask 834560   ;;  %vm16252_vm10 = vcmask 826368   ;;  %vm16250_vm11 = vcmask 818176   ;;  %vm16248_vm12 = vcmask 621568  }
  0x3e   : > { %s12945_s2 = smov 100   ;;  %s12946_s7 = smov 76   ;;  %vm16247_vm13 = vcmask 613376   ;;  %vm16246_vm14 = vcmask 605184   ;;  %vm16244_vm15 = vmmov 0  }
  0x3f   : > { %s13146_s18 = scalar_lea.vmem %s16303_s5, %s16278_s0  ;;  %s12947_s10 = smov 75  }
  0x40   : > { %v934_v5 = vld [vmem:[%s13146_s18 + $0x8] sm:$0xff]  ;;  %v936_v6 = vld [vmem:[%s13146_s18 + $0x18] sm:$0xff]  ;;  %v933_v7 = vld [vmem:[%s13146_s18] sm:$0xff]  ;;  %944 = vperm.xlu0 %12868, %v938_v3   ;;  %s12948_s11 = smov 74   ;;  %s12956_s0 = smov 124  }
  0x41   : > { %989 = vmatprep.subr.mxu0 %v934_v5  ;;  %1066 = vmatprep.subr.mxu1 %v936_v6  ;;  %v935_v8 = vld [vmem:[%s13146_s18 + $0x10] sm:$0xff]  ;;  %v937_v9 = vld [vmem:[%s13146_s18 + $0x20] sm:$0xff]  ;;  %s12965_s5 = smov 119  }
  0x42   : > { %990 = vmatpush1.msra.mxu0 %v933_v7  ;;  %1067 = vmatpush1.msra.mxu1 %v935_v8 }
  0x43   : > { %11997 = vmatmul.mubr.msk.f32.vlgmr.msra.gmra.mxu0 %vm952_vm0, %v940_v4  ;;  %11999 = vmatmul.mubr.msk.f32.vlgmr.msra.gmra.mxu1 %vm952_vm0, %v940_v4 }
  0x44   : > { %1029 = vmatprep.mubr.f32.mxu0 %v16226_v0  ;;  %1106 = vmatprep.mubr.f32.mxu1 %v16226_v0 }
  0x45   : > { %12482 = vmatprep.subr.mxu0 %v937_v9 }
  0x46   : > { %12483 = vmatpush3.msra.mxu0 %v937_v9 }
  0x47   : > { %11998 = vmatmul.mubr.msk.f32.gmra.mxu0 %vm952_vm0, %v941_v10  ;;  %12000 = vmatmul.mubr.msk.f32.gmra.mxu1 %vm952_vm0, %v941_v10 }
  0x48   : > { %12484 = vmatprep.mubr.msk.f32.mxu0 %vm952_vm0, %v940_v4  ;;  %1354 = vmatprep.mubr.f32.mxu1 %v16226_v0 }
  0x4b   : > { %12485 = vmatmul.mubr.msk.f32.vlgmr.msra.gmra.mxu0 %vm952_vm0, %v941_v10 }
  0x4c   : > { %1431 = vmatprep.mubr.f32.mxu0 %v16226_v0 }
  0xb7   : > { %v13165_v11 = vpop.permute.xlu0 %949 }
  0xb8   : > { %1190 = vst.msk [vmem:[#allocation2 + $0x30] sm:$0xff] %vm1188_vm1, %v13165_v11 }
  0xbb   : > { %v13169_v12 = vpop.permute.xlu0 %944 }
  0xbc   : > { %1189 = vst.msk [vmem:[#allocation2] sm:$0xff] %vm1188_vm1, %v13169_v12 }
 0x103   : > { %v1025_v13 = vpop.f32.mrf.mxu0  ;;  %v1102_v14 = vpop.f32.mrf.mxu1 }
 0x104   : > { %v13174_v15 = vadd.f32 %v1025_v13, %v13169_v12  ;;  %v13182_v19 = vadd.f32 %v1102_v14, %v13169_v12 }
 0x105   : > { %v1027_v16 = vpop.f32.mrf.mxu0  ;;  %v1104_v18 = vpop.f32.mrf.mxu1 }
 0x106   : > { %16304 = vst [vmem:[#allocation20_spill] sm:$0xff] %v13174_v15  ;;  %v13177_v17 = vadd.f32 %v1027_v16, %v13169_v12  ;;  %1201 = vrot.lane.b32.xlu1 %v13174_v15, %s12940_s22  ;;  %16306 = vst [vmem:[#allocation22_spill] sm:$0xff] %v13182_v19  ;;  %v13187_v21 = vadd.f32 %v1104_v18, %v13169_v12 }
 0x107   : > { %v1031_v20 = vpop.f32.mrf.mxu0  ;;  %v1108_v22 = vpop.f32.mrf.mxu1 }
 0x108   : > { %16305 = vst [vmem:[#allocation21_spill] sm:$0xff] %v13177_v17  ;;  %1203 = vrot.lane.b32.xlu0 %v13177_v17, %s12940_s22  ;;  %16307 = vst [vmem:[#allocation23_spill] sm:$0xff] %v13187_v21  ;;  %v13192_v23 = vadd.f32 %v1031_v20, %v13165_v11  ;;  %v13197_v25 = vadd.f32 %v1108_v22, %v13165_v11 }
 0x109   : > { %v1033_v24 = vpop.f32.mrf.mxu0  ;;  %v1110_v26 = vpop.f32.mrf.mxu1 }
 0x10a   : > { %1205 = vrot.lane.b32.xlu1 %v13182_v19, %s12940_s22  ;;  %16308 = vst [vmem:[#allocation24_spill] sm:$0xff] %v13192_v23  ;;  %16309 = vst [vmem:[#allocation25_spill] sm:$0xff] %v13197_v25  ;;  %v13202_v27 = vadd.f32 %v1033_v24, %v13165_v11  ;;  %v13207_v29 = vadd.f32 %v1110_v26, %v13165_v11 }
 0x10b   : > { %v12486_v28 = vpop.f32.mrf.mxu0 }
 0x10c   : > { %1207 = vrot.lane.b32.xlu0 %v13187_v21, %s12940_s22  ;;  %16310 = vst [vmem:[#allocation26_spill] sm:$0xff] %v13202_v27  ;;  %16311 = vst [vmem:[#allocation27_spill] sm:$0xff] %v13207_v29  ;;  %v13212_v30 = vadd.f32 %v12486_v28, %v13165_v11 }
 0x10d   : > { %v1179_v31 = vpop.f32.mrf.mxu0 }
 0x10e   : > { %1211 = vrot.lane.b32.xlu1 %v13192_v23, %s12940_s22  ;;  %16312 = vst [vmem:[#allocation28_spill] sm:$0xff] %v13212_v30  ;;  %v13219_v32 = vadd.f32 %v1179_v31, %v13169_v12 }
 0x110   : > { %1215 = vrot.lane.b32.xlu0 %v13197_v25, %s12940_s22  ;;  %16313 = vst [vmem:[#allocation29_spill] sm:$0xff] %v13219_v32 }
 0x112   : > { %1213 = vrot.lane.b32.xlu1 %v13202_v27, %s12940_s22 }
 0x114   : > { %1217 = vrot.lane.b32.xlu0 %v13207_v29, %s12940_s22 }
 0x116   : > { %1219 = vrot.lane.b32.xlu1 %v13212_v30, %s12940_s22 }
 0x11a   : > { %1209 = vrot.lane.b32.xlu1 %v13219_v32, %s12940_s22 }
 0x178   : > { %v1202_v33 = vpop.permute.xlu1 %1201 }
 0x179   : > { %1243 = vst.msk [vmem:[#allocation2] sm:$0xff] %vm1242_vm2, %v1202_v33 }
 0x17a   : > { %v1204_v34 = vpop.permute.xlu0 %1203 }
 0x17b   : > { %v13254_v48 = vsel %vm1221_vm3, %v1202_v33, %v1204_v34 }
 0x17c   : > { %v1206_v35 = vpop.permute.xlu1 %1205 }
 0x17d   : > { %v13225_v36 = vsel %vm1221_vm3, %v1204_v34, %v1206_v35 }
 0x17e   : > { %v1208_v37 = vpop.permute.xlu0 %1207  ;;  %1546 = vrot.lane.b32.xlu0 %v13225_v36, %s12941_s23 }
 0x17f   : > { %v13232_v40 = vsel %vm1221_vm3, %v1206_v35, %v1208_v37 }
 0x180   : > { %v1212_v38 = vpop.permute.xlu1 %1211  ;;  %v13229_v39 = vld [vmem:[#allocation2] sm:$0xff] }
 0x181   : > { %1250 = vst.msk [vmem:[#allocation2 + $0x30] sm:$0xff] %vm1242_vm2, %v1212_v38  ;;  %1542 = vrot.lane.b32.xlu1 %v13229_v39, %s12941_s23 }
 0x182   : > { %v1216_v41 = vpop.permute.xlu0 %1215  ;;  %1548 = vrot.lane.b32.xlu0 %v13232_v40, %s12941_s23 }
 0x184   : > { %v1214_v42 = vpop.permute.xlu1 %1213 }
 0x185   : > { %v13240_v43 = vsel %vm1221_vm3, %v1212_v38, %v1214_v42  ;;  %1829 = vrot.lane.b32.xlu1 %v13229_v39, %s12942_s26  ;;  %v13257_v49 = vsel %vm1221_vm3, %v1214_v42, %v1216_v41  ;;  %v1259_v42 = vld [vmem:[%s12994_s21] sm:$0xff] }
 0x186   : > { %v1218_v44 = vpop.permute.xlu0 %1217  ;;  %1833 = vrot.lane.b32.xlu0 %v13225_v36, %s12942_s26  ;;  %1318 = vmatprep.subr.mxu1 %v13240_v43 }
 0x187   : > { %v13248_v45 = vsel %vm1221_vm3, %v1216_v41, %v1218_v44 }
 0x188   : > { %v1220_v46 = vpop.permute.xlu1 %1219  ;;  %v13250_v47 = vld [vmem:[#allocation2 + $0x30] sm:$0xff]  ;;  %1395 = vmatprep.subr.mxu0 %v13248_v45 }
 0x189   : > { %1255 = vst.msk [vmem:[#allocation2 + $0x58] sm:$0xff] %vm1248_vm4, %v1220_v46  ;;  %2140 = vrot.lane.b32.xlu1 %v13229_v39, %s12943_s28  ;;  %1319 = vmatpush1.msra.mxu1 %v13250_v47  ;;  %v13269_v51 = vsel %vm1221_vm3, %v1218_v44, %v1220_v46  ;;  %v4180_v46 = vld [vmem:[%s13014_s8 + $0x8] sm:$0xff] }
 0x18a   : > { %1258 = vst.msk [vmem:[#allocation2 + $0x58] sm:$0xff] %vm1256_vm5, %v13165_v11  ;;  %1320 = vmatprep.subr.mxu1 %v13254_v48  ;;  %1396 = vmatpush1.msra.mxu0 %v13257_v49 }
 0x18b   : > { %1321 = vmatpush1.msra.mxu1 %v13229_v39  ;;  %1835 = vrot.lane.b32.xlu0 %v13232_v40, %s12942_s26 }
 0x18c   : > { %v1210_v52 = vpop.permute.xlu1 %1209  ;;  %1397 = vmatprep.subr.mxu0 %v13232_v40  ;;  %12487 = vmatprep.subr.mxu1 %v13269_v51 }
 0x18d   : > { %v13277_v53 = vsel %vm1221_vm3, %v1208_v37, %v1210_v52  ;;  %1249 = vst.msk [vmem:[#allocation2 + $0x28] sm:$0xff] %vm1248_vm4, %v1210_v52  ;;  %2433 = vrot.lane.b32.xlu1 %v13229_v39, %s12944_s1  ;;  %12003 = vmatmul.mubr.msk.f32.vlgmr.msra.gmra.mxu1 %vm1283_vm6, %v1271_v50 }
 0x18e   : > { %1257 = vst.msk [vmem:[#allocation2 + $0x28] sm:$0xff] %vm1256_vm5, %v13169_v12  ;;  %1398 = vmatpush1.msra.mxu0 %v13225_v36  ;;  %12488 = vmatpush3.msra.mxu1 %v13269_v51 }
 0x18f   : > { %2144 = vrot.lane.b32.xlu0 %v13225_v36, %s12943_s28  ;;  %12489 = vmatprep.subr.mxu1 %v13277_v53 }
 0x190   : > { %12490 = vmatpush3.msra.mxu1 %v13277_v53  ;;  %12005 = vmatmul.mubr.msk.f32.vlgmr.msra.gmra.mxu0 %vm1283_vm6, %v1271_v50 }
 0x191   : > { %2726 = vrot.lane.b32.xlu1 %v13229_v39, %s12945_s2  ;;  %1360 = vmatprep.mubr.f32.mxu1 %v16226_v0  ;;  %v13409_v58 = vld [vmem:[#allocation2 + $0x58] sm:$0xff] }
 0x192   : > { %12004 = vmatmul.mubr.msk.f32.gmra.mxu1 %vm1283_vm6, %v1272_v54  ;;  %1437 = vmatprep.mubr.f32.mxu0 %v16226_v0 }
 0x193   : > { %2146 = vrot.lane.b32.xlu0 %v13232_v40, %s12943_s28  ;;  %12491 = vmatprep.mubr.msk.f32.mxu1 %vm1283_vm6, %v1271_v50 }
 0x194   : > { %12006 = vmatmul.mubr.msk.f32.gmra.mxu0 %vm1283_vm6, %v1272_v54 }
 0x195   : > { %3019 = vrot.lane.b32.xlu1 %v13229_v39, %s12946_s7  ;;  %1651 = vmatprep.mubr.f32.mxu0 %v16226_v0  ;;  %v2121_v4 = vld [vmem:[#allocation2 + $0x28] sm:$0xff] }
 0x196   : > { %12492 = vmatmul.mubr.msk.f32.vlgmr.msra.gmra.mxu1 %vm1283_vm6, %v1272_v54 }
 0x197   : > { %2437 = vrot.lane.b32.xlu0 %v13225_v36, %s12944_s1  ;;  %1728 = vmatprep.mubr.f32.mxu1 %v16226_v0 }
 0x199   : > { %1544 = vrot.lane.b32.xlu1 %v13254_v48, %s12941_s23 }
 0x19b   : > { %2439 = vrot.lane.b32.xlu0 %v13232_v40, %s12944_s1 }
 0x19d   : > { %1831 = vrot.lane.b32.xlu1 %v13254_v48, %s12942_s26 }
 0x19f   : > { %2730 = vrot.lane.b32.xlu0 %v13225_v36, %s12945_s2 }
 0x1a1   : > { %2142 = vrot.lane.b32.xlu1 %v13254_v48, %s12943_s28 }
 0x1a3   : > { %2732 = vrot.lane.b32.xlu0 %v13232_v40, %s12945_s2 }
 0x1a5   : > { %2435 = vrot.lane.b32.xlu1 %v13254_v48, %s12944_s1 }
 0x1a7   : > { %3023 = vrot.lane.b32.xlu0 %v13225_v36, %s12946_s7 }
 0x1a9   : > { %2728 = vrot.lane.b32.xlu1 %v13254_v48, %s12945_s2 }
 0x1ab   : > { %3025 = vrot.lane.b32.xlu0 %v13232_v40, %s12946_s7 }
 0x1ad   : > { %3021 = vrot.lane.b32.xlu1 %v13254_v48, %s12946_s7 }
 0x1af   : > { %1552 = vrot.lane.b32.xlu0 %v13250_v47, %s12941_s23 }
 0x1b1   : > { %3314 = vrot.lane.b32.xlu1 %v13254_v48, %s12947_s10 }
 0x1b3   : > { %1839 = vrot.lane.b32.xlu0 %v13250_v47, %s12942_s26 }
 0x1b5   : > { %1556 = vrot.lane.b32.xlu1 %v13257_v49, %s12941_s23 }
 0x1b7   : > { %2152 = vrot.lane.b32.xlu0 %v13250_v47, %s12943_s28 }
 0x1b9   : > { %1558 = vrot.lane.b32.xlu1 %v13248_v45, %s12941_s23 }
 0x1bb   : > { %2445 = vrot.lane.b32.xlu0 %v13250_v47, %s12944_s1 }
 0x1bd   : > { %1843 = vrot.lane.b32.xlu1 %v13257_v49, %s12942_s26 }
 0x1bf   : > { %2738 = vrot.lane.b32.xlu0 %v13250_v47, %s12945_s2 }
 0x1c1   : > { %1845 = vrot.lane.b32.xlu1 %v13248_v45, %s12942_s26 }
 0x1c3   : > { %3031 = vrot.lane.b32.xlu0 %v13250_v47, %s12946_s7 }
 0x1c5   : > { %2156 = vrot.lane.b32.xlu1 %v13257_v49, %s12943_s28 }
 0x1c7   : > { %3324 = vrot.lane.b32.xlu0 %v13250_v47, %s12947_s10 }
 0x1c9   : > { %2158 = vrot.lane.b32.xlu1 %v13248_v45, %s12943_s28 }
 0x1cb   : > { %1554 = vrot.lane.b32.xlu0 %v13240_v43, %s12941_s23 }
 0x1cd   : > { %2449 = vrot.lane.b32.xlu1 %v13257_v49, %s12944_s1 }
 0x1cf   : > { %1841 = vrot.lane.b32.xlu0 %v13240_v43, %s12942_s26 }
 0x1d1   : > { %2451 = vrot.lane.b32.xlu1 %v13248_v45, %s12944_s1 }
 0x1d3   : > { %2154 = vrot.lane.b32.xlu0 %v13240_v43, %s12943_s28 }
 0x1d5   : > { %2742 = vrot.lane.b32.xlu1 %v13257_v49, %s12945_s2 }
 0x1d7   : > { %2447 = vrot.lane.b32.xlu0 %v13240_v43, %s12944_s1 }
 0x1d9   : > { %2744 = vrot.lane.b32.xlu1 %v13248_v45, %s12945_s2 }
 0x1db   : > { %2740 = vrot.lane.b32.xlu0 %v13240_v43, %s12945_s2 }
 0x1dd   : > { %3035 = vrot.lane.b32.xlu1 %v13257_v49, %s12946_s7 }
 0x1df   : > { %3033 = vrot.lane.b32.xlu0 %v13240_v43, %s12946_s7 }
 0x1e1   : > { %3037 = vrot.lane.b32.xlu1 %v13248_v45, %s12946_s7 }
 0x1e3   : > { %3326 = vrot.lane.b32.xlu0 %v13240_v43, %s12947_s10 }
 0x1e5   : > { %3328 = vrot.lane.b32.xlu1 %v13257_v49, %s12947_s10 }
 0x1e7   : > { %1560 = vrot.lane.b32.xlu0 %v13269_v51, %s12941_s23 }
 0x1e9   : > { %1550 = vrot.lane.b32.xlu1 %v13277_v53, %s12941_s23 }
 0x1eb   : > { %3316 = vrot.lane.b32.xlu0 %v13225_v36, %s12947_s10 }
 0x1ed   : > { %3330 = vrot.lane.b32.xlu1 %v13248_v45, %s12947_s10 }
 0x1ef   : > { %1847 = vrot.lane.b32.xlu0 %v13269_v51, %s12942_s26 }
 0x1f0   : > { %v13397_v55 = vpop.permute.xlu0 %1546 }
 0x1f1   : > { %3312 = vrot.lane.b32.xlu1 %v13229_v39, %s12947_s10 }
 0x1f3   : > { %v13401_v56 = vpop.permute.xlu1 %1542  ;;  %2160 = vrot.lane.b32.xlu0 %v13269_v51, %s12943_s28 }
 0x1f4   : > { %v13405_v57 = vpop.permute.xlu0 %1548 }
 0x1f5   : > { %1837 = vrot.lane.b32.xlu1 %v13277_v53, %s12942_s26  ;;  %v1565_v19 = vsel %vm1562_vm7, %v13397_v55, %v13405_v57 }
 0x1f7   : > { %v13411_v59 = vpop.permute.xlu1 %1829  ;;  %2162 = vrot.lane.b32.xlu0 %v13409_v58, %s12943_s28 }
 0x1f8   : > { %v13415_v60 = vpop.permute.xlu0 %1833 }
 0x1f9   : > { %3621 = vrot.lane.b32.xlu1 %v13257_v49, %s12948_s11 }
 0x1fb   : > { %v13419_v61 = vpop.permute.xlu1 %2140  ;;  %2453 = vrot.lane.b32.xlu0 %v13269_v51, %s12944_s1 }
 0x1fd   : > { %2148 = vrot.lane.b32.xlu1 %v13277_v53, %s12943_s28  ;;  %v13425_v62 = vpop.permute.xlu0 %1835 }
 0x1ff   : > { %v13427_v63 = vpop.permute.xlu1 %2433  ;;  %2455 = vrot.lane.b32.xlu0 %v13409_v58, %s12944_s1 }
 0x201   : > { %3607 = vrot.lane.b32.xlu1 %v13254_v48, %s12948_s11  ;;  %v13433_v1 = vpop.permute.xlu0 %2144 }
 0x203   : > { %v13435_v3 = vpop.permute.xlu1 %2726  ;;  %2746 = vrot.lane.b32.xlu0 %v13269_v51, %s12945_s2 }
 0x205   : > { %2150 = vrot.lane.b32.xlu1 %v2121_v4, %s12943_s28  ;;  %v13440_v5 = vpop.permute.xlu0 %2146 }
 0x207   : > { %v13442_v6 = vpop.permute.xlu1 %3019  ;;  %2748 = vrot.lane.b32.xlu0 %v13409_v58, %s12945_s2 }
 0x209   : > { %2441 = vrot.lane.b32.xlu1 %v13277_v53, %s12944_s1  ;;  %v13448_v7 = vpop.permute.xlu0 %2437 }
 0x20b   : > { %v13450_v8 = vpop.permute.xlu1 %1544  ;;  %3039 = vrot.lane.b32.xlu0 %v13269_v51, %s12946_s7 }
 0x20c   : > { %v1564_v52 = vsel %vm1562_vm7, %v13450_v8, %v13397_v55 }
 0x20d   : > { %2443 = vrot.lane.b32.xlu1 %v2121_v4, %s12944_s1  ;;  %v13455_v9 = vpop.permute.xlu0 %2439 }
 0x20f   : > { %v13457_v10 = vpop.permute.xlu1 %1831  ;;  %3041 = vrot.lane.b32.xlu0 %v13409_v58, %s12946_s7 }
 0x211   : > { %2734 = vrot.lane.b32.xlu1 %v13277_v53, %s12945_s2  ;;  %v13463_v11 = vpop.permute.xlu0 %2730 }
 0x213   : > { %v13465_v12 = vpop.permute.xlu1 %2142  ;;  %3332 = vrot.lane.b32.xlu0 %v13269_v51, %s12947_s10 }
 0x215   : > { %3623 = vrot.lane.b32.xlu1 %v13248_v45, %s12948_s11  ;;  %v13471_v13 = vpop.permute.xlu0 %2732 }
 0x217   : > { %v13473_v14 = vpop.permute.xlu1 %2435  ;;  %3318 = vrot.lane.b32.xlu0 %v13232_v40, %s12947_s10 }
 0x219   : > { %2736 = vrot.lane.b32.xlu1 %v2121_v4, %s12945_s2  ;;  %v13478_v16 = vpop.permute.xlu0 %3023 }
 0x21b   : > { %v13480_v18 = vpop.permute.xlu1 %2728  ;;  %3334 = vrot.lane.b32.xlu0 %v13409_v58, %s12947_s10 }
 0x21d   : > { %3027 = vrot.lane.b32.xlu1 %v13277_v53, %s12946_s7  ;;  %v13486_v20 = vpop.permute.xlu0 %3025 }
 0x21f   : > { %v13488_v22 = vpop.permute.xlu1 %3021  ;;  %3619 = vrot.lane.b32.xlu0 %v13240_v43, %s12948_s11 }
 0x221   : > { %3029 = vrot.lane.b32.xlu1 %v2121_v4, %s12946_s7  ;;  %v1553_v24 = vpop.permute.xlu0 %1552 }
 0x223   : > { %v13493_v26 = vpop.permute.xlu1 %3314  ;;  %3617 = vrot.lane.b32.xlu0 %v13250_v47, %s12948_s11  ;;  %v4179_v47 = vld [vmem:[%s13014_s8] sm:$0xff] }
 0x225   : > { %3320 = vrot.lane.b32.xlu1 %v13277_v53, %s12947_s10  ;;  %v13499_v28 = vpop.permute.xlu0 %1839 }
 0x227   : > { %v13501_v31 = vpop.permute.xlu1 %1556  ;;  %3609 = vrot.lane.b32.xlu0 %v13225_v36, %s12948_s11 }
 0x229   : > { %3605 = vrot.lane.b32.xlu1 %v13229_v39, %s12948_s11  ;;  %v13507_v33 = vpop.permute.xlu0 %2152  ;;  %v1260_v39 = vld [vmem:[%s12994_s21 + $0x8] sm:$0xff] }
 0x22b   : > { %v1559_v34 = vpop.permute.xlu1 %1558  ;;  %3625 = vrot.lane.b32.xlu0 %v13269_v51, %s12948_s11 }
 0x22d   : > { %3322 = vrot.lane.b32.xlu1 %v2121_v4, %s12947_s10  ;;  %v13512_v35 = vpop.permute.xlu0 %2445 }
 0x22f   : > { %v13514_v37 = vpop.permute.xlu1 %1843  ;;  %3611 = vrot.lane.b32.xlu0 %v13232_v40, %s12948_s11  ;;  %v3906_v40 = vld [vmem:[%s13004_s29] sm:$0xff] }
 0x231   : > { %3613 = vrot.lane.b32.xlu1 %v13277_v53, %s12948_s11  ;;  %v13520_v36 = vpop.permute.xlu0 %2738  ;;  %v12009_v53 = vld [vmem:[%s12989_s17 + $0x10] sm:$0xff] }
 0x233   : > { %v13522_v38 = vpop.permute.xlu1 %1845  ;;  %3627 = vrot.lane.b32.xlu0 %v13409_v58, %s12948_s11  ;;  %v1563_v58 = vsel %vm1562_vm7, %v13401_v56, %v13450_v8 }
 0x235   : > { %3615 = vrot.lane.b32.xlu1 %v2121_v4, %s12948_s11  ;;  %v13528_v41 = vpop.permute.xlu0 %3031 }
 0x237   : > { %v13531_v43 = vpop.permute.xlu1 %2156  ;;  %1268 = vperm.xlu0 %12868, %v1260_v39  }
 0x239   : > { %v13534_v44 = vpop.permute.xlu0 %3324  ;;  %1263 = vperm.xlu1 %12869, %v1259_v42  }
 0x23b   : > { %v13536_v45 = vpop.permute.xlu1 %2158  ;;  %3909 = vperm.xlu0 %12868, %v3906_v40  }
 0x23d   : > { %v1555_v48 = vpop.permute.xlu0 %1554  ;;  %4190 = vperm.xlu1 %12869, %v4180_v46  }
 0x23e   : > { %v1568_v49 = vsel %vm1562_vm7, %v1555_v48, %v13501_v31  ;;  %v1567_v50 = vsel %vm1562_vm7, %v1553_v24, %v1555_v48  ;;  %v12010_v24 = vld [vmem:[%s12989_s17 + $0x18] sm:$0xff] }
 0x23f   : > { %v13543_v51 = vpop.permute.xlu1 %2449  ;;  %4185 = vperm.xlu0 %12868, %v4179_v47   ;;  %1615 = vmatprep.subr.mxu0 %v1568_v49 }
 0x240   : > { %1616 = vmatpush1.msra.mxu0 %v1567_v50 }
 0x241   : > { %v1842_v54 = vpop.permute.xlu0 %1841  ;;  %1617 = vmatprep.subr.mxu0 %v1564_v52 }
 0x242   : > { %1618 = vmatpush1.msra.mxu0 %v1563_v58 }
 0x243   : > { %v13552_v4 = vpop.permute.xlu1 %2451  ;;  %12011 = vmatmul.mubr.msk.f32.vlgmr.msra.gmra.mxu0 %vm1283_vm6, %v12009_v53 }
 0x244   : > { %1657 = vmatprep.mubr.f32.mxu0 %v16226_v0  ;;  %v1569_v0 = vsel %vm1562_vm7, %v13501_v31, %v1559_v34  ;;  %v1855_v31 = vsel %vm1849_vm8, %v1842_v54, %v13514_v37 }
 0x245   : > { %v13557_v39 = vpop.permute.xlu0 %2154 }
 0x247   : > { %v13559_v42 = vpop.permute.xlu1 %2742  ;;  %12012 = vmatmul.mubr.msk.f32.gmra.mxu0 %vm1283_vm6, %v12010_v24 }
 0x248   : > { %12498 = vmatprep.mubr.msk.f32.mxu0 %vm1283_vm6, %v12009_v53 }
 0x249   : > { %v13563_v40 = vpop.permute.xlu0 %2447 }
 0x24b   : > { %v13565_v46 = vpop.permute.xlu1 %2744 }
 0x24d   : > { %v13567_v56 = vpop.permute.xlu0 %2740 }
 0x24f   : > { %v13569_v8 = vpop.permute.xlu1 %3035 }
 0x251   : > { %v13571_v47 = vpop.permute.xlu0 %3033 }
 0x253   : > { %v13573_v48 = vpop.permute.xlu1 %3037 }
 0x255   : > { %v13575_v49 = vpop.permute.xlu0 %3326 }
 0x257   : > { %v13577_v50 = vpop.permute.xlu1 %3328 }
 0x259   : > { %v1561_v52 = vpop.permute.xlu0 %1560 }
 0x25a   : > { %12494 = vmatprep.subr.mxu0 %v1561_v52  ;;  %v1570_v58 = vsel %vm1562_vm7, %v1559_v34, %v1561_v52 }
 0x25b   : > { %v1551_v2 = vpop.permute.xlu1 %1550  ;;  %1692 = vmatprep.subr.mxu1 %v1570_v58  ;;  %12495 = vmatpush3.msra.mxu0 %v1561_v52 }
 0x25c   : > { %1693 = vmatpush1.msra.mxu1 %v1569_v0  ;;  %12496 = vmatprep.subr.mxu0 %v1551_v2  ;;  %v1566_v32 = vsel %vm1562_vm7, %v13405_v57, %v1551_v2  ;;  %v1850_v57 = vsel %vm1849_vm8, %v13411_v59, %v13457_v10 }
 0x25d   : > { %v13584_v30 = vpop.permute.xlu0 %3316  ;;  %1694 = vmatprep.subr.mxu1 %v1566_v32  ;;  %12497 = vmatpush3.msra.mxu0 %v1551_v2  ;;  %v1854_v32 = vsel %vm1849_vm8, %v13499_v28, %v1842_v54  ;;  %v1851_v2 = vsel %vm1849_vm8, %v13457_v10, %v13415_v60  ;;  %v12017_v54 = vld [vmem:[%s12989_s17 + $0x20] sm:$0xff] }
 0x25e   : > { %1695 = vmatpush1.msra.mxu1 %v1565_v19  ;;  %12499 = vmatmul.mubr.msk.f32.vlgmr.msra.gmra.mxu0 %vm1283_vm6, %v12010_v24  ;;  %v16314_v19 = vmov 0.0  }
 0x25f   : > { %v13592_v0 = vpop.permute.xlu1 %3330  ;;  %12013 = vmatmul.mubr.msk.f32.vlgmr.msra.gmra.mxu1 %vm1283_vm6, %v12009_v53  ;;  %1902 = vmatprep.subr.mxu1 %v1855_v31  ;;  %v1856_v53 = vsel %vm1849_vm8, %v13514_v37, %v13522_v38  ;;  %v1852_v37 = vsel %vm1849_vm8, %v13415_v60, %v13425_v62  ;;  %v2170_v31 = vsel %vm16253_vm9, %v13507_v33, %v13557_v39 }
 0x260   : > { %1903 = vmatpush1.msra.mxu1 %v1854_v32  ;;  %1734 = vmatprep.mubr.f32.mxu1 %v16314_v19  ;;  %v12018_v32 = vld [vmem:[%s12989_s17 + $0x28] sm:$0xff]  ;;  %v2166_v60 = vsel %vm16253_vm9, %v13465_v12, %v13433_v1 }
 0x261   : > { %v1848_v55 = vpop.permute.xlu0 %1847  ;;  %1904 = vmatprep.subr.mxu1 %v1851_v2  ;;  %2015 = vmatprep.mubr.f32.mxu0 %v16314_v19  ;;  %v2165_v2 = vsel %vm16253_vm9, %v13419_v61, %v13465_v12 }
 0x262   : > { %1905 = vmatpush1.msra.mxu1 %v1850_v57  ;;  %v1857_v28 = vsel %vm1849_vm8, %v13522_v38, %v1848_v55  ;;  %v12025_v57 = vld [vmem:[%s12989_s17 + $0x30] sm:$0xff] }
 0x263   : > { %v13607_v34 = vpop.permute.xlu1 %3312  ;;  %12014 = vmatmul.mubr.msk.f32.gmra.mxu1 %vm1283_vm6, %v12010_v24  ;;  %1979 = vmatprep.subr.mxu0 %v1857_v28  ;;  %v2171_v24 = vsel %vm16253_vm9, %v13557_v39, %v13531_v43  ;;  %v2172_v28 = vsel %vm16253_vm9, %v13531_v43, %v13536_v45  ;;  %v2464_v43 = vsel %vm16252_vm10, %v13563_v40, %v13543_v51 }
 0x264   : > { %12501 = vmatprep.subr.mxu1 %v1848_v55  ;;  %1980 = vmatpush1.msra.mxu0 %v1856_v53 }
 0x265   : > { %v2161_v52 = vpop.permute.xlu0 %2160  ;;  %1938 = vmatprep.mubr.f32.mxu1 %v16314_v19 }
 0x267   : > { %v1838_v59 = vpop.permute.xlu1 %1837  ;;  %12019 = vmatmul.mubr.msk.f32.vlgmr.msra.gmra.mxu1 %vm1283_vm6, %v12017_v54 }
 0x268   : > { %v1853_v10 = vsel %vm1849_vm8, %v13425_v62, %v1838_v59  ;;  %12502 = vmatpush3.msra.mxu1 %v1848_v55  ;;  %1944 = vmatprep.mubr.f32.mxu1 %v16314_v19  ;;  %v2173_v62 = vsel %vm16253_vm9, %v13536_v45, %v2161_v52 }
 0x269   : > { %1981 = vmatprep.subr.mxu0 %v1853_v10  ;;  %12503 = vmatprep.subr.mxu1 %v1838_v59  ;;  %v2163_v38 = vpop.permute.xlu0 %2162  ;;  %v2459_v10 = vsel %vm16252_vm10, %v13473_v14, %v13448_v7 }
 0x26a   : > { %1982 = vmatpush1.msra.mxu0 %v1852_v37  ;;  %12504 = vmatpush3.msra.mxu1 %v1838_v59  ;;  %v2174_v33 = vsel %vm16253_vm9, %v2161_v52, %v2163_v38  ;;  %v12026_v52 = vld [vmem:[%s12989_s17 + $0x38] sm:$0xff]  ;;  %v2458_v37 = vsel %vm16252_vm10, %v13427_v63, %v13473_v14  ;;  %v2465_v63 = vsel %vm16252_vm10, %v13543_v51, %v13552_v4  ;;  %v12033_v14 = vld [vmem:[%s12989_s17 + $0x40] sm:$0xff] }
 0x26b   : > { %v13625_v58 = vpop.permute.xlu1 %3621  ;;  %12021 = vmatmul.mubr.msk.f32.vlgmr.msra.gmra.mxu0 %vm1283_vm6, %v12017_v54  ;;  %2219 = vmatprep.subr.mxu0 %v2171_v24  ;;  %v2757_v51 = vsel %vm16250_vm11, %v13567_v56, %v13559_v42 }
 0x26c   : > { %2220 = vmatpush1.msra.mxu0 %v2170_v31  ;;  %2021 = vmatprep.mubr.f32.mxu0 %v16314_v19 }
 0x26d   : > { %2221 = vmatprep.subr.mxu0 %v2166_v60  ;;  %2296 = vmatprep.subr.mxu1 %v2173_v62  ;;  %v2454_v55 = vpop.permute.xlu0 %2453  ;;  %v2460_v62 = vsel %vm16252_vm10, %v13448_v7, %v13455_v9  ;;  %v2752_v7 = vsel %vm16250_vm11, %v13480_v18, %v13463_v11 }
 0x26e   : > { %2222 = vmatpush1.msra.mxu0 %v2165_v2  ;;  %12020 = vmatmul.mubr.msk.f32.gmra.mxu1 %vm1283_vm6, %v12018_v32  ;;  %v2756_v2 = vsel %vm16250_vm11, %v13520_v36, %v13567_v56 }
 0x26f   : > { %v2149_v39 = vpop.permute.xlu1 %2148  ;;  %12022 = vmatmul.mubr.msk.f32.gmra.mxu0 %vm1283_vm6, %v12018_v32  ;;  %12508 = vmatprep.subr.mxu0 %v2174_v33 }
 0x270   : > { %12505 = vmatprep.mubr.msk.f32.mxu1 %vm1283_vm6, %v12017_v54  ;;  %2255 = vmatprep.mubr.f32.mxu0 %v16314_v19  ;;  %v2168_v61 = vsel %vm16253_vm9, %v13440_v5, %v2149_v39  ;;  %v2167_v54 = vsel %vm16253_vm9, %v13433_v1, %v13440_v5  ;;  %v2463_v1 = vsel %vm16252_vm10, %v13512_v35, %v13563_v40 }
 0x271   : > { %v2456_v12 = vpop.permute.xlu0 %2455  ;;  %v2466_v35 = vsel %vm16252_vm10, %v13552_v4, %v2454_v55 }
 0x272   : > { %12506 = vmatmul.mubr.msk.f32.vlgmr.msra.gmra.mxu1 %vm1283_vm6, %v12018_v32  ;;  %v2467_v24 = vsel %vm16252_vm10, %v2454_v55, %v2456_v12 }
 0x273   : > { %v13653_v53 = vpop.permute.xlu1 %3607  ;;  %12027 = vmatmul.mubr.msk.f32.vlgmr.msra.gmra.mxu0 %vm1283_vm6, %v12025_v57  ;;  %2297 = vmatpush1.msra.mxu1 %v2172_v28  ;;  %v2758_v28 = vsel %vm16250_vm11, %v13559_v42, %v13565_v46  ;;  %v3050_v42 = vsel %vm16248_vm12, %v13571_v47, %v13569_v8 }
 0x274   : > { %12509 = vmatpush3.msra.mxu0 %v2174_v33  ;;  %2298 = vmatprep.subr.mxu1 %v2168_v61  ;;  %v2751_v33 = vsel %vm16250_vm11, %v13435_v3, %v13480_v18  ;;  %v12041_v18 = vld [vmem:[%s12989_s17 + $0x50] sm:$0xff] }
 0x275   : > { %2299 = vmatpush1.msra.mxu1 %v2167_v54  ;;  %2261 = vmatprep.mubr.f32.mxu0 %v16314_v19  ;;  %v2747_v45 = vpop.permute.xlu0 %2746 }
 0x276   : > { %2332 = vmatprep.mubr.f32.mxu1 %v16314_v19  ;;  %2512 = vmatprep.subr.mxu1 %v2464_v43  ;;  %v2759_v36 = vsel %vm16250_vm11, %v13565_v46, %v2747_v45  ;;  %v2753_v43 = vsel %vm16250_vm11, %v13463_v11, %v13471_v13  ;;  %v3049_v11 = vsel %vm16248_vm12, %v13528_v41, %v13571_v47 }
 0x277   : > { %v2151_v59 = vpop.permute.xlu1 %2150  ;;  %12028 = vmatmul.mubr.msk.f32.gmra.mxu0 %vm1283_vm6, %v12026_v52  ;;  %12029 = vmatmul.mubr.msk.f32.vlgmr.msra.gmra.mxu1 %vm1283_vm6, %v12025_v57 }
 0x278   : > { %v2169_v5 = vsel %vm16253_vm9, %v2149_v39, %v2151_v59  ;;  %2513 = vmatpush1.msra.mxu1 %v2463_v1  ;;  %2338 = vmatprep.mubr.f32.mxu1 %v16314_v19  ;;  %v12034_v39 = vld [vmem:[%s12989_s17 + $0x48] sm:$0xff] }
 0x279   : > { %12510 = vmatprep.subr.mxu0 %v2169_v5  ;;  %2514 = vmatprep.subr.mxu1 %v2459_v10  ;;  %v2749_v38 = vpop.permute.xlu0 %2748  ;;  %v3044_v10 = vsel %vm16248_vm12, %v13442_v6, %v13488_v22  ;;  %v3051_v6 = vsel %vm16248_vm12, %v13569_v8, %v13573_v48  ;;  %v3343_v8 = vsel %vm16247_vm13, %v13575_v49, %v13577_v50 }
 0x27a   : > { %12511 = vmatpush3.msra.mxu0 %v2169_v5  ;;  %2515 = vmatpush1.msra.mxu1 %v2458_v37  ;;  %v2760_v56 = vsel %vm16250_vm11, %v2747_v45, %v2749_v38  ;;  %v12042_v45 = vld [vmem:[%s12989_s17 + $0x58] sm:$0xff]  ;;  %v12049_v38 = vld [vmem:[%s12989_s17 + $0x60] sm:$0xff] }
 0x27b   : > { %2589 = vmatprep.subr.mxu0 %v2466_v35  ;;  %v2442_v40 = vpop.permute.xlu1 %2441  ;;  %12512 = vmatprep.mubr.msk.f32.mxu0 %vm1283_vm6, %v12025_v57  ;;  %v3046_v35 = vsel %vm16248_vm12, %v13478_v16, %v13486_v20 }
 0x27c   : > { %12515 = vmatprep.subr.mxu1 %v2467_v24  ;;  %12030 = vmatmul.mubr.msk.f32.gmra.mxu1 %vm1283_vm6, %v12026_v52  ;;  %v2461_v31 = vsel %vm16252_vm10, %v13455_v9, %v2442_v40 }
 0x27d   : > { %12513 = vmatmul.mubr.msk.f32.vlgmr.msra.gmra.mxu0 %vm1283_vm6, %v12026_v52  ;;  %2548 = vmatprep.mubr.f32.mxu1 %v16314_v19  ;;  %v13691_v32 = vpop.permute.xlu0 %3039 }
 0x27e   : > { %2590 = vmatpush1.msra.mxu0 %v2465_v63  ;;  %2625 = vmatprep.mubr.f32.mxu0 %v16314_v19  ;;  %v3052_v1 = vsel %vm16248_vm12, %v13573_v48, %v13691_v32  ;;  %v3337_v63 = vsel %vm16247_vm13, %v13607_v34, %v13493_v26 }
 0x27f   : > { %2591 = vmatprep.subr.mxu0 %v2461_v31  ;;  %v2444_v60 = vpop.permute.xlu1 %2443 }
 0x280   : > { %2592 = vmatpush1.msra.mxu0 %v2460_v62  ;;  %12035 = vmatmul.mubr.msk.f32.vlgmr.msra.gmra.mxu1 %vm1283_vm6, %v12033_v14  ;;  %v2462_v4 = vsel %vm16252_vm10, %v2442_v40, %v2444_v60  ;;  %v3344_v62 = vsel %vm16247_vm13, %v13577_v50, %v13592_v0 }
 0x281   : > { %2805 = vmatprep.subr.mxu0 %v2757_v51  ;;  %12037 = vmatmul.mubr.msk.f32.vlgmr.msra.gmra.mxu0 %vm1283_vm6, %v12033_v14  ;;  %v3042_v55 = vpop.permute.xlu0 %3041 }
 0x282   : > { %12516 = vmatpush3.msra.mxu1 %v2467_v24  ;;  %2806 = vmatpush1.msra.mxu0 %v2756_v2  ;;  %v3053_v41 = vsel %vm16248_vm12, %v13691_v32, %v3042_v55  ;;  %v12058_v55 = vld [vmem:[%s12989_s17 + $0x78] sm:$0xff] }
 0x283   : > { %12517 = vmatprep.subr.mxu1 %v2462_v4  ;;  %2807 = vmatprep.subr.mxu0 %v2752_v7  ;;  %v2735_v9 = vpop.permute.xlu1 %2734 }
 0x284   : > { %12518 = vmatpush3.msra.mxu1 %v2462_v4  ;;  %2808 = vmatpush1.msra.mxu0 %v2751_v33  ;;  %v2754_v12 = vsel %vm16250_vm11, %v13471_v13, %v2735_v9  ;;  %v3045_v13 = vsel %vm16248_vm12, %v13488_v22, %v13478_v16  ;;  %v3342_v16 = vsel %vm16247_vm13, %v13534_v44, %v13575_v49 }
 0x285   : > { %2554 = vmatprep.mubr.f32.mxu1 %v16314_v19  ;;  %2631 = vmatprep.mubr.f32.mxu0 %v16314_v19  ;;  %v13718_v57 = vpop.permute.xlu0 %3332 }
 0x286   : > { %2882 = vmatprep.subr.mxu1 %v2759_v36  ;;  %12522 = vmatprep.subr.mxu0 %v2760_v56  ;;  %v3345_v44 = vsel %vm16247_vm13, %v13592_v0, %v13718_v57 }
 0x287   : > { %12036 = vmatmul.mubr.msk.f32.gmra.mxu1 %vm1283_vm6, %v12034_v39  ;;  %12038 = vmatmul.mubr.msk.f32.gmra.mxu0 %vm1283_vm6, %v12034_v39  ;;  %v13722_v3 = vpop.permute.xlu1 %3623 }
 0x288   : > { %12519 = vmatprep.mubr.msk.f32.mxu1 %vm1283_vm6, %v12033_v14  ;;  %2841 = vmatprep.mubr.f32.mxu0 %v16314_v19  ;;  %v12050_v14 = vld [vmem:[%s12989_s17 + $0x68] sm:$0xff] }
 0x289   : > { %v13727_v61 = vpop.permute.xlu0 %3318 }
 0x28a   : > { %v3339_v2 = vsel %vm16247_vm13, %v13584_v30, %v13727_v61 }
 0x28b   : > { %12520 = vmatmul.mubr.msk.f32.vlgmr.msra.gmra.mxu1 %vm1283_vm6, %v12034_v39  ;;  %12043 = vmatmul.mubr.msk.f32.vlgmr.msra.gmra.mxu0 %vm1283_vm6, %v12041_v18  ;;  %v2737_v54 = vpop.permute.xlu1 %2736 }
 0x28c   : > { %2883 = vmatpush1.msra.mxu1 %v2758_v28  ;;  %12523 = vmatpush3.msra.mxu0 %v2760_v56  ;;  %v2755_v52 = vsel %vm16250_vm11, %v2735_v9, %v2737_v54 }
 0x28d   : > { %2884 = vmatprep.subr.mxu1 %v2754_v12  ;;  %2847 = vmatprep.mubr.f32.mxu0 %v16314_v19  ;;  %v3335_v59 = vpop.permute.xlu0 %3334 }
 0x28e   : > { %2885 = vmatpush1.msra.mxu1 %v2753_v43  ;;  %2918 = vmatprep.mubr.f32.mxu1 %v16314_v19  ;;  %v3346_v49 = vsel %vm16247_vm13, %v13718_v57, %v3335_v59  ;;  %v13879_v59 = vpop.f32.mrf.mxu1 }
 0x28f   : > { %12524 = vmatprep.subr.mxu0 %v2755_v52  ;;  %3098 = vmatprep.subr.mxu1 %v3050_v42  ;;  %v3028_v46 = vpop.permute.xlu1 %3027 }
 0x290   : > { %12044 = vmatmul.mubr.msk.f32.gmra.mxu0 %vm1283_vm6, %v12042_v45  ;;  %12045 = vmatmul.mubr.msk.f32.vlgmr.msra.gmra.mxu1 %vm1283_vm6, %v12041_v18  ;;  %v3047_v37 = vsel %vm16248_vm12, %v13486_v20, %v3028_v46  ;;  %v3338_v20 = vsel %vm16247_vm13, %v13493_v26, %v13584_v30  ;;  %v12057_v26 = vld [vmem:[%s12989_s17 + $0x70] sm:$0xff] }
 0x291   : > { %12525 = vmatpush3.msra.mxu0 %v2755_v52  ;;  %3099 = vmatpush1.msra.mxu1 %v3049_v11  ;;  %v13757_v5 = vpop.permute.xlu0 %3619 }
 0x292   : > { %3100 = vmatprep.subr.mxu1 %v3045_v13  ;;  %3175 = vmatprep.subr.mxu0 %v3052_v1  ;;  %v3636_v50 = vsel %vm16246_vm14, %v13757_v5, %v13625_v58 }
 0x293   : > { %3101 = vmatpush1.msra.mxu1 %v3044_v10  ;;  %2924 = vmatprep.mubr.f32.mxu1 %v16314_v19  ;;  %v3030_v47 = vpop.permute.xlu1 %3029 }
 0x294   : > { %12526 = vmatprep.mubr.msk.f32.mxu0 %vm1283_vm6, %v12041_v18  ;;  %12529 = vmatprep.subr.mxu1 %v3053_v41  ;;  %v3048_v48 = vsel %vm16248_vm12, %v3028_v46, %v3030_v47  ;;  %v12065_v18 = vld [vmem:[%s12989_s17 + $0x80] sm:$0xff]  ;;  %v13883_v46 = vpop.f32.mrf.mxu1 }
 0x295   : > { %12046 = vmatmul.mubr.msk.f32.gmra.mxu1 %vm1283_vm6, %v12042_v45  ;;  %12527 = vmatmul.mubr.msk.f32.vlgmr.msra.gmra.mxu0 %vm1283_vm6, %v12042_v45  ;;  %v3618_v22 = vpop.permute.xlu0 %3617  ;;  %v13877_v45 = vpop.f32.mrf.mxu0 }
 0x296   : > { %3176 = vmatpush1.msra.mxu0 %v3051_v6  ;;  %3134 = vmatprep.mubr.f32.mxu1 %v16314_v19  ;;  %v3635_v30 = vsel %vm16246_vm14, %v3618_v22, %v13757_v5  ;;  %v13887_v13 = vpop.f32.mrf.mxu1 }
 0x297   : > { %3177 = vmatprep.subr.mxu0 %v3047_v37  ;;  %3211 = vmatprep.mubr.f32.mxu0 %v16314_v19  ;;  %v3321_v40 = vpop.permute.xlu1 %3320  ;;  %v13881_v42 = vpop.f32.mrf.mxu0 }
 0x298   : > { %3178 = vmatpush1.msra.mxu0 %v3046_v35  ;;  %v3340_v60 = vsel %vm16247_vm13, %v13727_v61, %v3321_v40  ;;  %v13891_v5 = vpop.f32.mrf.mxu1 }
 0x299   : > { %3391 = vmatprep.subr.mxu0 %v3343_v8  ;;  %12051 = vmatmul.mubr.msk.f32.vlgmr.msra.gmra.mxu1 %vm1283_vm6, %v12049_v38  ;;  %v13784_v24 = vpop.permute.xlu0 %3609  ;;  %v13885_v11 = vpop.f32.mrf.mxu0 }
 0x29a   : > { %12053 = vmatmul.mubr.msk.f32.vlgmr.msra.gmra.mxu0 %vm1283_vm6, %v12049_v38  ;;  %12530 = vmatpush3.msra.mxu1 %v3053_v41  ;;  %v3631_v9 = vsel %vm16246_vm14, %v13653_v53, %v13784_v24  ;;  %v12493_v41 = vpop.f32.mrf.mxu1 }
 0x29b   : > { %3392 = vmatpush1.msra.mxu0 %v3342_v16  ;;  %12531 = vmatprep.subr.mxu1 %v3048_v48  ;;  %v3606_v31 = vpop.permute.xlu1 %3605  ;;  %v13889_v1 = vpop.f32.mrf.mxu0 }
 0x29c   : > { %3393 = vmatprep.subr.mxu0 %v3338_v20  ;;  %12532 = vmatpush3.msra.mxu1 %v3048_v48  ;;  %v3630_v7 = vsel %vm16246_vm14, %v3606_v31, %v13653_v53  ;;  %v3637_v53 = vsel %vm16246_vm14, %v13625_v58, %v13722_v3  ;;  %v13897_v37 = vpop.f32.mrf.mxu1 }
 0x29d   : > { %3394 = vmatpush1.msra.mxu0 %v3337_v63  ;;  %3140 = vmatprep.mubr.f32.mxu1 %v16314_v19  ;;  %v3626_v32 = vpop.permute.xlu0 %3625 }
 0x29e   : > { %3217 = vmatprep.mubr.f32.mxu0 %v16314_v19  ;;  %3468 = vmatprep.subr.mxu1 %v3345_v44  ;;  %v3638_v39 = vsel %vm16246_vm14, %v13722_v3, %v3626_v32  ;;  %v12066_v3 = vld [vmem:[%s12989_s17 + $0x88] sm:$0xff] }
 0x29f   : > { %12536 = vmatprep.subr.mxu0 %v3346_v49  ;;  %12052 = vmatmul.mubr.msk.f32.gmra.mxu1 %vm1283_vm6, %v12050_v14  ;;  %v3323_v34 = vpop.permute.xlu1 %3322 }
 0x2a0   : > { %12054 = vmatmul.mubr.msk.f32.gmra.mxu0 %vm1283_vm6, %v12050_v14  ;;  %12533 = vmatprep.mubr.msk.f32.mxu1 %vm1283_vm6, %v12049_v38  ;;  %v3341_v51 = vsel %vm16247_vm13, %v3321_v40, %v3323_v34 }
 0x2a1   : > { %3427 = vmatprep.mubr.f32.mxu0 %v16314_v19  ;;  %v3612_v4 = vpop.permute.xlu0 %3611 }
 0x2a2   : > { %v3632_v61 = vsel %vm16246_vm14, %v13784_v24, %v3612_v4 }
 0x2a3   : > { %12534 = vmatmul.mubr.msk.f32.vlgmr.msra.gmra.mxu1 %vm1283_vm6, %v12050_v14  ;;  %v3614_v0 = vpop.permute.xlu1 %3613 }
 0x2a4   : > { %12059 = vmatmul.mubr.msk.f32.vlgmr.msra.gmra.mxu0 %vm1283_vm6, %v12057_v26  ;;  %3469 = vmatpush1.msra.mxu1 %v3344_v62  ;;  %v3633_v36 = vsel %vm16246_vm14, %v3612_v4, %v3614_v0 }
 0x2a5   : > { %12537 = vmatpush3.msra.mxu0 %v3346_v49  ;;  %3470 = vmatprep.subr.mxu1 %v3340_v60  ;;  %v3628_v33 = vpop.permute.xlu0 %3627 }
 0x2a6   : > { %3471 = vmatpush1.msra.mxu1 %v3339_v2  ;;  %3433 = vmatprep.mubr.f32.mxu0 %v16314_v19  ;;  %v3639_v56 = vsel %vm16246_vm14, %v3626_v32, %v3628_v33 }
 0x2a7   : > { %3504 = vmatprep.mubr.f32.mxu1 %v16314_v19  ;;  %12538 = vmatprep.subr.mxu0 %v3341_v51  ;;  %v3616_v57 = vpop.permute.xlu1 %3615 }
 0x2a8   : > { %3684 = vmatprep.subr.mxu1 %v3636_v50  ;;  %12060 = vmatmul.mubr.msk.f32.gmra.mxu0 %vm1283_vm6, %v12058_v55  ;;  %v3634_v58 = vsel %vm16246_vm14, %v3614_v0, %v3616_v57 }
 0x2a9   : > { %12061 = vmatmul.mubr.msk.f32.vlgmr.msra.gmra.mxu1 %vm1283_vm6, %v12057_v26  ;;  %12539 = vmatpush3.msra.mxu0 %v3341_v51 }
 0x2aa   : > { %3685 = vmatpush1.msra.mxu1 %v3635_v30  ;;  %3510 = vmatprep.mubr.f32.mxu1 %v16314_v19 }
 0x2ab   : > { %3686 = vmatprep.subr.mxu1 %v3631_v9  ;;  %12540 = vmatprep.mubr.msk.f32.mxu0 %vm1283_vm6, %v12057_v26 }
 0x2ac   : > { %3687 = vmatpush1.msra.mxu1 %v3630_v7  ;;  %12541 = vmatmul.mubr.msk.f32.vlgmr.msra.gmra.mxu0 %vm1283_vm6, %v12058_v55 }
 0x2ad   : > { %12062 = vmatmul.mubr.msk.f32.gmra.mxu1 %vm1283_vm6, %v12058_v55  ;;  %3761 = vmatprep.subr.mxu0 %v3638_v39 }
 0x2ae   : > { %3762 = vmatpush1.msra.mxu0 %v3637_v53  ;;  %3720 = vmatprep.mubr.f32.mxu1 %v16314_v19 }
 0x2af   : > { %3763 = vmatprep.subr.mxu0 %v3633_v36  ;;  %3797 = vmatprep.mubr.f32.mxu0 %v16314_v19 }
 0x2b0   : > { %3764 = vmatpush1.msra.mxu0 %v3632_v61  ;;  %12543 = vmatprep.subr.mxu1 %v3639_v56 }
 0x2b1   : > { %12067 = vmatmul.mubr.msk.f32.vlgmr.msra.gmra.mxu1 %vm1283_vm6, %v12065_v18  ;;  %12069 = vmatmul.mubr.msk.f32.vlgmr.msra.gmra.mxu0 %vm1283_vm6, %v12065_v18 }
 0x2b2   : > { %3726 = vmatprep.mubr.f32.mxu1 %v16314_v19  ;;  %3803 = vmatprep.mubr.f32.mxu0 %v16314_v19  ;;  %v13857_v12 = vpop.permute.xlu0 %1268 }
 0x2b3   : > { %12544 = vmatpush3.msra.mxu1 %v3639_v56 }
 0x2b4   : > { %12545 = vmatprep.subr.mxu1 %v3634_v58  ;;  %v13871_v52 = vpop.permute.xlu1 %1263 }
 0x2b5   : > { %12068 = vmatmul.mubr.msk.f32.gmra.mxu1 %vm1283_vm6, %v12066_v3  ;;  %12070 = vmatmul.mubr.msk.f32.gmra.mxu0 %vm1283_vm6, %v12066_v3 }
 0x2b6   : > { %12546 = vmatpush3.msra.mxu1 %v3634_v58  ;;  %12547 = vmatprep.mubr.msk.f32.mxu1 %vm1283_vm6, %v12065_v18  ;;  %v13862_v28 = vpop.permute.xlu0 %3909 }
 0x2b7   : > { %16315 = vst [vmem:[#allocation30_spill] sm:$0xff] %v13862_v28  ;;  %3979 = vmatprep.mubr.f32.mxu0 %v16314_v19 }
 0x2b8   : > { %v13873_v43 = vpop.permute.xlu1 %4190 }
 0x2b9   : > { %12548 = vmatmul.mubr.msk.f32.vlgmr.msra.gmra.mxu1 %vm1283_vm6, %v12066_v3  ;;  %16317 = vst [vmem:[#allocation32_spill] sm:$0xff] %v13873_v43  ;;  %4429 = vst.msk [vmem:[#allocation2 + $0x30] sm:$0xff] %vm1188_vm1, %v13873_v43 }
 0x2ba   : > { %v13866_v54 = vpop.permute.xlu0 %4185  ;;  %4050 = vmatprep.mubr.f32.mxu1 %v16314_v19 }
 0x2bb   : > { %16316 = vst [vmem:[#allocation31_spill] sm:$0xff] %v13866_v54  ;;  %4428 = vst.msk [vmem:[#allocation2] sm:$0xff] %vm1188_vm1, %v13866_v54 }
 0x303   : > { %v13893_v10 = vpop.f32.mrf.mxu0 }
 0x305   : > { %v13895_v47 = vpop.f32.mrf.mxu0 }
 0x307   : > { %v13899_v6 = vpop.f32.mrf.mxu0 }
 0x309   : > { %v13905_v35 = vpop.f32.mrf.mxu0 }
 0x31e   : > { %v13909_v8 = vpop.f32.mrf.mxu0 }
 0x31f   : > { %v13901_v22 = vpop.f32.mrf.mxu1 }
 0x320   : > { %v13915_v16 = vpop.f32.mrf.mxu0 }
 0x321   : > { %v13903_v38 = vpop.f32.mrf.mxu1 }
 0x323   : > { %v13907_v40 = vpop.f32.mrf.mxu1 }
 0x325   : > { %v13911_v48 = vpop.f32.mrf.mxu1 }
 0x327   : > { %v13913_v24 = vpop.f32.mrf.mxu1 }
 0x329   : > { %v13917_v20 = vpop.f32.mrf.mxu1 }
 0x32b   : > { %v13919_v31 = vpop.f32.mrf.mxu0 }
 0x32d   : > { %v13921_v63 = vpop.f32.mrf.mxu0 }
 0x32e   : > { %v13923_v14 = vpop.f32.mrf.mxu1 }
 0x32f   : > { %v13925_v44 = vpop.f32.mrf.mxu0 }
 0x330   : > { %v13927_v49 = vpop.f32.mrf.mxu1 }
 0x331   : > { %v13929_v32 = vpop.f32.mrf.mxu0 }
 0x332   : > { %v13931_v26 = vpop.f32.mrf.mxu1 }
 0x333   : > { %v13933_v34 = vpop.f32.mrf.mxu0 }
 0x334   : > { %v13935_v60 = vpop.f32.mrf.mxu1 }
 0x335   : > { %v13937_v62 = vpop.f32.mrf.mxu0 }
 0x337   : > { %v13939_v51 = vpop.f32.mrf.mxu0  ;;  %v13941_v4 = vpop.f32.mrf.mxu1 }
 0x339   : > { %v13943_v2 = vpop.f32.mrf.mxu0  ;;  %v13945_v55 = vpop.f32.mrf.mxu1 }
 0x33c   : > { %v13947_v50 = vpop.f32.mrf.mxu1 }
 0x33d   : > { %v13949_v0 = vpop.f32.mrf.mxu0 }
 0x33e   : > { %v13951_v7 = vpop.f32.mrf.mxu1 }
 0x33f   : > { %v13953_v30 = vpop.f32.mrf.mxu0 }
 0x340   : > { %v13955_v9 = vpop.f32.mrf.mxu1 }
 0x341   : > { %v13957_v33 = vpop.f32.mrf.mxu0 }
 0x342   : > { %v13959_v39 = vpop.f32.mrf.mxu1 }
 0x343   : > { %v13961_v36 = vpop.f32.mrf.mxu0 }
 0x347   : > { %v13963_v53 = vpop.f32.mrf.mxu1  ;;  %v13965_v56 = vpop.f32.mrf.mxu0 }
 0x349   : > { %v13967_v57 = vpop.f32.mrf.mxu1  ;;  %v13969_v18 = vpop.f32.mrf.mxu0 }
 0x34b   : > { %v13971_v61 = vpop.f32.mrf.mxu1  ;;  %v13973_v58 = vpop.f32.mrf.mxu0 }
 0x34d   : > { %v13975_v3 = vpop.f32.mrf.mxu1  ;;  %v13977_v43 = vpop.f32.mrf.mxu0 }
 0x34e   : > { %16318 = vst [vmem:[#allocation33_spill] sm:$0xff] %v13977_v43 }
 0x350   : > { %v13979_v54 = vpop.f32.mrf.mxu0  ;;  %v13981_v28 = vpop.f32.mrf.mxu1 }
 0x351   : > { %16319 = vst [vmem:[#allocation34_spill] sm:$0xff] %v13979_v54  ;;  %16320 = vst [vmem:[#allocation35_spill] sm:$0xff] %v13981_v28 }
 0x352   : > { %v13983_v19 = vpop.f32.mrf.mxu0  ;;  %v13985_v15 = vpop.f32.mrf.mxu1 }
 0x353   : > { %16321 = vst [vmem:[#allocation36_spill] sm:$0xff] %v13983_v19  ;;  %16322 = vst [vmem:[#allocation37_spill] sm:$0xff] %v13985_v15 }
 0x355   : > { %v13987_v21 = vpop.f32.mrf.mxu1  ;;  %v13989_v17 = vpop.f32.mrf.mxu0 }
 0x356   : > { %16323 = vst [vmem:[#allocation38_spill] sm:$0xff] %v13989_v17  ;;  %v1519_v17 = vadd.f32 %v13879_v59, %v13871_v52  ;;  %v1521_v59 = vadd.f32 %v13877_v45, %v13871_v52 }
 0x357   : > { %v13991_v25 = vpop.f32.mrf.mxu1  ;;  %v13993_v23 = vpop.f32.mrf.mxu0 }
 0x358   : > { %16324 = vst [vmem:[#allocation39_spill] sm:$0xff] %v13991_v25  ;;  %16325 = vst [vmem:[#allocation40_spill] sm:$0xff] %v13993_v23 }
 0x359   : > { %v13995_v29 = vpop.f32.mrf.mxu1 }
 0x35a   : > { %16326 = vst [vmem:[#allocation41_spill] sm:$0xff] %v13995_v29  ;;  %v13997_v27 = vpop.f32.mrf.mxu0  ;;  %v1520_v29 = vadd.f32 %v13883_v46, %v13871_v52  ;;  %v1523_v46 = vadd.f32 %v13897_v37, %v13871_v52 }
 0x35b   : > { %16327 = vst [vmem:[#allocation42_spill] sm:$0xff] %v13997_v27  ;;  %v13999_v43 = vpop.f32.mrf.mxu1  ;;  %v1528_v27 = vadd.f32 %v12493_v41, %v13857_v12  ;;  %v1522_v41 = vadd.f32 %v13881_v42, %v13871_v52 }
 0x35c   : > { %16328 = vst [vmem:[#allocation43_spill] sm:$0xff] %v13999_v43  ;;  %v14001_v54 = vpop.f32.mrf.mxu0 }
 0x35d   : > { %16329 = vst [vmem:[#allocation44_spill] sm:$0xff] %v14001_v54  ;;  %v1524_v54 = vadd.f32 %v13887_v13, %v13857_v12  ;;  %v1527_v13 = vadd.f32 %v13889_v1, %v13857_v12  ;;  %v1825_v37 = vadd.f32 %v13909_v8, %v1528_v27  ;;  %v1819_v52 = vadd.f32 %v13903_v38, %v1522_v41  ;;  %v16341_v41 = vld [vmem:[#allocation37_spill] sm:$0xff] }
 0x35f   : > { %v14003_v28 = vpop.f32.mrf.mxu1  ;;  %v1821_v45 = vadd.f32 %v13899_v6, %v1524_v54  ;;  %v2112_v38 = vadd.f32 %v13931_v26, %v1825_v37 }
 0x360   : > { %16330 = vst [vmem:[#allocation45_spill] sm:$0xff] %v14003_v28  ;;  %v14005_v19 = vpop.f32.mrf.mxu0  ;;  %v1820_v28 = vadd.f32 %v13915_v16, %v1523_v46 }
 0x361   : > { %16331 = vst [vmem:[#allocation46_spill] sm:$0xff] %v14005_v19  ;;  %v14007_v15 = vpop.f32.mrf.mxu1  ;;  %v2108_v27 = vadd.f32 %v13923_v14, %v1821_v45  ;;  %v16343_v45 = vld [vmem:[#allocation39_spill] sm:$0xff]  ;;  %v16345_v37 = vld [vmem:[#allocation41_spill] sm:$0xff] }
 0x362   : > { %16332 = vst [vmem:[#allocation47_spill] sm:$0xff] %v14007_v15  ;;  %v14011_v25 = vpop.f32.mrf.mxu0  ;;  %v1525_v15 = vadd.f32 %v13891_v5, %v13857_v12 }
 0x363   : > { %16333 = vst [vmem:[#allocation48_spill] sm:$0xff] %v14011_v25  ;;  %v14015_v23 = vpop.f32.mrf.mxu1  ;;  %v1526_v25 = vadd.f32 %v13885_v11, %v13857_v12  ;;  %v1818_v11 = vadd.f32 %v13901_v22, %v1521_v59  ;;  %v2425_v8 = vadd.f32 %v13939_v51, %v2108_v27 }
 0x364   : > { %16334 = vst [vmem:[#allocation49_spill] sm:$0xff] %v14015_v23  ;;  %v14018_v43 = vpop.f32.mrf.mxu0  ;;  %v1822_v23 = vadd.f32 %v13905_v35, %v1525_v15  ;;  %v2107_v35 = vadd.f32 %v13935_v60, %v1820_v28 }
 0x365   : > { %16335 = vst [vmem:[#allocation50_spill] sm:$0xff] %v14018_v43  ;;  %v14028_v19 = vpop.f32.mrf.mxu1  ;;  %v1816_v43 = vadd.f32 %v13893_v10, %v1519_v17  ;;  %v1823_v12 = vadd.f32 %v13907_v40, %v1526_v25  ;;  %v1824_v17 = vadd.f32 %v13911_v48, %v1527_v13  ;;  %v2105_v54 = vadd.f32 %v13919_v31, %v1818_v11  ;;  %v16342_v13 = vld [vmem:[#allocation38_spill] sm:$0xff]  ;;  %v16344_v11 = vld [vmem:[#allocation40_spill] sm:$0xff] }
 0x366   : > { %16336 = vst [vmem:[#allocation51_spill] sm:$0xff] %v14028_v19  ;;  %v14037_v5 = vpop.f32.mrf.mxu0  ;;  %v1817_v19 = vadd.f32 %v13895_v47, %v1520_v29  ;;  %v2106_v29 = vadd.f32 %v13921_v63, %v1819_v52  ;;  %v2109_v6 = vadd.f32 %v13927_v49, %v1822_v23  ;;  %v2429_v31 = vadd.f32 %v13949_v0, %v2112_v38 }
 0x367   : > { %v2103_v1 = vadd.f32 %v13913_v24, %v1816_v43  ;;  %v2110_v47 = vadd.f32 %v13925_v44, %v1823_v12  ;;  %v2111_v22 = vadd.f32 %v13929_v32, %v1824_v17  ;;  %v2422_v48 = vadd.f32 %v13941_v4, %v2105_v54  ;;  %v16346_v12 = vld [vmem:[#allocation45_spill] sm:$0xff] }
 0x368   : > { %v3435_v42 = vpop.f32.mrf.mxu0  ;;  %v2104_v15 = vadd.f32 %v13917_v20, %v1817_v19  ;;  %v2426_v24 = vadd.f32 %v13943_v2, %v2109_v6  ;;  %v2423_v23 = vadd.f32 %v13945_v55, %v2106_v29  ;;  %v2424_v28 = vadd.f32 %v13953_v30, %v2107_v35  ;;  %v16348_v29 = vld [vmem:[#allocation43_spill] sm:$0xff] }
 0x369   : > { %v14051_v10 = vpop.f32.mrf.mxu1  ;;  %v2420_v43 = vadd.f32 %v13933_v34, %v2103_v1  ;;  %v2427_v20 = vadd.f32 %v13947_v50, %v2110_v47  ;;  %v2428_v63 = vadd.f32 %v13951_v7, %v2111_v22  ;;  %v2715_v49 = vadd.f32 %v13957_v33, %v2422_v48  ;;  %v16337_v7 = vld [vmem:[#allocation33_spill] sm:$0xff]  ;;  %v16347_v1 = vld [vmem:[#allocation46_spill] sm:$0xff]  ;;  %v16349_v47 = vld [vmem:[#allocation44_spill] sm:$0xff] }
 0x36a   : > { %v3437_v25 = vpop.f32.mrf.mxu0  ;;  %v2421_v40 = vadd.f32 %v13937_v62, %v2104_v15  ;;  %v2716_v34 = vadd.f32 %v13961_v36, %v2423_v23  ;;  %v2718_v60 = vadd.f32 %v13963_v53, %v2425_v8  ;;  %v2719_v51 = vadd.f32 %v13967_v57, %v2426_v24  ;;  %v16340_v57 = vld [vmem:[#allocation36_spill] sm:$0xff]  ;;  %v16350_v22 = vld [vmem:[#allocation47_spill] sm:$0xff] }
 0x36b   : > { %v3508_v19 = vpop.f32.mrf.mxu1  ;;  %v2713_v44 = vadd.f32 %v13955_v9, %v2420_v43  ;;  %v2720_v62 = vadd.f32 %v13965_v56, %v2427_v20  ;;  %v2721_v2 = vadd.f32 %v13969_v18, %v2428_v63  ;;  %v2722_v55 = vadd.f32 %v13971_v61, %v2429_v31  ;;  %v16338_v9 = vld [vmem:[#allocation34_spill] sm:$0xff]  ;;  %v16351_v43 = vld [vmem:[#allocation48_spill] sm:$0xff]  ;;  %v16353_v48 = vld [vmem:[#allocation49_spill] sm:$0xff] }
 0x36c   : > { %v12542_v16 = vpop.f32.mrf.mxu0  ;;  %v2714_v32 = vadd.f32 %v13959_v39, %v2421_v40  ;;  %v2717_v0 = vadd.f32 %v13975_v3, %v2424_v28  ;;  %v3011_v33 = vadd.f32 %v16338_v9, %v2718_v60  ;;  %v16339_v39 = vld [vmem:[#allocation35_spill] sm:$0xff]  ;;  %v3012_v46 = vadd.f32 %v16340_v57, %v2719_v51  ;;  %v16352_v40 = vld [vmem:[#allocation42_spill] sm:$0xff]  ;;  %v16358_v57 = vld [vmem:[#allocation24_spill] sm:$0xff] }
 0x36d   : > { %v3512_v14 = vpop.f32.mrf.mxu1  ;;  %v3006_v50 = vadd.f32 %v13973_v58, %v2713_v44  ;;  %v3008_v36 = vadd.f32 %v16339_v39, %v2715_v49  ;;  %v3013_v53 = vadd.f32 %v13987_v21, %v2720_v62  ;;  %v3009_v18 = vadd.f32 %v16341_v41, %v2716_v34  ;;  %v16354_v34 = vld [vmem:[#allocation50_spill] sm:$0xff]  ;;  %v16359_v41 = vld [vmem:[#allocation25_spill] sm:$0xff] }
 0x36e   : > { %v3583_v26 = vpop.f32.mrf.mxu0  ;;  %v3007_v30 = vadd.f32 %v16337_v7, %v2714_v32  ;;  %v3015_v61 = vadd.f32 %v16342_v13, %v2722_v55  ;;  %v3014_v58 = vadd.f32 %v16343_v45, %v2721_v2  ;;  %v3010_v3 = vadd.f32 %v16344_v11, %v2717_v0  ;;  %v16360_v45 = vld [vmem:[#allocation21_spill] sm:$0xff]  ;;  %v16361_v11 = vld [vmem:[#allocation23_spill] sm:$0xff] }
 0x36f   : > { %v3514_v4 = vpop.f32.mrf.mxu1  ;;  %v3299_v52 = vadd.f32 %v16345_v37, %v3006_v50  ;;  %v3304_v17 = vadd.f32 %v16346_v12, %v3011_v33  ;;  %v3306_v54 = vadd.f32 %v16347_v1, %v3013_v53  ;;  %v3302_v6 = vadd.f32 %v16349_v47, %v3009_v18  ;;  %v16364_v12 = vld [vmem:[#allocation28_spill] sm:$0xff] }
 0x370   : > { %v3300_v27 = vadd.f32 %v16348_v29, %v3007_v30  ;;  %v3305_v38 = vadd.f32 %v16350_v22, %v3012_v46  ;;  %v3307_v35 = vadd.f32 %v16351_v43, %v3014_v58  ;;  %v3301_v8 = vadd.f32 %v16352_v40, %v3008_v36  ;;  %v16357_v36 = vld [vmem:[#allocation27_spill] sm:$0xff] }
 0x371   : > { %v3722_v56 = vpop.f32.mrf.mxu1  ;;  %v3799_v59 = vpop.f32.mrf.mxu0  ;;  %v3308_v24 = vadd.f32 %v16353_v48, %v3015_v61  ;;  %v3597_v23 = vadd.f32 %v3435_v42, %v3304_v17  ;;  %v3599_v20 = vadd.f32 %v3512_v14, %v3306_v54  ;;  %v3595_v49 = vadd.f32 %v3508_v19, %v3302_v6  ;;  %v16355_v14 = vld [vmem:[#allocation51_spill] sm:$0xff]  ;;  %v16356_v19 = vld [vmem:[#allocation26_spill] sm:$0xff]  ;;  %v16366_v54 = vld [vmem:[#allocation29_spill] sm:$0xff] }
 0x372   : > { %v3593_v28 = vadd.f32 %v14037_v5, %v3300_v27  ;;  %v3598_v44 = vadd.f32 %v3437_v25, %v3305_v38  ;;  %v3600_v32 = vadd.f32 %v3514_v4, %v3307_v35  ;;  %v3592_v60 = vadd.f32 %v16354_v34, %v3299_v52  ;;  %v931_v29 = vld [vmem:[%s13114_s24] sm:$0x1f] }
 0x373   : > { %v3724_v15 = vpop.f32.mrf.mxu1  ;;  %v3801_v21 = vpop.f32.mrf.mxu0  ;;  %v3594_v62 = vadd.f32 %v14051_v10, %v3301_v8  ;;  %v3303_v9 = vadd.f32 %v16355_v14, %v3010_v3  ;;  %v3601_v33 = vadd.f32 %v12542_v16, %v3308_v24  ;;  %v16362_v16 = vld [vmem:[#allocation20_spill] sm:$0xff]  ;;  %v16365_v1 = vmov 0.0   ;;  %v12890_v34 = vld [vmem:[%s13146_s18] sm:$0xff] }
 0x374   : > { %v3886_v0 = vadd.f32 %v3724_v15, %v3593_v28  ;;  %v3888_v7 = vadd.f32 %v3801_v21, %v3595_v49  ;;  %v3885_v39 = vadd.f32 %v3722_v56, %v3592_v60  ;;  %v4134_v21 = vlaneseq }
 0x375   : > { %v3728_v31 = vpop.f32.mrf.mxu1  ;;  %v3805_v63 = vpop.f32.mrf.mxu0  ;;  %v3887_v5 = vadd.f32 %v3799_v59, %v3594_v62  ;;  %v3596_v10 = vadd.f32 %v3583_v26, %v3303_v9  ;;  %v16363_v59 = vld [vmem:[#allocation22_spill] sm:$0xff]  ;;  %v3905_v26 = vld [vmem:[%s12999_s25] sm:$0xff]  ;;  %vm4132_vm1 = vcmp.gt.f32.partialorder %v931_v29, 0.5  ;;  %v16368_v6 = vmov 0  }
 0x376   : > { %v3890_v51 = vadd.f32 %v3728_v31, %v3597_v23  ;;  %v3892_v55 = vadd.f32 %v3805_v63, %v3599_v20  ;;  %v3896_v58 = vadd.f32 %v3886_v0, %v16360_v45  ;;  %v3898_v3 = vadd.f32 %v3888_v7, %v16361_v11  ;;  %v16372_v20 = vld [vmem:[#allocation30_spill] sm:$0xff] }
 0x377   : > { %v3730_v2 = vpop.f32.mrf.mxu1  ;;  %v3807_v50 = vpop.f32.mrf.mxu0  ;;  %v3895_v56 = vadd.f32 %v3885_v39, %v16362_v16  ;;  %v3897_v37 = vadd.f32 %v3887_v5, %v16363_v59  ;;  %v14124_v27 = vshrl.u32 %v4134_v21, 7  ;;  %v4133_v22 = vsel %vm4132_vm1, 1, %v16368_v6  ;;  %v4182_v16 = vld [vmem:[%s16302_s3 + $0x8] sm:$0xff]  ;;  %v16380_v59 = vld [vmem:[#allocation31_spill] sm:$0xff] }
 0x378   : > { %v3891_v30 = vadd.f32 %v3730_v2, %v3598_v44  ;;  %v3893_v42 = vadd.f32 %v3807_v50, %v3600_v32  ;;  %v3900_v46 = vadd.f32 %v3890_v51, %v16358_v57  ;;  %v3902_v18 = vadd.f32 %v3892_v55, %v16359_v41  ;;  %v12891_v2 = vld [vmem:[%s13146_s18 + $0x10] sm:$0xff]  ;;  %v16384_v21 = vld [vmem:[#allocation32_spill] sm:$0xff] }
 0x379   : > { %v12549_v25 = vpop.f32.mrf.mxu1  ;;  %16367 = vst [vmem:[#allocation33_spill] sm:$0xff] %v14124_v27  ;;  %v16254_v47 = vsub.s32 0, %v14124_v27  ;;  %v4144_v38 = vsub.s32 2, %v14124_v27  ;;  %v4140_v43 = vsub.s32 1, %v14124_v27  ;;  %v4148_v35 = vsub.s32 3, %v14124_v27 }
 0x37a   : > { %v3901_v4 = vadd.f32 %v3891_v30, %v16356_v19  ;;  %v3903_v53 = vadd.f32 %v3893_v42, %v16357_v36  ;;  %v3894_v13 = vadd.f32 %v12549_v25, %v3601_v33  ;;  %v4152_v8 = vsub.s32 4, %v14124_v27  ;;  %v12892_v30 = vld [vmem:[%s13146_s18 + $0x8] sm:$0xff]  ;;  %v12893_v33 = vld [vmem:[%s13146_s18 + $0x18] sm:$0xff]  ;;  %v12894_v19 = vld [vmem:[%s13146_s18 + $0x20] sm:$0xff] }
 0x37b   : > { %v3876_v61 = vpop.f32.mrf.mxu1  ;;  %v14133_v40 = vrot.slane %v4133_v22, %v16254_v47  ;;  %v14136_v48 = vrot.slane %v4133_v22, %v4144_v38  ;;  %v14138_v23 = vrot.slane %v4133_v22, %v4140_v43  ;;  %v14141_v28 = vrot.slane %v4133_v22, %v4148_v35  ;;  %v7132_v27 = vld [vmem:[%s13034_s30] sm:$0xff] }
 0x37c   : > { %3943 = vmatprep.subr.mxu0 %v3901_v4  ;;  %4014 = vmatprep.subr.mxu1 %v3903_v53  ;;  %v3889_v52 = vadd.f32 %v3876_v61, %v3596_v10  ;;  %v3904_v17 = vadd.f32 %v3894_v13, %v16364_v12  ;;  %v14145_v32 = vrot.slane %v4133_v22, %v4152_v8  ;;  %v4181_v13 = vld [vmem:[%s16302_s3] sm:$0xff]  ;;  %s16561_s3 = sld [smem:[#allocation15_spill]] }
 0x37d   : > { %3944 = vmatpush1.msra.mxu0 %v3900_v46  ;;  %4015 = vmatpush1.msra.mxu1 %v3902_v18  ;;  %16369 = vst [vmem:[#allocation34_spill] sm:$0xff] %v14133_v40  ;;  %16370 = vst [vmem:[#allocation35_spill] sm:$0xff] %v14136_v48  ;;  %vm16249_vm1 = vcmp.eq.s32.totalorder %v14133_v40, 1  ;;  %vm4155_vm14 = vcmp.eq.s32.totalorder %v14138_v23, 1  ;;  %vm4157_vm13 = vcmp.eq.s32.totalorder %v14141_v28, 1 }
 0x37e   : > { %3945 = vmatprep.subr.mxu0 %v3896_v58  ;;  %4016 = vmatprep.subr.mxu1 %v3898_v3  ;;  %v3899_v15 = vadd.f32 %v3889_v52, %v16366_v54  ;;  %16371 = vst [vmem:[#allocation36_spill] sm:$0xff] %v14138_v23  ;;  %16373 = vst [vmem:[#allocation37_spill] sm:$0xff] %v14141_v28  ;;  %vm4158_vm12 = vcmp.eq.s32.totalorder %v14145_v32, 1 }
 0x37f   : > { %3946 = vmatpush1.msra.mxu0 %v3895_v56  ;;  %4017 = vmatpush1.msra.mxu1 %v3897_v37  ;;  %16374 = vst [vmem:[#allocation38_spill] sm:$0xff] %v14145_v32  ;;  %v7614_v32 = vld [vmem:[%s13054_s27 + $0x8] sm:$0xff] }
 0x380   : > { %12073 = vmatmul.mubr.msk.f32.vlgmr.msra.gmra.mxu0 %vm1283_vm6, %v3905_v26  ;;  %12550 = vmatprep.subr.mxu0 %v16365_v1 }
 0x381   : > { %12551 = vmatpush3.msra.mxu0 %v3904_v17  ;;  %12074 = vmatmul.mubr.msk.f32.vlgmr.msra.gmra.mxu1 %vm1283_vm6, %v3905_v26 }
 0x382   : > { %12552 = vmatprep.subr.mxu0 %v16365_v1  ;;  %12554 = vmatprep.mubr.msk.f32.mxu0 %vm16244_vm15, %v16365_v1  ;;  %vm16251_vm15 = vcmp.eq.s32.totalorder %v14136_v48, 1 }
 0x383   : > { %12553 = vmatpush3.msra.mxu0 %v3899_v15  ;;  %4263 = vmatprep.mubr.f32.mxu1 %v16365_v1 }
 0x384   : > { %12555 = vmatmul.mubr.msk.f32.vlgmr.msra.gmra.mxu0 %vm1283_vm6, %v3905_v26 }
 0x385   : > { %4340 = vmatprep.mubr.f32.mxu0 %v16365_v1 }
 0x440   : > { %v3981_v24 = vpop.f32.mrf.mxu0 }
 0x441   : > { %v3982_v31 = vadd.f32 %v3981_v24, %v16372_v20  ;;  %v4052_v63 = vpop.f32.mrf.mxu1 }
 0x442   : > { %v3983_v44 = vpop.f32.mrf.mxu0  ;;  %v4053_v49 = vadd.f32 %v4052_v63, %v16372_v20 }
 0x443   : > { %v4127_v60 = vadd.f32 %v12890_v34, %v3982_v31  ;;  %v3984_v62 = vadd.f32 %v3983_v44, %v16372_v20  ;;  %v4054_v51 = vpop.f32.mrf.mxu1 }
 0x444   : > { %v4129_v55 = vadd.f32 %v12891_v2, %v4053_v49  ;;  %v4055_v50 = vadd.f32 %v4054_v51, %v16372_v20  ;;  %v4123_v0 = vpop.f32.mrf.mxu0 }
 0x445   : > { %v4159_v7 = vsel %vm16249_vm1, %v4127_v60, 0.0  ;;  %v4128_v42 = vadd.f32 %v12892_v30, %v3984_v62  ;;  %v4124_v14 = vadd.f32 %v4123_v0, %v16372_v20 }
 0x446   : > { %v4161_v9 = vsel %vm16251_vm15, %v4129_v55, 0.0  ;;  %v4130_v39 = vadd.f32 %v12893_v33, %v4055_v50  ;;  %v12556_v5 = vpop.f32.mrf.mxu0  ;;  %v4169_v25 = vmul.f32 0.05, %v4159_v7  ;;  %vm4164_vm11 = vcmp.ge.f32.partialorder %v4159_v7, 0.0  ;;  %v4506_v33 = vld [vmem:[%s13019_s14] sm:$0xff] }
 0x447   : > { %v4131_v4 = vadd.f32 %v12894_v19, %v4124_v14  ;;  %v4160_v36 = vsel %vm4155_vm14, %v4128_v42, 0.0  ;;  %v4171_v57 = vmul.f32 0.05, %v4161_v9  ;;  %vm4166_vm9 = vcmp.ge.f32.partialorder %v4161_v9, 0.0 }
 0x448   : > { %vm4165_vm1 = vcmp.ge.f32.partialorder %v4160_v36, 0.0  ;;  %v4170_v53 = vmul.f32 0.05, %v4160_v36  ;;  %v4162_v10 = vsel %vm4157_vm13, %v4130_v39, 0.0  ;;  %v14173_v45 = vsel %vm4164_vm11, %v4159_v7, %v4169_v25 }
 0x449   : > { %vm4167_vm15 = vcmp.ge.f32.partialorder %v4162_v10, 0.0  ;;  %v4172_v46 = vmul.f32 0.05, %v4162_v10  ;;  %v4163_v41 = vsel %vm4158_vm12, %v4131_v4, 0.0  ;;  %16376 = vst [vmem:[#allocation40_spill] sm:$0xff] %v14173_v45  ;;  %v14183_v3 = vsel %vm4166_vm9, %v4161_v9, %v4171_v57  ;;  %v4507_v57 = vld [vmem:[%s13019_s14 + $0x8] sm:$0xff] }
 0x44a   : > { %v14169_v18 = vsel %vm4165_vm1, %v4160_v36, %v4170_v53  ;;  %vm4168_vm10 = vcmp.ge.f32.partialorder %v4163_v41, 0.0  ;;  %v4173_v61 = vmul.f32 0.05, %v4163_v41  ;;  %16379 = vst [vmem:[#allocation46_spill] sm:$0xff] %v14183_v3 }
 0x44b   : > { %16375 = vst [vmem:[#allocation39_spill] sm:$0xff] %v14169_v18  ;;  %4229 = vmatprep.subr.mxu1 %v14169_v18  ;;  %v14175_v58 = vsel %vm4167_vm15, %v4162_v10, %v4172_v46 }
 0x44c   : > { %16377 = vst [vmem:[#allocation41_spill] sm:$0xff] %v14175_v58  ;;  %4230 = vmatpush1.msra.mxu1 %v14173_v45  ;;  %4306 = vmatprep.subr.mxu0 %v14175_v58  ;;  %v14179_v11 = vsel %vm4168_vm10, %v4163_v41, %v4173_v61 }
 0x44d   : > { %16378 = vst [vmem:[#allocation45_spill] sm:$0xff] %v14179_v11  ;;  %12076 = vmatmul.mubr.msk.f32.vlgmr.msra.gmra.mxu1 %vm952_vm0, %v4181_v13  ;;  %12557 = vmatprep.subr.mxu1 %v14179_v11 }
 0x44e   : > { %4307 = vmatpush1.msra.mxu0 %v14183_v3  ;;  %12558 = vmatpush3.msra.mxu1 %v14179_v11 }
 0x44f   : > { %12078 = vmatmul.mubr.msk.f32.vlgmr.msra.gmra.mxu0 %vm952_vm0, %v4181_v13  ;;  %4269 = vmatprep.mubr.f32.mxu1 %v16365_v1 }
 0x450   : > { %4346 = vmatprep.mubr.f32.mxu0 %v16365_v1 }
 0x451   : > { %12077 = vmatmul.mubr.msk.f32.gmra.mxu1 %vm952_vm0, %v4182_v16 }
 0x452   : > { %12559 = vmatprep.mubr.msk.f32.mxu1 %vm952_vm0, %v4181_v13 }
 0x453   : > { %12079 = vmatmul.mubr.msk.f32.gmra.mxu0 %vm952_vm0, %v4182_v16 }
 0x454   : > { %4588 = vmatprep.mubr.f32.mxu0 %v16365_v1 }
 0x455   : > { %12560 = vmatmul.mubr.msk.f32.vlgmr.msra.gmra.mxu1 %vm952_vm0, %v4182_v16 }
 0x456   : > { %4665 = vmatprep.mubr.f32.mxu1 %v16365_v1 }
 0x50d   : > { %v4265_v56 = vpop.f32.mrf.mxu1 }
 0x50e   : > { %v14198_v37 = vadd.f32 %v4265_v56, %v16380_v59 }
 0x50f   : > { %v4267_v52 = vpop.f32.mrf.mxu1  ;;  %v4342_v26 = vpop.f32.mrf.mxu0 }
 0x510   : > { %16381 = vst [vmem:[#allocation43_spill] sm:$0xff] %v14198_v37  ;;  %v14201_v12 = vadd.f32 %v4267_v52, %v16380_v59  ;;  %v14204_v17 = vadd.f32 %v4342_v26, %v16380_v59  ;;  %4440 = vrot.lane.b32.xlu0 %v14198_v37, %s12940_s22 }
 0x511   : > { %v4271_v54 = vpop.f32.mrf.mxu1  ;;  %v4344_v22 = vpop.f32.mrf.mxu0 }
 0x512   : > { %16382 = vst [vmem:[#allocation44_spill] sm:$0xff] %v14201_v12  ;;  %16383 = vst [vmem:[#allocation47_spill] sm:$0xff] %v14204_v17  ;;  %4442 = vrot.lane.b32.xlu1 %v14201_v12, %s12940_s22  ;;  %v14211_v29 = vadd.f32 %v4271_v54, %v16384_v21  ;;  %v14221_v35 = vadd.f32 %v4344_v22, %v16380_v59 }
 0x513   : > { %v4273_v15 = vpop.f32.mrf.mxu1  ;;  %v4348_v8 = vpop.f32.mrf.mxu0 }
 0x514   : > { %16385 = vst [vmem:[#allocation48_spill] sm:$0xff] %v14211_v29  ;;  %4444 = vrot.lane.b32.xlu0 %v14204_v17, %s12940_s22  ;;  %v14216_v38 = vadd.f32 %v4273_v15, %v16384_v21  ;;  %16387 = vst [vmem:[#allocation49_spill] sm:$0xff] %v14221_v35  ;;  %v14231_v31 = vadd.f32 %v4348_v8, %v16384_v21 }
 0x515   : > { %v12561_v43 = vpop.f32.mrf.mxu1  ;;  %v4350_v63 = vpop.f32.mrf.mxu0 }
 0x516   : > { %16386 = vst [vmem:[#allocation42_spill] sm:$0xff] %v14216_v38  ;;  %4450 = vrot.lane.b32.xlu1 %v14211_v29, %s12940_s22  ;;  %v14226_v24 = vadd.f32 %v12561_v43, %v16384_v21  ;;  %16389 = vst [vmem:[#allocation51_spill] sm:$0xff] %v14231_v31  ;;  %v14241_v49 = vadd.f32 %v4350_v63, %v16384_v21 }
 0x517   : > { %v4419_v20 = vpop.f32.mrf.mxu1 }
 0x518   : > { %4452 = vrot.lane.b32.xlu0 %v14216_v38, %s12940_s22  ;;  %16388 = vst [vmem:[#allocation50_spill] sm:$0xff] %v14226_v24  ;;  %v14236_v44 = vadd.f32 %v4419_v20, %v16380_v59  ;;  %16391 = vst [vmem:[#allocation27_spill] sm:$0xff] %v14241_v49 }
 0x51a   : > { %4446 = vrot.lane.b32.xlu1 %v14221_v35, %s12940_s22  ;;  %16390 = vst [vmem:[#allocation26_spill] sm:$0xff] %v14236_v44 }
 0x51c   : > { %4458 = vrot.lane.b32.xlu0 %v14226_v24, %s12940_s22 }
 0x51e   : > { %4454 = vrot.lane.b32.xlu1 %v14231_v31, %s12940_s22 }
 0x520   : > { %4448 = vrot.lane.b32.xlu0 %v14236_v44, %s12940_s22 }
 0x522   : > { %4456 = vrot.lane.b32.xlu1 %v14241_v49, %s12940_s22  ;;  %s16492_s22 = sld [smem:[#allocation7_spill]] }
 0x582   : > { %v4441_v34 = vpop.permute.xlu0 %4440 }
 0x583   : > { %4480 = vst.msk [vmem:[#allocation2] sm:$0xff] %vm1242_vm2, %v4441_v34 }
 0x584   : > { %v4443_v60 = vpop.permute.xlu1 %4442 }
 0x585   : > { %v14274_v9 = vsel %vm1221_vm3, %v4441_v34, %v4443_v60 }
 0x586   : > { %v4445_v62 = vpop.permute.xlu0 %4444 }
 0x587   : > { %v14249_v51 = vsel %vm1221_vm3, %v4443_v60, %v4445_v62 }
 0x588   : > { %v4451_v2 = vpop.permute.xlu1 %4450  ;;  %4780 = vrot.lane.b32.xlu1 %v14249_v51, %s12941_s23 }
 0x589   : > { %4486 = vst.msk [vmem:[#allocation2 + $0x30] sm:$0xff] %vm1242_vm2, %v4451_v2  ;;  %vm7872_vm2 = vcmask 293888  }
 0x58a   : > { %v4453_v55 = vpop.permute.xlu0 %4452  ;;  %v14254_v50 = vld [vmem:[#allocation2] sm:$0xff] }
 0x58b   : > { %v14257_v0 = vsel %vm1221_vm3, %v4451_v2, %v4453_v55  ;;  %4776 = vrot.lane.b32.xlu0 %v14254_v50, %s12941_s23 }
 0x58c   : > { %v4447_v7 = vpop.permute.xlu1 %4446  ;;  %5066 = vrot.lane.b32.xlu1 %v14249_v51, %s12942_s26  ;;  %4552 = vmatprep.subr.mxu0 %v14257_v0 }
 0x58d   : > { %v14311_v10 = vsel %vm1221_vm3, %v4445_v62, %v4447_v7 }
 0x58e   : > { %v4459_v30 = vpop.permute.xlu0 %4458 }
 0x58f   : > { %4491 = vst.msk [vmem:[#allocation2 + $0x58] sm:$0xff] %vm1248_vm4, %v4459_v30  ;;  %5062 = vrot.lane.b32.xlu0 %v14254_v50, %s12942_s26 }
 0x590   : > { %4493 = vst.msk [vmem:[#allocation2 + $0x58] sm:$0xff] %vm1256_vm5, %v16384_v21  ;;  %v4455_v42 = vpop.permute.xlu1 %4454  ;;  %v14269_v14 = vld [vmem:[#allocation2 + $0x30] sm:$0xff]  ;;  %5376 = vrot.lane.b32.xlu1 %v14249_v51, %s12943_s28 }
 0x591   : > { %4553 = vmatpush1.msra.mxu0 %v14269_v14  ;;  %v14300_v36 = vsel %vm1221_vm3, %v4453_v55, %v4455_v42 }
 0x592   : > { %v4449_v39 = vpop.permute.xlu0 %4448  ;;  %4554 = vmatprep.subr.mxu0 %v14274_v9 }
 0x593   : > { %v14280_v5 = vsel %vm1221_vm3, %v4447_v7, %v4449_v39  ;;  %4485 = vst.msk [vmem:[#allocation2 + $0x28] sm:$0xff] %vm1248_vm4, %v4449_v39  ;;  %5372 = vrot.lane.b32.xlu0 %v14254_v50, %s12943_s28  ;;  %4555 = vmatpush1.msra.mxu0 %v14254_v50 }
 0x594   : > { %4484 = vst [vmem:[#allocation2 + $0x20] sm:$0xff] %v14280_v5  ;;  %4492 = vst.msk [vmem:[#allocation2 + $0x28] sm:$0xff] %vm1256_vm5, %v16380_v59  ;;  %v4457_v25 = vpop.permute.xlu1 %4456  ;;  %5668 = vrot.lane.b32.xlu1 %v14249_v51, %s12944_s1  ;;  %12082 = vmatmul.mubr.msk.f32.vlgmr.msra.gmra.mxu0 %vm1283_vm6, %v4506_v33 }
 0x595   : > { %v14293_v19 = vsel %vm1221_vm3, %v4455_v42, %v4457_v25  ;;  %v14296_v4 = vsel %vm1221_vm3, %v4457_v25, %v4459_v30  ;;  %4594 = vmatprep.mubr.f32.mxu0 %v16365_v1  ;;  %vm16392_vm3 = vcmask 834560  }
 0x596   : > { %4490 = vst [vmem:[#allocation2 + $0x50] sm:$0xff] %v14296_v4  ;;  %4629 = vmatprep.subr.mxu1 %v14293_v19  ;;  %12562 = vmatprep.subr.mxu0 %v14296_v4  ;;  %vm16393_vm4 = vmmov %vm16392_vm3 }
 0x597   : > { %v14305_v53 = vld [vmem:[#allocation2 + $0x58] sm:$0xff]  ;;  %5664 = vrot.lane.b32.xlu0 %v14254_v50, %s12944_s1  ;;  %4630 = vmatpush1.msra.mxu1 %v14300_v36  ;;  %vm16394_vm5 = vmmov %vm16392_vm3 }
 0x598   : > { %7875 = vst.msk [vmem:[#allocation2 + $0x58] sm:$0xff] %vm7872_vm2, %v16365_v1  ;;  %12563 = vmatpush3.msra.mxu0 %v14296_v4  ;;  %5960 = vrot.lane.b32.xlu1 %v14249_v51, %s12945_s2  ;;  %vm16395_vm9 = vmmov %vm16392_vm3 }
 0x599   : > { %4631 = vmatprep.subr.mxu1 %v14311_v10  ;;  %12564 = vmatprep.subr.mxu0 %v14280_v5  ;;  %vm16396_vm10 = vmmov %vm16392_vm3 }
 0x59a   : > { %4632 = vmatpush1.msra.mxu1 %v14249_v51  ;;  %12565 = vmatpush3.msra.mxu0 %v14280_v5  ;;  %vm16397_vm11 = vmmov %vm16392_vm3 }
 0x59b   : > { %v14323_v46 = vld [vmem:[#allocation2 + $0x28] sm:$0xff]  ;;  %5956 = vrot.lane.b32.xlu0 %v14254_v50, %s12945_s2  ;;  %12083 = vmatmul.mubr.msk.f32.gmra.mxu0 %vm1283_vm6, %v4507_v57  ;;  %vm16398_vm15 = vmmov %vm16392_vm3 }
 0x59c   : > { %7873 = vst.msk [vmem:[#allocation2 + $0x28] sm:$0xff] %vm7872_vm2, %v16365_v1  ;;  %6252 = vrot.lane.b32.xlu1 %v14249_v51, %s12946_s7  ;;  %12566 = vmatprep.mubr.msk.f32.mxu0 %vm1283_vm6, %v4506_v33  ;;  %vm16399_vm1 = vmmov %vm16392_vm3 }
 0x59d   : > { %12084 = vmatmul.mubr.msk.f32.vlgmr.msra.gmra.mxu1 %vm1283_vm6, %v4506_v33  ;;  %vm16400_vm2 = vmmov %vm16399_vm1 }
 0x59e   : > { %4671 = vmatprep.mubr.f32.mxu1 %v16365_v1 }
 0x59f   : > { %6248 = vrot.lane.b32.xlu0 %v14254_v50, %s12946_s7  ;;  %12567 = vmatmul.mubr.msk.f32.vlgmr.msra.gmra.mxu0 %vm1283_vm6, %v4507_v57 }
 0x5a0   : > { %4786 = vrot.lane.b32.xlu1 %v14269_v14, %s12941_s23  ;;  %4961 = vmatprep.mubr.f32.mxu0 %v16365_v1 }
 0x5a1   : > { %12085 = vmatmul.mubr.msk.f32.gmra.mxu1 %vm1283_vm6, %v4507_v57 }
 0x5a2   : > { %4884 = vmatprep.mubr.f32.mxu1 %v16365_v1 }
 0x5a3   : > { %4778 = vrot.lane.b32.xlu0 %v14274_v9, %s12941_s23 }
 0x5a4   : > { %5072 = vrot.lane.b32.xlu1 %v14269_v14, %s12942_s26 }
 0x5a7   : > { %5064 = vrot.lane.b32.xlu0 %v14274_v9, %s12942_s26 }
 0x5a8   : > { %5384 = vrot.lane.b32.xlu1 %v14269_v14, %s12943_s28 }
 0x5ab   : > { %5374 = vrot.lane.b32.xlu0 %v14274_v9, %s12943_s28 }
 0x5ac   : > { %5676 = vrot.lane.b32.xlu1 %v14269_v14, %s12944_s1 }
 0x5af   : > { %5666 = vrot.lane.b32.xlu0 %v14274_v9, %s12944_s1 }
 0x5b0   : > { %5968 = vrot.lane.b32.xlu1 %v14269_v14, %s12945_s2 }
 0x5b3   : > { %5958 = vrot.lane.b32.xlu0 %v14274_v9, %s12945_s2 }
 0x5b4   : > { %6260 = vrot.lane.b32.xlu1 %v14269_v14, %s12946_s7 }
 0x5b7   : > { %6250 = vrot.lane.b32.xlu0 %v14274_v9, %s12946_s7 }
 0x5b8   : > { %6552 = vrot.lane.b32.xlu1 %v14269_v14, %s12947_s10 }
 0x5bb   : > { %6542 = vrot.lane.b32.xlu0 %v14274_v9, %s12947_s10 }
 0x5bc   : > { %4782 = vrot.lane.b32.xlu1 %v14311_v10, %s12941_s23 }
 0x5bf   : > { %4790 = vrot.lane.b32.xlu0 %v14300_v36, %s12941_s23 }
 0x5c0   : > { %5068 = vrot.lane.b32.xlu1 %v14311_v10, %s12942_s26 }
 0x5c3   : > { %5076 = vrot.lane.b32.xlu0 %v14300_v36, %s12942_s26 }
 0x5c4   : > { %5378 = vrot.lane.b32.xlu1 %v14311_v10, %s12943_s28 }
 0x5c7   : > { %5388 = vrot.lane.b32.xlu0 %v14300_v36, %s12943_s28 }
 0x5c8   : > { %5670 = vrot.lane.b32.xlu1 %v14311_v10, %s12944_s1 }
 0x5cb   : > { %5680 = vrot.lane.b32.xlu0 %v14300_v36, %s12944_s1 }
 0x5cc   : > { %5962 = vrot.lane.b32.xlu1 %v14311_v10, %s12945_s2 }
 0x5cf   : > { %5972 = vrot.lane.b32.xlu0 %v14300_v36, %s12945_s2 }
 0x5d0   : > { %6254 = vrot.lane.b32.xlu1 %v14311_v10, %s12946_s7 }
 0x5d3   : > { %6264 = vrot.lane.b32.xlu0 %v14300_v36, %s12946_s7 }
 0x5d4   : > { %4788 = vrot.lane.b32.xlu1 %v14257_v0, %s12941_s23 }
 0x5d7   : > { %6556 = vrot.lane.b32.xlu0 %v14300_v36, %s12947_s10 }
 0x5d8   : > { %5074 = vrot.lane.b32.xlu1 %v14257_v0, %s12942_s26 }
 0x5db   : > { %4792 = vrot.lane.b32.xlu0 %v14293_v19, %s12941_s23 }
 0x5dc   : > { %5386 = vrot.lane.b32.xlu1 %v14257_v0, %s12943_s28 }
 0x5df   : > { %5078 = vrot.lane.b32.xlu0 %v14293_v19, %s12942_s26 }
 0x5e0   : > { %5678 = vrot.lane.b32.xlu1 %v14257_v0, %s12944_s1 }
 0x5e3   : > { %5390 = vrot.lane.b32.xlu0 %v14293_v19, %s12943_s28 }
 0x5e4   : > { %5970 = vrot.lane.b32.xlu1 %v14257_v0, %s12945_s2 }
 0x5e7   : > { %5682 = vrot.lane.b32.xlu0 %v14293_v19, %s12944_s1 }
 0x5e8   : > { %6262 = vrot.lane.b32.xlu1 %v14257_v0, %s12946_s7 }
 0x5eb   : > { %5974 = vrot.lane.b32.xlu0 %v14293_v19, %s12945_s2 }
 0x5ec   : > { %6554 = vrot.lane.b32.xlu1 %v14257_v0, %s12947_s10 }
 0x5ef   : > { %6266 = vrot.lane.b32.xlu0 %v14293_v19, %s12946_s7 }
 0x5f0   : > { %4794 = vrot.lane.b32.xlu1 %v14296_v4, %s12941_s23 }
 0x5f3   : > { %4784 = vrot.lane.b32.xlu0 %v14280_v5, %s12941_s23 }
 0x5f4   : > { %6544 = vrot.lane.b32.xlu1 %v14249_v51, %s12947_s10 }
 0x5f7   : > { %6558 = vrot.lane.b32.xlu0 %v14293_v19, %s12947_s10 }
 0x5f8   : > { %5080 = vrot.lane.b32.xlu1 %v14296_v4, %s12942_s26 }
 0x5fa   : > { %v14431_v41 = vpop.permute.xlu1 %4780 }
 0x5fb   : > { %6540 = vrot.lane.b32.xlu0 %v14254_v50, %s12947_s10 }
 0x5fc   : > { %5392 = vrot.lane.b32.xlu1 %v14296_v4, %s12943_s28 }
 0x5fd   : > { %v14437_v13 = vpop.permute.xlu0 %4776 }
 0x5fe   : > { %v14439_v61 = vpop.permute.xlu1 %5066 }
 0x5ff   : > { %5070 = vrot.lane.b32.xlu0 %v14280_v5, %s12942_s26 }
 0x600   : > { %5394 = vrot.lane.b32.xlu1 %v14305_v53, %s12943_s28 }
 0x601   : > { %v14445_v16 = vpop.permute.xlu0 %5062 }
 0x602   : > { %v14447_v56 = vpop.permute.xlu1 %5376 }
 0x603   : > { %6848 = vrot.lane.b32.xlu0 %v14300_v36, %s12948_s11 }
 0x604   : > { %5684 = vrot.lane.b32.xlu1 %v14296_v4, %s12944_s1 }
 0x605   : > { %v14453_v59 = vpop.permute.xlu0 %5372 }
 0x606   : > { %v14455_v52 = vpop.permute.xlu1 %5668 }
 0x607   : > { %5380 = vrot.lane.b32.xlu0 %v14280_v5, %s12943_s28 }
 0x608   : > { %5686 = vrot.lane.b32.xlu1 %v14305_v53, %s12944_s1 }
 0x609   : > { %v14461_v26 = vpop.permute.xlu0 %5664 }
 0x60a   : > { %v14463_v54 = vpop.permute.xlu1 %5960 }
 0x60b   : > { %6834 = vrot.lane.b32.xlu0 %v14274_v9, %s12948_s11 }
 0x60c   : > { %5976 = vrot.lane.b32.xlu1 %v14296_v4, %s12945_s2 }
 0x60d   : > { %v14469_v15 = vpop.permute.xlu0 %5956 }
 0x60e   : > { %v14471_v21 = vpop.permute.xlu1 %6252 }
 0x60f   : > { %5382 = vrot.lane.b32.xlu0 %v14323_v46, %s12943_s28  ;;  %s16514_s28 = sld [smem:[#allocation8_spill]] }
 0x610   : > { %5978 = vrot.lane.b32.xlu1 %v14305_v53, %s12945_s2 }
 0x611   : > { %v14477_v22 = vpop.permute.xlu0 %6248 }
 0x612   : > { %v4787_v43 = vpop.permute.xlu1 %4786 }
 0x613   : > { %5672 = vrot.lane.b32.xlu0 %v14280_v5, %s12944_s1 }
 0x614   : > { %6268 = vrot.lane.b32.xlu1 %v14296_v4, %s12946_s7 }
 0x615   : > { %v14483_v8 = vpop.permute.xlu0 %4778 }
 0x616   : > { %v14485_v20 = vpop.permute.xlu1 %5072 }
 0x617   : > { %5674 = vrot.lane.b32.xlu0 %v14323_v46, %s12944_s1 }
 0x618   : > { %6270 = vrot.lane.b32.xlu1 %v14305_v53, %s12946_s7 }
 0x619   : > { %v14491_v63 = vpop.permute.xlu0 %5064 }
 0x61a   : > { %v14493_v34 = vpop.permute.xlu1 %5384 }
 0x61b   : > { %5964 = vrot.lane.b32.xlu0 %v14280_v5, %s12945_s2 }
 0x61c   : > { %6560 = vrot.lane.b32.xlu1 %v14296_v4, %s12947_s10 }
 0x61d   : > { %v14499_v60 = vpop.permute.xlu0 %5374 }
 0x61e   : > { %v14501_v62 = vpop.permute.xlu1 %5676 }
 0x61f   : > { %6850 = vrot.lane.b32.xlu0 %v14293_v19, %s12948_s11 }
 0x620   : > { %6546 = vrot.lane.b32.xlu1 %v14311_v10, %s12947_s10 }
 0x621   : > { %v14507_v2 = vpop.permute.xlu0 %5666 }
 0x622   : > { %v14509_v55 = vpop.permute.xlu1 %5968 }
 0x623   : > { %5966 = vrot.lane.b32.xlu0 %v14323_v46, %s12945_s2 }
 0x624   : > { %6562 = vrot.lane.b32.xlu1 %v14305_v53, %s12947_s10 }
 0x625   : > { %v14515_v7 = vpop.permute.xlu0 %5958 }
 0x626   : > { %v14517_v30 = vpop.permute.xlu1 %6260 }
 0x627   : > { %6256 = vrot.lane.b32.xlu0 %v14280_v5, %s12946_s7 }
 0x628   : > { %6846 = vrot.lane.b32.xlu1 %v14257_v0, %s12948_s11 }
 0x629   : > { %v14523_v42 = vpop.permute.xlu0 %6250 }
 0x62a   : > { %v14525_v9 = vpop.permute.xlu1 %6552 }
 0x62b   : > { %6258 = vrot.lane.b32.xlu0 %v14323_v46, %s12946_s7 }
 0x62c   : > { %6844 = vrot.lane.b32.xlu1 %v14269_v14, %s12948_s11 }
 0x62d   : > { %v14531_v33 = vpop.permute.xlu0 %6542 }
 0x62e   : > { %v14533_v39 = vpop.permute.xlu1 %4782 }
 0x62f   : > { %6548 = vrot.lane.b32.xlu0 %v14280_v5, %s12947_s10  ;;  %v4798_v37 = vsel %vm1562_vm7, %v14431_v41, %v14533_v39 }
 0x630   : > { %6836 = vrot.lane.b32.xlu1 %v14249_v51, %s12948_s11 }
 0x631   : > { %v14539_v0 = vpop.permute.xlu0 %4790 }
 0x632   : > { %v14541_v25 = vpop.permute.xlu1 %5068 }
 0x633   : > { %6832 = vrot.lane.b32.xlu0 %v14254_v50, %s12948_s11 }
 0x634   : > { %6852 = vrot.lane.b32.xlu1 %v14296_v4, %s12948_s11  ;;  %v4495_v4 = vld [vmem:[%s13024_s19 + $0x8] sm:$0xff] }
 0x635   : > { %v14547_v14 = vpop.permute.xlu0 %5076 }
 0x636   : > { %v14549_v19 = vpop.permute.xlu1 %5378 }
 0x637   : > { %6550 = vrot.lane.b32.xlu0 %v14323_v46, %s12947_s10 }
 0x638   : > { %6838 = vrot.lane.b32.xlu1 %v14311_v10, %s12948_s11  ;;  %v4494_v10 = vld [vmem:[%s13024_s19] sm:$0xff] }
 0x639   : > { %v14555_v51 = vpop.permute.xlu0 %5388 }
 0x63a   : > { %v14557_v36 = vpop.permute.xlu1 %5670 }
 0x63b   : > { %6840 = vrot.lane.b32.xlu0 %v14280_v5, %s12948_s11  ;;  %v7384_v5 = vld [vmem:[%s13044_s12] sm:$0xff] }
 0x63c   : > { %6854 = vrot.lane.b32.xlu1 %v14305_v53, %s12948_s11 }
 0x63d   : > { %v14563_v50 = vpop.permute.xlu0 %5680 }
 0x63e   : > { %v14566_v57 = vpop.permute.xlu1 %5962 }
 0x63f   : > { %6842 = vrot.lane.b32.xlu0 %v14323_v46, %s12948_s11 }
 0x640   : > { %4503 = vperm.xlu1 %12869, %v4495_v4   ;;  %v7613_v4 = vld [vmem:[%s13054_s27] sm:$0xff] }
 0x641   : > { %v14571_v47 = vpop.permute.xlu0 %5972 }
 0x642   : > { %v14574_v6 = vpop.permute.xlu1 %6254 }
 0x643   : > { %4498 = vperm.xlu0 %12868, %v4494_v10   ;;  %v12088_v10 = vld [vmem:[%s13019_s14 + $0x10] sm:$0xff] }
 0x644   : > { %7135 = vperm.xlu1 %12869, %v7132_v27   ;;  %v4797_v27 = vsel %vm1562_vm7, %v14483_v8, %v14431_v41 }
 0x645   : > { %v14577_v53 = vpop.permute.xlu0 %6264 }
 0x646   : > { %v4789_v28 = vpop.permute.xlu1 %4788 }
 0x647   : > { %7387 = vperm.xlu0 %12868, %v7384_v5   ;;  %v4801_v11 = vsel %vm1562_vm7, %v4789_v28, %v14539_v0  ;;  %v4800_v46 = vsel %vm1562_vm7, %v4787_v43, %v4789_v28  ;;  %v4796_v5 = vsel %vm1562_vm7, %v14437_v13, %v14483_v8 }
 0x648   : > { %7622 = vperm.xlu1 %12869, %v7614_v32   ;;  %4848 = vmatprep.subr.mxu1 %v4801_v11  ;;  %v12089_v32 = vld [vmem:[%s13019_s14 + $0x18] sm:$0xff] }
 0x649   : > { %v14584_v23 = vpop.permute.xlu0 %6556  ;;  %4849 = vmatpush1.msra.mxu1 %v4800_v46 }
 0x64a   : > { %4850 = vmatprep.subr.mxu1 %v4797_v27  ;;  %v5075_v58 = vpop.permute.xlu1 %5074 }
 0x64b   : > { %7617 = vperm.xlu0 %12868, %v7613_v4   ;;  %4851 = vmatpush1.msra.mxu1 %v4796_v5 }
 0x64c   : > { %12090 = vmatmul.mubr.msk.f32.vlgmr.msra.gmra.mxu1 %vm1283_vm6, %v12088_v10 }
 0x64d   : > { %v4793_v28 = vpop.permute.xlu0 %4792  ;;  %4890 = vmatprep.mubr.f32.mxu1 %v16365_v1 }
 0x64e   : > { %v14596_v11 = vpop.permute.xlu1 %5386  ;;  %v4802_v45 = vsel %vm1562_vm7, %v14539_v0, %v4793_v28  ;;  %v12096_v0 = vld [vmem:[%s13019_s14 + $0x20] sm:$0xff] }
 0x650   : > { %12091 = vmatmul.mubr.msk.f32.gmra.mxu1 %vm1283_vm6, %v12089_v32 }
 0x651   : > { %v5079_v43 = vpop.permute.xlu0 %5078  ;;  %12573 = vmatprep.mubr.msk.f32.mxu1 %vm1283_vm6, %v12088_v10 }
 0x652   : > { %v14600_v46 = vpop.permute.xlu1 %5678 }
 0x655   : > { %v14602_v27 = vpop.permute.xlu0 %5390 }
 0x656   : > { %v14604_v13 = vpop.permute.xlu1 %5970 }
 0x659   : > { %v14606_v8 = vpop.permute.xlu0 %5682 }
 0x65a   : > { %v14608_v4 = vpop.permute.xlu1 %6262 }
 0x65d   : > { %v14610_v5 = vpop.permute.xlu0 %5974 }
 0x65e   : > { %v14612_v48 = vpop.permute.xlu1 %6554 }
 0x661   : > { %v14614_v18 = vpop.permute.xlu0 %6266 }
 0x662   : > { %v4795_v40 = vpop.permute.xlu1 %4794 }
 0x663   : > { %12569 = vmatprep.subr.mxu1 %v4795_v40  ;;  %v4803_v3 = vsel %vm1562_vm7, %v4793_v28, %v4795_v40  ;;  %v5402_v28 = vsel %vm16392_vm3, %v14596_v11, %v14555_v51  ;;  %vm16401_vm3 = vcmask 826368  }
 0x664   : > { %4925 = vmatprep.subr.mxu0 %v4803_v3  ;;  %12570 = vmatpush3.msra.mxu1 %v4795_v40  ;;  %v5087_v40 = vsel %vm1849_vm8, %v5075_v58, %v14547_v14 }
 0x665   : > { %v4785_v44 = vpop.permute.xlu0 %4784  ;;  %4926 = vmatpush1.msra.mxu0 %v4802_v45  ;;  %v5086_v45 = vsel %vm1849_vm8, %v14485_v20, %v5075_v58  ;;  %v5088_v20 = vsel %vm1849_vm8, %v14547_v14, %v5079_v43  ;;  %v5084_v14 = vsel %vm1849_vm8, %v14439_v61, %v14541_v25 }
 0x666   : > { %12571 = vmatprep.subr.mxu1 %v4785_v44  ;;  %v4799_v24 = vsel %vm1562_vm7, %v14533_v39, %v4785_v44  ;;  %v14621_v17 = vpop.permute.xlu1 %6544 }
 0x667   : > { %4927 = vmatprep.subr.mxu0 %v4799_v24  ;;  %12572 = vmatpush3.msra.mxu1 %v4785_v44  ;;  %v5083_v24 = vsel %vm1849_vm8, %v14491_v63, %v14439_v61  ;;  %v5082_v44 = vsel %vm1849_vm8, %v14445_v16, %v14491_v63  ;;  %v5397_v61 = vsel %vm16394_vm5, %v14499_v60, %v14447_v56  ;;  %vm16403_vm5 = vmmov %vm16399_vm1 }
 0x668   : > { %4928 = vmatpush1.msra.mxu0 %v4798_v37  ;;  %12574 = vmatmul.mubr.msk.f32.vlgmr.msra.gmra.mxu1 %vm1283_vm6, %v12089_v32 }
 0x669   : > { %v14629_v3 = vpop.permute.xlu0 %6558  ;;  %12092 = vmatmul.mubr.msk.f32.vlgmr.msra.gmra.mxu0 %vm1283_vm6, %v12088_v10  ;;  %5134 = vmatprep.subr.mxu0 %v5087_v40  ;;  %v12097_v40 = vld [vmem:[%s13019_s14 + $0x28] sm:$0xff] }
 0x66a   : > { %5135 = vmatpush1.msra.mxu0 %v5086_v45  ;;  %v5081_v37 = vpop.permute.xlu1 %5080  ;;  %4967 = vmatprep.mubr.f32.mxu0 %v16365_v1 }
 0x66b   : > { %5136 = vmatprep.subr.mxu0 %v5083_v24  ;;  %v5089_v41 = vsel %vm1849_vm8, %v5079_v43, %v5081_v37  ;;  %5247 = vmatprep.mubr.f32.mxu1 %v16365_v1  ;;  %v5401_v43 = vsel %vm16393_vm4, %v14493_v34, %v14596_v11  ;;  %v5396_v24 = vsel %vm16396_vm10, %v14453_v59, %v14499_v60  ;;  %vm16402_vm4 = vmmov %vm16401_vm3 }
 0x66c   : > { %5137 = vmatpush1.msra.mxu0 %v5082_v44  ;;  %5211 = vmatprep.subr.mxu1 %v5089_v41  ;;  %v5403_v60 = vsel %vm16399_vm1, %v14555_v51, %v14602_v27  ;;  %v5694_v51 = vsel %vm16401_vm3, %v14600_v46, %v14563_v50  ;;  %vm16405_vm10 = vmmov %vm16401_vm3 }
 0x66d   : > { %v14643_v58 = vpop.permute.xlu0 %6540  ;;  %12093 = vmatmul.mubr.msk.f32.gmra.mxu0 %vm1283_vm6, %v12089_v32  ;;  %12576 = vmatprep.subr.mxu0 %v5081_v37  ;;  %vm16408_vm1 = vmmov %vm16401_vm3 }
 0x66e   : > { %5212 = vmatpush1.msra.mxu1 %v5088_v20  ;;  %v5393_v39 = vpop.permute.xlu1 %5392  ;;  %5170 = vmatprep.mubr.f32.mxu0 %v16365_v1  ;;  %v5398_v20 = vsel %vm16400_vm2, %v14447_v56, %v14549_v19  ;;  %v5693_v56 = vsel %vm16402_vm4, %v14501_v62, %v14600_v46  ;;  %vm16409_vm2 = vmmov %vm16408_vm1  ;;  %vm16411_vm4 = vcmask 818176  }
 0x671   : > { %v5071_v16 = vpop.permute.xlu0 %5070  ;;  %12098 = vmatmul.mubr.msk.f32.vlgmr.msra.gmra.mxu0 %vm1283_vm6, %v12096_v0 }
 0x672   : > { %v5085_v63 = vsel %vm1849_vm8, %v14541_v25, %v5071_v16  ;;  %12577 = vmatpush3.msra.mxu0 %v5081_v37  ;;  %v5395_v10 = vpop.permute.xlu1 %5394  ;;  %5176 = vmatprep.mubr.f32.mxu0 %v16365_v1  ;;  %v5404_v25 = vsel %vm16395_vm9, %v14602_v27, %v5393_v39  ;;  %v12104_v37 = vld [vmem:[%s13019_s14 + $0x30] sm:$0xff]  ;;  %vm16404_vm9 = vmmov %vm16401_vm3 }
 0x673   : > { %5213 = vmatprep.subr.mxu1 %v5085_v63  ;;  %12578 = vmatprep.subr.mxu0 %v5071_v16  ;;  %v5405_v34 = vsel %vm16397_vm11, %v5393_v39, %v5395_v10  ;;  %v12105_v39 = vld [vmem:[%s13019_s14 + $0x38] sm:$0xff]  ;;  %v5688_v10 = vsel %vm16405_vm10, %v14461_v26, %v14507_v2  ;;  %vm16406_vm11 = vmmov %vm16401_vm3  ;;  %v5695_v26 = vsel %vm16409_vm2, %v14563_v50, %v14606_v8 }
 0x674   : > { %5214 = vmatpush1.msra.mxu1 %v5084_v14  ;;  %12579 = vmatpush3.msra.mxu0 %v5071_v16  ;;  %v5689_v16 = vsel %vm16404_vm9, %v14507_v2, %v14455_v52  ;;  %v12112_v2 = vld [vmem:[%s13019_s14 + $0x40] sm:$0xff]  ;;  %vm16413_vm9 = vmmov %vm16411_vm4 }
 0x675   : > { %v14660_v32 = vpop.permute.xlu0 %6848  ;;  %12100 = vmatmul.mubr.msk.f32.vlgmr.msra.gmra.mxu1 %vm1283_vm6, %v12096_v0  ;;  %5450 = vmatprep.subr.mxu1 %v5402_v28  ;;  %vm16414_vm10 = vmmov %vm16411_vm4 }
 0x676   : > { %5451 = vmatpush1.msra.mxu1 %v5401_v43  ;;  %5253 = vmatprep.mubr.f32.mxu1 %v16365_v1  ;;  %v5685_v45 = vpop.permute.xlu1 %5684 }
 0x677   : > { %5452 = vmatprep.subr.mxu1 %v5397_v61  ;;  %5527 = vmatprep.subr.mxu0 %v5404_v25  ;;  %v5696_v62 = vsel %vm16406_vm11, %v14606_v8, %v5685_v45  ;;  %v5986_v25 = vsel %vm16411_vm4, %v14604_v13, %v14571_v47  ;;  %vm16415_vm11 = vmmov %vm16411_vm4 }
 0x678   : > { %5453 = vmatpush1.msra.mxu1 %v5396_v24  ;;  %12099 = vmatmul.mubr.msk.f32.gmra.mxu0 %vm1283_vm6, %v12097_v40  ;;  %v5980_v24 = vsel %vm16415_vm11, %v14469_v15, %v14515_v7 }
 0x679   : > { %v5381_v11 = vpop.permute.xlu0 %5380  ;;  %12101 = vmatmul.mubr.msk.f32.gmra.mxu1 %vm1283_vm6, %v12097_v40  ;;  %12583 = vmatprep.subr.mxu1 %v5405_v34 }
 0x67a   : > { %12580 = vmatprep.mubr.msk.f32.mxu0 %vm1283_vm6, %v12096_v0  ;;  %5486 = vmatprep.mubr.f32.mxu1 %v16365_v1  ;;  %v5687_v44 = vpop.permute.xlu1 %5686  ;;  %v5399_v59 = vsel %vm16398_vm15, %v14549_v19, %v5381_v11  ;;  %vm16407_vm15 = vmmov %vm16401_vm3 }
 0x67b   : > { %v5697_v14 = vsel %vm16407_vm15, %v5685_v45, %v5687_v44  ;;  %vm16410_vm3 = vmmov %vm16408_vm1  ;;  %v5985_v45 = vsel %vm16413_vm9, %v14509_v55, %v14604_v13  ;;  %vm16422_vm9 = vcmask 621568  }
 0x67c   : > { %12581 = vmatmul.mubr.msk.f32.vlgmr.msra.gmra.mxu0 %vm1283_vm6, %v12097_v40  ;;  %v5690_v61 = vsel %vm16410_vm3, %v14455_v52, %v14557_v36  ;;  %v5981_v52 = vsel %vm16414_vm10, %v14515_v7, %v14463_v54  ;;  %vm16416_vm15 = vmmov %vm16411_vm4  ;;  %v12120_v7 = vld [vmem:[%s13019_s14 + $0x50] sm:$0xff] }
 0x67d   : > { %v14688_v41 = vpop.permute.xlu0 %6834  ;;  %12106 = vmatmul.mubr.msk.f32.vlgmr.msra.gmra.mxu1 %vm1283_vm6, %v12104_v37  ;;  %5528 = vmatpush1.msra.mxu0 %v5403_v60  ;;  %vm16423_vm10 = vmmov %vm16422_vm9 }
 0x67e   : > { %12584 = vmatpush3.msra.mxu1 %v5405_v34  ;;  %5529 = vmatprep.subr.mxu0 %v5399_v59  ;;  %v5977_v0 = vpop.permute.xlu1 %5976  ;;  %v12113_v34 = vld [vmem:[%s13019_s14 + $0x48] sm:$0xff]  ;;  %vm16424_vm11 = vmmov %vm16422_vm9 }
 0x67f   : > { %5530 = vmatpush1.msra.mxu0 %v5398_v20  ;;  %5492 = vmatprep.mubr.f32.mxu1 %v16365_v1  ;;  %v5988_v55 = vsel %vm16416_vm15, %v14610_v5, %v5977_v0  ;;  %vm16425_vm15 = vmmov %vm16422_vm9 }
 0x680   : > { %5563 = vmatprep.mubr.f32.mxu0 %v16365_v1  ;;  %5742 = vmatprep.subr.mxu0 %v5694_v51  ;;  %v12121_v51 = vld [vmem:[%s13019_s14 + $0x58] sm:$0xff] }
 0x681   : > { %v5383_v27 = vpop.permute.xlu0 %5382  ;;  %12107 = vmatmul.mubr.msk.f32.gmra.mxu1 %vm1283_vm6, %v12105_v39  ;;  %12108 = vmatmul.mubr.msk.f32.vlgmr.msra.gmra.mxu0 %vm1283_vm6, %v12104_v37 }
 0x682   : > { %v5400_v19 = vsel %vm16403_vm5, %v5381_v11, %v5383_v27  ;;  %5743 = vmatpush1.msra.mxu0 %v5693_v56  ;;  %5569 = vmatprep.mubr.f32.mxu0 %v16365_v1  ;;  %v5979_v63 = vpop.permute.xlu1 %5978  ;;  %vm16412_vm5 = vmmov %vm16408_vm1  ;;  %v6273_v27 = vsel %vm16424_vm11, %v14523_v42, %v14471_v21 }
 0x683   : > { %12585 = vmatprep.subr.mxu1 %v5400_v19  ;;  %5744 = vmatprep.subr.mxu0 %v5689_v16 }
 0x684   : > { %12586 = vmatpush3.msra.mxu1 %v5400_v19  ;;  %5745 = vmatpush1.msra.mxu0 %v5688_v10 }
 0x685   : > { %v5673_v46 = vpop.permute.xlu0 %5672  ;;  %5819 = vmatprep.subr.mxu1 %v5696_v62  ;;  %12587 = vmatprep.mubr.msk.f32.mxu1 %vm1283_vm6, %v12104_v37 }
 0x686   : > { %12590 = vmatprep.subr.mxu0 %v5697_v14  ;;  %12109 = vmatmul.mubr.msk.f32.gmra.mxu0 %vm1283_vm6, %v12105_v39  ;;  %v5691_v28 = vsel %vm16408_vm1, %v14557_v36, %v5673_v46  ;;  %v14720_v43 = vpop.permute.xlu1 %6268  ;;  %vm16417_vm1 = vmmov %vm16411_vm4 }
 0x687   : > { %12588 = vmatmul.mubr.msk.f32.vlgmr.msra.gmra.mxu1 %vm1283_vm6, %v12105_v39  ;;  %5778 = vmatprep.mubr.f32.mxu0 %v16365_v1  ;;  %v5989_v13 = vsel %vm16417_vm1, %v5977_v0, %v5979_v63  ;;  %vm16418_vm2 = vmmov %vm16417_vm1  ;;  %v6280_v56 = vsel %vm16425_vm15, %v14614_v18, %v14720_v43 }
 0x688   : > { %5820 = vmatpush1.msra.mxu1 %v5695_v26  ;;  %5855 = vmatprep.mubr.f32.mxu1 %v16365_v1  ;;  %vm16419_vm3 = vmmov %vm16417_vm1 }
 0x689   : > { %v5675_v40 = vpop.permute.xlu0 %5674  ;;  %5821 = vmatprep.subr.mxu1 %v5691_v28  ;;  %v5987_v59 = vsel %vm16419_vm3, %v14571_v47, %v14610_v5  ;;  %vm16420_vm4 = vmmov %vm16417_vm1  ;;  %v6278_v47 = vsel %vm16422_vm9, %v14608_v4, %v14577_v53 }
 0x68a   : > { %5822 = vmatpush1.msra.mxu1 %v5690_v61  ;;  %12114 = vmatmul.mubr.msk.f32.vlgmr.msra.gmra.mxu0 %vm1283_vm6, %v12112_v2  ;;  %v5692_v50 = vsel %vm16412_vm5, %v5673_v46, %v5675_v40  ;;  %v6271_v8 = vpop.permute.xlu1 %6270  ;;  %vm16421_vm5 = vmmov %vm16417_vm1 }
 0x68b   : > { %6034 = vmatprep.subr.mxu1 %v5986_v25  ;;  %12116 = vmatmul.mubr.msk.f32.vlgmr.msra.gmra.mxu1 %vm1283_vm6, %v12112_v2  ;;  %v5982_v0 = vsel %vm16421_vm5, %v14463_v54, %v14566_v57  ;;  %v6277_v54 = vsel %vm16423_vm10, %v14517_v30, %v14608_v4  ;;  %vm16426_vm1 = vmmov %vm16422_vm9  ;;  %vm16431_vm9 = vcmask 613376  }
 0x68c   : > { %12591 = vmatpush3.msra.mxu0 %v5697_v14  ;;  %6035 = vmatpush1.msra.mxu1 %v5985_v45  ;;  %v6272_v19 = vsel %vm16426_vm1, %v14477_v22, %v14523_v42  ;;  %vm16428_vm3 = vmmov %vm16426_vm1  ;;  %v12128_v42 = vld [vmem:[%s13019_s14 + $0x60] sm:$0xff]  ;;  %v6570_v46 = vsel %vm16431_vm9, %v14612_v48, %v14584_v23 }
 0x68d   : > { %v5965_v36 = vpop.permute.xlu0 %5964  ;;  %12592 = vmatprep.subr.mxu0 %v5692_v50  ;;  %6036 = vmatprep.subr.mxu1 %v5981_v52  ;;  %vm16430_vm5 = vmmov %vm16426_vm1 }
 0x68e   : > { %12593 = vmatpush3.msra.mxu0 %v5692_v50  ;;  %6037 = vmatpush1.msra.mxu1 %v5980_v24  ;;  %v14748_v11 = vpop.permute.xlu1 %6560  ;;  %v5983_v44 = vsel %vm16418_vm2, %v14566_v57, %v5965_v36  ;;  %vm16427_vm2 = vmmov %vm16426_vm1  ;;  %v6274_v10 = vsel %vm16430_vm5, %v14471_v21, %v14574_v6 }
 0x68f   : > { %5784 = vmatprep.mubr.f32.mxu0 %v16365_v1  ;;  %5861 = vmatprep.mubr.f32.mxu1 %v16365_v1  ;;  %v6281_v30 = vsel %vm16427_vm2, %v14720_v43, %v6271_v8  ;;  %vm16432_vm10 = vmmov %vm16426_vm1  ;;  %v12129_v43 = vld [vmem:[%s13019_s14 + $0x68] sm:$0xff]  ;;  %v12137_v8 = vld [vmem:[%s13019_s14 + $0x78] sm:$0xff] }
 0x690   : > { %6111 = vmatprep.subr.mxu0 %v5988_v55  ;;  %12597 = vmatprep.subr.mxu1 %v5989_v13  ;;  %vm16433_vm11 = vmmov %vm16431_vm9 }
 0x691   : > { %12115 = vmatmul.mubr.msk.f32.gmra.mxu0 %vm1283_vm6, %v12113_v34  ;;  %12117 = vmatmul.mubr.msk.f32.gmra.mxu1 %vm1283_vm6, %v12113_v34  ;;  %v14757_v15 = vpop.permute.xlu0 %6850  ;;  %vm16434_vm15 = vmmov %vm16431_vm9 }
 0x692   : > { %12594 = vmatprep.mubr.msk.f32.mxu0 %vm1283_vm6, %v12112_v2  ;;  %6070 = vmatprep.mubr.f32.mxu1 %v16365_v1  ;;  %v14762_v37 = vpop.permute.xlu1 %6546  ;;  %v6565_v21 = vsel %vm16434_vm15, %v14531_v33, %v14621_v17 }
 0x695   : > { %12595 = vmatmul.mubr.msk.f32.vlgmr.msra.gmra.mxu0 %vm1283_vm6, %v12113_v34  ;;  %12122 = vmatmul.mubr.msk.f32.vlgmr.msra.gmra.mxu1 %vm1283_vm6, %v12120_v7  ;;  %v5967_v60 = vpop.permute.xlu0 %5966 }
 0x696   : > { %6112 = vmatpush1.msra.mxu0 %v5987_v59  ;;  %12598 = vmatpush3.msra.mxu1 %v5989_v13  ;;  %v5984_v20 = vsel %vm16420_vm4, %v5965_v36, %v5967_v60  ;;  %v14772_v39 = vpop.permute.xlu1 %6562  ;;  %vm16429_vm4 = vmmov %vm16426_vm1  ;;  %v12144_v13 = vld [vmem:[%s13019_s14 + $0x80] sm:$0xff] }
 0x697   : > { %6113 = vmatprep.subr.mxu0 %v5983_v44  ;;  %6076 = vmatprep.mubr.f32.mxu1 %v16365_v1  ;;  %v6279_v22 = vsel %vm16429_vm4, %v14577_v53, %v14614_v18  ;;  %vm16435_vm1 = vmmov %vm16431_vm9  ;;  %v14906_v44 = vpop.f32.mrf.mxu1 }
 0x698   : > { %6114 = vmatpush1.msra.mxu0 %v5982_v0  ;;  %6147 = vmatprep.mubr.f32.mxu0 %v16365_v1  ;;  %v6564_v28 = vsel %vm16435_vm1, %v14643_v58, %v14531_v33  ;;  %vm16436_vm2 = vmmov %vm16435_vm1  ;;  %v12136_v33 = vld [vmem:[%s13019_s14 + $0x70] sm:$0xff] }
 0x699   : > { %12599 = vmatprep.subr.mxu1 %v5984_v20  ;;  %6326 = vmatprep.subr.mxu0 %v6278_v47  ;;  %v6257_v5 = vpop.permute.xlu0 %6256  ;;  %vm16438_vm4 = vmmov %vm16435_vm1  ;;  %v14910_v60 = vpop.f32.mrf.mxu1 }
 0x69a   : > { %12123 = vmatmul.mubr.msk.f32.gmra.mxu1 %vm1283_vm6, %v12121_v51  ;;  %12124 = vmatmul.mubr.msk.f32.vlgmr.msra.gmra.mxu0 %vm1283_vm6, %v12120_v7  ;;  %v14788_v57 = vpop.permute.xlu1 %6846  ;;  %v6275_v16 = vsel %vm16428_vm3, %v14574_v6, %v6257_v5  ;;  %v6569_v6 = vsel %vm16433_vm11, %v14525_v9, %v14612_v48  ;;  %v6572_v48 = vsel %vm16436_vm2, %v14629_v3, %v14748_v11  ;;  %vm16437_vm3 = vmmov %vm16435_vm1  ;;  %vm16442_vm11 = vcmask 605184  }
 0x69b   : > { %12600 = vmatpush3.msra.mxu1 %v5984_v20  ;;  %6327 = vmatpush1.msra.mxu0 %v6277_v54  ;;  %v6573_v9 = vsel %vm16437_vm3, %v14748_v11, %v14772_v39  ;;  %vm16439_vm5 = vmmov %vm16435_vm1  ;;  %v14914_v39 = vpop.f32.mrf.mxu1 }
 0x69c   : > { %6328 = vmatprep.subr.mxu0 %v6273_v27  ;;  %6403 = vmatprep.subr.mxu1 %v6280_v56  ;;  %v6571_v40 = vsel %vm16439_vm5, %v14584_v23, %v14629_v3  ;;  %vm16440_vm9 = vmmov %vm16435_vm1  ;;  %v6862_v23 = vsel %vm16442_vm11, %v14788_v57, %v14660_v32 }
 0x69d   : > { %6329 = vmatpush1.msra.mxu0 %v6272_v19  ;;  %6153 = vmatprep.mubr.f32.mxu0 %v16365_v1  ;;  %v6259_v4 = vpop.permute.xlu0 %6258  ;;  %vm16443_vm15 = vmmov %vm16442_vm11 }
 0x69e   : > { %12601 = vmatprep.mubr.msk.f32.mxu1 %vm1283_vm6, %v12120_v7  ;;  %12604 = vmatprep.subr.mxu0 %v6281_v30  ;;  %v14805_v63 = vpop.permute.xlu1 %6844  ;;  %v6276_v18 = vsel %vm16432_vm10, %v6257_v5, %v6259_v4  ;;  %vm16441_vm10 = vmmov %vm16435_vm1 }
 0x69f   : > { %12125 = vmatmul.mubr.msk.f32.gmra.mxu0 %vm1283_vm6, %v12121_v51  ;;  %12602 = vmatmul.mubr.msk.f32.vlgmr.msra.gmra.mxu1 %vm1283_vm6, %v12121_v51  ;;  %v6566_v50 = vsel %vm16441_vm10, %v14621_v17, %v14762_v37  ;;  %vm16444_vm1 = vmmov %vm16442_vm11  ;;  %v14918_v51 = vpop.f32.mrf.mxu1 }
 0x6a0   : > { %6404 = vmatpush1.msra.mxu1 %v6279_v22  ;;  %6362 = vmatprep.mubr.f32.mxu0 %v16365_v1  ;;  %v6861_v17 = vsel %vm16444_vm1, %v14805_v63, %v14788_v57  ;;  %vm16445_vm2 = vmmov %vm16444_vm1 }
 0x6a1   : > { %6405 = vmatprep.subr.mxu1 %v6275_v16  ;;  %6439 = vmatprep.mubr.f32.mxu1 %v16365_v1  ;;  %v6549_v62 = vpop.permute.xlu0 %6548  ;;  %vm16446_vm3 = vmmov %vm16444_vm1 }
 0x6a2   : > { %6406 = vmatpush1.msra.mxu1 %v6274_v10  ;;  %v14822_v53 = vpop.permute.xlu1 %6836  ;;  %v6567_v2 = vsel %vm16438_vm4, %v14762_v37, %v6549_v62  ;;  %vm16447_vm4 = vmmov %vm16444_vm1  ;;  %v14904_v37 = vpop.f32.mrf.mxu0 }
 0x6a3   : > { %6618 = vmatprep.subr.mxu1 %v6570_v46  ;;  %12130 = vmatmul.mubr.msk.f32.vlgmr.msra.gmra.mxu0 %vm1283_vm6, %v12128_v42  ;;  %v6857_v52 = vsel %vm16445_vm2, %v14688_v41, %v14822_v53  ;;  %vm16448_vm5 = vmmov %vm16444_vm1 }
 0x6a4   : > { %12132 = vmatmul.mubr.msk.f32.vlgmr.msra.gmra.mxu1 %vm1283_vm6, %v12128_v42  ;;  %12605 = vmatpush3.msra.mxu0 %v6281_v30  ;;  %vm16450_vm10 = vmmov %vm16444_vm1  ;;  %v14908_v59 = vpop.f32.mrf.mxu0 }
 0x6a5   : > { %6619 = vmatpush1.msra.mxu1 %v6569_v6  ;;  %12606 = vmatprep.subr.mxu0 %v6276_v18  ;;  %v6833_v14 = vpop.permute.xlu0 %6832  ;;  %vm16451_vm11 = vmmov %vm16444_vm1 }
 0x6a6   : > { %6620 = vmatprep.subr.mxu1 %v6565_v21  ;;  %12607 = vmatpush3.msra.mxu0 %v6276_v18  ;;  %v6853_v26 = vpop.permute.xlu1 %6852  ;;  %v6856_v45 = vsel %vm16443_vm15, %v6833_v14, %v14688_v41  ;;  %v6863_v41 = vsel %vm16448_vm5, %v14660_v32, %v14757_v15  ;;  %v14912_v20 = vpop.f32.mrf.mxu0  ;;  %vm16502_vm15 = vmmov 0  }
 0x6a7   : > { %6621 = vmatpush1.msra.mxu1 %v6564_v28  ;;  %6368 = vmatprep.mubr.f32.mxu0 %v16365_v1  ;;  %v6864_v24 = vsel %vm16446_vm3, %v14757_v15, %v6853_v26  ;;  %v12145_v15 = vld [vmem:[%s13019_s14 + $0x88] sm:$0xff] }
 0x6a8   : > { %6445 = vmatprep.mubr.f32.mxu1 %v16365_v1  ;;  %6695 = vmatprep.subr.mxu0 %v6572_v48  ;;  %v14916_v0 = vpop.f32.mrf.mxu0 }
 0x6a9   : > { %12611 = vmatprep.subr.mxu1 %v6573_v9  ;;  %12131 = vmatmul.mubr.msk.f32.gmra.mxu0 %vm1283_vm6, %v12129_v43  ;;  %v6551_v58 = vpop.permute.xlu0 %6550 }
 0x6aa   : > { %12133 = vmatmul.mubr.msk.f32.gmra.mxu1 %vm1283_vm6, %v12129_v43  ;;  %12608 = vmatprep.mubr.msk.f32.mxu0 %vm1283_vm6, %v12128_v42  ;;  %v6568_v61 = vsel %vm16440_vm9, %v6549_v62, %v6551_v58  ;;  %v6839_v25 = vpop.permute.xlu1 %6838  ;;  %vm16449_vm9 = vmmov %vm16444_vm1  ;;  %v14922_v5 = vpop.f32.mrf.mxu0 }
 0x6ab   : > { %6654 = vmatprep.mubr.f32.mxu1 %v16365_v1  ;;  %v6858_v7 = vsel %vm16450_vm10, %v14822_v53, %v6839_v25  ;;  %vm8344_vm10 = vcmask 1022976  }
 0x6ac   : > { %v14926_v57 = vpop.f32.mrf.mxu0 }
 0x6ad   : > { %12609 = vmatmul.mubr.msk.f32.vlgmr.msra.gmra.mxu0 %vm1283_vm6, %v12129_v43  ;;  %v6841_v3 = vpop.permute.xlu0 %6840 }
 0x6ae   : > { %12138 = vmatmul.mubr.msk.f32.vlgmr.msra.gmra.mxu1 %vm1283_vm6, %v12136_v33  ;;  %6696 = vmatpush1.msra.mxu0 %v6571_v40  ;;  %v6855_v36 = vpop.permute.xlu1 %6854  ;;  %v6859_v34 = vsel %vm16447_vm4, %v6839_v25, %v6841_v3 }
 0x6af   : > { %12612 = vmatpush3.msra.mxu1 %v6573_v9  ;;  %6697 = vmatprep.subr.mxu0 %v6567_v2  ;;  %v6865_v11 = vsel %vm16449_vm9, %v6853_v26, %v6855_v36 }
 0x6b0   : > { %6698 = vmatpush1.msra.mxu0 %v6566_v50  ;;  %6660 = vmatprep.mubr.f32.mxu1 %v16365_v1 }
 0x6b1   : > { %6731 = vmatprep.mubr.f32.mxu0 %v16365_v1  ;;  %12613 = vmatprep.subr.mxu1 %v6568_v61  ;;  %v6843_v55 = vpop.permute.xlu0 %6842 }
 0x6b2   : > { %6910 = vmatprep.subr.mxu0 %v6862_v23  ;;  %12139 = vmatmul.mubr.msk.f32.gmra.mxu1 %vm1283_vm6, %v12137_v8  ;;  %v6860_v32 = vsel %vm16451_vm11, %v6841_v3, %v6843_v55  ;;  %vm16519_vm11 = vcmask 826368  }
 0x6b3   : > { %12140 = vmatmul.mubr.msk.f32.vlgmr.msra.gmra.mxu0 %vm1283_vm6, %v12136_v33  ;;  %12614 = vmatpush3.msra.mxu1 %v6568_v61 }
 0x6b4   : > { %6911 = vmatpush1.msra.mxu0 %v6861_v17  ;;  %6737 = vmatprep.mubr.f32.mxu0 %v16365_v1 }
 0x6b5   : > { %6912 = vmatprep.subr.mxu0 %v6857_v52  ;;  %12615 = vmatprep.mubr.msk.f32.mxu1 %vm1283_vm6, %v12136_v33 }
 0x6b6   : > { %6913 = vmatpush1.msra.mxu0 %v6856_v45  ;;  %12616 = vmatmul.mubr.msk.f32.vlgmr.msra.gmra.mxu1 %vm1283_vm6, %v12137_v8 }
 0x6b7   : > { %12141 = vmatmul.mubr.msk.f32.gmra.mxu0 %vm1283_vm6, %v12137_v8  ;;  %6987 = vmatprep.subr.mxu1 %v6864_v24 }
 0x6b8   : > { %6988 = vmatpush1.msra.mxu1 %v6863_v41  ;;  %6946 = vmatprep.mubr.f32.mxu0 %v16365_v1 }
 0x6b9   : > { %6989 = vmatprep.subr.mxu1 %v6859_v34  ;;  %7023 = vmatprep.mubr.f32.mxu1 %v16365_v1 }
 0x6ba   : > { %6990 = vmatpush1.msra.mxu1 %v6858_v7  ;;  %12618 = vmatprep.subr.mxu0 %v6865_v11 }
 0x6bb   : > { %12146 = vmatmul.mubr.msk.f32.vlgmr.msra.gmra.mxu0 %vm1283_vm6, %v12144_v13  ;;  %12148 = vmatmul.mubr.msk.f32.vlgmr.msra.gmra.mxu1 %vm1283_vm6, %v12144_v13 }
 0x6bc   : > { %6952 = vmatprep.mubr.f32.mxu0 %v16365_v1  ;;  %7029 = vmatprep.mubr.f32.mxu1 %v16365_v1 }
 0x6bd   : > { %12619 = vmatpush3.msra.mxu0 %v6865_v11 }
 0x6be   : > { %12620 = vmatprep.subr.mxu0 %v6860_v32 }
 0x6bf   : > { %12147 = vmatmul.mubr.msk.f32.gmra.mxu0 %vm1283_vm6, %v12145_v15  ;;  %12149 = vmatmul.mubr.msk.f32.gmra.mxu1 %vm1283_vm6, %v12145_v15 }
 0x6c0   : > { %12621 = vmatpush3.msra.mxu0 %v6860_v32  ;;  %12622 = vmatprep.mubr.msk.f32.mxu0 %vm1283_vm6, %v12144_v13 }
 0x6c1   : > { %7205 = vmatprep.mubr.f32.mxu1 %v16365_v1 }
 0x6c3   : > { %12623 = vmatmul.mubr.msk.f32.vlgmr.msra.gmra.mxu0 %vm1283_vm6, %v12145_v15 }
 0x6c4   : > { %7276 = vmatprep.mubr.f32.mxu0 %v16365_v1 }
 0x70c   : > { %v14920_v47 = vpop.f32.mrf.mxu1 }
 0x70e   : > { %v14924_v54 = vpop.f32.mrf.mxu1 }
 0x710   : > { %v14928_v27 = vpop.f32.mrf.mxu1 }
 0x712   : > { %v14934_v30 = vpop.f32.mrf.mxu1 }
 0x728   : > { %v14938_v16 = vpop.f32.mrf.mxu1 }
 0x729   : > { %v14930_v56 = vpop.f32.mrf.mxu0 }
 0x72a   : > { %v14944_v42 = vpop.f32.mrf.mxu1 }
 0x72b   : > { %v14932_v19 = vpop.f32.mrf.mxu0 }
 0x72d   : > { %v14936_v4 = vpop.f32.mrf.mxu0 }
 0x72f   : > { %v14940_v63 = vpop.f32.mrf.mxu0 }
 0x731   : > { %v14942_v22 = vpop.f32.mrf.mxu0 }
 0x733   : > { %v14946_v10 = vpop.f32.mrf.mxu0 }
 0x735   : > { %v14948_v62 = vpop.f32.mrf.mxu1 }
 0x737   : > { %v14950_v46 = vpop.f32.mrf.mxu1 }
 0x738   : > { %v14952_v18 = vpop.f32.mrf.mxu0 }
 0x739   : > { %v14954_v53 = vpop.f32.mrf.mxu1 }
 0x73a   : > { %v14956_v6 = vpop.f32.mrf.mxu0 }
 0x73b   : > { %v14958_v21 = vpop.f32.mrf.mxu1 }
 0x73c   : > { %v14960_v14 = vpop.f32.mrf.mxu0 }
 0x73d   : > { %v14962_v28 = vpop.f32.mrf.mxu1 }
 0x73e   : > { %v14964_v43 = vpop.f32.mrf.mxu0 }
 0x73f   : > { %v14966_v48 = vpop.f32.mrf.mxu1 }
 0x741   : > { %v14968_v9 = vpop.f32.mrf.mxu1  ;;  %v14970_v26 = vpop.f32.mrf.mxu0 }
 0x743   : > { %v14972_v33 = vpop.f32.mrf.mxu1  ;;  %v14974_v58 = vpop.f32.mrf.mxu0 }
 0x746   : > { %v14976_v2 = vpop.f32.mrf.mxu0 }
 0x747   : > { %v14978_v40 = vpop.f32.mrf.mxu1 }
 0x748   : > { %v14980_v61 = vpop.f32.mrf.mxu0 }
 0x749   : > { %v14982_v25 = vpop.f32.mrf.mxu1 }
 0x74a   : > { %v14984_v50 = vpop.f32.mrf.mxu0 }
 0x74b   : > { %v14986_v8 = vpop.f32.mrf.mxu1 }
 0x74c   : > { %v14988_v23 = vpop.f32.mrf.mxu0 }
 0x74d   : > { %v14990_v3 = vpop.f32.mrf.mxu1 }
 0x751   : > { %v14992_v45 = vpop.f32.mrf.mxu0  ;;  %v14994_v17 = vpop.f32.mrf.mxu1 }
 0x753   : > { %v14996_v52 = vpop.f32.mrf.mxu0  ;;  %v14998_v36 = vpop.f32.mrf.mxu1 }
 0x755   : > { %v15000_v24 = vpop.f32.mrf.mxu0  ;;  %v15002_v34 = vpop.f32.mrf.mxu1 }
 0x757   : > { %v15004_v41 = vpop.f32.mrf.mxu0  ;;  %v15006_v11 = vpop.f32.mrf.mxu1 }
 0x758   : > { %16452 = vst [vmem:[#allocation24_spill] sm:$0xff] %v15006_v11 }
 0x75a   : > { %v15008_v55 = vpop.f32.mrf.mxu1  ;;  %v15010_v13 = vpop.f32.mrf.mxu0 }
 0x75b   : > { %16453 = vst [vmem:[#allocation25_spill] sm:$0xff] %v15008_v55  ;;  %16454 = vst [vmem:[#allocation21_spill] sm:$0xff] %v15010_v13 }
 0x75c   : > { %v15012_v7 = vpop.f32.mrf.mxu1  ;;  %v15014_v32 = vpop.f32.mrf.mxu0 }
 0x75d   : > { %16455 = vst [vmem:[#allocation23_spill] sm:$0xff] %v15012_v7  ;;  %16456 = vst [vmem:[#allocation20_spill] sm:$0xff] %v15014_v32  ;;  %v4504_v7 = vpop.permute.xlu1 %4503 }
 0x75f   : > { %v15016_v15 = vpop.f32.mrf.mxu0  ;;  %v15018_v1 = vpop.f32.mrf.mxu1 }
 0x760   : > { %16457 = vst [vmem:[#allocation22_spill] sm:$0xff] %v15016_v15  ;;  %16458 = vst [vmem:[#allocation28_spill] sm:$0xff] %v15018_v1  ;;  %v4499_v15 = vpop.permute.xlu0 %4498 }
 0x761   : > { %v15020_v35 = vpop.f32.mrf.mxu0  ;;  %v15022_v12 = vpop.f32.mrf.mxu1 }
 0x762   : > { %16459 = vst [vmem:[#allocation29_spill] sm:$0xff] %v15020_v35  ;;  %16460 = vst [vmem:[#allocation30_spill] sm:$0xff] %v15022_v12 }
 0x763   : > { %v15024_v31 = vpop.f32.mrf.mxu0 }
 0x764   : > { %16461 = vst [vmem:[#allocation31_spill] sm:$0xff] %v15024_v31  ;;  %v15026_v29 = vpop.f32.mrf.mxu1  ;;  %v4753_v31 = vadd.f32 %v14904_v37, %v4499_v15 }
 0x765   : > { %16462 = vst [vmem:[#allocation32_spill] sm:$0xff] %v15026_v29  ;;  %v15028_v49 = vpop.f32.mrf.mxu0  ;;  %v4758_v29 = vadd.f32 %v14912_v20, %v4504_v7  ;;  %v4757_v20 = vadd.f32 %v14926_v57, %v4499_v15 }
 0x766   : > { %16463 = vst [vmem:[#allocation52_spill] sm:$0xff] %v15028_v49  ;;  %v15030_v38 = vpop.f32.mrf.mxu1  ;;  %v4759_v49 = vadd.f32 %v14916_v0, %v4504_v7  ;;  %v5049_v37 = vadd.f32 %v14920_v47, %v4753_v31  ;;  %v4761_v0 = vadd.f32 %v14918_v51, %v4504_v7 }
 0x767   : > { %16464 = vst [vmem:[#allocation53_spill] sm:$0xff] %v15030_v38  ;;  %v4754_v38 = vadd.f32 %v14908_v59, %v4499_v15 }
 0x768   : > { %v5057_v51 = vadd.f32 %v14940_v63, %v4761_v0 }
 0x769   : > { %v15032_v13 = vpop.f32.mrf.mxu0  ;;  %v5050_v59 = vadd.f32 %v14924_v54, %v4754_v38 }
 0x76a   : > { %16465 = vst [vmem:[#allocation54_spill] sm:$0xff] %v15032_v13  ;;  %v15034_v32 = vpop.f32.mrf.mxu1  ;;  %v4762_v13 = vadd.f32 %v14922_v5, %v4504_v7  ;;  %v5054_v5 = vadd.f32 %v14928_v27, %v4758_v29 }
 0x76b   : > { %16466 = vst [vmem:[#allocation55_spill] sm:$0xff] %v15034_v32  ;;  %v15036_v55 = vpop.f32.mrf.mxu0  ;;  %v4755_v32 = vadd.f32 %v14906_v44, %v4499_v15  ;;  %v5055_v44 = vadd.f32 %v14934_v30, %v4759_v49  ;;  %v5336_v29 = vadd.f32 %v14946_v10, %v5050_v59  ;;  %v5343_v30 = vadd.f32 %v14958_v21, %v5057_v51 }
 0x76c   : > { %16467 = vst [vmem:[#allocation56_spill] sm:$0xff] %v15036_v55  ;;  %v15038_v1 = vpop.f32.mrf.mxu1  ;;  %v4760_v55 = vadd.f32 %v14914_v39, %v4504_v7  ;;  %v5335_v7 = vadd.f32 %v14942_v22, %v5049_v37  ;;  %v5340_v27 = vadd.f32 %v14952_v18, %v5054_v5  ;;  %v16476_v5 = vld [vmem:[#allocation20_spill] sm:$0xff] }
 0x76d   : > { %16468 = vst [vmem:[#allocation57_spill] sm:$0xff] %v15038_v1  ;;  %v15040_v35 = vpop.f32.mrf.mxu0  ;;  %v5051_v39 = vadd.f32 %v14930_v56, %v4755_v32  ;;  %v16472_v32 = vld [vmem:[#allocation25_spill] sm:$0xff] }
 0x76e   : > { %16469 = vst [vmem:[#allocation58_spill] sm:$0xff] %v15040_v35  ;;  %v15045_v12 = vpop.f32.mrf.mxu1  ;;  %v4756_v35 = vadd.f32 %v14910_v60, %v4499_v15  ;;  %v5053_v60 = vadd.f32 %v14944_v42, %v4757_v20  ;;  %v5056_v47 = vadd.f32 %v14936_v4, %v4760_v55  ;;  %v5652_v42 = vadd.f32 %v14966_v48, %v5336_v29 }
 0x76f   : > { %v15051_v11 = vpop.f32.mrf.mxu0  ;;  %v5337_v38 = vadd.f32 %v14948_v62, %v5051_v39  ;;  %v5656_v10 = vadd.f32 %v14968_v9, %v5340_v27  ;;  %v16478_v39 = vld [vmem:[#allocation29_spill] sm:$0xff] }
 0x770   : > { %16470 = vst [vmem:[#allocation59_spill] sm:$0xff] %v15051_v11  ;;  %v15057_v1 = vpop.f32.mrf.mxu1  ;;  %v5058_v11 = vadd.f32 %v14938_v16, %v4762_v13  ;;  %v5052_v31 = vadd.f32 %v14932_v19, %v4756_v35  ;;  %v5342_v56 = vadd.f32 %v14954_v53, %v5056_v47  ;;  %v5341_v35 = vadd.f32 %v14956_v6, %v5055_v44  ;;  %v16471_v13 = vld [vmem:[#allocation24_spill] sm:$0xff] }
 0x771   : > { %v5651_v16 = vadd.f32 %v14962_v28, %v5335_v7  ;;  %v5339_v63 = vadd.f32 %v14964_v43, %v5053_v60  ;;  %v5653_v62 = vadd.f32 %v14970_v26, %v5337_v38  ;;  %v5944_v26 = vadd.f32 %v14988_v23, %v5652_v42  ;;  %v16477_v44 = vld [vmem:[#allocation28_spill] sm:$0xff]  ;;  %v16479_v60 = vld [vmem:[#allocation30_spill] sm:$0xff] }
 0x772   : > { %v6662_v57 = vpop.f32.mrf.mxu1  ;;  %v5338_v54 = vadd.f32 %v14950_v46, %v5052_v31  ;;  %v5344_v4 = vadd.f32 %v14960_v14, %v5058_v11  ;;  %v5657_v46 = vadd.f32 %v14972_v33, %v5341_v35  ;;  %v5658_v6 = vadd.f32 %v14976_v2, %v5342_v56  ;;  %v16480_v31 = vld [vmem:[#allocation31_spill] sm:$0xff]  ;;  %v16481_v51 = vld [vmem:[#allocation54_spill] sm:$0xff]  ;;  %v16483_v56 = vld [vmem:[#allocation52_spill] sm:$0xff] }
 0x773   : > { %v15071_v49 = vpop.f32.mrf.mxu0  ;;  %v5659_v14 = vadd.f32 %v14980_v61, %v5343_v30  ;;  %v5655_v43 = vadd.f32 %v14982_v25, %v5339_v63  ;;  %v5943_v48 = vadd.f32 %v14984_v50, %v5651_v16  ;;  %v5945_v9 = vadd.f32 %v14986_v8, %v5653_v62  ;;  %v16482_v38 = vld [vmem:[#allocation55_spill] sm:$0xff]  ;;  %v16484_v30 = vld [vmem:[#allocation53_spill] sm:$0xff]  ;;  %v16485_v16 = vld [vmem:[#allocation56_spill] sm:$0xff] }
 0x774   : > { %v6664_v19 = vpop.f32.mrf.mxu1  ;;  %v5654_v53 = vadd.f32 %v14974_v58, %v5338_v54  ;;  %v5660_v21 = vadd.f32 %v14978_v40, %v5344_v4  ;;  %v5948_v58 = vadd.f32 %v14992_v45, %v5656_v10  ;;  %v5950_v2 = vadd.f32 %v14994_v17, %v5658_v6  ;;  %v16474_v45 = vld [vmem:[#allocation22_spill] sm:$0xff]  ;;  %v16486_v42 = vld [vmem:[#allocation57_spill] sm:$0xff]  ;;  %v16487_v62 = vld [vmem:[#allocation32_spill] sm:$0xff] }
 0x775   : > { %v6735_v22 = vpop.f32.mrf.mxu0  ;;  %v5949_v40 = vadd.f32 %v14996_v52, %v5657_v46  ;;  %v5951_v61 = vadd.f32 %v14998_v36, %v5659_v14  ;;  %v6235_v50 = vadd.f32 %v15002_v34, %v5943_v48  ;;  %v5947_v8 = vadd.f32 %v15004_v41, %v5655_v43  ;;  %v16475_v52 = vld [vmem:[#allocation23_spill] sm:$0xff] }
 0x776   : > { %v12617_v18 = vpop.f32.mrf.mxu1  ;;  %v5946_v33 = vadd.f32 %v14990_v3, %v5654_v53  ;;  %v5952_v25 = vadd.f32 %v15000_v24, %v5660_v21  ;;  %v6236_v23 = vadd.f32 %v16471_v13, %v5944_v26  ;;  %v6240_v15 = vadd.f32 %v16472_v32, %v5948_v58  ;;  %v16473_v3 = vld [vmem:[#allocation21_spill] sm:$0xff]  ;;  %v16488_v53 = vld [vmem:[#allocation58_spill] sm:$0xff] }
 0x777   : > { %v6739_v28 = vpop.f32.mrf.mxu0  ;;  %v6237_v37 = vadd.f32 %v16473_v3, %v5945_v9  ;;  %v6242_v20 = vadd.f32 %v16474_v45, %v5950_v2  ;;  %v6241_v59 = vadd.f32 %v16475_v52, %v5949_v40  ;;  %v6243_v34 = vadd.f32 %v16478_v39, %v5951_v61  ;;  %v16491_v45 = vld [vmem:[#allocation27_spill] sm:$0xff] }
 0x778   : > { %v6810_v11 = vpop.f32.mrf.mxu1  ;;  %v6238_v36 = vadd.f32 %v16476_v5, %v5946_v33  ;;  %v6244_v24 = vadd.f32 %v16477_v44, %v5952_v25  ;;  %v6239_v41 = vadd.f32 %v16479_v60, %v5947_v8  ;;  %v6527_v47 = vadd.f32 %v16480_v31, %v6235_v50 }
 0x779   : > { %v6741_v55 = vpop.f32.mrf.mxu0  ;;  %v6532_v7 = vadd.f32 %v16481_v51, %v6240_v15  ;;  %v6534_v29 = vadd.f32 %v16482_v38, %v6242_v20  ;;  %v6528_v35 = vadd.f32 %v16483_v56, %v6236_v23  ;;  %v6533_v63 = vadd.f32 %v16485_v16, %v6241_v59  ;;  %v16493_v20 = vld [vmem:[#allocation48_spill] sm:$0xff]  ;;  %v16494_v59 = vld [vmem:[#allocation51_spill] sm:$0xff]  ;;  %v16501_v38 = vld [vmem:[#allocation26_spill] sm:$0xff] }
 0x77a   : > { %v6530_v4 = vadd.f32 %v16484_v30, %v6238_v36  ;;  %v6535_v10 = vadd.f32 %v16486_v42, %v6243_v34  ;;  %v6529_v46 = vadd.f32 %v16487_v62, %v6237_v37  ;;  %v6536_v6 = vadd.f32 %v16488_v53, %v6244_v24  ;;  %v16495_v24 = vld [vmem:[#allocation44_spill] sm:$0xff]  ;;  %v16496_v34 = vld [vmem:[#allocation49_spill] sm:$0xff]  ;;  %v16504_v62 = vld [vmem:[#allocation46_spill] sm:$0xff] }
 0x77b   : > { %v6948_v17 = vpop.f32.mrf.mxu0  ;;  %v7025_v0 = vpop.f32.mrf.mxu1  ;;  %v6824_v21 = vadd.f32 %v6662_v57, %v6532_v7  ;;  %v6826_v14 = vadd.f32 %v6739_v28, %v6534_v29  ;;  %v6820_v9 = vadd.f32 %v15057_v1, %v6528_v35  ;;  %v6825_v26 = vadd.f32 %v6664_v19, %v6533_v63  ;;  %v16489_v28 = vld [vmem:[#allocation59_spill] sm:$0xff]  ;;  %v16503_v16 = vld [vmem:[#allocation40_spill] sm:$0xff] }
 0x77c   : > { %v6822_v33 = vadd.f32 %v6735_v22, %v6530_v4  ;;  %v6827_v58 = vadd.f32 %v6741_v55, %v6535_v10  ;;  %v6819_v2 = vadd.f32 %v15045_v12, %v6527_v47  ;;  %v6821_v40 = vadd.f32 %v15071_v49, %v6529_v46  ;;  %v16490_v22 = vld [vmem:[#allocation42_spill] sm:$0xff] }
 0x77d   : > { %v6950_v54 = vpop.f32.mrf.mxu0  ;;  %v7027_v27 = vpop.f32.mrf.mxu1  ;;  %v6531_v15 = vadd.f32 %v16489_v28, %v6239_v41  ;;  %v6828_v3 = vadd.f32 %v12617_v18, %v6536_v6  ;;  %v16497_v18 = vld [vmem:[#allocation43_spill] sm:$0xff]  ;;  %v16499_v47 = vld [vmem:[#allocation50_spill] sm:$0xff]  ;;  %v16500_v7 = vmov 0.0  }
 0x77e   : > { %v7112_v13 = vadd.f32 %v6950_v54, %v6820_v9  ;;  %v7114_v23 = vadd.f32 %v7027_v27, %v6822_v33  ;;  %v7111_v37 = vadd.f32 %v6948_v17, %v6819_v2  ;;  %v7113_v1 = vadd.f32 %v7025_v0, %v6821_v40  ;;  %v16498_v0 = vld [vmem:[#allocation47_spill] sm:$0xff]  ;;  %v7136_v54 = vpop.permute.xlu1 %7135  ;;  %v16510_v2 = vld [vmem:[#allocation41_spill] sm:$0xff] }
 0x77f   : > { %v6954_v43 = vpop.f32.mrf.mxu0  ;;  %v7031_v48 = vpop.f32.mrf.mxu1  ;;  %v6823_v49 = vadd.f32 %v6810_v11, %v6531_v15  ;;  %v7131_v11 = vld [vmem:[%s16492_s22] sm:$0xff]  ;;  %s16516_s22 = sld [smem:[#allocation9_spill]] }
 0x780   : > { %v7116_v61 = vadd.f32 %v6954_v43, %v6824_v21  ;;  %v7118_v50 = vadd.f32 %v7031_v48, %v6826_v14  ;;  %v7122_v39 = vadd.f32 %v7112_v13, %v16495_v24  ;;  %v7124_v60 = vadd.f32 %v7114_v23, %v16496_v34  ;;  %v16505_v21 = vld [vmem:[#allocation34_spill] sm:$0xff]  ;;  %v16507_v43 = vld [vmem:[#allocation39_spill] sm:$0xff]  ;;  %v16512_v13 = vld [vmem:[#allocation45_spill] sm:$0xff] }
 0x781   : > { %v6956_v25 = vpop.f32.mrf.mxu0  ;;  %v7033_v8 = vpop.f32.mrf.mxu1  ;;  %v7121_v17 = vadd.f32 %v7111_v37, %v16497_v18  ;;  %v7123_v41 = vadd.f32 %v7113_v1, %v16498_v0  ;;  %vm16506_vm1 = vcmp.eq.s32.totalorder %v16505_v21, 1  ;;  %v16508_v33 = vld [vmem:[#allocation35_spill] sm:$0xff]  ;;  %v12899_v34 = vld [vmem:[%s13146_s18 + $0x10] sm:$0xff] }
 0x782   : > { %v7117_v32 = vadd.f32 %v6956_v25, %v6825_v26  ;;  %v7119_v57 = vadd.f32 %v7033_v8, %v6827_v58  ;;  %v7126_v52 = vadd.f32 %v7116_v61, %v16493_v20  ;;  %v7128_v5 = vadd.f32 %v7118_v50, %v16494_v59  ;;  %v12898_v24 = vld [vmem:[%s13146_s18 + $0x20] sm:$0xff]  ;;  %v7388_v18 = vpop.permute.xlu0 %7387 }
 0x783   : > { %v12624_v19 = vpop.f32.mrf.mxu0  ;;  %vm16509_vm3 = vcmp.eq.s32.totalorder %v16508_v33, 1 }
 0x784   : > { %v7127_v55 = vadd.f32 %v7117_v32, %v16490_v22  ;;  %v7129_v12 = vadd.f32 %v7119_v57, %v16491_v45  ;;  %v7120_v36 = vadd.f32 %v12624_v19, %v6828_v3  ;;  %v12895_v45 = vld [vmem:[%s13146_s18 + $0x8] sm:$0xff] }
 0x785   : > { %v7102_v44 = vpop.f32.mrf.mxu0 }
 0x786   : > { %7169 = vmatprep.subr.mxu1 %v7127_v55  ;;  %7240 = vmatprep.subr.mxu0 %v7129_v12  ;;  %v7115_v31 = vadd.f32 %v7102_v44, %v6823_v49  ;;  %v7130_v51 = vadd.f32 %v7120_v36, %v16499_v47  ;;  %v12897_v36 = vld [vmem:[%s13146_s18 + $0x18] sm:$0xff] }
 0x787   : > { %7170 = vmatpush1.msra.mxu1 %v7126_v52  ;;  %7241 = vmatpush1.msra.mxu0 %v7128_v5  ;;  %v12896_v52 = vld [vmem:[%s13146_s18] sm:$0xff]  ;;  %s12950_s18 = smov 125  }
 0x788   : > { %7171 = vmatprep.subr.mxu1 %v7122_v39  ;;  %7242 = vmatprep.subr.mxu0 %v7124_v60  ;;  %v7125_v29 = vadd.f32 %v7115_v31, %v16501_v38  ;;  %v7383_v5 = vld [vmem:[%s16514_s28] sm:$0xff]  ;;  %s12951_s28 = smov 99  }
 0x789   : > { %7172 = vmatpush1.msra.mxu1 %v7121_v17  ;;  %7243 = vmatpush1.msra.mxu0 %v7123_v41 }
 0x78a   : > { %12152 = vmatmul.mubr.msk.f32.vlgmr.msra.gmra.mxu1 %vm1283_vm6, %v7131_v11  ;;  %12625 = vmatprep.subr.mxu1 %v16500_v7 }
 0x78b   : > { %12626 = vmatpush3.msra.mxu1 %v7130_v51  ;;  %12153 = vmatmul.mubr.msk.f32.vlgmr.msra.gmra.mxu0 %vm1283_vm6, %v7131_v11 }
 0x78c   : > { %12627 = vmatprep.subr.mxu1 %v16500_v7  ;;  %12629 = vmatprep.mubr.msk.f32.mxu1 %vm16502_vm15, %v16500_v7 }
 0x78d   : > { %12628 = vmatpush3.msra.mxu1 %v7125_v29  ;;  %7457 = vmatprep.mubr.f32.mxu0 %v16500_v7  ;;  %v7611_v29 = vld [vmem:[%s16516_s22] sm:$0xff] }
 0x78e   : > { %12630 = vmatmul.mubr.msk.f32.vlgmr.msra.gmra.mxu1 %vm1283_vm6, %v7131_v11 }
 0x78f   : > { %7528 = vmatprep.mubr.f32.mxu1 %v16500_v7 }
 0x84a   : > { %v7207_v27 = vpop.f32.mrf.mxu1 }
 0x84b   : > { %v7208_v56 = vadd.f32 %v7207_v27, %v7136_v54  ;;  %v7278_v35 = vpop.f32.mrf.mxu0 }
 0x84c   : > { %v7209_v30 = vpop.f32.mrf.mxu1  ;;  %v7279_v4 = vadd.f32 %v7278_v35, %v7136_v54  ;;  %v7612_v35 = vld [vmem:[%s16516_s22 + $0x8] sm:$0xff] }
 0x84d   : > { %v7353_v63 = vadd.f32 %v7208_v56, %v16503_v16  ;;  %v7210_v42 = vadd.f32 %v7209_v30, %v7136_v54  ;;  %v7280_v10 = vpop.f32.mrf.mxu0  ;;  %v7618_v30 = vpop.permute.xlu0 %7617 }
 0x84e   : > { %v7355_v46 = vadd.f32 %v7279_v4, %v16504_v62  ;;  %v7281_v53 = vadd.f32 %v7280_v10, %v7136_v54  ;;  %v7349_v6 = vpop.f32.mrf.mxu1  ;;  %v7623_v10 = vpop.permute.xlu1 %7622 }
 0x84f   : > { %v7358_v14 = vsel %vm16506_vm1, %v7353_v63, 0.0  ;;  %v7354_v48 = vadd.f32 %v7210_v42, %v16507_v43  ;;  %v7350_v9 = vadd.f32 %v7349_v6, %v7136_v54  ;;  %vm16520_vm1 = vmmov %vm16519_vm11 }
 0x850   : > { %vm7363_vm2 = vcmp.ge.f32.partialorder %v7358_v14, 0.0  ;;  %v7368_v26 = vmul.f32 0.05, %v7358_v14  ;;  %v7360_v58 = vsel %vm16509_vm3, %v7355_v46, 0.0  ;;  %v7356_v40 = vadd.f32 %v7281_v53, %v16510_v2  ;;  %v12631_v61 = vpop.f32.mrf.mxu1  ;;  %vm16522_vm3 = vmmov %vm16520_vm1 }
 0x851   : > { %v7359_v50 = vsel %vm4155_vm14, %v7354_v48, 0.0  ;;  %v7370_v8 = vmul.f32 0.05, %v7360_v58  ;;  %v7357_v23 = vadd.f32 %v7350_v9, %v16512_v13  ;;  %vm7365_vm5 = vcmp.ge.f32.partialorder %v7360_v58, 0.0 }
 0x852   : > { %vm7364_vm4 = vcmp.ge.f32.partialorder %v7359_v50, 0.0  ;;  %v7369_v32 = vmul.f32 0.05, %v7359_v50  ;;  %v7361_v28 = vsel %vm4157_vm13, %v7356_v40, 0.0  ;;  %v7373_v15 = vsel %vm7363_vm2, %v7358_v14, %v7368_v26  ;;  %vm16521_vm2 = vmmov %vm16520_vm1 }
 0x853   : > { %vm7366_vm9 = vcmp.ge.f32.partialorder %v7361_v28, 0.0  ;;  %v7371_v3 = vmul.f32 0.05, %v7361_v28  ;;  %v7362_v1 = vsel %vm4158_vm12, %v7357_v23, 0.0  ;;  %v7375_v55 = vsel %vm7365_vm5, %v7360_v58, %v7370_v8 }
 0x854   : > { %vm7367_vm14 = vcmp.ge.f32.partialorder %v7362_v1, 0.0  ;;  %v7372_v19 = vmul.f32 0.05, %v7362_v1  ;;  %v7374_v22 = vsel %vm7364_vm4, %v7359_v50, %v7369_v32  ;;  %v7378_v59 = vadd.f32 %v12896_v52, %v7373_v15 }
 0x855   : > { %v7379_v12 = vadd.f32 %v12895_v45, %v7374_v22  ;;  %v7376_v49 = vsel %vm7366_vm9, %v7361_v28, %v7371_v3  ;;  %v7380_v60 = vadd.f32 %v12899_v34, %v7375_v55  ;;  %vm7609_vm12 = vcmask 916480  }
 0x856   : > { %v7377_v20 = vsel %vm7367_vm14, %v7362_v1, %v7372_v19  ;;  %v7381_v44 = vadd.f32 %v12897_v36, %v7376_v49  ;;  %vm7870_vm13 = vcmask 1048448   ;;  %vm16523_vm4 = vcmask 818176  }
 0x857   : > { %7423 = vmatprep.subr.mxu0 %v7379_v12  ;;  %v7382_v39 = vadd.f32 %v12898_v24, %v7377_v20  ;;  %vm16524_vm5 = vmmov %vm16523_vm4 }
 0x858   : > { %7424 = vmatpush1.msra.mxu0 %v7378_v59  ;;  %7494 = vmatprep.subr.mxu1 %v7381_v44  ;;  %vm16525_vm9 = vmmov %vm16523_vm4 }
 0x859   : > { %12155 = vmatmul.mubr.msk.f32.vlgmr.msra.gmra.mxu0 %vm952_vm0, %v7383_v5  ;;  %12632 = vmatprep.subr.mxu0 %v16500_v7  ;;  %vm16526_vm14 = vmmov %vm16523_vm4 }
 0x85a   : > { %7495 = vmatpush1.msra.mxu1 %v7380_v60  ;;  %12633 = vmatpush3.msra.mxu0 %v7382_v39 }
 0x85b   : > { %12156 = vmatmul.mubr.msk.f32.vlgmr.msra.gmra.mxu1 %vm952_vm0, %v7383_v5  ;;  %12634 = vmatprep.mubr.msk.f32.mxu0 %vm16502_vm15, %v16500_v7 }
 0x85c   : > { %7695 = vmatprep.mubr.f32.mxu1 %v16500_v7 }
 0x85d   : > { %12635 = vmatmul.mubr.msk.f32.vlgmr.msra.gmra.mxu0 %vm952_vm0, %v7383_v5 }
 0x85e   : > { %7772 = vmatprep.mubr.f32.mxu0 %v16500_v7 }
 0x919   : > { %v7459_v17 = vpop.f32.mrf.mxu0 }
 0x91a   : > { %v7460_v0 = vadd.f32 %v7459_v17, %v7388_v18 }
 0x91b   : > { %v7461_v41 = vpop.f32.mrf.mxu0  ;;  %v7530_v31 = vpop.f32.mrf.mxu1 }
 0x91c   : > { %7605 = vst [vmem:[#allocation4] sm:$0xff] %v7460_v0  ;;  %v7462_v11 = vadd.f32 %v7461_v41, %v7388_v18  ;;  %v7531_v47 = vadd.f32 %v7530_v31, %v7388_v18 }
 0x91d   : > { %v7532_v51 = vpop.f32.mrf.mxu1  ;;  %v7601_v38 = vpop.f32.mrf.mxu0 }
 0x91e   : > { %7606 = vst [vmem:[#allocation4 + $0x8] sm:$0xff] %v7462_v11  ;;  %7607 = vst [vmem:[#allocation4 + $0x10] sm:$0xff] %v7531_v47  ;;  %v7533_v54 = vadd.f32 %v7532_v51, %v7388_v18  ;;  %v7602_v27 = vadd.f32 %v7601_v38, %v7388_v18  ;;  %7661 = vmatprep.subr.mxu1 %v7462_v11 }
 0x91f   : > { %7662 = vmatpush1.msra.mxu1 %v7460_v0  ;;  %v12636_v56 = vpop.f32.mrf.mxu0 }
 0x920   : > { %7608 = vst [vmem:[#allocation4 + $0x18] sm:$0xff] %v7533_v54  ;;  %7610 = vst.msk [vmem:[#allocation4 + $0x20] sm:$0xff] %vm7609_vm12, %v7602_v27  ;;  %12158 = vmatmul.mubr.msk.f32.vlgmr.msra.gmra.mxu1 %vm952_vm0, %v7611_v29  ;;  %7738 = vmatprep.subr.mxu0 %v7533_v54 }
 0x921   : > { %12637 = vmatprep.subr.mxu1 %v7602_v27  ;;  %7739 = vmatpush1.msra.mxu0 %v7531_v47 }
 0x922   : > { %12638 = vmatpush3.msra.mxu1 %v7602_v27  ;;  %12160 = vmatmul.mubr.msk.f32.vlgmr.msra.gmra.mxu0 %vm952_vm0, %v7611_v29 }
 0x923   : > { %7701 = vmatprep.mubr.f32.mxu1 %v16500_v7  ;;  %7778 = vmatprep.mubr.f32.mxu0 %v16500_v7 }
 0x924   : > { %12159 = vmatmul.mubr.msk.f32.gmra.mxu1 %vm952_vm0, %v7612_v35 }
 0x925   : > { %12639 = vmatprep.mubr.msk.f32.mxu1 %vm952_vm0, %v7611_v29 }
 0x926   : > { %12161 = vmatmul.mubr.msk.f32.gmra.mxu0 %vm952_vm0, %v7612_v35 }
 0x927   : > { %8016 = vmatprep.mubr.f32.mxu0 %v16500_v7 }
 0x928   : > { %12640 = vmatmul.mubr.msk.f32.vlgmr.msra.gmra.mxu1 %vm952_vm0, %v7612_v35 }
 0x929   : > { %8093 = vmatprep.mubr.f32.mxu1 %v16500_v7 }
 0x9e0   : > { %v7697_v4 = vpop.f32.mrf.mxu1 }
 0x9e1   : > { %v15185_v16 = vadd.f32 %v7697_v4, %v7618_v30 }
 0x9e2   : > { %v7699_v63 = vpop.f32.mrf.mxu1  ;;  %v7774_v42 = vpop.f32.mrf.mxu0 }
 0x9e3   : > { %7860 = vst [vmem:[#allocation2] sm:$0xff] %v15185_v16  ;;  %v15188_v62 = vadd.f32 %v7699_v63, %v7618_v30  ;;  %v15190_v46 = vadd.f32 %v7774_v42, %v7618_v30  ;;  %7910 = vrot.lane.b32.xlu0 %v15185_v16, %s12941_s23 }
 0x9e4   : > { %v7703_v53 = vpop.f32.mrf.mxu1  ;;  %v7776_v6 = vpop.f32.mrf.mxu0 }
 0x9e5   : > { %7861 = vst [vmem:[#allocation2 + $0x8] sm:$0xff] %v15188_v62  ;;  %7862 = vst [vmem:[#allocation2 + $0x10] sm:$0xff] %v15190_v46  ;;  %v15196_v21 = vadd.f32 %v7703_v53, %v7623_v10  ;;  %v15198_v14 = vadd.f32 %v7776_v6, %v7618_v30  ;;  %7914 = vrot.lane.b32.xlu1 %v15190_v46, %s12941_s23 }
 0x9e6   : > { %v7705_v43 = vpop.f32.mrf.mxu1  ;;  %v7780_v48 = vpop.f32.mrf.mxu0 }
 0x9e7   : > { %7865 = vst [vmem:[#allocation2 + $0x30] sm:$0xff] %v15196_v21  ;;  %7863 = vst [vmem:[#allocation2 + $0x18] sm:$0xff] %v15198_v14  ;;  %v15204_v9 = vadd.f32 %v7705_v43, %v7623_v10  ;;  %v15206_v26 = vadd.f32 %v7780_v48, %v7623_v10  ;;  %8117 = vrot.lane.b32.xlu0 %v15185_v16, %s12942_s26 }
 0x9e8   : > { %v7782_v33 = vpop.f32.mrf.mxu0  ;;  %v12641_v58 = vpop.f32.mrf.mxu1 }
 0x9e9   : > { %7866 = vst [vmem:[#allocation2 + $0x38] sm:$0xff] %v15204_v9  ;;  %7867 = vst [vmem:[#allocation2 + $0x40] sm:$0xff] %v15206_v26  ;;  %v15212_v2 = vadd.f32 %v7782_v33, %v7623_v10  ;;  %v7857_v40 = vadd.f32 %v12641_v58, %v7623_v10  ;;  %8121 = vrot.lane.b32.xlu1 %v15190_v46, %s12942_s26 }
 0x9ea   : > { %v7851_v61 = vpop.f32.mrf.mxu1 }
 0x9eb   : > { %7868 = vst [vmem:[#allocation2 + $0x48] sm:$0xff] %v15212_v2  ;;  %7869 = vst.msk [vmem:[#allocation2 + $0x50] sm:$0xff] %vm7609_vm12, %v7857_v40  ;;  %v7852_v25 = vadd.f32 %v7851_v61, %v7618_v30  ;;  %8324 = vrot.lane.b32.xlu0 %v15185_v16, %s12950_s18 }
 0x9ec   : > { %7874 = vst.msk [vmem:[#allocation2 + $0x50] sm:$0xff] %vm7870_vm13, %v16500_v7 }
 0x9ed   : > { %7864 = vst.msk [vmem:[#allocation2 + $0x20] sm:$0xff] %vm7609_vm12, %v7852_v25  ;;  %8328 = vrot.lane.b32.xlu1 %v15190_v46, %s12950_s18 }
 0x9ee   : > { %7871 = vst.msk [vmem:[#allocation2 + $0x20] sm:$0xff] %vm7870_vm13, %v16500_v7  ;;  %vm8966_vm13 = vcmask 809984  }
 0x9ef   : > { %8532 = vrot.lane.b32.xlu0 %v15185_v16, %s12944_s1 }
 0x9f1   : > { %8536 = vrot.lane.b32.xlu1 %v15190_v46, %s12944_s1 }
 0x9f3   : > { %8739 = vrot.lane.b32.xlu0 %v15185_v16, %s12945_s2  ;;  %v15295_v50 = vld [vmem:[#allocation2 + $0x50] sm:$0xff] }
 0x9f5   : > { %8743 = vrot.lane.b32.xlu1 %v15190_v46, %s12945_s2  ;;  %v15325_v8 = vld [vmem:[#allocation2 + $0x20] sm:$0xff] }
 0x9f7   : > { %8946 = vrot.lane.b32.xlu0 %v15185_v16, %s12951_s28 }
 0x9f9   : > { %8950 = vrot.lane.b32.xlu1 %v15190_v46, %s12951_s28 }
 0x9fb   : > { %9154 = vrot.lane.b32.xlu0 %v15185_v16, %s12947_s10 }
 0x9fd   : > { %9158 = vrot.lane.b32.xlu1 %v15190_v46, %s12947_s10 }
 0x9ff   : > { %7912 = vrot.lane.b32.xlu0 %v15188_v62, %s12941_s23 }
 0xa01   : > { %7920 = vrot.lane.b32.xlu1 %v15196_v21, %s12941_s23 }
 0xa03   : > { %8119 = vrot.lane.b32.xlu0 %v15188_v62, %s12942_s26 }
 0xa05   : > { %7916 = vrot.lane.b32.xlu1 %v15198_v14, %s12941_s23 }
 0xa07   : > { %8326 = vrot.lane.b32.xlu0 %v15188_v62, %s12950_s18 }
 0xa09   : > { %8127 = vrot.lane.b32.xlu1 %v15196_v21, %s12942_s26 }
 0xa0b   : > { %8534 = vrot.lane.b32.xlu0 %v15188_v62, %s12944_s1 }
 0xa0d   : > { %8123 = vrot.lane.b32.xlu1 %v15198_v14, %s12942_s26 }
 0xa0f   : > { %8741 = vrot.lane.b32.xlu0 %v15188_v62, %s12945_s2 }
 0xa11   : > { %8334 = vrot.lane.b32.xlu1 %v15196_v21, %s12950_s18 }
 0xa13   : > { %8948 = vrot.lane.b32.xlu0 %v15188_v62, %s12951_s28 }
 0xa15   : > { %8330 = vrot.lane.b32.xlu1 %v15198_v14, %s12950_s18 }
 0xa17   : > { %9156 = vrot.lane.b32.xlu0 %v15188_v62, %s12947_s10 }
 0xa19   : > { %8542 = vrot.lane.b32.xlu1 %v15196_v21, %s12944_s1 }
 0xa1b   : > { %7924 = vrot.lane.b32.xlu0 %v15206_v26, %s12941_s23 }
 0xa1d   : > { %8538 = vrot.lane.b32.xlu1 %v15198_v14, %s12944_s1 }
 0xa1f   : > { %8131 = vrot.lane.b32.xlu0 %v15206_v26, %s12942_s26 }
 0xa21   : > { %8749 = vrot.lane.b32.xlu1 %v15196_v21, %s12945_s2 }
 0xa23   : > { %8338 = vrot.lane.b32.xlu0 %v15206_v26, %s12950_s18 }
 0xa25   : > { %8745 = vrot.lane.b32.xlu1 %v15198_v14, %s12945_s2 }
 0xa27   : > { %8546 = vrot.lane.b32.xlu0 %v15206_v26, %s12944_s1 }
 0xa29   : > { %8956 = vrot.lane.b32.xlu1 %v15196_v21, %s12951_s28 }
 0xa2b   : > { %8753 = vrot.lane.b32.xlu0 %v15206_v26, %s12945_s2 }
 0xa2d   : > { %8952 = vrot.lane.b32.xlu1 %v15198_v14, %s12951_s28 }
 0xa2f   : > { %8960 = vrot.lane.b32.xlu0 %v15206_v26, %s12951_s28 }
 0xa31   : > { %9164 = vrot.lane.b32.xlu1 %v15196_v21, %s12947_s10 }
 0xa33   : > { %9168 = vrot.lane.b32.xlu0 %v15206_v26, %s12947_s10 }
 0xa35   : > { %7922 = vrot.lane.b32.xlu1 %v15204_v9, %s12941_s23 }
 0xa37   : > { %7928 = vrot.lane.b32.xlu0 %v15295_v50, %s12941_s23 }
 0xa39   : > { %8129 = vrot.lane.b32.xlu1 %v15204_v9, %s12942_s26 }
 0xa3b   : > { %8135 = vrot.lane.b32.xlu0 %v15295_v50, %s12942_s26 }
 0xa3d   : > { %8336 = vrot.lane.b32.xlu1 %v15204_v9, %s12950_s18 }
 0xa3f   : > { %8342 = vrot.lane.b32.xlu0 %v15295_v50, %s12950_s18 }
 0xa41   : > { %8544 = vrot.lane.b32.xlu1 %v15204_v9, %s12944_s1 }
 0xa43   : > { %8550 = vrot.lane.b32.xlu0 %v15295_v50, %s12944_s1 }
 0xa45   : > { %8751 = vrot.lane.b32.xlu1 %v15204_v9, %s12945_s2 }
 0xa47   : > { %8757 = vrot.lane.b32.xlu0 %v15295_v50, %s12945_s2 }
 0xa49   : > { %8958 = vrot.lane.b32.xlu1 %v15204_v9, %s12951_s28 }
 0xa4b   : > { %8964 = vrot.lane.b32.xlu0 %v15295_v50, %s12951_s28 }
 0xa4d   : > { %9166 = vrot.lane.b32.xlu1 %v15204_v9, %s12947_s10 }
 0xa4f   : > { %9172 = vrot.lane.b32.xlu0 %v15295_v50, %s12947_s10 }
 0xa51   : > { %7926 = vrot.lane.b32.xlu1 %v15212_v2, %s12941_s23 }
 0xa53   : > { %7918 = vrot.lane.b32.xlu0 %v15325_v8, %s12941_s23 }
 0xa55   : > { %v15331_v13 = vpop.permute.xlu0 %7910  ;;  %9373 = vrot.lane.b32.xlu1 %v15204_v9, %s12948_s11 }
 0xa57   : > { %9375 = vrot.lane.b32.xlu0 %v15206_v26, %s12948_s11  ;;  %v15337_v23 = vpop.permute.xlu1 %7914 }
 0xa59   : > { %v15339_v32 = vpop.permute.xlu0 %8117  ;;  %8133 = vrot.lane.b32.xlu1 %v15212_v2, %s12942_s26 }
 0xa5b   : > { %8125 = vrot.lane.b32.xlu0 %v15325_v8, %s12942_s26  ;;  %v15345_v57 = vpop.permute.xlu1 %8121 }
 0xa5d   : > { %v15347_v28 = vpop.permute.xlu0 %8324  ;;  %8340 = vrot.lane.b32.xlu1 %v15212_v2, %s12950_s18 }
 0xa5f   : > { %9363 = vrot.lane.b32.xlu0 %v15188_v62, %s12948_s11  ;;  %v15353_v15 = vpop.permute.xlu1 %8328 }
 0xa61   : > { %v15355_v3 = vpop.permute.xlu0 %8532  ;;  %8548 = vrot.lane.b32.xlu1 %v15212_v2, %s12944_s1 }
 0xa63   : > { %8332 = vrot.lane.b32.xlu0 %v15325_v8, %s12950_s18  ;;  %v15361_v37 = vpop.permute.xlu1 %8536  ;;  %s16517_s18 = sld [smem:[#allocation11_spill]] }
 0xa65   : > { %v15363_v1 = vpop.permute.xlu0 %8739  ;;  %8755 = vrot.lane.b32.xlu1 %v15212_v2, %s12945_s2 }
 0xa67   : > { %9361 = vrot.lane.b32.xlu0 %v15185_v16, %s12948_s11  ;;  %v15369_v19 = vpop.permute.xlu1 %8743 }
 0xa69   : > { %v15371_v22 = vpop.permute.xlu0 %8946  ;;  %8962 = vrot.lane.b32.xlu1 %v15212_v2, %s12951_s28  ;;  %v7876_v51 = vld [vmem:[%s16517_s18] sm:$0xff]  ;;  %v7877_v29 = vld [vmem:[%s16517_s18 + $0x8] sm:$0xff] }
 0xa6b   : > { %8540 = vrot.lane.b32.xlu0 %v15325_v8, %s12944_s1  ;;  %v15377_v55 = vpop.permute.xlu1 %8950  ;;  %s12952_s1 = smov 73  }
 0xa6d   : > { %v15379_v45 = vpop.permute.xlu0 %9154  ;;  %9170 = vrot.lane.b32.xlu1 %v15212_v2, %s12947_s10 }
 0xa6f   : > { %9379 = vrot.lane.b32.xlu0 %v15295_v50, %s12948_s11  ;;  %v15385_v12 = vpop.permute.xlu1 %9158 }
 0xa71   : > { %v7913_v49 = vpop.permute.xlu0 %7912  ;;  %9160 = vrot.lane.b32.xlu1 %v15198_v14, %s12947_s10 }
 0xa72   : > { %v7931_v53 = vsel %vm1562_vm7, %v7913_v49, %v15337_v23 }
 0xa73   : > { %8747 = vrot.lane.b32.xlu0 %v15325_v8, %s12945_s2  ;;  %v7921_v20 = vpop.permute.xlu1 %7920 }
 0xa75   : > { %v15391_v52 = vpop.permute.xlu0 %8119  ;;  %9371 = vrot.lane.b32.xlu1 %v15196_v21, %s12948_s11 }
 0xa77   : > { %9582 = vrot.lane.b32.xlu0 %v15206_v26, %s12952_s1  ;;  %v15397_v59 = vpop.permute.xlu1 %7916  ;;  %v8138_v26 = vsel %vm1849_vm8, %v15391_v52, %v15345_v57 }
 0xa79   : > { %v15399_v5 = vpop.permute.xlu0 %8326  ;;  %9365 = vrot.lane.b32.xlu1 %v15190_v46, %s12948_s11 }
 0xa7b   : > { %8954 = vrot.lane.b32.xlu0 %v15325_v8, %s12951_s28  ;;  %v8128_v36 = vpop.permute.xlu1 %8127  ;;  %s12954_s28 = smov 48  }
 0xa7d   : > { %v15405_v44 = vpop.permute.xlu0 %8534  ;;  %9377 = vrot.lane.b32.xlu1 %v15212_v2, %s12948_s11 }
 0xa7f   : > { %9570 = vrot.lane.b32.xlu0 %v15188_v62, %s12952_s1  ;;  %v15411_v24 = vpop.permute.xlu1 %8123 }
 0xa81   : > { %v15413_v39 = vpop.permute.xlu0 %8741  ;;  %9580 = vrot.lane.b32.xlu1 %v15204_v9, %s12952_s1 }
 0xa83   : > { %9162 = vrot.lane.b32.xlu0 %v15325_v8, %s12947_s10  ;;  %v15419_v34 = vpop.permute.xlu1 %8334  ;;  %s16518_s10 = sld [smem:[#allocation10_spill]] }
 0xa85   : > { %v15421_v60 = vpop.permute.xlu0 %8948  ;;  %9367 = vrot.lane.b32.xlu1 %v15198_v14, %s12948_s11 }
 0xa87   : > { %9568 = vrot.lane.b32.xlu0 %v15185_v16, %s12952_s1  ;;  %v15427_v18 = vpop.permute.xlu1 %8330 }
 0xa89   : > { %v15429_v17 = vpop.permute.xlu0 %9156  ;;  %9578 = vrot.lane.b32.xlu1 %v15196_v21, %s12952_s1  ;;  %v15483_v6 = vld [vmem:[%s16518_s10] sm:$0xff]  ;;  %v15499_v33 = vld [vmem:[%s16518_s10 + $0x8] sm:$0xff]  ;;  %v15512_v25 = vld [vmem:[%s16518_s10 + $0x10] sm:$0xff] }
 0xa8b   : > { %9369 = vrot.lane.b32.xlu0 %v15325_v8, %s12948_s11  ;;  %v15435_v0 = vpop.permute.xlu1 %8542  ;;  %s12953_s11 = smov 24  }
 0xa8d   : > { %v15437_v41 = vpop.permute.xlu0 %7924  ;;  %9572 = vrot.lane.b32.xlu1 %v15190_v46, %s12952_s1 }
 0xa8f   : > { %9586 = vrot.lane.b32.xlu0 %v15295_v50, %s12952_s1  ;;  %v15443_v31 = vpop.permute.xlu1 %8538 }
 0xa91   : > { %v15445_v11 = vpop.permute.xlu0 %8131  ;;  %9584 = vrot.lane.b32.xlu1 %v15212_v2, %s12952_s1  ;;  %v8137_v2 = vsel %vm1849_vm8, %v15339_v32, %v15391_v52  ;;  %v8346_v32 = vsel %vm8344_vm10, %v15399_v5, %v15353_v15 }
 0xa93   : > { %9576 = vrot.lane.b32.xlu0 %v15325_v8, %s12952_s1  ;;  %v15451_v47 = vpop.permute.xlu1 %8749 }
 0xa95   : > { %v15454_v38 = vpop.permute.xlu0 %8338  ;;  %9574 = vrot.lane.b32.xlu1 %v15198_v14, %s12952_s1  ;;  %v7930_v14 = vsel %vm1562_vm7, %v15331_v13, %v7913_v49  ;;  %v15525_v49 = vld [vmem:[%s16518_s10 + $0x18] sm:$0xff]  ;;  %s12955_s1 = smov 72  }
 0xa97   : > { %7880 = vperm.xlu0 %12868, %v7876_v51   ;;  %v15459_v54 = vpop.permute.xlu1 %8745  ;;  %v15538_v51 = vld [vmem:[%s16518_s10 + $0x20] sm:$0xff] }
 0xa99   : > { %v15461_v27 = vpop.permute.xlu0 %8546  ;;  %7885 = vperm.xlu1 %12869, %v7877_v29  }
 0xa9b   : > { %v15463_v56 = vpop.permute.xlu1 %8956 }
 0xa9d   : > { %v15465_v35 = vpop.permute.xlu0 %8753 }
 0xa9f   : > { %v15467_v30 = vpop.permute.xlu1 %8952 }
 0xaa1   : > { %v15469_v4 = vpop.permute.xlu0 %8960 }
 0xaa3   : > { %v15471_v16 = vpop.permute.xlu1 %9164 }
 0xaa5   : > { %v15473_v63 = vpop.permute.xlu0 %9168 }
 0xaa7   : > { %v7923_v42 = vpop.permute.xlu1 %7922 }
 0xaa8   : > { %v7935_v10 = vsel %vm1562_vm7, %v7923_v42, %v15437_v41  ;;  %v7934_v62 = vsel %vm1562_vm7, %v7921_v20, %v7923_v42  ;;  %v8345_v20 = vsel %vm8344_vm10, %v15347_v28, %v15399_v5  ;;  %v8553_v5 = vsel %vm16521_vm2, %v15405_v44, %v15361_v37 }
 0xaa9   : > { %v15478_v46 = vpop.permute.xlu0 %7928  ;;  %7980 = vmatprep.subr.mxu0 %v7935_v10  ;;  %v15551_v10 = vld [vmem:[%s16518_s10 + $0x28] sm:$0xff] }
 0xaaa   : > { %7981 = vmatpush1.msra.mxu0 %v7934_v62  ;;  %v8552_v62 = vsel %vm16522_vm3, %v15355_v3, %v15405_v44  ;;  %vm16532_vm3 = vmmov %vm16521_vm2 }
 0xaab   : > { %7982 = vmatprep.subr.mxu0 %v7931_v53  ;;  %v8130_v21 = vpop.permute.xlu1 %8129 }
 0xaac   : > { %7983 = vmatpush1.msra.mxu0 %v7930_v14  ;;  %v8142_v43 = vsel %vm1849_vm8, %v8130_v21, %v15445_v11  ;;  %v8141_v48 = vsel %vm1849_vm8, %v8128_v36, %v8130_v21  ;;  %v15566_v14 = vld [vmem:[%s16518_s10 + $0x30] sm:$0xff] }
 0xaad   : > { %v15490_v9 = vpop.permute.xlu0 %8135  ;;  %12164 = vmatmul.mubr.msk.f32.vlgmr.msra.gmra.mxu0 %vm1283_vm6, %v15483_v6  ;;  %8187 = vmatprep.subr.mxu0 %v8142_v43 }
 0xaae   : > { %8188 = vmatpush1.msra.mxu0 %v8141_v48  ;;  %8022 = vmatprep.mubr.f32.mxu0 %v16500_v7 }
 0xaaf   : > { %8189 = vmatprep.subr.mxu0 %v8138_v26  ;;  %v8337_v58 = vpop.permute.xlu1 %8336 }
 0xab0   : > { %8190 = vmatpush1.msra.mxu0 %v8137_v2  ;;  %v8350_v40 = vsel %vm8344_vm10, %v8337_v58, %v15454_v38  ;;  %v8349_v13 = vsel %vm8344_vm10, %v15419_v34, %v8337_v58  ;;  %v8760_v58 = vsel %vm16525_vm9, %v15413_v39, %v15369_v19 }
 0xab1   : > { %v15506_v61 = vpop.permute.xlu0 %8342  ;;  %12165 = vmatmul.mubr.msk.f32.gmra.mxu0 %vm1283_vm6, %v15499_v33  ;;  %8395 = vmatprep.subr.mxu0 %v8350_v40  ;;  %v15590_v40 = vld [vmem:[%s16518_s10 + $0x38] sm:$0xff] }
 0xab2   : > { %8223 = vmatprep.mubr.f32.mxu0 %v16500_v7 }
 0xab3   : > { %v8545_v50 = vpop.permute.xlu1 %8544 }
 0xab4   : > { %v8557_v36 = vsel %vm16519_vm11, %v8545_v50, %v15461_v27  ;;  %v8556_v28 = vsel %vm16520_vm1, %v15435_v0, %v8545_v50  ;;  %vm16531_vm1 = vcmask 605184  }
 0xab5   : > { %v15514_v8 = vpop.permute.xlu0 %8550  ;;  %12170 = vmatmul.mubr.msk.f32.vlgmr.msra.gmra.mxu0 %vm1283_vm6, %v15512_v25 }
 0xab6   : > { %8396 = vmatpush1.msra.mxu0 %v8349_v13  ;;  %8229 = vmatprep.mubr.f32.mxu0 %v16500_v7 }
 0xab7   : > { %8397 = vmatprep.subr.mxu0 %v8346_v32  ;;  %v8752_v52 = vpop.permute.xlu1 %8751 }
 0xab8   : > { %8398 = vmatpush1.msra.mxu0 %v8345_v20  ;;  %v8764_v0 = vsel %vm16523_vm4, %v8752_v52, %v15465_v35  ;;  %v8763_v26 = vsel %vm16524_vm5, %v15451_v47, %v8752_v52  ;;  %v7932_v47 = vsel %vm1562_vm7, %v15337_v23, %v15397_v59  ;;  %vm16533_vm4 = vmmov %vm16521_vm2 }
 0xab9   : > { %8602 = vmatprep.subr.mxu0 %v8557_v36  ;;  %v15532_v34 = vpop.permute.xlu0 %8757  ;;  %12171 = vmatmul.mubr.msk.f32.gmra.mxu0 %vm1283_vm6, %v15525_v49  ;;  %vm16534_vm5 = vmmov %vm16521_vm2 }
 0xaba   : > { %8431 = vmatprep.mubr.f32.mxu0 %v16500_v7 }
 0xabb   : > { %v8959_v29 = vpop.permute.xlu1 %8958 }
 0xabc   : > { %v8972_v50 = vsel %vm8966_vm13, %v8959_v29, %v15469_v4 }
 0xabd   : > { %v15540_v42 = vpop.permute.xlu0 %8964  ;;  %12176 = vmatmul.mubr.msk.f32.vlgmr.msra.gmra.mxu0 %vm1283_vm6, %v15538_v51 }
 0xabe   : > { %8603 = vmatpush1.msra.mxu0 %v8556_v28  ;;  %8437 = vmatprep.mubr.f32.mxu0 %v16500_v7  ;;  %v8347_v28 = vsel %vm8344_vm10, %v15353_v15, %v15427_v18 }
 0xabf   : > { %8604 = vmatprep.subr.mxu0 %v8553_v5  ;;  %v15556_v53 = vpop.permute.xlu1 %9166 }
 0xac0   : > { %8605 = vmatpush1.msra.mxu0 %v8552_v62 }
 0xac1   : > { %8809 = vmatprep.subr.mxu0 %v8764_v0  ;;  %v15560_v21 = vpop.permute.xlu0 %9172  ;;  %12177 = vmatmul.mubr.msk.f32.gmra.mxu0 %vm1283_vm6, %v15551_v10 }
 0xac2   : > { %8638 = vmatprep.mubr.f32.mxu0 %v16500_v7 }
 0xac3   : > { %v7927_v43 = vpop.permute.xlu1 %7926 }
 0xac4   : > { %v7937_v3 = vsel %vm1562_vm7, %v7927_v43, %v15478_v46  ;;  %v7936_v44 = vsel %vm1562_vm7, %v15437_v41, %v7927_v43  ;;  %v8759_v41 = vsel %vm16526_vm14, %v15363_v1, %v15413_v39  ;;  %v15604_v1 = vld [vmem:[%s16518_s10 + $0x40] sm:$0xff]  ;;  %v8554_v43 = vsel %vm16534_vm5, %v15361_v37, %v15443_v31  ;;  %vm16535_vm14 = vmmov %vm16525_vm9 }
 0xac5   : > { %v7919_v48 = vpop.permute.xlu0 %7918  ;;  %8057 = vmatprep.subr.mxu1 %v7937_v3  ;;  %12182 = vmatmul.mubr.msk.f32.vlgmr.msra.gmra.mxu0 %vm1283_vm6, %v15566_v14 }
 0xac6   : > { %8810 = vmatpush1.msra.mxu0 %v8763_v26  ;;  %8058 = vmatpush1.msra.mxu1 %v7936_v44  ;;  %v7933_v46 = vsel %vm1562_vm7, %v15397_v59, %v7919_v48  ;;  %vm16527_vm7 = vcmask 613376  }
 0xac7   : > { %8811 = vmatprep.subr.mxu0 %v8760_v58  ;;  %8059 = vmatprep.subr.mxu1 %v7933_v46  ;;  %v15584_v2 = vpop.permute.xlu1 %9373  ;;  %vm16529_vm11 = vmmov %vm16527_vm7 }
 0xac8   : > { %8812 = vmatpush1.msra.mxu0 %v8759_v41  ;;  %8060 = vmatpush1.msra.mxu1 %v7932_v47  ;;  %v9175_v62 = vsel %vm16529_vm11, %v15429_v17, %v15385_v12  ;;  %vm16538_vm11 = vmmov %vm16531_vm1  ;;  %v12204_v47 = vld [vmem:[%s16518_s10 + $0x70] sm:$0xff] }
 0xac9   : > { %8644 = vmatprep.mubr.f32.mxu0 %v16500_v7  ;;  %9017 = vmatprep.subr.mxu0 %v8972_v50  ;;  %v15595_v13 = vpop.permute.xlu0 %9375  ;;  %v8969_v50 = vsel %vm8966_vm13, %v15377_v55, %v15467_v30 }
 0xaca   : > { %12166 = vmatmul.mubr.msk.f32.vlgmr.msra.gmra.mxu1 %vm1283_vm6, %v15483_v6  ;;  %12183 = vmatmul.mubr.msk.f32.gmra.mxu0 %vm1283_vm6, %v15590_v40  ;;  %v8971_v6 = vsel %vm8966_vm13, %v15463_v56, %v8959_v29  ;;  %v8139_v56 = vsel %vm1849_vm8, %v15345_v57, %v15411_v24  ;;  %v15632_v29 = vld [vmem:[%s16518_s10 + $0x48] sm:$0xff] }
 0xacb   : > { %v8134_v23 = vpop.permute.xlu1 %8133  ;;  %8099 = vmatprep.mubr.f32.mxu1 %v16500_v7  ;;  %8845 = vmatprep.mubr.f32.mxu0 %v16500_v7 }
 0xacc   : > { %v8144_v59 = vsel %vm1849_vm8, %v8134_v23, %v15490_v9  ;;  %v8143_v39 = vsel %vm1849_vm8, %v15445_v11, %v8134_v23  ;;  %v8968_v9 = vsel %vm8966_vm13, %v15421_v60, %v15377_v55 }
 0xacd   : > { %v8126_v32 = vpop.permute.xlu0 %8125  ;;  %8264 = vmatprep.subr.mxu1 %v8144_v59  ;;  %v12205_v59 = vld [vmem:[%s16518_s10 + $0x78] sm:$0xff] }
 0xace   : > { %12167 = vmatmul.mubr.msk.f32.gmra.mxu1 %vm1283_vm6, %v15499_v33  ;;  %12188 = vmatmul.mubr.msk.f32.vlgmr.msra.gmra.mxu0 %vm1283_vm6, %v15604_v1  ;;  %v8140_v11 = vsel %vm1849_vm8, %v15411_v24, %v8126_v32  ;;  %v8967_v33 = vsel %vm8966_vm13, %v15371_v22, %v15421_v60  ;;  %v9179_v22 = vsel %vm16527_vm7, %v15556_v53, %v15473_v63  ;;  %vm16528_vm8 = vmmov %vm16527_vm7 }
 0xacf   : > { %9018 = vmatpush1.msra.mxu0 %v8971_v6  ;;  %8265 = vmatpush1.msra.mxu1 %v8143_v39  ;;  %v8341_v20 = vpop.permute.xlu1 %8340  ;;  %v9178_v5 = vsel %vm16528_vm8, %v15471_v16, %v15556_v53  ;;  %v9386_v16 = vsel %vm16531_vm1, %v15584_v2, %v15595_v13 }
 0xad0   : > { %9019 = vmatprep.subr.mxu0 %v8968_v9  ;;  %8266 = vmatprep.subr.mxu1 %v8140_v11  ;;  %v8352_v36 = vsel %vm8344_vm10, %v8341_v20, %v15506_v61  ;;  %v8351_v57 = vsel %vm8344_vm10, %v15454_v38, %v8341_v20  ;;  %v15647_v61 = vld [vmem:[%s16518_s10 + $0x50] sm:$0xff] }
 0xad1   : > { %9020 = vmatpush1.msra.mxu0 %v8967_v33  ;;  %8267 = vmatpush1.msra.mxu1 %v8139_v56  ;;  %v15627_v52 = vpop.permute.xlu0 %9363 }
 0xad2   : > { %8300 = vmatprep.mubr.f32.mxu1 %v16500_v7  ;;  %8851 = vmatprep.mubr.f32.mxu0 %v16500_v7 }
 0xad3   : > { %9224 = vmatprep.subr.mxu0 %v9179_v22  ;;  %12172 = vmatmul.mubr.msk.f32.vlgmr.msra.gmra.mxu1 %vm1283_vm6, %v15512_v25  ;;  %v8549_v24 = vpop.permute.xlu1 %8548  ;;  %v12210_v22 = vld [vmem:[%s16518_s10 + $0x80] sm:$0xff] }
 0xad4   : > { %8472 = vmatprep.subr.mxu1 %v8352_v36  ;;  %12189 = vmatmul.mubr.msk.f32.gmra.mxu0 %vm1283_vm6, %v15632_v29  ;;  %v8559_v53 = vsel %vm16521_vm2, %v8549_v24, %v15514_v8  ;;  %vm16540_vm2 = vcmask 613376  }
 0xad5   : > { %8473 = vmatpush1.msra.mxu1 %v8351_v57  ;;  %8306 = vmatprep.mubr.f32.mxu1 %v16500_v7  ;;  %v8333_v60 = vpop.permute.xlu0 %8332  ;;  %vm16543_vm5 = vmmov %vm16540_vm2 }
 0xad6   : > { %9053 = vmatprep.mubr.f32.mxu0 %v16500_v7  ;;  %v8348_v38 = vsel %vm8344_vm10, %v15427_v18, %v8333_v60  ;;  %vm16530_vm10 = vmmov %vm16527_vm7  ;;  %v15671_v18 = vld [vmem:[%s16518_s10 + $0x58] sm:$0xff] }
 0xad7   : > { %12173 = vmatmul.mubr.msk.f32.gmra.mxu1 %vm1283_vm6, %v15525_v49  ;;  %8474 = vmatprep.subr.mxu1 %v8348_v38  ;;  %v8756_v25 = vpop.permute.xlu1 %8755  ;;  %v9174_v15 = vsel %vm16530_vm10, %v15379_v45, %v15429_v17  ;;  %v8558_v45 = vsel %vm16532_vm3, %v15461_v27, %v8549_v24  ;;  %vm16536_vm7 = vmmov %vm16525_vm9  ;;  %vm9588_vm3 = vcmask 596992  }
 0xad8   : > { %12194 = vmatmul.mubr.msk.f32.vlgmr.msra.gmra.mxu0 %vm1283_vm6, %v15647_v61  ;;  %8475 = vmatpush1.msra.mxu1 %v8347_v28  ;;  %v8766_v3 = vsel %vm16525_vm9, %v8756_v25, %v15532_v34  ;;  %v8765_v37 = vsel %vm16535_vm14, %v15465_v35, %v8756_v25  ;;  %vm16537_vm8 = vmmov %vm16536_vm7  ;;  %v12211_v25 = vld [vmem:[%s16518_s10 + $0x88] sm:$0xff] }
 0xad9   : > { %9225 = vmatpush1.msra.mxu0 %v9178_v5  ;;  %8508 = vmatprep.mubr.f32.mxu1 %v16500_v7  ;;  %v9362_v49 = vpop.permute.xlu0 %9361  ;;  %v8761_v35 = vsel %vm16537_vm8, %v15369_v19, %v15459_v54  ;;  %vm16539_vm10 = vmmov %vm16531_vm1 }
 0xada   : > { %9226 = vmatprep.subr.mxu0 %v9175_v62  ;;  %9059 = vmatprep.mubr.f32.mxu0 %v16500_v7  ;;  %vm16544_vm9 = vmmov %vm16531_vm1 }
 0xadb   : > { %9227 = vmatpush1.msra.mxu0 %v9174_v15  ;;  %12178 = vmatmul.mubr.msk.f32.vlgmr.msra.gmra.mxu1 %vm1283_vm6, %v15538_v51  ;;  %v8963_v0 = vpop.permute.xlu1 %8962  ;;  %v15687_v51 = vld [vmem:[%s16518_s10 + $0x60] sm:$0xff]  ;;  %vm16545_vm14 = vmmov %vm16531_vm1 }
 0xadc   : > { %9431 = vmatprep.subr.mxu0 %v9386_v16  ;;  %8679 = vmatprep.subr.mxu1 %v8559_v53  ;;  %v8974_v58 = vsel %vm8966_vm13, %v8963_v0, %v15540_v42  ;;  %v8973_v19 = vsel %vm8966_vm13, %v15469_v4, %v8963_v0  ;;  %v9381_v42 = vsel %vm16531_vm1, %v9362_v49, %v15627_v52  ;;  %vm16547_vm8 = vmmov %vm16531_vm1 }
 0xadd   : > { %12195 = vmatmul.mubr.msk.f32.gmra.mxu0 %vm1283_vm6, %v15671_v18  ;;  %8680 = vmatpush1.msra.mxu1 %v8558_v45  ;;  %v8541_v17 = vpop.permute.xlu0 %8540 }
 0xade   : > { %8514 = vmatprep.mubr.f32.mxu1 %v16500_v7  ;;  %9260 = vmatprep.mubr.f32.mxu0 %v16500_v7  ;;  %v8555_v8 = vsel %vm16533_vm4, %v15443_v31, %v8541_v17  ;;  %vm16541_vm4 = vmmov %vm16540_vm2 }
 0xadf   : > { %12179 = vmatmul.mubr.msk.f32.gmra.mxu1 %vm1283_vm6, %v15551_v10  ;;  %8681 = vmatprep.subr.mxu1 %v8555_v8  ;;  %v9171_v27 = vpop.permute.xlu1 %9170  ;;  %v15705_v10 = vld [vmem:[%s16518_s10 + $0x68] sm:$0xff] }
 0xae0   : > { %8682 = vmatpush1.msra.mxu1 %v8554_v43  ;;  %8715 = vmatprep.mubr.f32.mxu1 %v16500_v7  ;;  %v9181_v23 = vsel %vm16540_vm2, %v9171_v27, %v15560_v21  ;;  %v9180_v55 = vsel %vm16541_vm4, %v15473_v63, %v9171_v27  ;;  %vm10031_vm4 = vcmask 39936  }
 0xae1   : > { %12200 = vmatmul.mubr.msk.f32.vlgmr.msra.gmra.mxu0 %vm1283_vm6, %v15687_v51  ;;  %v15701_v44 = vpop.permute.xlu0 %9379  ;;  %8886 = vmatprep.subr.mxu1 %v8766_v3 }
 0xae2   : > { %9266 = vmatprep.mubr.f32.mxu0 %v16500_v7 }
 0xae3   : > { %12184 = vmatmul.mubr.msk.f32.vlgmr.msra.gmra.mxu1 %vm1283_vm6, %v15566_v14  ;;  %v9161_v31 = vpop.permute.xlu1 %9160 }
 0xae4   : > { %8887 = vmatpush1.msra.mxu1 %v8765_v37  ;;  %8721 = vmatprep.mubr.f32.mxu1 %v16500_v7  ;;  %v9176_v6 = vsel %vm16543_vm5, %v15385_v12, %v9161_v31  ;;  %vm10034_vm5 = vcmask 48128  }
 0xae5   : > { %12201 = vmatmul.mubr.msk.f32.gmra.mxu0 %vm1283_vm6, %v15705_v10  ;;  %v8748_v34 = vpop.permute.xlu0 %8747 }
 0xae6   : > { %v8762_v48 = vsel %vm16536_vm7, %v15459_v54, %v8748_v34  ;;  %9467 = vmatprep.mubr.f32.mxu0 %v16500_v7  ;;  %vm16546_vm7 = vmmov %vm16531_vm1  ;;  %vm10019_vm1 = vcmask 7168  }
 0xae7   : > { %12185 = vmatmul.mubr.msk.f32.gmra.mxu1 %vm1283_vm6, %v15590_v40  ;;  %8888 = vmatprep.subr.mxu1 %v8762_v48  ;;  %v9372_v14 = vpop.permute.xlu1 %9371 }
 0xae8   : > { %v9385_v26 = vsel %vm16538_vm11, %v9372_v14, %v15584_v2  ;;  %8889 = vmatpush1.msra.mxu1 %v8761_v35  ;;  %8922 = vmatprep.mubr.f32.mxu1 %v16500_v7  ;;  %vm9793_vm11 = vcmask 195584  }
 0xae9   : > { %v15727_v46 = vpop.permute.xlu0 %9582  ;;  %9094 = vmatprep.subr.mxu1 %v8974_v58  ;;  %9432 = vmatpush1.msra.mxu0 %v9385_v26 }
 0xaeb   : > { %12190 = vmatmul.mubr.msk.f32.vlgmr.msra.gmra.mxu1 %vm1283_vm6, %v15604_v1  ;;  %v9366_v54 = vpop.permute.xlu1 %9365 }
 0xaec   : > { %9095 = vmatpush1.msra.mxu1 %v8973_v19  ;;  %8928 = vmatprep.mubr.f32.mxu1 %v16500_v7  ;;  %v9382_v41 = vsel %vm16539_vm10, %v15627_v52, %v9366_v54  ;;  %vm9918_vm10 = vcmask 392192  }
 0xaed   : > { %v8955_v2 = vpop.permute.xlu0 %8954  ;;  %9433 = vmatprep.subr.mxu0 %v9382_v41 }
 0xaee   : > { %9434 = vmatpush1.msra.mxu0 %v9381_v42  ;;  %v8970_v40 = vsel %vm8966_vm13, %v15467_v30, %v8955_v2  ;;  %vm16542_vm13 = vmmov %vm16540_vm2  ;;  %vm10022_vm2 = vcmask 15360  }
 0xaef   : > { %12191 = vmatmul.mubr.msk.f32.gmra.mxu1 %vm1283_vm6, %v15632_v29  ;;  %9096 = vmatprep.subr.mxu1 %v8970_v40  ;;  %v9378_v4 = vpop.permute.xlu1 %9377 }
 0xaf0   : > { %12206 = vmatmul.mubr.msk.f32.vlgmr.msra.gmra.mxu0 %vm1283_vm6, %v12204_v47  ;;  %9097 = vmatpush1.msra.mxu1 %v8969_v50  ;;  %v9388_v9 = vsel %vm16544_vm9, %v9378_v4, %v15701_v44  ;;  %v9387_v20 = vsel %vm16545_vm14, %v15595_v13, %v9378_v4  ;;  %vm10037_vm9 = vcmask 56320   ;;  %vm10165_vm14 = vcmask 39944  }
 0xaf1   : > { %9130 = vmatprep.mubr.f32.mxu1 %v16500_v7  ;;  %v9571_v1 = vpop.permute.xlu0 %9570  ;;  %9301 = vmatprep.subr.mxu1 %v9181_v23 }
 0xaf2   : > { %9473 = vmatprep.mubr.f32.mxu0 %v16500_v7 }
 0xaf3   : > { %12196 = vmatmul.mubr.msk.f32.vlgmr.msra.gmra.mxu1 %vm1283_vm6, %v15647_v61  ;;  %v9581_v30 = vpop.permute.xlu1 %9580 }
 0xaf4   : > { %9302 = vmatpush1.msra.mxu1 %v9180_v55  ;;  %12207 = vmatmul.mubr.msk.f32.gmra.mxu0 %vm1283_vm6, %v12205_v59  ;;  %v9594_v21 = vsel %vm9588_vm3, %v9581_v30, %v15727_v46 }
 0xaf5   : > { %9136 = vmatprep.mubr.f32.mxu1 %v16500_v7  ;;  %v9163_v39 = vpop.permute.xlu0 %9162  ;;  %9639 = vmatprep.subr.mxu0 %v9594_v21 }
 0xaf6   : > { %v9177_v32 = vsel %vm16542_vm13, %v9161_v31, %v9163_v39  ;;  %9675 = vmatprep.mubr.f32.mxu0 %v16500_v7  ;;  %vm10028_vm13 = vcmask 31744  }
 0xaf7   : > { %12197 = vmatmul.mubr.msk.f32.gmra.mxu1 %vm1283_vm6, %v15671_v18  ;;  %9303 = vmatprep.subr.mxu1 %v9177_v32  ;;  %v9368_v63 = vpop.permute.xlu1 %9367 }
 0xaf8   : > { %9304 = vmatpush1.msra.mxu1 %v9176_v6  ;;  %9337 = vmatprep.mubr.f32.mxu1 %v16500_v7  ;;  %v9383_v29 = vsel %vm16547_vm8, %v9366_v54, %v9368_v63  ;;  %vm10186_vm8 = vcmask 105512  }
 0xaf9   : > { %v9569_v11 = vpop.permute.xlu0 %9568  ;;  %9508 = vmatprep.subr.mxu1 %v9388_v9 }
 0xafa   : > { %v9589_v57 = vsel %vm9588_vm3, %v9569_v11, %v9571_v1 }
 0xafb   : > { %12202 = vmatmul.mubr.msk.f32.vlgmr.msra.gmra.mxu1 %vm1283_vm6, %v15687_v51  ;;  %v9579_v33 = vpop.permute.xlu1 %9578 }
 0xafc   : > { %9509 = vmatpush1.msra.mxu1 %v9387_v20  ;;  %v9593_v56 = vsel %vm9588_vm3, %v9579_v33, %v9581_v30  ;;  %9343 = vmatprep.mubr.f32.mxu1 %v16500_v7 }
 0xafd   : > { %v9370_v12 = vpop.permute.xlu0 %9369  ;;  %9640 = vmatpush1.msra.mxu0 %v9593_v56 }
 0xafe   : > { %v9384_v52 = vsel %vm16546_vm7, %v9368_v63, %v9370_v12  ;;  %vm10228_vm7 = vcmask 261120  }
 0xaff   : > { %12203 = vmatmul.mubr.msk.f32.gmra.mxu1 %vm1283_vm6, %v15705_v10  ;;  %9510 = vmatprep.subr.mxu1 %v9384_v52  ;;  %v9573_v36 = vpop.permute.xlu1 %9572 }
 0xb00   : > { %9511 = vmatpush1.msra.mxu1 %v9383_v29  ;;  %9544 = vmatprep.mubr.f32.mxu1 %v16500_v7  ;;  %v9590_v13 = vsel %vm9588_vm3, %v9571_v1, %v9573_v36 }
 0xb01   : > { %9641 = vmatprep.subr.mxu0 %v9590_v13  ;;  %v9587_v24 = vpop.permute.xlu0 %9586 }
 0xb02   : > { %9642 = vmatpush1.msra.mxu0 %v9589_v57 }
 0xb03   : > { %12208 = vmatmul.mubr.msk.f32.vlgmr.msra.gmra.mxu1 %vm1283_vm6, %v12204_v47  ;;  %12212 = vmatmul.mubr.msk.f32.vlgmr.msra.gmra.mxu0 %vm1283_vm6, %v12210_v22  ;;  %v9585_v60 = vpop.permute.xlu1 %9584 }
 0xb04   : > { %9550 = vmatprep.mubr.f32.mxu1 %v16500_v7  ;;  %v9596_v61 = vsel %vm9588_vm3, %v9585_v60, %v9587_v24  ;;  %9681 = vmatprep.mubr.f32.mxu0 %v16500_v7  ;;  %v9595_v38 = vsel %vm9588_vm3, %v15727_v46, %v9585_v60 }
 0xb05   : > { %9716 = vmatprep.subr.mxu1 %v9596_v61  ;;  %v9577_v28 = vpop.permute.xlu0 %9576 }
 0xb06   : > { %9717 = vmatpush1.msra.mxu1 %v9595_v38 }
 0xb07   : > { %12209 = vmatmul.mubr.msk.f32.gmra.mxu1 %vm1283_vm6, %v12205_v59  ;;  %12213 = vmatmul.mubr.msk.f32.gmra.mxu0 %vm1283_vm6, %v12211_v25  ;;  %v9575_v5 = vpop.permute.xlu1 %9574 }
 0xb08   : > { %v9592_v62 = vsel %vm9588_vm3, %v9575_v5, %v9577_v28  ;;  %v9591_v49 = vsel %vm9588_vm3, %v9573_v36, %v9575_v5  ;;  %9752 = vmatprep.mubr.f32.mxu1 %v16500_v7  ;;  %vm10025_vm3 = vcmask 23552  }
 0xb09   : > { %9718 = vmatprep.subr.mxu1 %v9592_v62 }
 0xb0a   : > { %9719 = vmatpush1.msra.mxu1 %v9591_v49 }
 0xb0b   : > { %12214 = vmatmul.mubr.msk.f32.vlgmr.msra.gmra.mxu1 %vm1283_vm6, %v12210_v22 }
 0xb0c   : > { %9758 = vmatprep.mubr.f32.mxu1 %v16500_v7 }
 0xb0f   : > { %12215 = vmatmul.mubr.msk.f32.gmra.mxu1 %vm1283_vm6, %v12211_v25 }
 0xb12   : > { %v7881_v46 = vpop.permute.xlu0 %7880 }
 0xb14   : > { %v15823_v40 = vpop.permute.xlu1 %7885 }
 0xb6d   : > { %v8018_v15 = vpop.f32.mrf.mxu0 }
 0xb6e   : > { %v8106_v61 = vadd.f32 %v8018_v15, %v7881_v46 }
 0xb6f   : > { %v8020_v18 = vpop.f32.mrf.mxu0 }
 0xb70   : > { %v8107_v62 = vadd.f32 %v8020_v18, %v7881_v46 }
 0xb71   : > { %v15799_v16 = vpop.f32.mrf.mxu0 }
 0xb73   : > { %v15801_v53 = vpop.f32.mrf.mxu0 }
 0xb75   : > { %v8225_v0 = vpop.f32.mrf.mxu0 }
 0xb76   : > { %v8313_v28 = vadd.f32 %v8225_v0, %v8106_v61 }
 0xb77   : > { %v8227_v45 = vpop.f32.mrf.mxu0 }
 0xb79   : > { %v15803_v17 = vpop.f32.mrf.mxu0 }
 0xb7b   : > { %v15805_v51 = vpop.f32.mrf.mxu0 }
 0xb7d   : > { %v8433_v8 = vpop.f32.mrf.mxu0 }
 0xb7e   : > { %v8521_v49 = vadd.f32 %v8433_v8, %v8313_v28 }
 0xb7f   : > { %v8435_v27 = vpop.f32.mrf.mxu0 }
 0xb81   : > { %v15807_v43 = vpop.f32.mrf.mxu0 }
 0xb83   : > { %v15809_v3 = vpop.f32.mrf.mxu0 }
 0xb85   : > { %v8640_v44 = vpop.f32.mrf.mxu0 }
 0xb87   : > { %v8642_v10 = vpop.f32.mrf.mxu0 }
 0xb8a   : > { %v8095_v37 = vpop.f32.mrf.mxu1  ;;  %v15811_v31 = vpop.f32.mrf.mxu0 }
 0xb8c   : > { %v8097_v34 = vpop.f32.mrf.mxu1  ;;  %v15813_v48 = vpop.f32.mrf.mxu0 }
 0xb8d   : > { %v8109_v54 = vadd.f32 %v8097_v34, %v7881_v46 }
 0xb8e   : > { %v15815_v14 = vpop.f32.mrf.mxu1  ;;  %v8847_v35 = vpop.f32.mrf.mxu0 }
 0xb90   : > { %v8103_v26 = vpop.f32.mrf.mxu1  ;;  %v8849_v58 = vpop.f32.mrf.mxu0 }
 0xb91   : > { %v8113_v50 = vadd.f32 %v8103_v26, %v15823_v40 }
 0xb93   : > { %v8302_v19 = vpop.f32.mrf.mxu1 }
 0xb94   : > { %v15817_v41 = vpop.f32.mrf.mxu0 }
 0xb95   : > { %v8304_v42 = vpop.f32.mrf.mxu1 }
 0xb96   : > { %v15819_v2 = vadd.f32 %v8304_v42, %v8109_v54  ;;  %v15821_v47 = vpop.f32.mrf.mxu0  ;;  %v8314_v54 = vadd.f32 %v8227_v45, %v8107_v62  ;;  %v8728_v42 = vadd.f32 %v8640_v44, %v8521_v49 }
 0xb97   : > { %v15825_v4 = vpop.f32.mrf.mxu1 }
 0xb98   : > { %v9055_v23 = vpop.f32.mrf.mxu0 }
 0xb99   : > { %v8310_v1 = vpop.f32.mrf.mxu1 }
 0xb9a   : > { %v8320_v59 = vadd.f32 %v8310_v1, %v8113_v50  ;;  %v9057_v55 = vpop.f32.mrf.mxu0  ;;  %v8522_v1 = vadd.f32 %v8435_v27, %v8314_v54 }
 0xb9b   : > { %v8510_v30 = vpop.f32.mrf.mxu1 }
 0xb9c   : > { %v8729_v15 = vadd.f32 %v8642_v10, %v8522_v1 }
 0xb9d   : > { %v15828_v21 = vpop.f32.mrf.mxu1  ;;  %v15830_v39 = vpop.f32.mrf.mxu0 }
 0xb9e   : > { %v8936_v61 = vadd.f32 %v8849_v58, %v8729_v15 }
 0xb9f   : > { %v15832_v32 = vpop.f32.mrf.mxu1  ;;  %v15836_v9 = vpop.f32.mrf.mxu0 }
 0xba0   : > { %v9144_v45 = vadd.f32 %v9057_v55, %v8936_v61 }
 0xba1   : > { %v8518_v63 = vpop.f32.mrf.mxu1  ;;  %v9262_v33 = vpop.f32.mrf.mxu0 }
 0xba2   : > { %v15834_v6 = vadd.f32 %v8518_v63, %v8320_v59  ;;  %v8108_v59 = vadd.f32 %v8095_v37, %v7881_v46  ;;  %v8935_v63 = vadd.f32 %v8847_v35, %v8728_v42  ;;  %v8110_v35 = vadd.f32 %v15799_v16, %v15823_v40 }
 0xba3   : > { %v8717_v11 = vpop.f32.mrf.mxu1  ;;  %v9264_v52 = vpop.f32.mrf.mxu0  ;;  %v8111_v16 = vadd.f32 %v15801_v53, %v15823_v40 }
 0xba4   : > { %16548 = vst [vmem:[#allocation24_spill] sm:$0xff] %v15834_v6  ;;  %v9143_v6 = vadd.f32 %v9055_v23, %v8935_v63  ;;  %v9351_v46 = vadd.f32 %v9264_v52, %v9144_v45 }
 0xba5   : > { %v15838_v20 = vpop.f32.mrf.mxu1  ;;  %v15846_v13 = vpop.f32.mrf.mxu0 }
 0xba6   : > { %v9350_v8 = vadd.f32 %v9262_v33, %v9143_v6 }
 0xba7   : > { %v15840_v56 = vpop.f32.mrf.mxu1  ;;  %v15852_v24 = vpop.f32.mrf.mxu0 }
 0xba9   : > { %v15842_v12 = vpop.f32.mrf.mxu1 }
 0xbaa   : > { %16549 = vst [vmem:[#allocation25_spill] sm:$0xff] %v15842_v12  ;;  %v8315_v12 = vadd.f32 %v8302_v19, %v8108_v59 }
 0xbab   : > { %v8924_v36 = vpop.f32.mrf.mxu1 }
 0xbac   : > { %v8523_v18 = vadd.f32 %v8510_v30, %v8315_v12  ;;  %v8317_v30 = vadd.f32 %v15803_v17, %v8110_v35  ;;  %v8318_v17 = vadd.f32 %v15805_v51, %v8111_v16  ;;  %v8112_v51 = vadd.f32 %v15815_v14, %v15823_v40 }
 0xbad   : > { %v15844_v29 = vpop.f32.mrf.mxu1 }
 0xbae   : > { %v8730_v44 = vadd.f32 %v8717_v11, %v8523_v18  ;;  %v8525_v11 = vadd.f32 %v15807_v43, %v8317_v30  ;;  %v8526_v53 = vadd.f32 %v15809_v3, %v8318_v17 }
 0xbaf   : > { %v15848_v22 = vpop.f32.mrf.mxu1 }
 0xbb0   : > { %v9469_v38 = vpop.f32.mrf.mxu0  ;;  %v8937_v10 = vadd.f32 %v8924_v36, %v8730_v44  ;;  %v8733_v54 = vadd.f32 %v15813_v48, %v8526_v53 }
 0xbb1   : > { %v15850_v57 = vpop.f32.mrf.mxu1  ;;  %v9557_v62 = vadd.f32 %v9469_v38, %v9350_v8  ;;  %v16554_v8 = vld [vmem:[#allocation25_spill] sm:$0xff] }
 0xbb2   : > { %16550 = vst [vmem:[#allocation21_spill] sm:$0xff] %v15850_v57  ;;  %v9471_v34 = vpop.f32.mrf.mxu0 }
 0xbb3   : > { %v9132_v60 = vpop.f32.mrf.mxu1  ;;  %v9558_v33 = vadd.f32 %v9471_v34, %v9351_v46 }
 0xbb4   : > { %v9475_v7 = vpop.f32.mrf.mxu0  ;;  %v9145_v6 = vadd.f32 %v9132_v60, %v8937_v10  ;;  %v8732_v60 = vadd.f32 %v15811_v31, %v8525_v11  ;;  %v8940_v31 = vadd.f32 %v15821_v47, %v8733_v54 }
 0xbb5   : > { %v15854_v25 = vpop.f32.mrf.mxu1 }
 0xbb6   : > { %16551 = vst [vmem:[#allocation22_spill] sm:$0xff] %v15854_v25  ;;  %v9477_v28 = vpop.f32.mrf.mxu0  ;;  %v8939_v43 = vadd.f32 %v15817_v41, %v8732_v60  ;;  %v8319_v41 = vadd.f32 %v15825_v4, %v8112_v51  ;;  %v9148_v48 = vadd.f32 %v15836_v9, %v8940_v31 }
 0xbb7   : > { %v15856_v5 = vpop.f32.mrf.mxu1 }
 0xbb8   : > { %v9147_v42 = vadd.f32 %v15830_v39, %v8939_v43  ;;  %v8527_v39 = vadd.f32 %v15832_v32, %v8319_v41  ;;  %v9355_v14 = vadd.f32 %v15852_v24, %v9148_v48 }
 0xbb9   : > { %v15858_v26 = vpop.f32.mrf.mxu1  ;;  %v16555_v45 = vld [vmem:[#allocation21_spill] sm:$0xff] }
 0xbba   : > { %v9354_v3 = vadd.f32 %v15846_v13, %v9147_v42  ;;  %v8734_v13 = vadd.f32 %v15840_v56, %v8527_v39  ;;  %v9562_v59 = vadd.f32 %v9477_v28, %v9355_v14 }
 0xbbb   : > { %v9339_v50 = vpop.f32.mrf.mxu1 }
 0xbbc   : > { %v9352_v12 = vadd.f32 %v9339_v50, %v9145_v6  ;;  %v9561_v1 = vadd.f32 %v9475_v7, %v9354_v3  ;;  %v8524_v7 = vadd.f32 %v15828_v21, %v15819_v2  ;;  %v8941_v4 = vadd.f32 %v15848_v22, %v8734_v13 }
 0xbbd   : > { %v15860_v57 = vpop.f32.mrf.mxu1  ;;  %v16552_v21 = vld [vmem:[#allocation22_spill] sm:$0xff] }
 0xbbe   : > { %v8731_v24 = vadd.f32 %v15838_v20, %v8524_v7  ;;  %v9149_v63 = vadd.f32 %v15856_v5, %v8941_v4 }
 0xbbf   : > { %v15862_v0 = vpop.f32.mrf.mxu1 }
 0xbc0   : > { %v8938_v56 = vadd.f32 %v15844_v29, %v8731_v24  ;;  %v9356_v15 = vadd.f32 %v15862_v0, %v9149_v63  ;;  %v16553_v0 = vld [vmem:[#allocation24_spill] sm:$0xff] }
 0xbc1   : > { %v15864_v25 = vpop.f32.mrf.mxu1  ;;  %v8735_v28 = vadd.f32 %v16554_v8, %v16553_v0 }
 0xbc2   : > { %v9146_v22 = vadd.f32 %v16552_v21, %v8938_v56 }
 0xbc3   : > { %v9546_v27 = vpop.f32.mrf.mxu1  ;;  %v9677_v37 = vpop.f32.mrf.mxu0  ;;  %v8942_v44 = vadd.f32 %v16555_v45, %v8735_v28 }
 0xbc4   : > { %v15868_v19 = vadd.f32 %v9677_v37, %v9557_v62  ;;  %v9559_v38 = vadd.f32 %v9546_v27, %v9352_v12  ;;  %v9353_v20 = vadd.f32 %v15860_v57, %v9146_v22 }
 0xbc5   : > { %v15870_v23 = vpop.f32.mrf.mxu1  ;;  %v9679_v58 = vpop.f32.mrf.mxu0  ;;  %v9150_v57 = vadd.f32 %v15858_v26, %v8942_v44 }
 0xbc6   : > { %9785 = vrot.lane.b32.xlu1 %v15868_v19, %s12953_s11  ;;  %9775 = vrot.lane.b32.xlu0 %v15868_v19, %s12946_s7  ;;  %v15880_v52 = vadd.f32 %v9679_v58, %v9558_v33  ;;  %v9560_v18 = vadd.f32 %v15870_v23, %v9353_v20 }
 0xbc7   : > { %v9552_v55 = vpop.f32.mrf.mxu1  ;;  %v9683_v50 = vpop.f32.mrf.mxu0  ;;  %v9357_v62 = vadd.f32 %v15864_v25, %v9150_v57 }
 0xbc8   : > { %v15908_v40 = vadd.f32 %v9683_v50, %v9561_v1  ;;  %v9563_v61 = vadd.f32 %v9552_v55, %v9356_v15 }
 0xbc9   : > { %v15882_v36 = vpop.f32.mrf.mxu1  ;;  %v9685_v47 = vpop.f32.mrf.mxu0 }
 0xbca   : > { %9800 = vrot.lane.b32.xlu1 %v15880_v52, %s12945_s2  ;;  %9787 = vrot.lane.b32.xlu0 %v15880_v52, %s12953_s11  ;;  %v15917_v9 = vadd.f32 %v9685_v47, %v9562_v59  ;;  %v9564_v37 = vadd.f32 %v15882_v36, %v9357_v62 }
 0xbcb   : > { %v9754_v49 = vpop.f32.mrf.mxu1 }
 0xbcc   : > { %v9767_v34 = vadd.f32 %v9754_v49, %v9559_v38 }
 0xbcd   : > { %v9756_v32 = vpop.f32.mrf.mxu1 }
 0xbce   : > { %9884 = vrot.lane.b32.xlu1 %v15880_v52, %s12946_s7  ;;  %9910 = vrot.lane.b32.xlu0 %v9767_v34, %s12954_s28  ;;  %v9768_v29 = vadd.f32 %v9756_v32, %v9560_v18 }
 0xbcf   : > { %v9760_v2 = vpop.f32.mrf.mxu1 }
 0xbd0   : > { %v9771_v5 = vadd.f32 %v9760_v2, %v9563_v61 }
 0xbd1   : > { %v9762_v27 = vpop.f32.mrf.mxu1 }
 0xbd2   : > { %9808 = vrot.lane.b32.xlu1 %v15880_v52, %s12954_s28  ;;  %9826 = vrot.lane.b32.xlu0 %v9767_v34, %s12955_s1  ;;  %v9772_v35 = vadd.f32 %v9762_v27, %v9564_v37 }
 0xbd6   : > { %9892 = vrot.lane.b32.xlu1 %v9767_v34, %s12953_s11  ;;  %9789 = vrot.lane.b32.xlu0 %v15908_v40, %s12953_s11 }
 0xbda   : > { %9818 = vrot.lane.b32.xlu1 %v9767_v34, %s12956_s0  ;;  %9886 = vrot.lane.b32.xlu0 %v15917_v9, %s12946_s7 }
 0xbde   : > { %9900 = vrot.lane.b32.xlu1 %v9767_v34, %s12945_s2  ;;  %9810 = vrot.lane.b32.xlu0 %v15917_v9, %s12954_s28 }
 0xbe2   : > { %9894 = vrot.lane.b32.xlu0 %v9771_v5, %s12953_s11  ;;  %9777 = vrot.lane.b32.xlu1 %v15908_v40, %s12946_s7  ;;  %s16283_s7 = smov 122  }
 0xbe6   : > { %9820 = vrot.lane.b32.xlu0 %v9771_v5, %s12956_s0  ;;  %9912 = vrot.lane.b32.xlu1 %v9768_v29, %s12954_s28 }
 0xbea   : > { %9902 = vrot.lane.b32.xlu0 %v9771_v5, %s12945_s2  ;;  %9791 = vrot.lane.b32.xlu1 %v15917_v9, %s12953_s11  ;;  %s16281_s11 = smov 120  }
 0xbee   : > { %9828 = vrot.lane.b32.xlu0 %v9771_v5, %s12955_s1  ;;  %9802 = vrot.lane.b32.xlu1 %v15917_v9, %s12945_s2 }
 0xbf2   : > { %9916 = vrot.lane.b32.xlu0 %v9772_v35, %s12954_s28  ;;  %9914 = vrot.lane.b32.xlu1 %v9771_v5, %s12954_s28  ;;  %s16279_s28 = smov 118  }
 0xbf6   : > { %9925 = vrot.lane.b32.xlu0 %v9768_v29, %s12956_s0  ;;  %9927 = vrot.lane.b32.xlu1 %v9772_v35, %s12956_s0 }
 0xbfa   : > { %9933 = vrot.lane.b32.xlu0 %v9768_v29, %s12955_s1  ;;  %9935 = vrot.lane.b32.xlu1 %v9772_v35, %s12955_s1  ;;  %s12960_s1 = smov 116  }
 0xc38   : > { %v9776_v25 = vpop.permute.xlu0 %9775  ;;  %v9786_v26 = vpop.permute.xlu1 %9785 }
 0xc39   : > { %v9781_v6 = vmax.f32 %v15868_v19, %v9776_v25 }
 0xc3c   : > { %v9788_v46 = vpop.permute.xlu0 %9787  ;;  %v9801_v10 = vpop.permute.xlu1 %9800 }
 0xc3d   : > { %v9794_v30 = vsel %vm9793_vm11, %v9786_v26, %v9788_v46 }
 0xc3e   : > { %v9798_v16 = vmax.f32 %v9781_v6, %v9794_v30 }
 0xc40   : > { %v9911_v23 = vpop.permute.xlu0 %9910  ;;  %v9885_v58 = vpop.permute.xlu1 %9884  ;;  %v9806_v36 = vmax.f32 %v9798_v16, %v9801_v10 }
 0xc41   : > { %v9890_v14 = vmax.f32 %v15880_v52, %v9885_v58 }
 0xc44   : > { %v9827_v33 = vpop.permute.xlu0 %9826  ;;  %v9809_v55 = vpop.permute.xlu1 %9808 }
 0xc45   : > { %v9814_v17 = vmax.f32 %v9806_v36, %v9809_v55 }
 0xc48   : > { %v9790_v11 = vpop.permute.xlu0 %9789  ;;  %v9893_v12 = vpop.permute.xlu1 %9892 }
 0xc49   : > { %v9898_v13 = vmax.f32 %v9890_v14, %v9893_v12 }
 0xc4c   : > { %v9887_v60 = vpop.permute.xlu0 %9886  ;;  %v9819_v38 = vpop.permute.xlu1 %9818 }
 0xc4d   : > { %v9824_v49 = vmax.f32 %v9814_v17, %v9819_v38  ;;  %v9891_v52 = vmax.f32 %v15917_v9, %v9887_v60 }
 0xc4f   : > { %v15957_v53 = vmax.f32 %v9824_v49, %v9827_v33 }
 0xc50   : > { %v9811_v43 = vpop.permute.xlu0 %9810  ;;  %v9901_v34 = vpop.permute.xlu1 %9900 }
 0xc51   : > { %9852 = vrot.lane.b32.xlu1 %v15957_v53, %s16283_s7  ;;  %9836 = vrot.lane.b32.xlu0 %v15957_v53, %s12942_s26  ;;  %v9906_v4 = vmax.f32 %v9898_v13, %v9901_v34 }
 0xc54   : > { %v9895_v19 = vpop.permute.xlu0 %9894  ;;  %v9778_v54 = vpop.permute.xlu1 %9777 }
 0xc55   : > { %9860 = vrot.lane.b32.xlu1 %v15957_v53, %s16281_s11  ;;  %9844 = vrot.lane.b32.xlu0 %v15957_v53, %s12956_s0  ;;  %v9782_v41 = vmax.f32 %v15908_v40, %v9778_v54  ;;  %v9899_v61 = vmax.f32 %v9891_v52, %v9895_v19 }
 0xc58   : > { %v9821_v42 = vpop.permute.xlu0 %9820  ;;  %v9913_v51 = vpop.permute.xlu1 %9912 }
 0xc59   : > { %9868 = vrot.lane.b32.xlu1 %v15957_v53, %s16279_s28  ;;  %v9919_v7 = vsel %vm9918_vm10, %v9911_v23, %v9913_v51 }
 0xc5a   : > { %v9923_v63 = vmax.f32 %v9906_v4, %v9919_v7 }
 0xc5c   : > { %v9903_v31 = vpop.permute.xlu0 %9902  ;;  %v9792_v3 = vpop.permute.xlu1 %9791 }
 0xc5d   : > { %v9795_v50 = vsel %vm9793_vm11, %v9790_v11, %v9792_v3  ;;  %v9907_v18 = vmax.f32 %v9899_v61, %v9903_v31  ;;  %vm10191_vm11 = vcmask 138344  }
 0xc5e   : > { %v9799_v1 = vmax.f32 %v9782_v41, %v9795_v50 }
 0xc60   : > { %v9829_v48 = vpop.permute.xlu0 %9828  ;;  %v9803_v39 = vpop.permute.xlu1 %9802 }
 0xc61   : > { %v9807_v59 = vmax.f32 %v9799_v1, %v9803_v39 }
 0xc63   : > { %v9815_v24 = vmax.f32 %v9807_v59, %v9811_v43 }
 0xc64   : > { %v9917_v47 = vpop.permute.xlu0 %9916  ;;  %v9915_v40 = vpop.permute.xlu1 %9914 }
 0xc65   : > { %v9825_v2 = vmax.f32 %v9815_v24, %v9821_v42  ;;  %v9920_v20 = vsel %vm9918_vm10, %v9915_v40, %v9917_v47 }
 0xc66   : > { %v9924_v29 = vmax.f32 %v9907_v18, %v9920_v20 }
 0xc67   : > { %v9833_v22 = vmax.f32 %v9825_v2, %v9829_v48 }
 0xc68   : > { %v9926_v32 = vpop.permute.xlu0 %9925  ;;  %v9928_v5 = vpop.permute.xlu1 %9927 }
 0xc69   : > { %v9931_v56 = vmax.f32 %v9923_v63, %v9926_v32  ;;  %v9932_v8 = vmax.f32 %v9924_v29, %v9928_v5 }
 0xc6c   : > { %v9934_v15 = vpop.permute.xlu0 %9933  ;;  %v9936_v0 = vpop.permute.xlu1 %9935 }
 0xc6d   : > { %v15973_v21 = vmax.f32 %v9931_v56, %v9934_v15  ;;  %v9940_v9 = vmax.f32 %v9932_v8, %v9936_v0 }
 0xc6f   : > { %9967 = vrot.lane.b32.xlu0 %v15973_v21, %s16281_s11  ;;  %9943 = vrot.lane.b32.xlu1 %v15973_v21, %s12942_s26 }
 0xc73   : > { %9951 = vrot.lane.b32.xlu1 %v15973_v21, %s12956_s0  ;;  %9862 = vrot.lane.b32.xlu0 %v9833_v22, %s16281_s11 }
 0xc77   : > { %9959 = vrot.lane.b32.xlu1 %v15973_v21, %s16283_s7  ;;  %9870 = vrot.lane.b32.xlu0 %v9833_v22, %s16279_s28 }
 0xc7b   : > { %9878 = vrot.lane.b32.xlu0 %v9833_v22, %s12960_s1  ;;  %9838 = vrot.lane.b32.xlu1 %v9833_v22, %s12942_s26 }
 0xc7f   : > { %9846 = vrot.lane.b32.xlu1 %v9833_v22, %s12956_s0  ;;  %9945 = vrot.lane.b32.xlu0 %v9940_v9, %s12942_s26 }
 0xc83   : > { %9854 = vrot.lane.b32.xlu1 %v9833_v22, %s16283_s7  ;;  %9953 = vrot.lane.b32.xlu0 %v9940_v9, %s12956_s0 }
 0xc87   : > { %9876 = vrot.lane.b32.xlu1 %v15957_v53, %s12960_s1  ;;  %9961 = vrot.lane.b32.xlu0 %v9940_v9, %s16283_s7  ;;  %s12962_s7 = smov 105  }
 0xc8b   : > { %9977 = vrot.lane.b32.xlu1 %v9940_v9, %s16279_s28  ;;  %9969 = vrot.lane.b32.xlu0 %v9940_v9, %s16281_s11  ;;  %s16557_s11 = sld [smem:[#allocation13_spill]] }
 0xc8f   : > { %9985 = vrot.lane.b32.xlu1 %v9940_v9, %s12960_s1  ;;  %9975 = vrot.lane.b32.xlu0 %v15973_v21, %s16279_s28  ;;  %s12961_s28 = smov 1  }
 0xc91   : > { %v10042_v56 = vld [vmem:[%s16557_s11 + $0x10] sm:$0xff]  ;;  %v10043_v15 = vld [vmem:[%s16557_s11 + $0x18] sm:$0xff]  ;;  %v10040_v2 = vld [vmem:[%s16557_s11] sm:$0xff] }
 0xc93   : > { %9983 = vrot.lane.b32.xlu0 %v15973_v21, %s12960_s1  ;;  %s16556_s1 = sld [smem:[#allocation12_spill]] }
 0xc99   : > { %v10044_v14 = vld [vmem:[%s16556_s1] sm:$0xff] }
 0xc9a   : > { %12646 = vmatprep.mubr.msk.f32.mxu0 %vm1283_vm6, %v10044_v14  ;;  %v10199_v14 = vld [vmem:[%s16561_s3 + $0x18] sm:$0xff] }
 0xcc3   : > { %v9853_v28 = vpop.permute.xlu1 %9852  ;;  %v9837_v45 = vpop.permute.xlu0 %9836 }
 0xcc4   : > { %v9842_v10 = vmax.f32 %v15957_v53, %v9837_v45 }
 0xcc7   : > { %v9861_v44 = vpop.permute.xlu1 %9860  ;;  %v9845_v57 = vpop.permute.xlu0 %9844 }
 0xcc8   : > { %v9850_v23 = vmax.f32 %v9842_v10, %v9845_v57  ;;  %v10046_v10 = vld [vmem:[%s16556_s1 + $0x10] sm:$0xff] }
 0xcca   : > { %v9858_v6 = vmax.f32 %v9850_v23, %v9853_v28 }
 0xccb   : > { %v9869_v62 = vpop.permute.xlu1 %9868 }
 0xccc   : > { %v9866_v11 = vmax.f32 %v9858_v6, %v9861_v44 }
 0xcce   : > { %v9874_v38 = vmax.f32 %v9866_v11, %v9869_v62 }
 0xce1   : > { %v9968_v27 = vpop.permute.xlu0 %9967  ;;  %v9944_v37 = vpop.permute.xlu1 %9943 }
 0xce2   : > { %v9949_v53 = vmax.f32 %v15973_v21, %v9944_v37  ;;  %v10041_v21 = vld [vmem:[%s16557_s11 + $0x8] sm:$0xff] }
 0xce5   : > { %v9863_v35 = vpop.permute.xlu0 %9862  ;;  %v9952_v25 = vpop.permute.xlu1 %9951 }
 0xce6   : > { %v9957_v31 = vmax.f32 %v9949_v53, %v9952_v25 }
 0xce9   : > { %v9871_v26 = vpop.permute.xlu0 %9870  ;;  %v9960_v46 = vpop.permute.xlu1 %9959 }
 0xcea   : > { %v9965_v48 = vmax.f32 %v9957_v31, %v9960_v46  ;;  %v10045_v46 = vld [vmem:[%s16556_s1 + $0x8] sm:$0xff] }
 0xcec   : > { %v9973_v7 = vmax.f32 %v9965_v48, %v9968_v27 }
 0xced   : > { %v9879_v58 = vpop.permute.xlu0 %9878  ;;  %v9839_v30 = vpop.permute.xlu1 %9838 }
 0xcee   : > { %v9843_v16 = vmax.f32 %v9833_v22, %v9839_v30 }
 0xcf1   : > { %v9946_v33 = vpop.permute.xlu0 %9945  ;;  %v9847_v55 = vpop.permute.xlu1 %9846 }
 0xcf2   : > { %v9851_v12 = vmax.f32 %v9843_v16, %v9847_v55  ;;  %v9950_v49 = vmax.f32 %v9940_v9, %v9946_v33 }
 0xcf5   : > { %v9954_v36 = vpop.permute.xlu0 %9953  ;;  %v9855_v17 = vpop.permute.xlu1 %9854 }
 0xcf6   : > { %v9859_v60 = vmax.f32 %v9851_v12, %v9855_v17  ;;  %v9958_v54 = vmax.f32 %v9950_v49, %v9954_v36 }
 0xcf8   : > { %v9867_v43 = vmax.f32 %v9859_v60, %v9863_v35 }
 0xcf9   : > { %v9962_v34 = vpop.permute.xlu0 %9961  ;;  %v9877_v19 = vpop.permute.xlu1 %9876 }
 0xcfa   : > { %v9875_v42 = vmax.f32 %v9867_v43, %v9871_v26  ;;  %v9882_v51 = vmax.f32 %v9874_v38, %v9877_v19  ;;  %v9966_v3 = vmax.f32 %v9958_v54, %v9962_v34 }
 0xcfc   : > { %9999 = vrot.lane.b32.xlu0 %v9882_v51, %s12956_s0  ;;  %9993 = vrot.lane.b32.xlu1 %v9882_v51, %s12961_s28  ;;  %v9883_v1 = vmax.f32 %v9875_v42, %v9879_v58  ;;  %v10047_v58 = vld [vmem:[%s16556_s1 + $0x18] sm:$0xff]  ;;  %s16560_s1 = smov 120  }
 0xcfd   : > { %v9970_v50 = vpop.permute.xlu0 %9969  ;;  %v9978_v41 = vpop.permute.xlu1 %9977 }
 0xcfe   : > { %v9974_v39 = vmax.f32 %v9966_v3, %v9970_v50 }
 0xd00   : > { %v9982_v47 = vmax.f32 %v9974_v39, %v9978_v41  ;;  %10001 = vrot.lane.b32.xlu0 %v9883_v1, %s12956_s0  ;;  %9995 = vrot.lane.b32.xlu1 %v9883_v1, %s12961_s28  ;;  %s12964_s28 = smov 123  }
 0xd01   : > { %v9976_v13 = vpop.permute.xlu0 %9975  ;;  %v9986_v59 = vpop.permute.xlu1 %9985 }
 0xd02   : > { %v9990_v4 = vmax.f32 %v9982_v47, %v9986_v59  ;;  %v9981_v32 = vmax.f32 %v9973_v7, %v9976_v13  ;;  %v10198_v47 = vld [vmem:[%s16561_s3 + $0x10] sm:$0xff]  ;;  %v10197_v13 = vld [vmem:[%s16561_s3 + $0x8] sm:$0xff]  ;;  %v10196_v59 = vld [vmem:[%s16561_s3] sm:$0xff] }
 0xd04   : > { %10015 = vrot.lane.b32.xlu0 %v9990_v4, %s12945_s2  ;;  %10009 = vrot.lane.b32.xlu1 %v9990_v4, %s12962_s7 }
 0xd05   : > { %v9984_v24 = vpop.permute.xlu0 %9983 }
 0xd06   : > { %v9989_v63 = vmax.f32 %v9981_v32, %v9984_v24 }
 0xd08   : > { %10013 = vrot.lane.b32.xlu0 %v9989_v63, %s12945_s2  ;;  %10007 = vrot.lane.b32.xlu1 %v9989_v63, %s12962_s7  ;;  %s16558_s2 = sld [smem:[#allocation14_spill]]  ;;  %s12963_s7 = smov 5  }
 0xd0c   : > { %10060 = vperm.xlu0 %12868, %v10042_v56   ;;  %10065 = vperm.xlu1 %12869, %v10043_v15  }
 0xd0e   : > { %v10220_v43 = vld [vmem:[%s16558_s2] sm:$0xff]  ;;  %v10221_v50 = vld [vmem:[%s16558_s2 + $0x8] sm:$0xff]  ;;  %v10222_v41 = vld [vmem:[%s16558_s2 + $0x10] sm:$0xff] }
 0xd0f   : > { %12660 = vmatprep.mubr.msk.f32.mxu1 %vm10228_vm7, %v10220_v43  ;;  %v10223_v48 = vld [vmem:[%s16558_s2 + $0x18] sm:$0xff]  ;;  %v12226_v1 = vld [vmem:[%s16558_s2 + $0x20] sm:$0xff] }
 0xd10   : > { %10050 = vperm.xlu0 %12868, %v10040_v2   ;;  %10055 = vperm.xlu1 %12869, %v10041_v21   ;;  %v12234_v39 = vld [vmem:[%s16558_s2 + $0x40] sm:$0xff] }
 0xd6e   : > { %v10000_v40 = vpop.permute.xlu0 %9999  ;;  %v9994_v52 = vpop.permute.xlu1 %9993 }
 0xd6f   : > { %v10020_v22 = vsel %vm10019_vm1, 0.0, %v9994_v52 }
 0xd70   : > { %v10023_v18 = vsel %vm10022_vm2, %v10020_v22, %v10000_v40 }
 0xd71   : > { %v10026_v45 = vsel %vm10025_vm3, %v10023_v18, 0.0 }
 0xd72   : > { %v10002_v61 = vpop.permute.xlu0 %10001  ;;  %v9996_v20 = vpop.permute.xlu1 %9995  ;;  %v10029_v37 = vsel %vm10028_vm13, %v10026_v45, 0.0  ;;  %v12227_v45 = vld [vmem:[%s16558_s2 + $0x28] sm:$0xff] }
 0xd73   : > { %v10021_v5 = vsel %vm10019_vm1, 0.0, %v9996_v20 }
 0xd74   : > { %v10024_v29 = vsel %vm10022_vm2, %v10021_v5, %v10002_v61 }
 0xd75   : > { %v10027_v0 = vsel %vm10025_vm3, %v10024_v29, 0.0 }
 0xd76   : > { %v10016_v8 = vpop.permute.xlu0 %10015  ;;  %v10030_v9 = vsel %vm10028_vm13, %v10027_v0, 0.0  ;;  %v10010_v28 = vpop.permute.xlu1 %10009 }
 0xd77   : > { %v10033_v44 = vsel %vm10031_vm4, %v10030_v9, %v10010_v28 }
 0xd78   : > { %v10036_v57 = vsel %vm10034_vm5, %v10033_v44, %v10016_v8 }
 0xd79   : > { %12642 = vmatprep.subr.msk.mxu0 %vm10037_vm9, %v10036_v57  ;;  %v16014_v62 = vsel %vm10037_vm9, %v10036_v57, 0.0 }
 0xd7a   : > { %v10014_v27 = vpop.permute.xlu0 %10013  ;;  %12643 = vmatpush3.msk.msra.mxu0 %vm10037_vm9, %v10036_v57  ;;  %v10008_v35 = vpop.permute.xlu1 %10007  ;;  %v12228_v57 = vld [vmem:[%s16558_s2 + $0x30] sm:$0xff] }
 0xd7b   : > { %v10032_v25 = vsel %vm10031_vm4, %v10029_v37, %v10008_v35  ;;  %v12235_v37 = vld [vmem:[%s16558_s2 + $0x48] sm:$0xff]  ;;  %v12229_v35 = vld [vmem:[%s16558_s2 + $0x38] sm:$0xff] }
 0xd7c   : > { %v10035_v26 = vsel %vm10034_vm5, %v10032_v25, %v10014_v27 }
 0xd7d   : > { %12644 = vmatprep.subr.msk.mxu0 %vm10037_vm9, %v10035_v26  ;;  %v16022_v23 = vsel %vm10037_vm9, %v10035_v26, 0.0 }
 0xd7e   : > { %12645 = vmatpush3.msk.msra.mxu0 %vm10037_vm9, %v10035_v26 }
 0xd7f   : > { %12647 = vmatmul.mubr.msk.f32.vlgmr.msra.gmra.mxu0 %vm1283_vm6, %v10045_v46  ;;  %v12236_v46 = vld [vmem:[%s16558_s2 + $0x50] sm:$0xff] }
 0xd80   : > { %12649 = vmatprep.mubr.msk.f32.mxu0 %vm1283_vm6, %v10046_v10  ;;  %v12242_v10 = vld [vmem:[%s16558_s2 + $0x60] sm:$0xff] }
 0xd83   : > { %12650 = vmatmul.mubr.msk.f32.gmra.mxu0 %vm1283_vm6, %v10047_v58  ;;  %v12243_v58 = vld [vmem:[%s16558_s2 + $0x68] sm:$0xff] }
 0xd84   : > { %12674 = vmatprep.mubr.msk.f32.mxu0 %vm10228_vm7, %v12226_v1 }
 0xd87   : > { %v10061_v30 = vpop.permute.xlu0 %10060  ;;  %v10066_v6 = vpop.permute.xlu1 %10065 }
 0xd88   : > { %10168 = vst.msk [vmem:[#allocation3 + $0x10] sm:$0xff] %vm10165_vm14, %v10061_v30  ;;  %10169 = vst.msk [vmem:[#allocation3 + $0x18] sm:$0xff] %vm10165_vm14, %v10066_v6 }
 0xd8b   : > { %v10051_v33 = vpop.permute.xlu0 %10050  ;;  %v10056_v55 = vpop.permute.xlu1 %10055 }
 0xd8c   : > { %10166 = vst.msk [vmem:[#allocation3] sm:$0xff] %vm10165_vm14, %v10051_v33  ;;  %10167 = vst.msk [vmem:[#allocation3 + $0x8] sm:$0xff] %vm10165_vm14, %v10056_v55 }
 0xe3f   : > { %v12648_v16 = vpop.f32.mrf.mxu0 }
 0xe40   : > { %v16034_v38 = vadd.f32 %v12648_v16, %v10056_v55  ;;  %v12250_v16 = vld [vmem:[%s16558_s2 + $0x80] sm:$0xff] }
 0xe41   : > { %v10146_v11 = vpop.f32.mrf.mxu0 }
 0xe42   : > { %v16037_v49 = vadd.f32 %v10146_v11, %v10051_v33  ;;  %v12251_v11 = vld [vmem:[%s16558_s2 + $0x88] sm:$0xff] }
 0xe43   : > { %v12651_v12 = vpop.f32.mrf.mxu0 }
 0xe44   : > { %v16029_v36 = vadd.f32 %v12651_v12, %v10066_v6  ;;  %v12245_v12 = vld [vmem:[%s16558_s2 + $0x78] sm:$0xff] }
 0xe45   : > { %v10156_v17 = vpop.f32.mrf.mxu0 }
 0xe46   : > { %v16031_v60 = vadd.f32 %v10156_v17, %v10061_v30  ;;  %10180 = vrot.lane.b32.xlu1 %v16029_v36, %s12963_s7 }
 0xe48   : > { %10178 = vrot.lane.b32.xlu0 %v16031_v60, %s12963_s7 }
 0xe4a   : > { %10176 = vrot.lane.b32.xlu1 %v16034_v38, %s12963_s7 }
 0xe4c   : > { %10174 = vrot.lane.b32.xlu0 %v16037_v49, %s12963_s7  ;;  %s16559_s7 = smov 122  }
 0xeb8   : > { %v10181_v34 = vpop.permute.xlu1 %10180 }
 0xeb9   : > { %10190 = vst.msk [vmem:[#allocation3 + $0x18] sm:$0xff] %vm10186_vm8, %v10181_v34  ;;  %v12252_v34 = vld [vmem:[%s16558_s2 + $0x90] sm:$0xff] }
 0xeba   : > { %10195 = vst.msk [vmem:[#allocation3 + $0x18] sm:$0xff] %vm10191_vm11, %v10066_v6  ;;  %v10179_v19 = vpop.permute.xlu0 %10178 }
 0xebb   : > { %10189 = vst.msk [vmem:[#allocation3 + $0x10] sm:$0xff] %vm10186_vm8, %v10179_v19  ;;  %v12258_v19 = vld [vmem:[%s16558_s2 + $0xa0] sm:$0xff] }
 0xebc   : > { %10194 = vst.msk [vmem:[#allocation3 + $0x10] sm:$0xff] %vm10191_vm11, %v10061_v30  ;;  %v10177_v53 = vpop.permute.xlu1 %10176  ;;  %v12237_v30 = vld [vmem:[%s16558_s2 + $0x58] sm:$0xff] }
 0xebd   : > { %10188 = vst.msk [vmem:[#allocation3 + $0x8] sm:$0xff] %vm10186_vm8, %v10177_v53  ;;  %v12259_v53 = vld [vmem:[%s16558_s2 + $0xa8] sm:$0xff] }
 0xebe   : > { %10193 = vst.msk [vmem:[#allocation3 + $0x8] sm:$0xff] %vm10191_vm11, %v10056_v55  ;;  %v10175_v54 = vpop.permute.xlu0 %10174  ;;  %v12244_v55 = vld [vmem:[%s16558_s2 + $0x70] sm:$0xff] }
 0xebf   : > { %10187 = vst.msk [vmem:[#allocation3] sm:$0xff] %vm10186_vm8, %v10175_v54  ;;  %v12253_v54 = vld [vmem:[%s16558_s2 + $0x98] sm:$0xff] }
 0xec0   : > { %10192 = vst.msk [vmem:[#allocation3] sm:$0xff] %vm10191_vm11, %v10051_v33 }
 0xec1   : > { %v10227_v42 = vld [vmem:[#allocation3 + $0x18] sm:$0xff] }
 0xec2   : > { %12652 = vmatprep.subr.mxu1 %v10227_v42 }
 0xec3   : > { %12653 = vmatpush3.msra.mxu1 %v10227_v42  ;;  %v10226_v51 = vld [vmem:[#allocation3 + $0x10] sm:$0xff] }
 0xec4   : > { %12654 = vmatprep.subr.mxu1 %v10226_v51 }
 0xec5   : > { %12655 = vmatpush3.msra.mxu1 %v10226_v51  ;;  %v10225_v31 = vld [vmem:[#allocation3 + $0x8] sm:$0xff] }
 0xec6   : > { %10459 = vrot.lane.b32.xlu1 %v10225_v31, %s12942_s26  ;;  %10341 = vrot.lane.b32.xlu0 %v10225_v31, %s12941_s23 }
 0xec7   : > { %12656 = vmatprep.subr.mxu1 %v10225_v31  ;;  %v10224_v3 = vld [vmem:[#allocation3] sm:$0xff] }
 0xec8   : > { %12657 = vmatpush3.msra.mxu1 %v10225_v31 }
 0xec9   : > { %12658 = vmatprep.subr.mxu1 %v10224_v3 }
 0xeca   : > { %12659 = vmatpush3.msra.mxu1 %v10224_v3  ;;  %10695 = vrot.lane.b32.xlu1 %v10225_v31, %s12964_s28 }
 0xecb   : > { %10577 = vrot.lane.b32.xlu0 %v10225_v31, %s12956_s0  ;;  %12661 = vmatmul.mubr.msk.f32.vlgmr.msra.gmra.mxu1 %vm10228_vm7, %v10221_v50  ;;  %v12267_v50 = vld [vmem:[%s16558_s2 + $0xc8] sm:$0xff] }
 0xecc   : > { %12663 = vmatprep.mubr.msk.f32.mxu1 %vm10228_vm7, %v10222_v41  ;;  %v12261_v41 = vld [vmem:[%s16558_s2 + $0xb8] sm:$0xff] }
 0xece   : > { %10345 = vrot.lane.b32.xlu1 %v10227_v42, %s12941_s23 }
 0xecf   : > { %10813 = vrot.lane.b32.xlu0 %v10225_v31, %s16559_s7  ;;  %12664 = vmatmul.mubr.msk.f32.gmra.mxu1 %vm10228_vm7, %v10223_v48 }
 0xed0   : > { %12688 = vmatprep.mubr.msk.f32.mxu1 %vm10228_vm7, %v12234_v39  ;;  %v12268_v39 = vld [vmem:[%s16558_s2 + $0xd0] sm:$0xff] }
 0xed2   : > { %10463 = vrot.lane.b32.xlu1 %v10227_v42, %s12942_s26 }
 0xed3   : > { %10339 = vrot.lane.b32.xlu0 %v10224_v3, %s12941_s23 }
 0xed6   : > { %10581 = vrot.lane.b32.xlu1 %v10227_v42, %s12956_s0 }
 0xed7   : > { %10457 = vrot.lane.b32.xlu0 %v10224_v3, %s12942_s26 }
 0xeda   : > { %10699 = vrot.lane.b32.xlu1 %v10227_v42, %s12964_s28 }
 0xedb   : > { %10575 = vrot.lane.b32.xlu0 %v10224_v3, %s12956_s0 }
 0xede   : > { %10817 = vrot.lane.b32.xlu1 %v10227_v42, %s16559_s7 }
 0xedf   : > { %10693 = vrot.lane.b32.xlu0 %v10224_v3, %s12964_s28 }
 0xee2   : > { %10935 = vrot.lane.b32.xlu1 %v10227_v42, %s16560_s1 }
 0xee3   : > { %10343 = vrot.lane.b32.xlu0 %v10226_v51, %s12941_s23  ;;  %s16562_s23 = sld [smem:[#allocation17_spill]] }
 0xee6   : > { %10461 = vrot.lane.b32.xlu1 %v10226_v51, %s12942_s26  ;;  %s16563_s26 = smov 118  }
 0xee7   : > { %10811 = vrot.lane.b32.xlu0 %v10224_v3, %s16559_s7 }
 0xee9   : > { %v11284_v7 = vld [vmem:[%s16562_s23] sm:$0xff]  ;;  %v11285_v4 = vld [vmem:[%s16562_s23 + $0x8] sm:$0xff] }
 0xeea   : > { %10931 = vrot.lane.b32.xlu1 %v10225_v31, %s16560_s1 }
 0xeeb   : > { %10579 = vrot.lane.b32.xlu0 %v10226_v51, %s12956_s0  ;;  %s16564_s0 = sld [smem:[#allocation19_spill]] }
 0xeee   : > { %10697 = vrot.lane.b32.xlu1 %v10226_v51, %s12964_s28  ;;  %s16571_s28 = smul.u32 40, %s16573_s16 }
 0xeef   : > { %10929 = vrot.lane.b32.xlu0 %v10224_v3, %s16560_s1 }
 0xef1   : > { %v11639_v32 = vld [vmem:[%s16564_s0] sm:$0xff] }
 0xef2   : > { %11053 = vrot.lane.b32.xlu1 %v10227_v42, %s12965_s5 }
 0xef3   : > { %10815 = vrot.lane.b32.xlu0 %v10226_v51, %s16559_s7  ;;  %s930_s7 = scalar_lea.vmem %s13124_s6, %s16571_s28 }
 0xef6   : > { %10933 = vrot.lane.b32.xlu1 %v10226_v51, %s16560_s1  ;;  %s16570_s1 = sld [smem:[#allocation18_spill]] }
 0xef7   : > { %11049 = vrot.lane.b32.xlu0 %v10225_v31, %s12965_s5 }
 0xefa   : > { %11171 = vrot.lane.b32.xlu1 %v10227_v42, %s16563_s26 }
 0xefb   : > { %11051 = vrot.lane.b32.xlu0 %v10226_v51, %s12965_s5 }
 0xefe   : > { %11169 = vrot.lane.b32.xlu1 %v10226_v51, %s16563_s26 }
 0xeff   : > { %11047 = vrot.lane.b32.xlu0 %v10224_v3, %s12965_s5  ;;  %s16565_s5 = sld [smem:[#allocation16_spill]] }
 0xf02   : > { %11167 = vrot.lane.b32.xlu1 %v10225_v31, %s16563_s26  ;;  %v12260_v31 = vld [vmem:[%s16558_s2 + $0xb0] sm:$0xff] }
 0xf03   : > { %11165 = vrot.lane.b32.xlu0 %v10224_v3, %s16563_s26  ;;  %v12266_v3 = vld [vmem:[%s16558_s2 + $0xc0] sm:$0xff] }
 0xf06   : > { %10217 = vperm.xlu1 %12869, %v10199_v14   ;;  %v12274_v14 = vld [vmem:[%s16558_s2 + $0xe0] sm:$0xff] }
 0xf07   : > { %10212 = vperm.xlu0 %12868, %v10198_v47   ;;  %v12275_v47 = vld [vmem:[%s16558_s2 + $0xe8] sm:$0xff] }
 0xf0a   : > { %10207 = vperm.xlu1 %12869, %v10197_v13   ;;  %v12269_v13 = vld [vmem:[%s16558_s2 + $0xd8] sm:$0xff] }
 0xf0b   : > { %10202 = vperm.xlu0 %12868, %v10196_v59  }
 0xf0e   : > { %11288 = vperm.xlu1 %12869, %v11284_v7   ;;  %v12276_v7 = vld [vmem:[%s16558_s2 + $0xf0] sm:$0xff] }
 0xf0f   : > { %11293 = vperm.xlu0 %12868, %v11285_v4   ;;  %v12282_v4 = vld [vmem:[%s16558_s2 + $0x100] sm:$0xff] }
 0xf12   : > { %11642 = vperm.xlu1 %12869, %v11639_v32   ;;  %v12277_v32 = vld [vmem:[%s16558_s2 + $0xf8] sm:$0xff] }
 0xf38   : > { %v10460_v24 = vpop.permute.xlu1 %10459  ;;  %v10342_v63 = vpop.permute.xlu0 %10341 }
 0xf3c   : > { %v16084_v56 = vpop.permute.xlu1 %10695 }
 0xf3d   : > { %v10578_v15 = vpop.permute.xlu0 %10577 }
 0xf40   : > { %v10346_v2 = vpop.permute.xlu1 %10345 }
 0xf41   : > { %v16086_v21 = vpop.permute.xlu0 %10813  ;;  %12666 = vmatprep.subr.mxu0 %v10346_v2 }
 0xf42   : > { %12667 = vmatpush3.msra.mxu0 %v10346_v2  ;;  %v16566_v2 = vmov 0.0  }
 0xf44   : > { %v10464_v40 = vpop.permute.xlu1 %10463 }
 0xf45   : > { %v10340_v52 = vpop.permute.xlu0 %10339  ;;  %12680 = vmatprep.subr.mxu1 %v10464_v40 }
 0xf46   : > { %12681 = vmatpush3.msra.mxu1 %v10464_v40 }
 0xf48   : > { %v10582_v22 = vpop.permute.xlu1 %10581 }
 0xf49   : > { %v10458_v61 = vpop.permute.xlu0 %10457 }
 0xf4c   : > { %v10700_v20 = vpop.permute.xlu1 %10699 }
 0xf4d   : > { %v10576_v5 = vpop.permute.xlu0 %10575 }
 0xf50   : > { %v10818_v18 = vpop.permute.xlu1 %10817 }
 0xf51   : > { %v10694_v29 = vpop.permute.xlu0 %10693 }
 0xf54   : > { %v16088_v0 = vpop.permute.xlu1 %10935 }
 0xf55   : > { %v10344_v8 = vpop.permute.xlu0 %10343 }
 0xf56   : > { %12668 = vmatprep.subr.mxu0 %v10344_v8 }
 0xf57   : > { %12669 = vmatpush3.msra.mxu0 %v10344_v8 }
 0xf58   : > { %12670 = vmatprep.subr.mxu0 %v10342_v63  ;;  %v10462_v9 = vpop.permute.xlu1 %10461 }
 0xf59   : > { %12671 = vmatpush3.msra.mxu0 %v10342_v63  ;;  %v16090_v28 = vpop.permute.xlu0 %10811  ;;  %12682 = vmatprep.subr.mxu1 %v10462_v9  ;;  %v12283_v63 = vld [vmem:[%s16558_s2 + $0x108] sm:$0xff] }
 0xf5a   : > { %12672 = vmatprep.subr.mxu0 %v10340_v52  ;;  %12683 = vmatpush3.msra.mxu1 %v10462_v9 }
 0xf5b   : > { %12673 = vmatpush3.msra.mxu0 %v10340_v52  ;;  %12684 = vmatprep.subr.mxu1 %v10460_v24 }
 0xf5c   : > { %12675 = vmatmul.mubr.msk.f32.vlgmr.msra.gmra.mxu0 %vm10228_vm7, %v12227_v45  ;;  %12694 = vmatprep.subr.mxu0 %v10582_v22  ;;  %v16094_v44 = vpop.permute.xlu1 %10931 }
 0xf5d   : > { %12695 = vmatpush3.msra.mxu0 %v10582_v22  ;;  %v10580_v27 = vpop.permute.xlu0 %10579  ;;  %12685 = vmatpush3.msra.mxu1 %v10460_v24 }
 0xf5e   : > { %12686 = vmatprep.subr.mxu1 %v10458_v61  ;;  %12696 = vmatprep.subr.mxu0 %v10580_v27 }
 0xf5f   : > { %12677 = vmatprep.mubr.msk.f32.mxu0 %vm10228_vm7, %v12228_v57  ;;  %12687 = vmatpush3.msra.mxu1 %v10458_v61 }
 0xf60   : > { %12697 = vmatpush3.msra.mxu0 %v10580_v27  ;;  %12689 = vmatmul.mubr.msk.f32.vlgmr.msra.gmra.mxu1 %vm10228_vm7, %v12235_v37  ;;  %v10698_v25 = vpop.permute.xlu1 %10697 }
 0xf61   : > { %12678 = vmatmul.mubr.msk.f32.gmra.mxu0 %vm10228_vm7, %v12229_v35  ;;  %12698 = vmatprep.subr.mxu0 %v10578_v15  ;;  %v16102_v26 = vpop.permute.xlu0 %10929 }
 0xf62   : > { %12708 = vmatprep.subr.mxu1 %v10700_v20  ;;  %12699 = vmatpush3.msra.mxu0 %v10578_v15  ;;  %v12285_v15 = vld [vmem:[%s16558_s2 + $0x118] sm:$0xff] }
 0xf63   : > { %12709 = vmatpush3.msra.mxu1 %v10700_v20  ;;  %12700 = vmatprep.subr.mxu0 %v10576_v5 }
 0xf64   : > { %12710 = vmatprep.subr.mxu1 %v10698_v25  ;;  %12691 = vmatprep.mubr.msk.f32.mxu1 %vm10228_vm7, %v12236_v46  ;;  %v11054_v6 = vpop.permute.xlu1 %11053 }
 0xf65   : > { %12701 = vmatpush3.msra.mxu0 %v10576_v5  ;;  %12702 = vmatprep.mubr.msk.f32.mxu0 %vm10228_vm7, %v12242_v10  ;;  %v10816_v33 = vpop.permute.xlu0 %10815 }
 0xf66   : > { %12711 = vmatpush3.msra.mxu1 %v10698_v25  ;;  %12703 = vmatmul.mubr.msk.f32.vlgmr.msra.gmra.mxu0 %vm10228_vm7, %v12243_v58 }
 0xf67   : > { %12692 = vmatmul.mubr.msk.f32.gmra.mxu1 %vm10228_vm7, %v12237_v30  ;;  %12712 = vmatprep.subr.mxu1 %v16084_v56 }
 0xf68   : > { %12722 = vmatprep.subr.mxu0 %v10818_v18  ;;  %12713 = vmatpush3.msra.mxu1 %v16084_v56  ;;  %v10934_v17 = vpop.permute.xlu1 %10933  ;;  %v12284_v56 = vld [vmem:[%s16558_s2 + $0x110] sm:$0xff] }
 0xf69   : > { %12723 = vmatpush3.msra.mxu0 %v10818_v18  ;;  %12714 = vmatprep.subr.mxu1 %v10694_v29  ;;  %v11050_v43 = vpop.permute.xlu0 %11049 }
 0xf6a   : > { %12724 = vmatprep.subr.mxu0 %v10816_v33  ;;  %12705 = vmatprep.mubr.msk.f32.mxu0 %vm10228_vm7, %v12244_v55 }
 0xf6b   : > { %12715 = vmatpush3.msra.mxu1 %v10694_v29  ;;  %12716 = vmatprep.mubr.msk.f32.mxu1 %vm10228_vm7, %v12250_v16 }
 0xf6c   : > { %12725 = vmatpush3.msra.mxu0 %v10816_v33  ;;  %12717 = vmatmul.mubr.msk.f32.vlgmr.msra.gmra.mxu1 %vm10228_vm7, %v12251_v11  ;;  %v11172_v42 = vpop.permute.xlu1 %11171 }
 0xf6d   : > { %12706 = vmatmul.mubr.msk.f32.gmra.mxu0 %vm10228_vm7, %v12245_v12  ;;  %12726 = vmatprep.subr.mxu0 %v16086_v21  ;;  %v11052_v51 = vpop.permute.xlu0 %11051 }
 0xf6e   : > { %12736 = vmatprep.subr.mxu1 %v16088_v0  ;;  %12727 = vmatpush3.msra.mxu0 %v16086_v21  ;;  %v11282_v21 = vld [vmem:[%s16565_s5] sm:$0xff] }
 0xf6f   : > { %12737 = vmatpush3.msra.mxu1 %v16088_v0  ;;  %12728 = vmatprep.subr.mxu0 %v16090_v28 }
 0xf70   : > { %12738 = vmatprep.subr.mxu1 %v10934_v17  ;;  %12719 = vmatprep.mubr.msk.f32.mxu1 %vm10228_vm7, %v12252_v34  ;;  %v11170_v48 = vpop.permute.xlu1 %11169 }
 0xf71   : > { %12729 = vmatpush3.msra.mxu0 %v16090_v28  ;;  %12730 = vmatprep.mubr.msk.f32.mxu0 %vm10228_vm7, %v12258_v19  ;;  %v11048_v1 = vpop.permute.xlu0 %11047 }
 0xf72   : > { %12739 = vmatpush3.msra.mxu1 %v10934_v17  ;;  %12731 = vmatmul.mubr.msk.f32.vlgmr.msra.gmra.mxu0 %vm10228_vm7, %v12259_v53 }
 0xf73   : > { %12720 = vmatmul.mubr.msk.f32.gmra.mxu1 %vm10228_vm7, %v12253_v54  ;;  %12740 = vmatprep.subr.mxu1 %v16094_v44 }
 0xf74   : > { %12750 = vmatprep.subr.mxu0 %v11054_v6  ;;  %12741 = vmatpush3.msra.mxu1 %v16094_v44  ;;  %v11168_v59 = vpop.permute.xlu1 %11167 }
 0xf75   : > { %12751 = vmatpush3.msra.mxu0 %v11054_v6  ;;  %12742 = vmatprep.subr.mxu1 %v16102_v26  ;;  %v11166_v24 = vpop.permute.xlu0 %11165 }
 0xf76   : > { %12752 = vmatprep.subr.mxu0 %v11052_v51  ;;  %12733 = vmatprep.mubr.msk.f32.mxu0 %vm10228_vm7, %v12260_v31 }
 0xf77   : > { %12743 = vmatpush3.msra.mxu1 %v16102_v26  ;;  %12744 = vmatprep.mubr.msk.f32.mxu1 %vm10228_vm7, %v12266_v3 }
 0xf78   : > { %12753 = vmatpush3.msra.mxu0 %v11052_v51  ;;  %12745 = vmatmul.mubr.msk.f32.vlgmr.msra.gmra.mxu1 %vm10228_vm7, %v12267_v50 }
 0xf79   : > { %12734 = vmatmul.mubr.msk.f32.gmra.mxu0 %vm10228_vm7, %v12261_v41  ;;  %12754 = vmatprep.subr.mxu0 %v11050_v43 }
 0xf7a   : > { %12764 = vmatprep.subr.mxu1 %v11172_v42  ;;  %12755 = vmatpush3.msra.mxu0 %v11050_v43 }
 0xf7b   : > { %12765 = vmatpush3.msra.mxu1 %v11172_v42  ;;  %12756 = vmatprep.subr.mxu0 %v11048_v1 }
 0xf7c   : > { %12766 = vmatprep.subr.mxu1 %v11170_v48  ;;  %12747 = vmatprep.mubr.msk.f32.mxu1 %vm10228_vm7, %v12268_v39 }
 0xf7d   : > { %12757 = vmatpush3.msra.mxu0 %v11048_v1  ;;  %12758 = vmatprep.mubr.msk.f32.mxu0 %vm10228_vm7, %v12274_v14 }
 0xf7e   : > { %12767 = vmatpush3.msra.mxu1 %v11170_v48  ;;  %12759 = vmatmul.mubr.msk.f32.vlgmr.msra.gmra.mxu0 %vm10228_vm7, %v12275_v47 }
 0xf7f   : > { %12748 = vmatmul.mubr.msk.f32.gmra.mxu1 %vm10228_vm7, %v12269_v13  ;;  %12768 = vmatprep.subr.mxu1 %v11168_v59 }
 0xf80   : > { %12761 = vmatprep.mubr.msk.f32.mxu0 %vm10228_vm7, %v12276_v7  ;;  %12769 = vmatpush3.msra.mxu1 %v11168_v59 }
 0xf81   : > { %12770 = vmatprep.subr.mxu1 %v11166_v24  ;;  %12772 = vmatprep.mubr.msk.f32.mxu1 %vm10228_vm7, %v12282_v4  ;;  %v10218_v26 = vpop.permute.xlu1 %10217 }
 0xf82   : > { %12762 = vmatmul.mubr.msk.f32.gmra.mxu0 %vm10228_vm7, %v12277_v32  ;;  %12771 = vmatpush3.msra.mxu1 %v11166_v24  ;;  %v10213_v10 = vpop.permute.xlu0 %10212 }
 0xf83   : > { %12773 = vmatmul.mubr.msk.f32.vlgmr.msra.gmra.mxu1 %vm10228_vm7, %v12283_v63  ;;  %12786 = vmatprep.mubr.msk.f32.mxu0 %vm10228_vm7, %v11282_v21 }
 0xf84   : > { %12775 = vmatprep.mubr.msk.f32.mxu1 %vm10228_vm7, %v12284_v56 }
 0xf85   : > { %v10208_v55 = vpop.permute.xlu1 %10207 }
 0xf86   : > { %v10203_v11 = vpop.permute.xlu0 %10202 }
 0xf87   : > { %12776 = vmatmul.mubr.msk.f32.gmra.mxu1 %vm10228_vm7, %v12285_v15 }
 0xf88   : > { %11473 = vmatprep.mubr.f32.mxu1 %v16566_v2 }
 0xf8b   : > { %v12662_v40 = vpop.f32.mrf.mxu1 }
 0xf8c   : > { %v10327_v12 = vadd.f32 %v12662_v40, %v10208_v55  ;;  %v16567_v55 = vmov 0  }
 0xf8d   : > { %v10307_v52 = vpop.f32.mrf.mxu1 }
 0xf8e   : > { %v10326_v53 = vadd.f32 %v10307_v52, %v10203_v11 }
 0xf8f   : > { %v12665_v22 = vpop.f32.mrf.mxu1 }
 0xf90   : > { %v10329_v6 = vadd.f32 %v12665_v22, %v10218_v26 }
 0xf91   : > { %v10317_v20 = vpop.f32.mrf.mxu1 }
 0xf92   : > { %v10328_v17 = vadd.f32 %v10317_v20, %v10213_v10 }
0x101c   : > { %v12676_v61 = vpop.f32.mrf.mxu0 }
0x101d   : > { %v10449_v54 = vadd.f32 %v12676_v61, %v10327_v12  ;;  %v11289_v12 = vpop.permute.xlu1 %11288 }
0x101e   : > { %v10429_v5 = vpop.f32.mrf.mxu0 }
0x101f   : > { %v10448_v31 = vadd.f32 %v10429_v5, %v10326_v53 }
0x1020   : > { %v12690_v18 = vpop.f32.mrf.mxu1 }
0x1021   : > { %v12679_v29 = vpop.f32.mrf.mxu0  ;;  %v10567_v3 = vadd.f32 %v12690_v18, %v10449_v54 }
0x1022   : > { %v10547_v8 = vpop.f32.mrf.mxu1  ;;  %v10451_v43 = vadd.f32 %v12679_v29, %v10329_v6  ;;  %v11391_v6 = vld [vmem:[%s13109_s20 + $0x18] sm:$0xff] }
0x1023   : > { %v10439_v0 = vpop.f32.mrf.mxu0  ;;  %v10566_v39 = vadd.f32 %v10547_v8, %v10448_v31 }
0x1024   : > { %v10450_v42 = vadd.f32 %v10439_v0, %v10328_v17  ;;  %v11294_v17 = vpop.permute.xlu0 %11293 }
0x1026   : > { %v12704_v9 = vpop.f32.mrf.mxu0 }
0x1027   : > { %v12693_v28 = vpop.f32.mrf.mxu1  ;;  %v10685_v14 = vadd.f32 %v12704_v9, %v10567_v3 }
0x1028   : > { %v10665_v44 = vpop.f32.mrf.mxu0  ;;  %v10569_v51 = vadd.f32 %v12693_v28, %v10451_v43  ;;  %v16568_v43 = vld [vmem:[#allocation33_spill] sm:$0xff] }
0x1029   : > { %v10557_v45 = vpop.f32.mrf.mxu1  ;;  %v10684_v4 = vadd.f32 %v10665_v44, %v10566_v39 }
0x102a   : > { %v10568_v50 = vadd.f32 %v10557_v45, %v10450_v42 }
0x102c   : > { %v12718_v57 = vpop.f32.mrf.mxu1 }
0x102d   : > { %v12707_v27 = vpop.f32.mrf.mxu0  ;;  %v10803_v32 = vadd.f32 %v12718_v57, %v10685_v14  ;;  %v11399_v14 = vld [vmem:[#allocation2 + $0x38] sm:$0xff] }
0x102e   : > { %v10783_v35 = vpop.f32.mrf.mxu1  ;;  %v10687_v41 = vadd.f32 %v12707_v27, %v10569_v51 }
0x102f   : > { %v10675_v37 = vpop.f32.mrf.mxu0  ;;  %v10802_v21 = vadd.f32 %v10783_v35, %v10684_v4  ;;  %v11400_v4 = vld [vmem:[#allocation2 + $0x40] sm:$0xff] }
0x1030   : > { %v10686_v47 = vadd.f32 %v10675_v37, %v10568_v50 }
0x1032   : > { %v12732_v25 = vpop.f32.mrf.mxu0 }
0x1033   : > { %v12721_v46 = vpop.f32.mrf.mxu1  ;;  %v10921_v40 = vadd.f32 %v12732_v25, %v10803_v32 }
0x1034   : > { %v10901_v30 = vpop.f32.mrf.mxu0  ;;  %v10805_v13 = vadd.f32 %v12721_v46, %v10687_v41 }
0x1035   : > { %v10793_v58 = vpop.f32.mrf.mxu1  ;;  %v10920_v5 = vadd.f32 %v10901_v30, %v10802_v21  ;;  %v11388_v30 = vld [vmem:[%s13109_s20] sm:$0xff] }
0x1036   : > { %v10804_v24 = vadd.f32 %v10793_v58, %v10686_v47 }
0x1038   : > { %v12746_v33 = vpop.f32.mrf.mxu1 }
0x1039   : > { %v12735_v16 = vpop.f32.mrf.mxu0  ;;  %v11039_v18 = vadd.f32 %v12746_v33, %v10921_v40  ;;  %v932_v33 = vld [vmem:[%s13119_s4] sm:$0x1] }
0x103a   : > { %v11019_v19 = vpop.f32.mrf.mxu1  ;;  %v10923_v63 = vadd.f32 %v12735_v16, %v10805_v13  ;;  %vm11379_vm10 = vcmp.gt.f32.partialorder %v932_v33, 0.5  ;;  %v11401_v13 = vld [vmem:[#allocation2 + $0x48] sm:$0xff] }
0x103b   : > { %v10911_v34 = vpop.f32.mrf.mxu0  ;;  %v11038_v9 = vadd.f32 %v11019_v19, %v10920_v5  ;;  %v11380_v16 = vsel %vm11379_vm10, 1, %v16567_v55 }
0x103c   : > { %v10922_v52 = vadd.f32 %v10911_v34, %v10804_v24  ;;  %v16569_v34 = vsub.s32 0, %v16568_v43 }
0x103e   : > { %v12760_v48 = vpop.f32.mrf.mxu0  ;;  %v11384_v19 = vrot.slane %v11380_v16, %v16569_v34 }
0x103f   : > { %v12749_v1 = vpop.f32.mrf.mxu1  ;;  %v11157_v28 = vadd.f32 %v12760_v48, %v11039_v18 }
0x1040   : > { %v11137_v59 = vpop.f32.mrf.mxu0  ;;  %v11041_v22 = vadd.f32 %v12749_v1, %v10923_v63  ;;  %vm11385_vm1 = vcmp.eq.s32.totalorder %v11384_v19, 1  ;;  %v11394_v63 = vld [vmem:[#allocation2 + $0x8] sm:$0xff] }
0x1041   : > { %v11029_v7 = vpop.f32.mrf.mxu1  ;;  %v11156_v27 = vadd.f32 %v11137_v59, %v11038_v9  ;;  %v11397_v9 = vld [vmem:[#allocation2 + $0x20] sm:$0xff] }
0x1042   : > { %v12763_v56 = vpop.f32.mrf.mxu0  ;;  %v11040_v29 = vadd.f32 %v11029_v7, %v10922_v52  ;;  %v11398_v7 = vld [vmem:[#allocation2 + $0x30] sm:$0xff]  ;;  %v11393_v52 = vld [vmem:[#allocation2] sm:$0xff] }
0x1043   : > { %v12774_v15 = vpop.f32.mrf.mxu1  ;;  %v11159_v0 = vadd.f32 %v12763_v56, %v11041_v22  ;;  %v11396_v56 = vld [vmem:[#allocation2 + $0x18] sm:$0xff]  ;;  %v11395_v22 = vld [vmem:[#allocation2 + $0x10] sm:$0xff] }
0x1044   : > { %v11147_v61 = vpop.f32.mrf.mxu0  ;;  %v11275_v37 = vadd.f32 %v12774_v15, %v11157_v28 }
0x1045   : > { %v11255_v20 = vpop.f32.mrf.mxu1  ;;  %v11158_v45 = vadd.f32 %v11147_v61, %v11040_v29  ;;  %v11402_v29 = vld [vmem:[#allocation2 + $0x50] sm:$0xff] }
0x1046   : > { %v11274_v26 = vadd.f32 %v11255_v20, %v11156_v27  ;;  %v11279_v10 = vadd.f32 %v11275_v37, %v16034_v38  ;;  %v11390_v38 = vld [vmem:[%s13109_s20 + $0x10] sm:$0xff] }
0x1047   : > { %v12777_v8 = vpop.f32.mrf.mxu1 }
0x1048   : > { %v11277_v44 = vadd.f32 %v12777_v8, %v11159_v0  ;;  %v11278_v58 = vadd.f32 %v11274_v26, %v16037_v49  ;;  %v11392_v49 = vld [vmem:[%s13109_s20 + $0x20] sm:$0xff] }
0x1049   : > { %v11265_v57 = vpop.f32.mrf.mxu1  ;;  %v11638_v0 = vld [vmem:[%s16570_s1] sm:$0xff] }
0x104a   : > { %v11281_v35 = vadd.f32 %v11277_v44, %v16029_v36  ;;  %v11276_v25 = vadd.f32 %v11265_v57, %v11158_v45  ;;  %v11283_v36 = vld [vmem:[%s16565_s5 + $0x8] sm:$0xff]  ;;  %v11643_v44 = vpop.permute.xlu1 %11642 }
0x104c   : > { %v11280_v46 = vadd.f32 %v11276_v25, %v16031_v60  ;;  %12778 = vmatprep.subr.mxu0 %v11281_v35  ;;  %v11389_v60 = vld [vmem:[%s13109_s20 + $0x8] sm:$0xff] }
0x104d   : > { %12779 = vmatpush3.msra.mxu0 %v11281_v35  ;;  %11439 = vmatprep.subr.mxu1 %v11389_v60 }
0x104e   : > { %12780 = vmatprep.subr.mxu0 %v11280_v46  ;;  %11440 = vmatpush1.msra.mxu1 %v11388_v30 }
0x104f   : > { %12781 = vmatpush3.msra.mxu0 %v11280_v46  ;;  %12789 = vmatprep.subr.mxu1 %v11392_v49 }
0x1050   : > { %12782 = vmatprep.subr.mxu0 %v11279_v10 }
0x1051   : > { %12783 = vmatpush3.msra.mxu0 %v11279_v10 }
0x1052   : > { %12784 = vmatprep.subr.mxu0 %v11278_v58 }
0x1053   : > { %12785 = vmatpush3.msra.mxu0 %v11278_v58 }
0x1054   : > { %12787 = vmatmul.mubr.msk.f32.vlgmr.msra.gmra.mxu0 %vm10228_vm7, %v11283_v36  ;;  %11516 = vmatprep.subr.mxu0 %v11391_v6 }
0x1055   : > { %11550 = vmatprep.mubr.f32.mxu0 %v16566_v2  ;;  %11517 = vmatpush1.msra.mxu0 %v11390_v38 }
0x1114   : > { %v12788_v11 = vpop.f32.mrf.mxu0 }
0x1115   : > { %v11374_v54 = vadd.f32 %v12788_v11, %v11294_v17 }
0x1116   : > { %v11368_v53 = vpop.f32.mrf.mxu0 }
0x1117   : > { %v11369_v42 = vadd.f32 %v11368_v53, %v11289_v12  ;;  %v11378_v31 = vadd.f32 %v11374_v54, %v16014_v62 }
0x1119   : > { %v11377_v51 = vadd.f32 %v11369_v42, %v16022_v23  ;;  %v11387_v50 = vsel %vm11385_vm1, %v11378_v31, 0.0 }
0x111b   : > { %v11386_v3 = vsel %vm11385_vm1, %v11377_v51, 0.0 }
0x111c   : > { %12292 = vmatmul.mubr.msk.f32.vlgmr.msra.gmra.mxu1 %vm952_vm0, %v11386_v3  ;;  %12294 = vmatmul.mubr.msk.f32.vlgmr.msra.gmra.mxu0 %vm952_vm0, %v11386_v3 }
0x111d   : > { %11479 = vmatprep.mubr.f32.mxu1 %v16566_v2  ;;  %11556 = vmatprep.mubr.f32.mxu0 %v16566_v2 }
0x111e   : > { %12790 = vmatpush3.msra.mxu1 %v11392_v49 }
0x1120   : > { %12293 = vmatmul.mubr.msk.f32.gmra.mxu1 %vm952_vm0, %v11387_v50  ;;  %12295 = vmatmul.mubr.msk.f32.gmra.mxu0 %vm952_vm0, %v11387_v50 }
0x1121   : > { %12791 = vmatprep.mubr.msk.f32.mxu1 %vm952_vm0, %v11386_v3  ;;  %11712 = vmatprep.mubr.f32.mxu0 %v16566_v2 }
0x1124   : > { %12792 = vmatmul.mubr.msk.f32.vlgmr.msra.gmra.mxu1 %vm952_vm0, %v11387_v50 }
0x1125   : > { %11783 = vmatprep.mubr.f32.mxu1 %v16566_v2 }
0x11dc   : > { %v11475_v62 = vpop.f32.mrf.mxu1  ;;  %v11552_v23 = vpop.f32.mrf.mxu0 }
0x11dd   : > { %v11476_v5 = vadd.f32 %v11475_v62, %v11393_v52  ;;  %v11553_v18 = vadd.f32 %v11552_v23, %v11395_v22  ;;  %v11890_v62 = vld [vmem:[#allocation4] sm:$0xff] }
0x11de   : > { %v11477_v41 = vpop.f32.mrf.mxu1  ;;  %v11554_v48 = vpop.f32.mrf.mxu0 }
0x11df   : > { %v11478_v61 = vadd.f32 %v11477_v41, %v11394_v63  ;;  %v11555_v20 = vadd.f32 %v11554_v48, %v11396_v56  ;;  %v11892_v48 = vld [vmem:[#allocation4 + $0x10] sm:$0xff] }
0x11e0   : > { %v11481_v1 = vpop.f32.mrf.mxu1  ;;  %v11558_v39 = vpop.f32.mrf.mxu0 }
0x11e1   : > { %v11482_v15 = vadd.f32 %v11481_v1, %v11398_v7  ;;  %v11559_v21 = vadd.f32 %v11558_v39, %v11400_v4 }
0x11e2   : > { %v11483_v47 = vpop.f32.mrf.mxu1  ;;  %v11560_v59 = vpop.f32.mrf.mxu0 }
0x11e3   : > { %v11484_v32 = vadd.f32 %v11483_v47, %v11399_v14  ;;  %v11561_v24 = vadd.f32 %v11560_v59, %v11401_v13  ;;  %v11891_v14 = vld [vmem:[#allocation4 + $0x8] sm:$0xff]  ;;  %v11893_v59 = vld [vmem:[#allocation4 + $0x18] sm:$0xff] }
0x11e4   : > { %v12793_v40 = vpop.f32.mrf.mxu1 }
0x11e5   : > { %11676 = vmatprep.subr.mxu0 %v11484_v32  ;;  %11747 = vmatprep.subr.mxu1 %v11561_v24  ;;  %v11635_v28 = vadd.f32 %v12793_v40, %v11402_v29  ;;  %v11894_v32 = vld [vmem:[#allocation4 + $0x20] sm:$0xff] }
0x11e6   : > { %11677 = vmatpush1.msra.mxu0 %v11482_v15  ;;  %11748 = vmatpush1.msra.mxu1 %v11559_v21  ;;  %v11629_v8 = vpop.f32.mrf.mxu1 }
0x11e7   : > { %11678 = vmatprep.subr.mxu0 %v11478_v61  ;;  %11749 = vmatprep.subr.mxu1 %v11555_v20  ;;  %v11630_v45 = vadd.f32 %v11629_v8, %v11397_v9 }
0x11e8   : > { %11679 = vmatpush1.msra.mxu0 %v11476_v5  ;;  %11750 = vmatpush1.msra.mxu1 %v11553_v18 }
0x11e9   : > { %12298 = vmatmul.mubr.msk.f32.vlgmr.msra.gmra.mxu0 %vm1283_vm6, %v11638_v0  ;;  %12299 = vmatmul.mubr.msk.f32.vlgmr.msra.gmra.mxu1 %vm1283_vm6, %v11638_v0 }
0x11ea   : > { %12794 = vmatprep.subr.mxu0 %v16566_v2  ;;  %12798 = vmatprep.mubr.msk.f32.mxu0 %vm16502_vm15, %v16566_v2 }
0x11eb   : > { %12795 = vmatpush3.msra.mxu0 %v11635_v28 }
0x11ec   : > { %12796 = vmatprep.subr.mxu0 %v16566_v2 }
0x11ed   : > { %12797 = vmatpush3.msra.mxu0 %v11630_v45 }
0x11ee   : > { %12799 = vmatmul.mubr.msk.f32.vlgmr.msra.gmra.mxu0 %vm1283_vm6, %v11638_v0 }
0x12a9   : > { %v11714_v57 = vpop.f32.mrf.mxu0  ;;  %v11785_v27 = vpop.f32.mrf.mxu1 }
0x12aa   : > { %v11715_v37 = vadd.f32 %v11714_v57, %v11643_v44  ;;  %v11786_v35 = vadd.f32 %v11785_v27, %v11643_v44 }
0x12ab   : > { %v11716_v25 = vpop.f32.mrf.mxu0  ;;  %v11787_v26 = vpop.f32.mrf.mxu1 }
0x12ac   : > { %v11860_v46 = vsub.f32 0.0, %v11715_v37  ;;  %v11862_v10 = vsub.f32 0.0, %v11786_v35  ;;  %v11717_v58 = vadd.f32 %v11716_v25, %v11643_v44  ;;  %v11788_v36 = vadd.f32 %v11787_v26, %v11643_v44 }
0x12ae   : > { %v11865_v60 = vmul.f32 1.442695, %v11860_v46  ;;  %v11869_v30 = vmul.f32 1.442695, %v11862_v10  ;;  %v11861_v6 = vsub.f32 0.0, %v11717_v58  ;;  %v11863_v38 = vsub.f32 0.0, %v11788_v36  ;;  %v11856_v49 = vpop.f32.mrf.mxu0 }
0x12af   : > { %v11857_v2 = vadd.f32 %v11856_v49, %v11643_v44 }
0x12b0   : > { %12870 = vpow2.f32 %v11865_v60  ;;  %v11867_v33 = vmul.f32 1.442695, %v11861_v6  ;;  %v11871_v55 = vmul.f32 1.442695, %v11863_v38  ;;  %v12800_v16 = vpop.f32.mrf.mxu0 }
0x12b1   : > { %12872 = vpow2.f32 %v11869_v30  ;;  %v11864_v11 = vsub.f32 0.0, %v11857_v2 }
0x12b2   : > { %12874 = vpow2.f32 %v11867_v33 }
0x12b3   : > { %12876 = vpow2.f32 %v11871_v55  ;;  %v11873_v12 = vmul.f32 1.442695, %v11864_v11 }
0x12b5   : > { %12878 = vpow2.f32 %v11873_v12 }
0x12bd   : > { %v12871_v17 = vpop.eup %12870 }
0x12be   : > { %v12873_v43 = vpop.eup %12872  ;;  %v11875_v34 = vadd.f32 1.0, %v12871_v17 }
0x12bf   : > { %v12875_v19 = vpop.eup %12874  ;;  %v11877_v53 = vadd.f32 1.0, %v12873_v43 }
0x12c0   : > { %v12877_v54 = vpop.eup %12876  ;;  %12880 = vrcp.f32 %v11875_v34  ;;  %v11876_v42 = vadd.f32 1.0, %v12875_v19 }
0x12c1   : > { %12882 = vrcp.f32 %v11877_v53  ;;  %v11878_v51 = vadd.f32 1.0, %v12877_v54 }
0x12c2   : > { %v12879_v31 = vpop.eup %12878  ;;  %12884 = vrcp.f32 %v11876_v42 }
0x12c3   : > { %12886 = vrcp.f32 %v11878_v51  ;;  %v11879_v3 = vadd.f32 1.0, %v12879_v31 }
0x12c5   : > { %12888 = vrcp.f32 %v11879_v3 }
0x12cd   : > { %v12881_v50 = vpop.eup %12880 }
0x12ce   : > { %v12883_v23 = vpop.eup %12882  ;;  %v11895_v41 = vmul.f32 %v12881_v50, %v11890_v62 }
0x12cf   : > { %v12885_v1 = vpop.eup %12884  ;;  %v11897_v39 = vmul.f32 %v12883_v23, %v11892_v48 }
0x12d0   : > { %v12887_v47 = vpop.eup %12886  ;;  %11900 = vst [vmem:[%s930_s7] sm:$0xff] %v11895_v41  ;;  %v11896_v13 = vmul.f32 %v12885_v1, %v11891_v14 }
0x12d1   : > { %11902 = vst [vmem:[%s930_s7 + $0x10] sm:$0xff] %v11897_v39  ;;  %v11898_v7 = vmul.f32 %v12887_v47, %v11893_v59 }
0x12d2   : > { %v12889_v4 = vpop.eup %12888  ;;  %11901 = vst [vmem:[%s930_s7 + $0x8] sm:$0xff] %v11896_v13 }
0x12d3   : > { %11903 = vst [vmem:[%s930_s7 + $0x18] sm:$0xff] %v11898_v7  ;;  %v11899_v24 = vmul.f32 %v12889_v4, %v11894_v32 }
0x12d5   : > { %11904 = vst.msk [vmem:[%s930_s7 + $0x20] sm:$0xff] %vm7609_vm12, %v11899_v24 }
0x12d6 PF: > { %s71_s15 = sadd.s32 1, %s12906_s15  }
0x12d7   : > { %p68_p4 = scmp.ge.s32.totalorder %s71_s15, 4  }
0x12d9   :  { %70 = sbr.rel (!%p68_p4) target bundleno = 47 (0x2f), region = 232 }

</bundles_post_ra>
